<compile_context>
chip_gen: v5e
topology: v5e:2x2
jax: 0.10.0
libtpu: 0.0.40
codegen_flags: <defaults>
</compile_context>

<pallas_src>
import functools

import jax
import jax.numpy as jnp
from jax.experimental import pallas as pl
from jax.experimental.pallas import tpu as pltpu

BN_EPS = 1e-5


# ----------------------------- Pallas kernel: fused upsample + conv + (folded) BN + ReLU -----------------------------
def upconv_fused_kernel(x_ref, m_ref, ap_ref, w_ref, b_ref, o_ref, *, tile_h, w_out, cin, cout):
    # x_ref : (1, H_in, W_in*Cin)          low-res image, (w, c) packed on the lane axis
    # m_ref : (W_in*Cin, (W_out+2)*Cin)    kron(Bpad^T, I_Cin): width upsample + conv column-pad
    # ap_ref: (1, TILE_H+2, H_in)          per-row-tile rows of Apad: height upsample + conv row-pad (halo)
    # w_ref : (9*Cin, Cout)                conv weights with BN folded in, (dy, dx, c) ordering
    # b_ref : (1, Cout)                    conv bias with BN folded in
    # o_ref : (1, Cout, TILE_H*W_out)      channel-outer output tile, lane-dense flattened rows
    thp = tile_h + 2
    wp = w_out + 2

    # 1) height upsample (+ zero conv-pad rows) for this row tile: one matmul
    r1 = jnp.dot(ap_ref[0], x_ref[0], preferred_element_type=jnp.float32)        # (thp, W_in*Cin)

    # 2) width upsample (+ zero conv-pad cols), channels stay packed on the lane axis: one matmul
    z = jnp.dot(r1, m_ref[...], preferred_element_type=jnp.float32)              # (thp, wp*cin)
    z = z.reshape(thp, wp, cin)                                                   # (thp, wp, cin)

    # 3) im2col over the 3x3 window -> single conv matmul (K = 9*Cin)
    cols = []
    for dy in range(3):
        for dx in range(3):
            cols.append(z[dy:dy + tile_h, dx:dx + w_out, :].reshape(tile_h * w_out, cin))
    patches = jnp.concatenate(cols, axis=1)                                        # (tile_h*w_out, 9*cin)
    acc = jnp.dot(patches, w_ref[...], preferred_element_type=jnp.float32)         # (tile_h*w_out, cout)

    # 4) folded (conv bias + BN) affine, then ReLU
    y = jnp.maximum(acc + b_ref[...], 0.0)

    # 5) lane-dense, NCHW-compatible store: (Cout, tile_h*w_out)
    o_ref[...] = y.T.reshape(1, cout, tile_h * w_out).astype(o_ref.dtype)


# ----------------------------- wrapper helpers -----------------------------
def _interp_matrix(in_size, out_size):
    """Dense (out_size, in_size) bilinear interpolation matrix, align_corners=True."""
    if out_size > 1:
        src = jnp.arange(out_size, dtype=jnp.float32) * ((in_size - 1) / (out_size - 1))
    else:
        src = jnp.zeros((out_size,), jnp.float32)
    i0 = jnp.clip(jnp.floor(src).astype(jnp.int32), 0, in_size - 1)
    i1 = jnp.clip(i0 + 1, 0, in_size - 1)
    frac = src - i0.astype(jnp.float32)
    eye = jnp.eye(in_size, dtype=jnp.float32)
    return (1.0 - frac)[:, None] * eye[i0] + frac[:, None] * eye[i1]


def _pick_tile_h(h_out, w_out):
    """Largest row tile <= 16 that divides H_out and keeps the output block lane extent a
    multiple of 128 (unmasked full-lane stores); falls back to the whole image."""
    for th in range(min(16, h_out), 0, -1):
        if h_out % th == 0 and (th * w_out) % 128 == 0:
            return th
    return h_out


# ----------------------------- full Upconv forward -----------------------------
@functools.partial(jax.jit, static_argnames=("scale",))
def upconv_forward(x_nchw, params, scale=2):
    n, cin, h_in, w_in = x_nchw.shape
    h_out, w_out = h_in * scale, w_in * scale
    cout = params["w"].shape[-1]

    tile_h = _pick_tile_h(h_out, w_out)
    nrt = h_out // tile_h
    thp = tile_h + 2
    wp = w_out + 2

    # --- fold BatchNorm (running stats) + conv bias into the conv weights (constant fold of params) ---
    s = params["gamma"] * jax.lax.rsqrt(params["var"] + BN_EPS)                    # (Cout,)
    w_fold = (params["w"] * s).astype(jnp.float32)                                 # (3,3,Cin,Cout)
    b_fold = ((params["b"] - params["mean"]) * s + params["beta"]).astype(jnp.float32)
    wmat = w_fold.reshape(9 * cin, cout)                                           # (dy, dx, c) row order
    bvec = b_fold.reshape(1, cout)

    # --- bilinear upsample (align_corners=True) + conv zero-padding as constant matrices ---
    a_pad = jnp.pad(_interp_matrix(h_in, h_out), ((1, 1), (0, 0)))                 # (H_out+2, H_in)
    b_pad = jnp.pad(_interp_matrix(w_in, w_out), ((1, 1), (0, 0)))                 # (W_out+2, W_in)
    # overlapping per-tile rows of a_pad (1-row conv halo on each side)
    ap_tiles = jnp.stack([a_pad[r * tile_h:r * tile_h + thp] for r in range(nrt)])  # (nrt, thp, H_in)
    # width operator acting on the (w, c)-packed lane axis: kron(Bpad^T, I_Cin)
    m_wide = jnp.kron(b_pad.T, jnp.eye(cin, dtype=jnp.float32))                    # (W_in*Cin, Wp*Cin)

    # --- low-res input in (row, (w, c)) packing.  This small transpose is on the low-res input only;
    #     the full-size output is written directly in NCHW-flattened form by the kernel. ---
    x3 = jnp.transpose(x_nchw, (0, 2, 3, 1)).reshape(n, h_in, w_in * cin).astype(jnp.float32)

    flops = n * nrt * 2 * (thp * h_in * (w_in * cin)
                           + thp * (w_in * cin) * (wp * cin)
                           + (tile_h * w_out) * (9 * cin) * cout)
    bytes_accessed = 4 * (x3.size + m_wide.size + ap_tiles.size + wmat.size + bvec.size
                          + n * cout * h_out * w_out)

    out_flat = pl.pallas_call(
        functools.partial(upconv_fused_kernel, tile_h=tile_h, w_out=w_out, cin=cin, cout=cout),
        out_shape=jax.ShapeDtypeStruct((n, cout, h_out * w_out), jnp.float32),
        grid_spec=pltpu.PrefetchScalarGridSpec(
            num_scalar_prefetch=0,
            grid=(n, nrt),
            in_specs=[
                pl.BlockSpec((1, h_in, w_in * cin), lambda i, r: (i, 0, 0)),   # low-res image (reused over r)
                pl.BlockSpec((w_in * cin, wp * cin), lambda i, r: (0, 0)),     # width upsample+pad operator
                pl.BlockSpec((1, thp, h_in), lambda i, r: (r, 0, 0)),          # per-tile height rows (with halo)
                pl.BlockSpec((9 * cin, cout), lambda i, r: (0, 0)),            # folded conv weights
                pl.BlockSpec((1, cout), lambda i, r: (0, 0)),                  # folded bias
            ],
            out_specs=pl.BlockSpec((1, cout, tile_h * w_out), lambda i, r: (i, 0, r)),
        ),
        compiler_params=pltpu.CompilerParams(
            dimension_semantics=("parallel", "parallel"),
            vmem_limit_bytes=48 * 1024 * 1024,
        ),
        cost_estimate=pl.CostEstimate(flops=flops, transcendentals=0, bytes_accessed=bytes_accessed),
    )(x3, m_wide, ap_tiles, wmat, bvec)

    # pure metadata reshape back to NCHW (no transpose, no extra HBM traffic)
    return out_flat.reshape(n, cout, h_out, w_out)


# ----------------------------- pure-JAX reference (PyTorch semantics) -----------------------------
def _bilinear_upsample_nchw_ref(x, scale=2):
    n, c, h, w = x.shape
    ho, wo = h * scale, w * scale
    ys = jnp.arange(ho, dtype=jnp.float32) * ((h - 1) / (ho - 1)) if ho > 1 else jnp.zeros((ho,), jnp.float32)
    xs = jnp.arange(wo, dtype=jnp.float32) * ((w - 1) / (wo - 1)) if wo > 1 else jnp.zeros((wo,), jnp.float32)
    y0 = jnp.clip(jnp.floor(ys).astype(jnp.int32), 0, h - 1)
    x0 = jnp.clip(jnp.floor(xs).astype(jnp.int32), 0, w - 1)
    y1 = jnp.clip(y0 + 1, 0, h - 1)
    x1 = jnp.clip(x0 + 1, 0, w - 1)
    wy = (ys - y0.astype(jnp.float32))[:, None]
    wx = (xs - x0.astype(jnp.float32))[None, :]
    top = jnp.take(x, y0, axis=2)
    bot = jnp.take(x, y1, axis=2)
    tl = jnp.take(top, x0, axis=3)
    tr = jnp.take(top, x1, axis=3)
    bl = jnp.take(bot, x0, axis=3)
    br = jnp.take(bot, x1, axis=3)
    t = tl * (1.0 - wx) + tr * wx
    b = bl * (1.0 - wx) + br * wx
    return t * (1.0 - wy) + b * wy


def upconv_reference(x, params, scale=2):
    xu = _bilinear_upsample_nchw_ref(x, scale)
    y = jax.lax.conv_general_dilated(
        xu, params["w"], window_strides=(1, 1), padding=((1, 1), (1, 1)),
        dimension_numbers=("NCHW", "HWIO", "NCHW"),
        precision=jax.lax.Precision.HIGHEST,
    ) + params["b"][None, :, None, None]
    s = params["gamma"] * jax.lax.rsqrt(params["var"] + BN_EPS)
    y = (y - params["mean"][None, :, None, None]) * s[None, :, None, None] + params["beta"][None, :, None, None]
    return jnp.maximum(y, 0.0)


def init_params(key, in_features, out_features):
    k1, k2, k3, k4, k5, k6 = jax.random.split(key, 6)
    # conv weight in (kh, kw, Cin, Cout) layout (PyTorch (Cout, Cin, kh, kw) transposed (2,3,1,0))
    w = jax.random.normal(k1, (3, 3, in_features, out_features), jnp.float32) * 0.1
    b = jax.random.normal(k2, (out_features,), jnp.float32) * 0.05
    gamma = 1.0 + 0.1 * jax.random.normal(k3, (out_features,), jnp.float32)
    beta = 0.05 * jax.random.normal(k4, (out_features,), jnp.float32)
    mean = 0.05 * jax.random.normal(k5, (out_features,), jnp.float32)
    var = 1.0 + 0.1 * jax.random.uniform(k6, (out_features,), jnp.float32)
    return {"w": w, "b": b, "gamma": gamma, "beta": beta, "mean": mean, "var": var}


if __name__ == "__main__":
    key = jax.random.PRNGKey(0)
    k_x, k_p = jax.random.split(key)

    N, Cin, H, W = 2, 4, 16, 16
    Cout = 8

    x = jax.random.normal(k_x, (N, Cin, H, W), jnp.float32)
    params = init_params(k_p, Cin, Cout)

    out = upconv_forward(x, params, scale=2)
    out = jax.block_until_ready(out)

    assert out.shape == (N, Cout, 2 * H, 2 * W), out.shape
    assert bool(jnp.all(jnp.isfinite(out)))
    assert bool(jnp.all(out >= 0.0))  # ReLU output

    ref = upconv_reference(x, params, scale=2)
    max_err = float(jnp.max(jnp.abs(out - ref)))
    assert max_err < 5e-2, f"max abs error vs reference: {max_err}"

    print("KERNEL_OK")
</pallas_src>

<mosaic_0001>
module attributes {stable_mosaic.version = 11 : i64} {
  func.func @upconv_fused_kernel(%arg0: i32, %arg1: i32, %arg2: memref<1x16x64xf32, #tpu.memory_space<vmem>>, %arg3: memref<64x136xf32, #tpu.memory_space<vmem>>, %arg4: memref<1x18x16xf32, #tpu.memory_space<vmem>>, %arg5: memref<36x8xf32, #tpu.memory_space<vmem>>, %arg6: memref<1x8xf32, #tpu.memory_space<vmem>>, %arg7: memref<1x8x512xf32, #tpu.memory_space<vmem>>) attributes {dimension_semantics = [#tpu.dimension_semantics<parallel>, #tpu.dimension_semantics<parallel>], iteration_bounds = array<i64: 2, 2>, scalar_prefetch = 0 : i64, scratch_operands = 0 : i64, tpu.core_type = #tpu.core_type<tc>, window_params = [{transform_indices = @transform_0, window_bounds = array<i64: 1, 16, 64>}, {pipeline_mode = #tpu.pipeline_mode<synchronous>, transform_indices = @transform_1, window_bounds = array<i64: 64, 136>}, {transform_indices = @transform_2, window_bounds = array<i64: 1, 18, 16>}, {pipeline_mode = #tpu.pipeline_mode<synchronous>, transform_indices = @transform_3, window_bounds = array<i64: 36, 8>}, {pipeline_mode = #tpu.pipeline_mode<synchronous>, transform_indices = @transform_4, window_bounds = array<i64: 1, 8>}, {transform_indices = @transform_5, window_bounds = array<i64: 1, 8, 512>}]} {
    %c0 = arith.constant 0 : index
    %c0_0 = arith.constant 0 : index
    %c0_1 = arith.constant 0 : index
    %0 = vector.load %arg4[%c0, %c0_0, %c0_1] : memref<1x18x16xf32, #tpu.memory_space<vmem>>, vector<1x18x16xf32>
    %1 = vector.shape_cast %0 : vector<1x18x16xf32> to vector<18x16xf32>
    %c0_2 = arith.constant 0 : index
    %c0_3 = arith.constant 0 : index
    %c0_4 = arith.constant 0 : index
    %2 = vector.load %arg2[%c0_2, %c0_3, %c0_4] : memref<1x16x64xf32, #tpu.memory_space<vmem>>, vector<1x16x64xf32>
    %3 = vector.shape_cast %2 : vector<1x16x64xf32> to vector<16x64xf32>
    %cst = arith.constant dense<0.000000e+00> : vector<18x64xf32>
    %4 = tpu.matmul %1, %3, %cst {dimension_numbers = #tpu.dot_dimension_numbers<[1], [0], [0], [1], [0, 0, 1, 1], [], []>} : vector<18x16xf32>, vector<16x64xf32>, vector<18x64xf32> -> vector<18x64xf32>
    %c0_5 = arith.constant 0 : index
    %c0_6 = arith.constant 0 : index
    %5 = vector.load %arg3[%c0_5, %c0_6] : memref<64x136xf32, #tpu.memory_space<vmem>>, vector<64x136xf32>
    %cst_7 = arith.constant dense<0.000000e+00> : vector<18x136xf32>
    %6 = tpu.matmul %4, %5, %cst_7 {dimension_numbers = #tpu.dot_dimension_numbers<[1], [0], [0], [1], [0, 0, 1, 1], [], []>} : vector<18x64xf32>, vector<64x136xf32>, vector<18x136xf32> -> vector<18x136xf32>
    %7 = vector.shape_cast %6 : vector<18x136xf32> to vector<18x34x4xf32>
    %8 = vector.extract_strided_slice %7 {offsets = [0, 0, 0], sizes = [16, 32, 4], strides = [1, 1, 1]} : vector<18x34x4xf32> to vector<16x32x4xf32>
    %9 = vector.shape_cast %8 : vector<16x32x4xf32> to vector<512x4xf32>
    %10 = vector.extract_strided_slice %7 {offsets = [0, 1, 0], sizes = [16, 32, 4], strides = [1, 1, 1]} : vector<18x34x4xf32> to vector<16x32x4xf32>
    %11 = vector.shape_cast %10 : vector<16x32x4xf32> to vector<512x4xf32>
    %12 = vector.extract_strided_slice %7 {offsets = [0, 2, 0], sizes = [16, 32, 4], strides = [1, 1, 1]} : vector<18x34x4xf32> to vector<16x32x4xf32>
    %13 = vector.shape_cast %12 : vector<16x32x4xf32> to vector<512x4xf32>
    %14 = vector.extract_strided_slice %7 {offsets = [1, 0, 0], sizes = [16, 32, 4], strides = [1, 1, 1]} : vector<18x34x4xf32> to vector<16x32x4xf32>
    %15 = vector.shape_cast %14 : vector<16x32x4xf32> to vector<512x4xf32>
    %16 = vector.extract_strided_slice %7 {offsets = [1, 1, 0], sizes = [16, 32, 4], strides = [1, 1, 1]} : vector<18x34x4xf32> to vector<16x32x4xf32>
    %17 = vector.shape_cast %16 : vector<16x32x4xf32> to vector<512x4xf32>
    %18 = vector.extract_strided_slice %7 {offsets = [1, 2, 0], sizes = [16, 32, 4], strides = [1, 1, 1]} : vector<18x34x4xf32> to vector<16x32x4xf32>
    %19 = vector.shape_cast %18 : vector<16x32x4xf32> to vector<512x4xf32>
    %20 = vector.extract_strided_slice %7 {offsets = [2, 0, 0], sizes = [16, 32, 4], strides = [1, 1, 1]} : vector<18x34x4xf32> to vector<16x32x4xf32>
    %21 = vector.shape_cast %20 : vector<16x32x4xf32> to vector<512x4xf32>
    %22 = vector.extract_strided_slice %7 {offsets = [2, 1, 0], sizes = [16, 32, 4], strides = [1, 1, 1]} : vector<18x34x4xf32> to vector<16x32x4xf32>
    %23 = vector.shape_cast %22 : vector<16x32x4xf32> to vector<512x4xf32>
    %24 = vector.extract_strided_slice %7 {offsets = [2, 2, 0], sizes = [16, 32, 4], strides = [1, 1, 1]} : vector<18x34x4xf32> to vector<16x32x4xf32>
    %25 = vector.shape_cast %24 : vector<16x32x4xf32> to vector<512x4xf32>
    %26 = tpu.concatenate %9, %11, %13, %15, %17, %19, %21, %23, %25 in 1 : vector<512x4xf32>, vector<512x4xf32>, vector<512x4xf32>, vector<512x4xf32>, vector<512x4xf32>, vector<512x4xf32>, vector<512x4xf32>, vector<512x4xf32>, vector<512x4xf32> -> vector<512x36xf32>
    %c0_8 = arith.constant 0 : index
    %c0_9 = arith.constant 0 : index
    %27 = vector.load %arg5[%c0_8, %c0_9] : memref<36x8xf32, #tpu.memory_space<vmem>>, vector<36x8xf32>
    %cst_10 = arith.constant dense<0.000000e+00> : vector<512x8xf32>
    %28 = tpu.matmul %26, %27, %cst_10 {dimension_numbers = #tpu.dot_dimension_numbers<[1], [0], [0], [1], [0, 0, 1, 1], [], []>} : vector<512x36xf32>, vector<36x8xf32>, vector<512x8xf32> -> vector<512x8xf32>
    %c0_11 = arith.constant 0 : index
    %c0_12 = arith.constant 0 : index
    %29 = vector.load %arg6[%c0_11, %c0_12] : memref<1x8xf32, #tpu.memory_space<vmem>>, vector<1x8xf32>
    %30 = vector.broadcast %29 : vector<1x8xf32> to vector<512x8xf32>
    %31 = arith.addf %28, %30 : vector<512x8xf32>
    %cst_13 = arith.constant 0.000000e+00 : f32
    %32 = vector.broadcast %cst_13 : f32 to vector<512x8xf32>
    %33 = arith.maximumf %31, %32 : vector<512x8xf32>
    %34 = tpu.transpose %33, [1, 0] : vector<512x8xf32> -> vector<8x512xf32>
    %35 = vector.shape_cast %34 : vector<8x512xf32> to vector<1x8x512xf32>
    %c0_14 = arith.constant 0 : index
    %c0_15 = arith.constant 0 : index
    %c0_16 = arith.constant 0 : index
    %36 = vector.load %arg7[%c0_14, %c0_15, %c0_16] : memref<1x8x512xf32, #tpu.memory_space<vmem>>, vector<1x8x512xf32>
    tpu.vector_store %arg7[%c0_14, %c0_15, %c0_16], %35 {strides = array<i32>} : memref<1x8x512xf32, #tpu.memory_space<vmem>>, vector<1x8x512xf32>,
    return
  }
  func.func @transform_0(%arg0: i32, %arg1: i32) -> (i32, i32, i32) {
    %c0_i32 = arith.constant 0 : i32
    %c0_i32_0 = arith.constant 0 : i32
    %c0_i32_1 = arith.constant 0 : i32
    return %arg0, %c0_i32, %c0_i32_0 : i32, i32, i32
  }
  func.func @transform_1(%arg0: i32, %arg1: i32) -> (i32, i32) {
    %c0_i32 = arith.constant 0 : i32
    %c0_i32_0 = arith.constant 0 : i32
    %c0_i32_1 = arith.constant 0 : i32
    return %c0_i32, %c0_i32_0 : i32, i32
  }
  func.func @transform_2(%arg0: i32, %arg1: i32) -> (i32, i32, i32) {
    %c0_i32 = arith.constant 0 : i32
    %c0_i32_0 = arith.constant 0 : i32
    %c0_i32_1 = arith.constant 0 : i32
    return %arg1, %c0_i32, %c0_i32_0 : i32, i32, i32
  }
  func.func @transform_3(%arg0: i32, %arg1: i32) -> (i32, i32) {
    %c0_i32 = arith.constant 0 : i32
    %c0_i32_0 = arith.constant 0 : i32
    %c0_i32_1 = arith.constant 0 : i32
    return %c0_i32, %c0_i32_0 : i32, i32
  }
  func.func @transform_4(%arg0: i32, %arg1: i32) -> (i32, i32) {
    %c0_i32 = arith.constant 0 : i32
    %c0_i32_0 = arith.constant 0 : i32
    %c0_i32_1 = arith.constant 0 : i32
    return %c0_i32, %c0_i32_0 : i32, i32
  }
  func.func @transform_5(%arg0: i32, %arg1: i32) -> (i32, i32, i32) {
    %c0_i32 = arith.constant 0 : i32
    %c0_i32_0 = arith.constant 0 : i32
    return %arg0, %c0_i32, %arg1 : i32, i32, i32
  }
}

</mosaic_0001>

<bundles_post_ra>
// kernel: upconv_forward.1
= control target key start
LH: loop header
LB: loop body
LE: loop exit
PB: predicated region body
PF: predicated region fallthrough
CT: control target
= control target key end

     0   :  { %s5309_s18 = smov 0   ;;  %s5311_s19 = smov 0   ;;  %s10791_s0 = inlined_call_operand.vmem [shape: f32[2,16,64], index: 0, kind: input, shape index: {}]   ;;  %s10792_s1 = inlined_call_operand.vmem [shape: f32[64,136], index: 1, kind: input, shape index: {}]   ;;  %s10793_s2 = inlined_call_operand.vmem [shape: f32[2,18,16], index: 2, kind: input, shape index: {}]   ;;  %s10794_s3 = inlined_call_operand.vmem [shape: f32[36,8], index: 3, kind: input, shape index: {}]   ;;  %s10795_s4 = inlined_call_operand.vmem [shape: f32[1,8], index: 4, kind: input, shape index: {}]   ;;  %s10796_s5 = inlined_call_operand.vmem [shape: f32[2,8,1024], index: 5, kind: output, shape index: {}]  }
   0x1   :  { %s5313_s20 = smov 0   ;;  %s5315_s21 = smov 0  }
   0x2   :  { %s5317_s22 = smov 0  }
   0x3 LB: > { %s24_s23 = sadd.s32 1, %s5236_s20  ;;  %s27_s24 = sadd.s32 1, %s5240_s21  ;;  %s5244_s22 = sphi %s5317_s22, %s15_s22   ;;  %s5240_s21 = sphi %s5315_s21, %s12721_s21   ;;  %s5236_s20 = sphi %s5313_s20, %s12720_s20   ;;  %s5232_s19 = sphi %s5311_s19, %s12719_s19   ;;  %s5228_s18 = sphi %s5309_s18, %s12718_s18  }
   0x4   : > { %p25_p0 = scmp.ge.s32.totalorder %s24_s23, 2  ;;  %p5032_p1 = scmp.ge.s32.totalorder %s5244_s22, 1 }
   0x5   : > { %p211_p2 = scmp.lt.s32.totalorder %s5244_s22, 5 }
   0x6   : > { %s12723_s23 = smov (%p25_p0, %s24_s23), 0  ;;  %s12725_s24 = smov (!%p25_p0, %s27_s24), %s5240_s21 }
   0x7   : > { %p212_p3 = pnand %p5032_p1, %p211_p2  ;;  %p29_p4 = scmp.ge.s32.totalorder %s12725_s24, 2 }
   0x9   : > { %s12727_s24 = smov (%p29_p4, %s12725_s24), 0  ;;  %215 = sbr.rel (%p212_p3) target bundleno = 2375 (0x947), region = 40 }
   0xe   : > { %p248_p5 = scmp.lt.s32.totalorder %s5232_s19, 1  ;;  %p253_p6 = scmp.lt.s32.totalorder %s5228_s18, 1  ;;  %v323_v0 = vld [vmem:[%s10792_s1 + $0x70] sm:$0xff]  ;;  %v321_v1 = vld [vmem:[%s10792_s1 + $0x60] sm:$0xff]  ;;  %vm273_vm0 = vcmask 130048   ;;  %v324_v8 = vld [vmem:[%s10792_s1 + $0x78] sm:$0xff] }
   0xf   : > { %343 = vmatpush.msra.mxu1 %v323_v0  ;;  %v319_v2 = vld [vmem:[%s10792_s1 + $0x50] sm:$0xff]  ;;  %v317_v3 = vld [vmem:[%s10792_s1 + $0x40] sm:$0xff]  ;;  %v322_v10 = vld [vmem:[%s10792_s1 + $0x68] sm:$0xff]  ;;  %vm325_vm1 = vcmask 523264   ;;  %s5249_s8 = smov 112   ;;  %s5250_s9 = smov 108  }
  0x10   : > { %s12729_s19 = smov (!%p248_p5, %s5232_s19), 1  ;;  %v315_v6 = vld [vmem:[%s10792_s1 + $0x30] sm:$0xff]  ;;  %v313_v9 = vld [vmem:[%s10792_s1 + $0x20] sm:$0xff]  ;;  %v320_v12 = vld [vmem:[%s10792_s1 + $0x58] sm:$0xff]  ;;  %s5251_s10 = smov 104   ;;  %vm681_vm2 = vcmask 1047556  }
  0x11   : > { %s254_s6 = scalar_select %p253_p6, %s5228_s18, 1  ;;  %344 = vmatpush.msra.mxu1 %v321_v1  ;;  %v311_v11 = vld [vmem:[%s10792_s1 + $0x10] sm:$0xff]  ;;  %v318_v13 = vld [vmem:[%s10792_s1 + $0x48] sm:$0xff]  ;;  %v316_v15 = vld [vmem:[%s10792_s1 + $0x38] sm:$0xff]  ;;  %v5262_v33 = vmov 1983009808  }
  0x12   : > { %s5115_s7 = sshll.u32 %s12729_s19, 4  ;;  %v314_v16 = vld [vmem:[%s10792_s1 + $0x28] sm:$0xff]  ;;  %v312_v17 = vld [vmem:[%s10792_s1 + $0x18] sm:$0xff]  ;;  %v309_v19 = vld [vmem:[%s10792_s1] sm:$0xff]  ;;  %s5252_s11 = smov 100   ;;  %v686_v34 = vunpack.c.l.s4 %v5262_v33  ;;  %vm1930_vm3 = vcmask 1046528  }
  0x13   : > { %s252_s12 = scalar_lea.vmem %s10791_s0, %s5115_s7  ;;  %s5131_s13 = smul.u32 24, %s254_s6  ;;  %345 = vmatpush.msra.mxu1 %v319_v2  ;;  %v310_v20 = vld [vmem:[%s10792_s1 + $0x8] sm:$0xff]  ;;  %v5268_v57 = vmov 1934713408   ;;  %vm2075_vm4 = vcmask 1045504   ;;  %vm3802_vm5 = vcmask 31744  }
  0x14   : > { %v272_v4 = vld [vmem:[%s252_s12 + $0x8] sm:$0xff]  ;;  %v271_v5 = vld [vmem:[%s252_s12] sm:$0xff]  ;;  %s5247_s6 = smov 124   ;;  %s5248_s7 = smov 116   ;;  %v5467_v36 = vunpack.c.0.s8 %v686_v34  ;;  %v734_v58 = vunpack.c.l.s4 %v5268_v57  ;;  %vm3867_vm6 = vcmask 64512   ;;  %vm3932_vm7 = vcmask 97280  }
  0x15   : > { %297 = vmatpush.msra.mxu2 %v272_v4  ;;  %s257_s25 = scalar_lea.vmem %s10793_s2, %s5131_s13  ;;  %346 = vmatpush.msra.mxu1 %v317_v3  ;;  %s5253_s12 = smov 96   ;;  %vm4061_vm8 = vcmask 162816   ;;  %vm4126_vm9 = vcmask 195584   ;;  %vm4191_vm10 = vcmask 228352   ;;  %vm4523_vm11 = vcmask 1043456  }
  0x16   : > { %v268_v7 = vld [vmem:[%s257_s25] sm:$0xff]  ;;  %v269_v14 = vld [vmem:[%s257_s25 + $0x8] sm:$0xff]  ;;  %v270_v18 = vld [vmem:[%s257_s25 + $0x10] sm:$0x3]  ;;  %s5246_s25 = smov 120   ;;  %s5254_s13 = smov 92   ;;  %v5533_v63 = vunpack.c.0.s8 %v734_v58 }
  0x17   : > { %298 = vmatpush.msra.mxu2 %v271_v5  ;;  %347 = vmatpush.msra.mxu1 %v315_v6  ;;  %s5255_s14 = smov 88   ;;  %s5256_s15 = smov 84   ;;  %11224 = vst [vmem:[#allocation5_spill] sm:$0xff] %v5467_v36  ;;  %vm4330_vm12 = vcmask 293888   ;;  %vm4256_vm13 = vcmask 261120  }
  0x18   : > { %5039 = vmatmul.msk.f32.vlgmr.msra.gmra.mxu2 %vm273_vm0, %v268_v7  ;;  %s5257_s16 = smov 80   ;;  %s5258_s17 = smov 76   ;;  %11230 = vst [vmem:[#allocation11_spill] sm:$0xff] %v5533_v63 }
  0x19   : > { %369 = vmatpush.msrb.mxu2 %v324_v8  ;;  %348 = vmatpush.msra.mxu1 %v313_v9  ;;  %s5259_s26 = smov 72   ;;  %s5260_s27 = smov 68  }
  0x1a   : > { %s5261_s28 = smov 64   ;;  %s5263_s29 = smov 60  }
  0x1b   : > { %370 = vmatpush.msrb.mxu2 %v322_v10  ;;  %349 = vmatpush.msra.mxu1 %v311_v11  ;;  %s5264_s30 = smov 56  }
  0x1d   : > { %371 = vmatpush.msrb.mxu2 %v320_v12  ;;  %350 = vmatpush.msra.mxu1 %v309_v19 }
  0x1f   : > { %372 = vmatpush.msrb.mxu2 %v318_v13 }
  0x20   : > { %5040 = vmatmul.msk.f32.gmra.mxu2 %vm273_vm0, %v269_v14 }
  0x21   : > { %373 = vmatpush.msrb.mxu2 %v316_v15 }
  0x23   : > { %374 = vmatpush.msrb.mxu2 %v314_v16 }
  0x25   : > { %375 = vmatpush.msrb.mxu2 %v312_v17 }
  0x27   : > { %376 = vmatpush.msrb.mxu2 %v310_v20 }
  0x28   : > { %5041 = vmatmul.msk.f32.gmra.mxu2 %vm273_vm0, %v270_v18 }
  0x9b   : > { %v300_v21 = vpop.f32.mrf.mxu2 }
  0x9c   : > { %5042 = vmatmul.msk.f32.vlgmr.msra.gmra.mxu1 %vm325_vm1, %v300_v21  ;;  %5045 = vmatmul.msk.f32.vlgmr.msrb.gmra.mxu2 %vm325_vm1, %v300_v21 }
  0xa3   : > { %v303_v22 = vpop.f32.mrf.mxu2 }
  0xa4   : > { %5043 = vmatmul.msk.f32.gmra.mxu1 %vm325_vm1, %v303_v22  ;;  %5046 = vmatmul.msk.f32.gmra.mxu2 %vm325_vm1, %v303_v22 }
  0xab   : > { %v306_v23 = vpop.f32.mrf.mxu2 }
  0xac   : > { %5044 = vmatmul.msk.f32.gmra.mxu1 %vm325_vm1, %v306_v23  ;;  %5047 = vmatmul.msk.f32.gmra.mxu2 %vm325_vm1, %v306_v23 }
 0x119   : > { %v5403_v24 = vpop.f32.mrf.mxu1 }
 0x11a   : > { %399 = vrot.lane.b32.xlu1 %v5403_v24, %s5246_s25  ;;  %390 = vrot.lane.b32.xlu0 %v5403_v24, %s5247_s6 }
 0x121   : > { %v5408_v25 = vpop.f32.mrf.mxu1 }
 0x122   : > { %408 = vrot.lane.b32.xlu0 %v5403_v24, %s5248_s7  ;;  %410 = vrot.lane.b32.xlu1 %v5408_v25, %s5248_s7 }
 0x123   : > { %401 = vrot.lane.b32.xlu2 %v5408_v25, %s5246_s25 }
 0x129   : > { %v5413_v26 = vpop.f32.mrf.mxu1 }
 0x12a   : > { %11221 = vst [vmem:[#allocation2_spill] sm:$0xff] %v5413_v26  ;;  %417 = vrot.lane.b32.xlu0 %v5403_v24, %s5249_s8  ;;  %419 = vrot.lane.b32.xlu1 %v5408_v25, %s5249_s8 }
 0x12b   : > { %403 = vrot.lane.b32.xlu2 %v5413_v26, %s5246_s25  ;;  %s5265_s25 = smov 52  }
 0x132   : > { %426 = vrot.lane.b32.xlu0 %v5403_v24, %s5250_s9  ;;  %428 = vrot.lane.b32.xlu1 %v5408_v25, %s5250_s9 }
 0x133   : > { %412 = vrot.lane.b32.xlu2 %v5413_v26, %s5248_s7  ;;  %s5266_s7 = smov 48  }
 0x13a   : > { %435 = vrot.lane.b32.xlu0 %v5403_v24, %s5251_s10  ;;  %437 = vrot.lane.b32.xlu1 %v5408_v25, %s5251_s10 }
 0x13b   : > { %421 = vrot.lane.b32.xlu2 %v5413_v26, %s5249_s8  ;;  %s5267_s8 = smov 44  }
 0x142   : > { %444 = vrot.lane.b32.xlu0 %v5403_v24, %s5252_s11  ;;  %446 = vrot.lane.b32.xlu1 %v5408_v25, %s5252_s11 }
 0x143   : > { %430 = vrot.lane.b32.xlu2 %v5413_v26, %s5250_s9  ;;  %s5269_s9 = smov 40  }
 0x14a   : > { %453 = vrot.lane.b32.xlu0 %v5403_v24, %s5253_s12  ;;  %455 = vrot.lane.b32.xlu1 %v5408_v25, %s5253_s12 }
 0x14b   : > { %439 = vrot.lane.b32.xlu2 %v5413_v26, %s5251_s10  ;;  %s5270_s10 = smov 36  }
 0x152   : > { %462 = vrot.lane.b32.xlu0 %v5403_v24, %s5254_s13  ;;  %464 = vrot.lane.b32.xlu1 %v5408_v25, %s5254_s13 }
 0x153   : > { %448 = vrot.lane.b32.xlu2 %v5413_v26, %s5252_s11  ;;  %s5271_s11 = smov 32  }
 0x15a   : > { %471 = vrot.lane.b32.xlu0 %v5403_v24, %s5255_s14  ;;  %473 = vrot.lane.b32.xlu1 %v5408_v25, %s5255_s14 }
 0x15b   : > { %457 = vrot.lane.b32.xlu2 %v5413_v26, %s5253_s12  ;;  %s5272_s12 = smov 28  }
 0x162   : > { %480 = vrot.lane.b32.xlu0 %v5403_v24, %s5256_s15  ;;  %482 = vrot.lane.b32.xlu1 %v5408_v25, %s5256_s15 }
 0x163   : > { %466 = vrot.lane.b32.xlu2 %v5413_v26, %s5254_s13  ;;  %s5273_s13 = smov 24  }
 0x16a   : > { %489 = vrot.lane.b32.xlu0 %v5403_v24, %s5257_s16  ;;  %491 = vrot.lane.b32.xlu1 %v5408_v25, %s5257_s16 }
 0x16b   : > { %475 = vrot.lane.b32.xlu2 %v5413_v26, %s5255_s14  ;;  %s5274_s14 = smov 20  }
 0x172   : > { %498 = vrot.lane.b32.xlu0 %v5403_v24, %s5258_s17  ;;  %500 = vrot.lane.b32.xlu1 %v5408_v25, %s5258_s17 }
 0x173   : > { %484 = vrot.lane.b32.xlu2 %v5413_v26, %s5256_s15  ;;  %s5275_s15 = smov 16  }
 0x17a   : > { %507 = vrot.lane.b32.xlu0 %v5403_v24, %s5259_s26  ;;  %509 = vrot.lane.b32.xlu1 %v5408_v25, %s5259_s26 }
 0x17b   : > { %493 = vrot.lane.b32.xlu2 %v5413_v26, %s5257_s16  ;;  %s5276_s16 = smov 12  }
 0x17d   : > { %v5448_v27 = vpop.permute.xlu2 %401 }
 0x182   : > { %516 = vrot.lane.b32.xlu0 %v5403_v24, %s5260_s27  ;;  %518 = vrot.lane.b32.xlu1 %v5408_v25, %s5260_s27 }
 0x183   : > { %502 = vrot.lane.b32.xlu2 %v5413_v26, %s5258_s17  ;;  %s5277_s17 = smov 8  }
 0x185   : > { %v5453_v28 = vpop.permute.xlu2 %403 }
 0x186   : > { %11222 = vst [vmem:[#allocation3_spill] sm:$0xff] %v5453_v28 }
 0x18a   : > { %525 = vrot.lane.b32.xlu0 %v5403_v24, %s5261_s28  ;;  %527 = vrot.lane.b32.xlu1 %v5408_v25, %s5261_s28 }
 0x18b   : > { %511 = vrot.lane.b32.xlu2 %v5413_v26, %s5259_s26  ;;  %s5278_s26 = smov 4  }
 0x18c   : > { %v5458_v29 = vpop.permute.xlu1 %399  ;;  %v5460_v30 = vpop.permute.xlu0 %390 }
 0x18d   : > { %v680_v31 = vrot.slane %v5458_v29, 4  ;;  %v5463_v32 = vpop.permute.xlu2 %412 }
 0x18e   : > { %11223 = vst [vmem:[#allocation4_spill] sm:$0xff] %v5463_v32 }
 0x18f   : > { %v682_v35 = vsel %vm681_vm2, %v680_v31, %v5403_v24 }
 0x190   : > { %v5473_v37 = vperm.slane %v682_v35, %v5467_v36 }
 0x192   : > { %534 = vrot.lane.b32.xlu0 %v5403_v24, %s5263_s29  ;;  %536 = vrot.lane.b32.xlu1 %v5408_v25, %s5263_s29  ;;  %v731_v43 = vrot.slane %v5473_v37, 4 }
 0x193   : > { %520 = vrot.lane.b32.xlu2 %v5413_v26, %s5260_s27 }
 0x194   : > { %v5475_v38 = vpop.permute.xlu0 %408  ;;  %v5477_v39 = vpop.permute.xlu1 %410 }
 0x195   : > { %11225 = vst [vmem:[#allocation6_spill] sm:$0xff] %v5477_v39  ;;  %v693_v40 = vrot.slane %v5475_v38, 4  ;;  %v5480_v41 = vpop.permute.xlu2 %421 }
 0x196   : > { %11226 = vst [vmem:[#allocation7_spill] sm:$0xff] %v5480_v41 }
 0x197   : > { %v694_v42 = vsel %vm681_vm2, %v693_v40, %v5460_v30 }
 0x198   : > { %v5486_v44 = vperm.slane %v694_v42, %v5467_v36 }
 0x19a   : > { %v732_v45 = vsel %vm681_vm2, %v5486_v44, %v731_v43  ;;  %543 = vrot.lane.b32.xlu0 %v5403_v24, %s5264_s30  ;;  %545 = vrot.lane.b32.xlu1 %v5408_v25, %s5264_s30 }
 0x19b   : > { %529 = vrot.lane.b32.xlu2 %v5413_v26, %s5261_s28  ;;  %v740_v2 = vperm.slane %v732_v45, %v5533_v63 }
 0x19c   : > { %v5493_v46 = vpop.permute.xlu0 %417  ;;  %v5495_v47 = vpop.permute.xlu1 %419 }
 0x19d   : > { %v5497_v48 = vpop.permute.xlu2 %430  ;;  %v783_v9 = vrot.slane %v740_v2, 4 }
 0x19e   : > { %11227 = vst [vmem:[#allocation8_spill] sm:$0xff] %v5497_v48 }
 0x1a2   : > { %552 = vrot.lane.b32.xlu0 %v5403_v24, %s5265_s25  ;;  %554 = vrot.lane.b32.xlu1 %v5408_v25, %s5265_s25 }
 0x1a3   : > { %538 = vrot.lane.b32.xlu2 %v5413_v26, %s5263_s29 }
 0x1a4   : > { %v5502_v49 = vpop.permute.xlu0 %426  ;;  %v5504_v50 = vpop.permute.xlu1 %428 }
 0x1a5   : > { %v5506_v51 = vpop.permute.xlu2 %439 }
 0x1a6   : > { %11228 = vst [vmem:[#allocation9_spill] sm:$0xff] %v5506_v51 }
 0x1aa   : > { %561 = vrot.lane.b32.xlu0 %v5403_v24, %s5266_s7  ;;  %563 = vrot.lane.b32.xlu1 %v5408_v25, %s5266_s7 }
 0x1ab   : > { %547 = vrot.lane.b32.xlu2 %v5413_v26, %s5264_s30 }
 0x1ac   : > { %v5511_v52 = vpop.permute.xlu0 %435  ;;  %v5516_v55 = vpop.permute.xlu1 %437 }
 0x1ad   : > { %v705_v53 = vrot.slane %v5511_v52, 4  ;;  %v5518_v56 = vpop.permute.xlu2 %448 }
 0x1ae   : > { %11229 = vst [vmem:[#allocation10_spill] sm:$0xff] %v5518_v56 }
 0x1af   : > { %v706_v54 = vsel %vm681_vm2, %v705_v53, %v5493_v46 }
 0x1b0   : > { %v5526_v59 = vperm.slane %v706_v54, %v5467_v36 }
 0x1b2   : > { %570 = vrot.lane.b32.xlu0 %v5403_v24, %s5267_s8  ;;  %572 = vrot.lane.b32.xlu1 %v5408_v25, %s5267_s8  ;;  %v755_v0 = vrot.slane %v5526_v59, 4 }
 0x1b3   : > { %556 = vrot.lane.b32.xlu2 %v5413_v26, %s5265_s25 }
 0x1b4   : > { %v5528_v60 = vpop.permute.xlu0 %444  ;;  %v5545_v5 = vpop.permute.xlu1 %446 }
 0x1b5   : > { %v717_v61 = vrot.slane %v5528_v60, 4  ;;  %11231 = vst [vmem:[#allocation12_spill] sm:$0xff] %v5545_v5  ;;  %v5548_v6 = vpop.permute.xlu2 %457 }
 0x1b7   : > { %v718_v62 = vsel %vm681_vm2, %v717_v61, %v5502_v49 }
 0x1b8   : > { %v5537_v1 = vperm.slane %v718_v62, %v5467_v36 }
 0x1ba   : > { %v756_v3 = vsel %vm681_vm2, %v5537_v1, %v755_v0  ;;  %579 = vrot.lane.b32.xlu0 %v5403_v24, %s5269_s9  ;;  %581 = vrot.lane.b32.xlu1 %v5408_v25, %s5269_s9 }
 0x1bb   : > { %v764_v4 = vperm.slane %v756_v3, %v5533_v63  ;;  %565 = vrot.lane.b32.xlu2 %v5413_v26, %s5266_s7 }
 0x1bc   : > { %v5550_v7 = vpop.permute.xlu0 %453  ;;  %v5564_v13 = vpop.permute.xlu1 %455 }
 0x1bd   : > { %v781_v8 = vrot.slane %v764_v4, 4  ;;  %v5556_v11 = vsel %vm681_vm2, %v764_v4, %v783_v9  ;;  %11234 = vst [vmem:[#allocation15_spill] sm:$0xff] %v5564_v13  ;;  %v5566_v14 = vpop.permute.xlu2 %466 }
 0x1be   : > { %11233 = vst [vmem:[#allocation14_spill] sm:$0xff] %v5556_v11 }
 0x1bf   : > { %v5553_v10 = vsel %vm681_vm2, %v781_v8, %v740_v2 }
 0x1c0   : > { %11232 = vst [vmem:[#allocation13_spill] sm:$0xff] %v5553_v10 }
 0x1c2   : > { %588 = vrot.lane.b32.xlu0 %v5403_v24, %s5270_s10  ;;  %590 = vrot.lane.b32.xlu1 %v5408_v25, %s5270_s10 }
 0x1c3   : > { %574 = vrot.lane.b32.xlu2 %v5413_v26, %s5267_s8 }
 0x1c4   : > { %v5562_v12 = vpop.permute.xlu0 %462  ;;  %v5576_v17 = vpop.permute.xlu1 %464 }
 0x1c5   : > { %11235 = vst [vmem:[#allocation16_spill] sm:$0xff] %v5576_v17  ;;  %v5578_v18 = vpop.permute.xlu2 %475 }
 0x1ca   : > { %597 = vrot.lane.b32.xlu0 %v5403_v24, %s5271_s11  ;;  %599 = vrot.lane.b32.xlu1 %v5408_v25, %s5271_s11 }
 0x1cb   : > { %583 = vrot.lane.b32.xlu2 %v5413_v26, %s5269_s9 }
 0x1cc   : > { %v5573_v15 = vpop.permute.xlu0 %471  ;;  %v5599_v34 = vpop.permute.xlu1 %473 }
 0x1cd   : > { %v793_v16 = vrot.slane %v5573_v15, 4  ;;  %11236 = vst [vmem:[#allocation17_spill] sm:$0xff] %v5599_v34  ;;  %v5601_v35 = vpop.permute.xlu2 %484 }
 0x1cf   : > { %v794_v19 = vsel %vm681_vm2, %v793_v16, %v5550_v7 }
 0x1d0   : > { %v5588_v20 = vperm.slane %v794_v19, %v5467_v36 }
 0x1d2   : > { %606 = vrot.lane.b32.xlu0 %v5403_v24, %s5272_s12  ;;  %608 = vrot.lane.b32.xlu1 %v5408_v25, %s5272_s12  ;;  %v843_v31 = vrot.slane %v5588_v20, 4 }
 0x1d3   : > { %592 = vrot.lane.b32.xlu2 %v5413_v26, %s5270_s10 }
 0x1d4   : > { %v5590_v21 = vpop.permute.xlu0 %480  ;;  %v5617_v43 = vpop.permute.xlu1 %482 }
 0x1d5   : > { %v805_v22 = vrot.slane %v5590_v21, 4  ;;  %11237 = vst [vmem:[#allocation18_spill] sm:$0xff] %v5617_v43  ;;  %v5621_v45 = vpop.permute.xlu2 %493 }
 0x1d7   : > { %v806_v23 = vsel %vm681_vm2, %v805_v22, %v5562_v12 }
 0x1d8   : > { %v5597_v33 = vperm.slane %v806_v23, %v5467_v36 }
 0x1da   : > { %v844_v40 = vsel %vm681_vm2, %v5597_v33, %v843_v31  ;;  %615 = vrot.lane.b32.xlu0 %v5403_v24, %s5273_s13  ;;  %617 = vrot.lane.b32.xlu1 %v5408_v25, %s5273_s13  ;;  %v841_v51 = vrot.slane %v5597_v33, 4 }
 0x1db   : > { %601 = vrot.lane.b32.xlu2 %v5413_v26, %s5271_s11  ;;  %v852_v22 = vperm.slane %v844_v40, %v5533_v63 }
 0x1dc   : > { %v5611_v42 = vpop.permute.xlu0 %489  ;;  %v5633_v57 = vpop.permute.xlu1 %491 }
 0x1dd   : > { %11238 = vst [vmem:[#allocation19_spill] sm:$0xff] %v5633_v57  ;;  %v5636_v61 = vpop.permute.xlu2 %502 }
 0x1e2   : > { %624 = vrot.lane.b32.xlu0 %v5403_v24, %s5274_s14  ;;  %626 = vrot.lane.b32.xlu1 %v5408_v25, %s5274_s14 }
 0x1e3   : > { %610 = vrot.lane.b32.xlu2 %v5413_v26, %s5272_s12 }
 0x1e4   : > { %v5623_v53 = vpop.permute.xlu0 %498  ;;  %v5650_v4 = vpop.permute.xlu1 %500 }
 0x1e5   : > { %11239 = vst [vmem:[#allocation20_spill] sm:$0xff] %v5650_v4  ;;  %v5654_v9 = vpop.permute.xlu2 %511 }
 0x1ea   : > { %633 = vrot.lane.b32.xlu0 %v5403_v24, %s5275_s15  ;;  %635 = vrot.lane.b32.xlu1 %v5408_v25, %s5275_s15 }
 0x1eb   : > { %619 = vrot.lane.b32.xlu2 %v5413_v26, %s5273_s13 }
 0x1ec   : > { %v5631_v54 = vpop.permute.xlu0 %507  ;;  %v5676_v41 = vpop.permute.xlu1 %509 }
 0x1ed   : > { %v817_v58 = vrot.slane %v5631_v54, 4  ;;  %11242 = vst [vmem:[#allocation23_spill] sm:$0xff] %v5676_v41  ;;  %v521_v28 = vpop.permute.xlu2 %520 }
 0x1ee   : > { %v1739_v34 = vrot.slane %v521_v28, 4 }
 0x1ef   : > { %v818_v62 = vsel %vm681_vm2, %v817_v58, %v5611_v42 }
 0x1f0   : > { %v824_v0 = vperm.slane %v818_v62, %v5467_v36  ;;  %v895_v62 = vrot.slane %v852_v22, 4 }
 0x1f2   : > { %642 = vrot.lane.b32.xlu0 %v5403_v24, %s5276_s16  ;;  %644 = vrot.lane.b32.xlu1 %v5408_v25, %s5276_s16  ;;  %v867_v16 = vrot.slane %v824_v0, 4 }
 0x1f3   : > { %628 = vrot.lane.b32.xlu2 %v5413_v26, %s5274_s14 }
 0x1f4   : > { %v5647_v2 = vpop.permute.xlu0 %516  ;;  %v5701_v32 = vpop.permute.xlu1 %518 }
 0x1f5   : > { %v829_v3 = vrot.slane %v5647_v2, 4  ;;  %11244 = vst [vmem:[#allocation25_spill] sm:$0xff] %v5701_v32 }
 0x1f7   : > { %v830_v8 = vsel %vm681_vm2, %v829_v3, %v5623_v53 }
 0x1f8   : > { %v836_v19 = vperm.slane %v830_v8, %v5467_v36 }
 0x1fa   : > { %v868_v23 = vsel %vm681_vm2, %v836_v19, %v867_v16  ;;  %651 = vrot.lane.b32.xlu0 %v5403_v24, %s5277_s17  ;;  %653 = vrot.lane.b32.xlu1 %v5408_v25, %s5277_s17  ;;  %v5674_v16 = vpop.f32.mrf.mxu2 }
 0x1fb   : > { %v876_v31 = vperm.slane %v868_v23, %v5533_v63  ;;  %637 = vrot.lane.b32.xlu2 %v5413_v26, %s5275_s15  ;;  %v865_v23 = vrot.slane %v836_v19, 4 }
 0x1fc   : > { %v5666_v58 = vpop.permute.xlu0 %525 }
 0x1fd   : > { %v893_v3 = vrot.slane %v876_v31, 4  ;;  %v5669_v40 = vsel %vm681_vm2, %v876_v31, %v895_v62  ;;  %v866_v62 = vsel %vm681_vm2, %v865_v23, %v824_v0  ;;  %v5705_v0 = vpop.permute.xlu2 %529 }
 0x1fe   : > { %11240 = vst [vmem:[#allocation21_spill] sm:$0xff] %v5669_v40  ;;  %v5698_v19 = vperm.slane %v866_v62, %v5533_v63 }
 0x1ff   : > { %v5672_v8 = vsel %vm681_vm2, %v893_v3, %v852_v22  ;;  %v753_v22 = vrot.slane %v5537_v1, 4  ;;  %v729_v1 = vrot.slane %v5486_v44, 4 }
 0x200   : > { %11241 = vst [vmem:[#allocation22_spill] sm:$0xff] %v5672_v8  ;;  %v889_v62 = vrot.slane %v5698_v19, 4 }
 0x201   : > { %v754_v48 = vsel %vm681_vm2, %v753_v22, %v5526_v59  ;;  %v842_v22 = vsel %vm681_vm2, %v841_v51, %v5588_v20  ;;  %v730_v44 = vsel %vm681_vm2, %v729_v1, %v5473_v37 }
 0x202   : > { %660 = vrot.lane.b32.xlu0 %v5403_v24, %s5278_s26  ;;  %662 = vrot.lane.b32.xlu1 %v5408_v25, %s5278_s26  ;;  %v5688_v3 = vpop.f32.mrf.mxu2  ;;  %v5710_v33 = vperm.slane %v754_v48, %v5533_v63  ;;  %v5720_v4 = vperm.slane %v842_v22, %v5533_v63  ;;  %v5729_v48 = vperm.slane %v730_v44, %v5533_v63  ;;  %v5745_v22 = vpop.permute.xlu1 %527 }
 0x203   : > { %646 = vrot.lane.b32.xlu2 %v5413_v26, %s5276_s16  ;;  %11243 = vst [vmem:[#allocation24_spill] sm:$0xff] %v5688_v3 }
 0x204   : > { %v5684_v31 = vpop.permute.xlu0 %534  ;;  %v777_v56 = vrot.slane %v5710_v33, 4  ;;  %v5733_v37 = vsel %vm681_vm2, %v889_v62, %v5720_v4  ;;  %11247 = vst [vmem:[#allocation28_spill] sm:$0xff] %v5745_v22 }
 0x205   : > { %11245 = vst [vmem:[#allocation26_spill] sm:$0xff] %v5733_v37  ;;  %v10806_v62 = vrot.slane %v5733_v37, 1  ;;  %v5749_v13 = vpop.permute.xlu2 %538 }
 0x206   : > { %v5742_v1 = vsel %vm681_vm2, %v777_v56, %v5729_v48  ;;  %v1721_v56 = vrot.slane %v5578_v18, 4 }
 0x207   : > { %11246 = vst [vmem:[#allocation27_spill] sm:$0xff] %v5742_v1 }
 0x20a   : > { %672 = vrot.lane.b32.xlu0 %v5674_v16, %s5247_s6  ;;  %674 = vrot.lane.b32.xlu1 %v5688_v3, %s5247_s6  ;;  %v5761_v17 = vpop.f32.mrf.mxu2  ;;  %v5775_v28 = vpop.permute.xlu1 %536 }
 0x20b   : > { %655 = vrot.lane.b32.xlu2 %v5413_v26, %s5277_s17  ;;  %11248 = vst [vmem:[#allocation29_spill] sm:$0xff] %v5761_v17 }
 0x20c   : > { %v5707_v59 = vpop.permute.xlu0 %543  ;;  %11249 = vst [vmem:[#allocation30_spill] sm:$0xff] %v5775_v28 }
 0x20d   : > { %v905_v23 = vrot.slane %v5707_v59, 4 }
 0x20f   : > { %v906_v57 = vsel %vm681_vm2, %v905_v23, %v5666_v58  ;;  %v1727_v23 = vrot.slane %v5601_v35, 4 }
 0x210   : > { %v912_v51 = vperm.slane %v906_v57, %v5467_v36  ;;  %v1931_v57 = vrot.slane %v5742_v1, 1 }
 0x211   : > { %v1728_v35 = vsel %vm681_vm2, %v1727_v23, %v5566_v14  ;;  %v1722_v14 = vsel %vm681_vm2, %v1721_v56, %v5548_v6  ;;  %v1733_v23 = vrot.slane %v5654_v9, 4 }
 0x212   : > { %392 = vrot.lane.b32.xlu0 %v5408_v25, %s5247_s6  ;;  %394 = vrot.lane.b32.xlu1 %v5413_v26, %s5247_s6  ;;  %v955_v32 = vrot.slane %v912_v51, 4  ;;  %v1933_v22 = vsel %vm1930_vm3, %v1931_v57, %v10806_v62  ;;  %v1740_v57 = vsel %vm681_vm2, %v1739_v34, %v5636_v61  ;;  %v5778_v62 = vpop.permute.xlu2 %547  ;;  %v5790_v61 = vpop.permute.xlu1 %545 }
 0x213   : > { %664 = vrot.lane.b32.xlu2 %v5413_v26, %s5278_s26  ;;  %11251 = vst [vmem:[#allocation32_spill] sm:$0xff] %v5790_v61 }
 0x214   : > { %v5738_v20 = vpop.permute.xlu0 %552 }
 0x215   : > { %v917_v44 = vrot.slane %v5738_v20, 4 }
 0x217   : > { %v918_v26 = vsel %vm681_vm2, %v917_v44, %v5684_v31 }
 0x218   : > { %v924_v41 = vperm.slane %v918_v26, %v5467_v36  ;;  %v1732_v26 = vperm.slane %v1728_v35, %v5467_v36  ;;  %v1734_v35 = vsel %vm681_vm2, %v1733_v23, %v5621_v45 }
 0x219   : > { %v1738_v9 = vperm.slane %v1734_v35, %v5467_v36 }
 0x21a   : > { %v956_v44 = vsel %vm681_vm2, %v924_v41, %v955_v32  ;;  %2266 = vrot.lane.b32.xlu0 %v1933_v22, %s5278_s26  ;;  %v1726_v32 = vperm.slane %v1722_v14, %v5467_v36  ;;  %v1745_v22 = vrot.slane %v1732_v26, 4  ;;  %v557_v14 = vpop.permute.xlu2 %556  ;;  %v953_v35 = vrot.slane %v924_v41, 4 }
 0x21b   : > { %676 = vrot.lane.b32.xlu2 %v5761_v17, %s5247_s6  ;;  %v1744_v17 = vperm.slane %v1740_v57, %v5467_v36 }
 0x21c   : > { %v5768_v18 = vpop.permute.xlu0 %561  ;;  %v1746_v6 = vsel %vm681_vm2, %v1745_v22, %v1726_v32  ;;  %v5806_v22 = vpop.permute.xlu1 %554 }
 0x21d   : > { %v1751_v56 = vrot.slane %v1744_v17, 4  ;;  %v5788_v34 = vperm.slane %v1746_v6, %v5533_v63  ;;  %11254 = vst [vmem:[#allocation35_spill] sm:$0xff] %v5806_v22 }
 0x21f   : > { %11250 = vst [vmem:[#allocation31_spill] sm:$0xff] %v5788_v34  ;;  %v1752_v26 = vsel %vm681_vm2, %v1751_v56, %v1738_v9  ;;  %v1759_v57 = vrot.slane %v5788_v34, 4 }
 0x220   : > { %v5797_v45 = vperm.slane %v1752_v26, %v5533_v63 }
 0x222   : > { %11252 = vst [vmem:[#allocation33_spill] sm:$0xff] %v5797_v45  ;;  %v5802_v17 = vsel %vm681_vm2, %v5797_v45, %v1759_v57  ;;  %v566_v6 = vpop.permute.xlu2 %565 }
 0x223   : > { %11253 = vst [vmem:[#allocation34_spill] sm:$0xff] %v5802_v17  ;;  %v954_v17 = vsel %vm681_vm2, %v953_v35, %v912_v51 }
 0x224   : > { %v5783_v1 = vpop.permute.xlu0 %570 }
 0x22c   : > { %v5794_v28 = vpop.permute.xlu0 %579 }
 0x22d   : > { %v929_v23 = vrot.slane %v5794_v28, 4 }
 0x22f   : > { %v930_v32 = vsel %vm681_vm2, %v929_v23, %v5768_v18  ;;  %v964_v23 = vperm.slane %v956_v44, %v5533_v63 }
 0x230   : > { %v936_v9 = vperm.slane %v930_v32, %v5467_v36  ;;  %v960_v32 = vperm.slane %v954_v17, %v5533_v63 }
 0x231   : > { %v1007_v39 = vrot.slane %v964_v23, 4 }
 0x232   : > { %v979_v61 = vrot.slane %v936_v9, 4  ;;  %v1003_v35 = vrot.slane %v960_v32, 4 }
 0x234   : > { %v5809_v56 = vpop.permute.xlu0 %588 }
 0x235   : > { %v941_v26 = vrot.slane %v5809_v56, 4 }
 0x237   : > { %v942_v34 = vsel %vm681_vm2, %v941_v26, %v5783_v1  ;;  %v5823_v26 = vpop.permute.xlu1 %563 }
 0x238   : > { %v948_v57 = vperm.slane %v942_v34, %v5467_v36  ;;  %11255 = vst [vmem:[#allocation36_spill] sm:$0xff] %v5823_v26  ;;  %v575_v34 = vpop.permute.xlu2 %574 }
 0x23a   : > { %v977_v45 = vrot.slane %v948_v57, 4  ;;  %v980_v41 = vsel %vm681_vm2, %v948_v57, %v979_v61 }
 0x23b   : > { %v988_v22 = vperm.slane %v980_v41, %v5533_v63 }
 0x23c   : > { %v978_v43 = vsel %vm681_vm2, %v977_v45, %v936_v9  ;;  %v5821_v11 = vpop.permute.xlu0 %597 }
 0x23d   : > { %v1005_v5 = vrot.slane %v988_v22, 4  ;;  %v984_v51 = vperm.slane %v978_v43, %v5533_v63  ;;  %v5830_v61 = vsel %vm681_vm2, %v988_v22, %v1007_v39  ;;  %v891_v43 = vrot.slane %v5720_v4, 4 }
 0x23e   : > { %11257 = vst [vmem:[#allocation38_spill] sm:$0xff] %v5830_v61 }
 0x23f   : > { %v5827_v44 = vsel %vm681_vm2, %v1005_v5, %v964_v23  ;;  %v1001_v57 = vrot.slane %v984_v51, 4  ;;  %v5833_v17 = vsel %vm681_vm2, %v984_v51, %v1003_v35  ;;  %v11260_v5 = vrot.slane %v5733_v37, 1  ;;  %v5847_v22 = vpop.permute.xlu1 %572 }
 0x240   : > { %11256 = vst [vmem:[#allocation37_spill] sm:$0xff] %v5827_v44  ;;  %v779_v23 = vrot.slane %v5729_v48, 4  ;;  %v584_v51 = vpop.permute.xlu2 %583  ;;  %v1767_v48 = vrot.slane %v557_v14, 4 }
 0x241   : > { %11258 = vst [vmem:[#allocation39_spill] sm:$0xff] %v5833_v17  ;;  %v5836_v45 = vsel %vm681_vm2, %v1001_v57, %v960_v32  ;;  %v5853_v32 = vsel %vm681_vm2, %v5698_v19, %v891_v43 }
 0x242   : > { %11259 = vst [vmem:[#allocation40_spill] sm:$0xff] %v5836_v45  ;;  %v10820_v41 = vrot.slane %v5836_v45, 1  ;;  %v5857_v4 = vsel %vm681_vm2, %v5710_v33, %v779_v23  ;;  %v10825_v35 = vrot.slane %v5853_v32, 1  ;;  %v1768_v33 = vsel %vm681_vm2, %v1767_v48, %v5749_v13 }
 0x243   : > { %11261 = vst [vmem:[#allocation41_spill] sm:$0xff] %v5847_v22  ;;  %v1772_v37 = vperm.slane %v1768_v33, %v5467_v36 }
 0x244   : > { %v5838_v9 = vpop.permute.xlu0 %606  ;;  %v1935_v39 = vsel %vm1930_vm3, %v11260_v5, %v10820_v41  ;;  %11262 = vst [vmem:[#allocation42_spill] sm:$0xff] %v5853_v32  ;;  %v1940_v5 = vrot.slane %v5857_v4, 1  ;;  %v1761_v41 = vrot.slane %v5778_v62, 4 }
 0x245   : > { %2268 = vrot.lane.b32.xlu1 %v1935_v39, %s5278_s26  ;;  %11263 = vst [vmem:[#allocation43_spill] sm:$0xff] %v5857_v4 }
 0x246   : > { %v5866_v39 = vsel %vm1930_vm3, %v1940_v5, %v10825_v35  ;;  %v1762_v5 = vsel %vm681_vm2, %v1761_v41, %v5705_v0  ;;  %v1785_v35 = vrot.slane %v1772_v37, 4 }
 0x247   : > { %11264 = vst [vmem:[#allocation44_spill] sm:$0xff] %v5866_v39  ;;  %v5870_v19 = vpop.permute.xlu1 %581 }
 0x248   : > { %11265 = vst [vmem:[#allocation45_spill] sm:$0xff] %v5870_v19  ;;  %v593_v43 = vpop.permute.xlu2 %592  ;;  %v1766_v19 = vperm.slane %v1762_v5, %v5467_v36  ;;  %v719_v5 = vrot.slane %v5502_v49, 4  ;;  %v707_v49 = vrot.slane %v5493_v46, 4 }
 0x249   : > { %v1779_v4 = vrot.slane %v593_v43, 4 }
 0x24a   : > { %v1786_v62 = vsel %vm681_vm2, %v1785_v35, %v1766_v19 }
 0x24b   : > { %v1780_v14 = vsel %vm681_vm2, %v1779_v4, %v575_v34  ;;  %v5890_v22 = vperm.slane %v1786_v62, %v5533_v63 }
 0x24c   : > { %v5860_v57 = vpop.permute.xlu0 %615  ;;  %v1784_v13 = vperm.slane %v1780_v14, %v5467_v36 }
 0x24d   : > { %2274 = vrot.lane.b32.xlu1 %v5866_v39, %s5278_s26  ;;  %v1773_v39 = vrot.slane %v584_v51, 4  ;;  %11267 = vst [vmem:[#allocation47_spill] sm:$0xff] %v5890_v22  ;;  %v1799_v4 = vrot.slane %v5890_v22, 4  ;;  %v1017_v62 = vrot.slane %v5860_v57, 4 }
 0x24e   : > { %v1791_v33 = vrot.slane %v1784_v13, 4  ;;  %v720_v13 = vsel %vm681_vm2, %v5528_v60, %v719_v5 }
 0x24f   : > { %v5881_v26 = vpop.permute.xlu1 %590  ;;  %v1774_v43 = vsel %vm681_vm2, %v1773_v39, %v566_v6  ;;  %v1018_v60 = vsel %vm681_vm2, %v1017_v62, %v5821_v11  ;;  %v807_v62 = vrot.slane %v5562_v12, 4 }
 0x250   : > { %11266 = vst [vmem:[#allocation46_spill] sm:$0xff] %v5881_v26  ;;  %v1778_v0 = vperm.slane %v1774_v43, %v5467_v36  ;;  %v5902_v35 = vpop.permute.xlu2 %601 }
 0x251   : > { %11270 = vst [vmem:[#allocation50_spill] sm:$0xff] %v5902_v35 }
 0x252   : > { %v1792_v34 = vsel %vm681_vm2, %v1791_v33, %v1778_v0 }
 0x253   : > { %v5899_v51 = vperm.slane %v1792_v34, %v5533_v63  ;;  %v695_v34 = vrot.slane %v5460_v30, 4  ;;  %v708_v30 = vsel %vm681_vm2, %v5511_v52, %v707_v49 }
 0x254   : > { %v5874_v23 = vpop.permute.xlu0 %624  ;;  %v5950_v49 = vperm.slane %v708_v30, %v5467_v36 }
 0x255   : > { %11269 = vst [vmem:[#allocation49_spill] sm:$0xff] %v5899_v51  ;;  %v5906_v6 = vsel %vm681_vm2, %v5899_v51, %v1799_v4  ;;  %v1029_v0 = vrot.slane %v5874_v23, 4  ;;  %v5924_v4 = vperm.slane %v720_v13, %v5467_v36  ;;  %v696_v51 = vsel %vm681_vm2, %v5475_v38, %v695_v34 }
 0x256   : > { %11271 = vst [vmem:[#allocation51_spill] sm:$0xff] %v5906_v6  ;;  %v831_v6 = vrot.slane %v5623_v53, 4  ;;  %v1129_v38 = vrot.slane %v5674_v16, 4 }
 0x257   : > { %v5896_v41 = vpop.permute.xlu1 %599  ;;  %v1030_v53 = vsel %vm681_vm2, %v1029_v0, %v5838_v9  ;;  %v765_v13 = vrot.slane %v5924_v4, 4 }
 0x258   : > { %11268 = vst [vmem:[#allocation48_spill] sm:$0xff] %v5896_v41  ;;  %v5917_v43 = vpop.permute.xlu2 %610  ;;  %v832_v46 = vsel %vm681_vm2, %v5647_v2, %v831_v6  ;;  %v808_v2 = vsel %vm681_vm2, %v5590_v21, %v807_v62  ;;  %v1036_v0 = vperm.slane %v1030_v53, %v5467_v36 }
 0x259   : > { %11273 = vst [vmem:[#allocation53_spill] sm:$0xff] %v5917_v43  ;;  %v5955_v6 = vperm.slane %v832_v46, %v5467_v36 }
 0x25c   : > { %v5885_v48 = vpop.permute.xlu0 %633 }
 0x25f   : > { %v5912_v14 = vpop.permute.xlu1 %608 }
 0x260   : > { %11272 = vst [vmem:[#allocation52_spill] sm:$0xff] %v5912_v14  ;;  %v766_v14 = vsel %vm681_vm2, %v765_v13, %v5950_v49  ;;  %v5968_v21 = vpop.permute.xlu2 %619 }
 0x261   : > { %11275 = vst [vmem:[#allocation55_spill] sm:$0xff] %v5968_v21 }
 0x264   : > { %v5893_v37 = vpop.permute.xlu0 %642 }
 0x267   : > { %v5957_v12 = vpop.permute.xlu1 %617 }
 0x268   : > { %11274 = vst [vmem:[#allocation54_spill] sm:$0xff] %v5957_v12 }
 0x26c   : > { %v5908_v39 = vpop.permute.xlu0 %651 }
 0x26d   : > { %v1041_v19 = vrot.slane %v5908_v39, 4 }
 0x26f   : > { %v1042_v33 = vsel %vm681_vm2, %v1041_v19, %v5885_v48  ;;  %v6033_v21 = vpop.permute.xlu1 %626 }
 0x270   : > { %v1048_v5 = vperm.slane %v1042_v33, %v5467_v36  ;;  %v1024_v33 = vperm.slane %v1018_v60, %v5467_v36  ;;  %v683_v60 = vrot.slane %v5403_v24, 4  ;;  %v5975_v24 = vperm.slane %v5674_v16, %v5467_v36 }
 0x272   : > { %v1091_v34 = vrot.slane %v1048_v5, 4  ;;  %v1067_v46 = vrot.slane %v1024_v33, 4 }
 0x274   : > { %v5931_v22 = vpop.permute.xlu0 %660  ;;  %v1068_v16 = vsel %vm681_vm2, %v1036_v0, %v1067_v46 }
 0x275   : > { %v1053_v19 = vrot.slane %v5931_v22, 4 }
 0x277   : > { %v1054_v41 = vsel %vm681_vm2, %v1053_v19, %v5893_v37  ;;  %v5962_v19 = vperm.slane %v696_v51, %v5467_v36  ;;  %v795_v51 = vrot.slane %v5550_v7, 4  ;;  %v5992_v7 = vperm.slane %v766_v14, %v5533_v63 }
 0x278   : > { %v1060_v52 = vperm.slane %v1054_v41, %v5467_v36  ;;  %v819_v41 = vrot.slane %v5611_v42, 4  ;;  %v5979_v42 = vperm.slane %v808_v2, %v5467_v36 }
 0x279   : > { %v741_v35 = vrot.slane %v5962_v19, 4  ;;  %v796_v2 = vsel %vm681_vm2, %v5573_v15, %v795_v51  ;;  %v6011_v15 = vperm.slane %v1068_v16, %v5533_v63  ;;  %v6047_v51 = vpop.permute.xlu2 %628 }
 0x27a   : > { %v1092_v30 = vsel %vm681_vm2, %v1060_v52, %v1091_v34  ;;  %v1089_v62 = vrot.slane %v1060_v52, 4  ;;  %v820_v53 = vsel %vm681_vm2, %v5631_v54, %v819_v41  ;;  %v1130_v34 = vsel %vm681_vm2, 0.0, %v1129_v38 }
 0x27b   : > { %v5971_v12 = vperm.slane %v1092_v30, %v5533_v63  ;;  %v684_v52 = vsel %vm681_vm2, %v5458_v29, %v683_v60  ;;  %v877_v30 = vrot.slane %v5955_v6, 4  ;;  %v5998_v41 = vperm.slane %v820_v53, %v5467_v36 }
 0x27c   : > { %v5983_v13 = vpop.permute.xlu0 %672  ;;  %v1065_v38 = vrot.slane %v1036_v0, 4  ;;  %v1090_v29 = vsel %vm681_vm2, %v1089_v62, %v1048_v5  ;;  %v6006_v46 = vperm.slane %v1130_v34, %v5467_v36  ;;  %v853_v43 = vrot.slane %v5979_v42, 4 }
 0x27d   : > { %v1117_v54 = vrot.slane %v5971_v12, 4  ;;  %v6003_v60 = vperm.slane %v5983_v13, %v5467_v36  ;;  %v6015_v0 = vperm.slane %v684_v52, %v5467_v36  ;;  %v6018_v5 = vperm.slane %v796_v2, %v5467_v36 }
 0x27e   : > { %v878_v62 = vsel %vm681_vm2, %v877_v30, %v5998_v41  ;;  %v1031_v53 = vrot.slane %v5838_v9, 4  ;;  %v1096_v16 = vperm.slane %v1090_v29, %v5533_v63  ;;  %v919_v2 = vrot.slane %v5684_v31, 4 }
 0x27f   : > { %v1149_v34 = vrot.slane %v6003_v60, 4  ;;  %v6026_v14 = vsel %vm681_vm2, %v1117_v54, %v6011_v15  ;;  %v742_v52 = vsel %vm681_vm2, %v741_v35, %v6015_v0  ;;  %v1066_v30 = vsel %vm681_vm2, %v1065_v38, %v1024_v33 }
 0x280   : > { %11276 = vst [vmem:[#allocation56_spill] sm:$0xff] %v6026_v14  ;;  %v854_v9 = vsel %vm681_vm2, %v853_v43, %v6018_v5  ;;  %v6039_v26 = vperm.slane %v878_v62, %v5533_v63  ;;  %v1032_v54 = vsel %vm681_vm2, %v5874_v23, %v1031_v53  ;;  %v1055_v29 = vrot.slane %v5893_v37, 4 }
 0x281   : > { %v920_v35 = vsel %vm681_vm2, %v5738_v20, %v919_v2  ;;  %v943_v31 = vrot.slane %v5783_v1, 4  ;;  %v10838_v33 = vrot.slane %v5827_v44, 1  ;;  %v10837_v38 = vrot.slane %v6026_v14, 1 }
 0x282   : > { %v1056_v43 = vsel %vm681_vm2, %v5931_v22, %v1055_v29  ;;  %v1150_v62 = vsel %vm681_vm2, %v1149_v34, %v5975_v24  ;;  %v1072_v23 = vperm.slane %v1066_v30, %v5533_v63  ;;  %v1113_v37 = vrot.slane %v1096_v16, 4 }
 0x283   : > { %v6057_v53 = vperm.slane %v854_v9, %v5533_v63  ;;  %v944_v20 = vsel %vm681_vm2, %v5809_v56, %v943_v31  ;;  %v6062_v1 = vperm.slane %v1032_v54, %v5467_v36  ;;  %v6069_v22 = vsel %vm1930_vm3, %v10838_v33, %v10837_v38 }
 0x284   : > { %11277 = vst [vmem:[#allocation57_spill] sm:$0xff] %v6069_v22  ;;  %v907_v34 = vrot.slane %v5666_v58, 4  ;;  %v6073_v2 = vperm.slane %v920_v35, %v5467_v36  ;;  %v1019_v30 = vrot.slane %v5821_v11, 4  ;;  %2286 = vrot.lane.b32.xlu1 %v6069_v22, %s5278_s26  ;;  %v6079_v56 = vsel %vm681_vm2, %v1113_v37, %v1072_v23 }
 0x285   : > { %11278 = vst [vmem:[#allocation58_spill] sm:$0xff] %v6079_v56  ;;  %v931_v9 = vrot.slane %v5768_v18, 4  ;;  %v6083_v54 = vperm.slane %v1056_v43, %v5467_v36  ;;  %v1936_v29 = vrot.slane %v6079_v56, 1  ;;  %v6087_v58 = vperm.slane %v1150_v62, %v5533_v63 }
 0x286   : > { %v897_v35 = vrot.slane %v6039_v26, 4  ;;  %v952_v11 = vperm.slane %v944_v20, %v5467_v36  ;;  %v1020_v31 = vsel %vm681_vm2, %v5860_v57, %v1019_v30  ;;  %v1043_v37 = vrot.slane %v5885_v48, 4 }
 0x287   : > { %11279 = vst [vmem:[#allocation59_spill] sm:$0xff] %v6087_v58  ;;  %v908_v18 = vsel %vm681_vm2, %v5707_v59, %v907_v34  ;;  %v932_v43 = vsel %vm681_vm2, %v5794_v28, %v931_v9  ;;  %v1077_v38 = vrot.slane %v6062_v1, 4  ;;  %v11280_v20 = vrot.slane %v5836_v45, 1  ;;  %v6111_v28 = vpop.permute.xlu1 %635 }
 0x288   : > { %v1044_v33 = vsel %vm681_vm2, %v5908_v39, %v1043_v37  ;;  %v1938_v57 = vrot.slane %v6087_v58, 1  ;;  %v965_v59 = vrot.slane %v6073_v2, 4  ;;  %v6109_v34 = vperm.slane %v1020_v31, %v5467_v36  ;;  %v6122_v31 = vpop.permute.xlu2 %637 }
 0x289   : > { %v1937_v22 = vsel %vm1930_vm3, %v11280_v20, %v1936_v29  ;;  %v1101_v30 = vrot.slane %v6083_v54, 4  ;;  %v1115_v39 = vrot.slane %v1072_v23, 4  ;;  %v6116_v9 = vperm.slane %v908_v18, %v5467_v36  ;;  %11281 = vst [vmem:[#allocation60_spill] sm:$0xff] %v6122_v31 }
 0x28a   : > { %2270 = vrot.lane.b32.xlu2 %v1937_v22, %s5278_s26  ;;  %v940_v37 = vperm.slane %v932_v43, %v5467_v36  ;;  %v989_v20 = vrot.slane %v952_v11, 4  ;;  %v1939_v48 = vsel %vm1930_vm3, %v1936_v29, %v1938_v57  ;;  %v1078_v62 = vsel %vm681_vm2, %v1077_v38, %v6109_v34 }
 0x28b   : > { %v6125_v45 = vperm.slane %v1044_v33, %v5467_v36  ;;  %2272 = vrot.lane.b32.xlu0 %v1939_v48, %s5278_s26  ;;  %v11282_v23 = vrot.slane %v5830_v61, 1  ;;  %v11283_v22 = vrot.slane %v5669_v40, 1  ;;  %v6136_v43 = vsel %vm681_vm2, %v1096_v16, %v1115_v39 }
 0x28c   : > { %11285 = vst [vmem:[#allocation62_spill] sm:$0xff] %v6136_v43  ;;  %v6140_v38 = vperm.slane %v742_v52, %v5533_v63  ;;  %v1943_v33 = vrot.slane %v5833_v17, 1  ;;  %v6147_v57 = vsel %vm681_vm2, %v897_v35, %v6057_v53  ;;  %v6151_v48 = vperm.slane %v5688_v3, %v5467_v36 }
 0x28d   : > { %v6133_v18 = vsel %vm1930_vm3, %v11283_v22, %v11282_v23  ;;  %11286 = vst [vmem:[#allocation63_spill] sm:$0xff] %v6147_v57  ;;  %v1183_v16 = vrot.slane %v5408_v25, 4  ;;  %v966_v39 = vsel %vm681_vm2, %v965_v59, %v6116_v9  ;;  %v1102_v52 = vsel %vm681_vm2, %v1101_v30, %v6125_v45 }
 0x28e   : > { %11284 = vst [vmem:[#allocation61_spill] sm:$0xff] %v6133_v18  ;;  %2292 = vrot.lane.b32.xlu1 %v6133_v18, %s5278_s26  ;;  %v743_v23 = vrot.slane %v6015_v0, 4  ;;  %v6160_v22 = vperm.slane %v1078_v62, %v5533_v63  ;;  %v11288_v29 = vrot.slane %v5992_v7, 4  ;;  %v11290_v17 = vrot.slane %v5448_v27, 4 }
 0x28f   : > { %11287 = vst [vmem:[#allocation64_spill] sm:$0xff] %v6151_v48  ;;  %v991_v56 = vrot.slane %v940_v37, 4  ;;  %v990_v30 = vsel %vm681_vm2, %v989_v20, %v940_v37  ;;  %v10850_v0 = vrot.slane %v6147_v57, 1  ;;  %v6178_v35 = vperm.slane %v966_v39, %v5533_v63  ;;  %v11342_v48 = vld [vmem:[#allocation41_spill] sm:$0xff] }
 0x290   : > { %v6167_v18 = vsel %vm681_vm2, %v11288_v29, %v6140_v38  ;;  %v1182_v59 = vsel %vm681_vm2, %v11290_v17, %v5408_v25  ;;  %v744_v62 = vsel %vm681_vm2, %v5962_v19, %v743_v23  ;;  %v6181_v3 = vperm.slane %v1102_v52, %v5533_v63 }
 0x291   : > { %11289 = vst [vmem:[#allocation65_spill] sm:$0xff] %v6167_v18  ;;  %v11291_v29 = vrot.slane %v5853_v32, 1  ;;  %v1184_v25 = vsel %vm681_vm2, %v5448_v27, %v1183_v16  ;;  %v879_v17 = vrot.slane %v5998_v41, 4  ;;  %v992_v37 = vsel %vm681_vm2, %v952_v11, %v991_v56  ;;  %v6213_v16 = vpop.permute.xlu1 %644 }
 0x292   : > { %v1967_v19 = vrot.slane %v6167_v18, 1  ;;  %v1205_v20 = vrot.slane %v5516_v55, 4  ;;  %v6197_v39 = vperm.slane %v990_v30, %v5533_v63  ;;  %v1123_v52 = vrot.slane %v6160_v22, 4 }
 0x293   : > { %v6186_v31 = vsel %vm1930_vm3, %v11291_v29, %v1943_v33  ;;  %v11293_v23 = vrot.slane %v6136_v43, 1  ;;  %v6206_v41 = vperm.slane %v1182_v59, %v5467_v36  ;;  %v6209_v56 = vperm.slane %v744_v62, %v5533_v63 }
 0x294   : > { %11292 = vst [vmem:[#allocation66_spill] sm:$0xff] %v6186_v31  ;;  %2276 = vrot.lane.b32.xlu2 %v6186_v31, %s5278_s26  ;;  %v880_v11 = vsel %vm681_vm2, %v5955_v6, %v879_v17  ;;  %v6220_v30 = vsel %vm1930_vm3, %v1967_v19, %v10850_v0  ;;  %v6224_v59 = vperm.slane %v992_v37, %v5533_v63  ;;  %v1950_v6 = vrot.slane %v5672_v8, 1 }
 0x295   : > { %v6203_v27 = vsel %vm1930_vm3, %v1943_v33, %v11293_v23  ;;  %11295 = vst [vmem:[#allocation68_spill] sm:$0xff] %v6220_v30  ;;  %v1011_v33 = vrot.slane %v6178_v35, 4  ;;  %v6231_v62 = vsel %vm681_vm2, %v6181_v3, %v1123_v52  ;;  %v1207_v29 = vrot.slane %v5495_v47, 4  ;;  %v6236_v23 = vpop.permute.xlu2 %646 }
 0x296   : > { %11294 = vst [vmem:[#allocation67_spill] sm:$0xff] %v6203_v27  ;;  %2278 = vrot.lane.b32.xlu0 %v6203_v27, %s5278_s26  ;;  %2298 = vrot.lane.b32.xlu1 %v6220_v30, %s5278_s26  ;;  %v767_v17 = vrot.slane %v5950_v49, 4  ;;  %v967_v19 = vrot.slane %v6116_v9, 4  ;;  %v11297_v37 = vrot.slane %v5975_v24, 4  ;;  %v1206_v30 = vsel %vm681_vm2, %v1205_v20, %v5495_v47 }
 0x297   : > { %11296 = vst [vmem:[#allocation69_spill] sm:$0xff] %v6231_v62  ;;  %v6245_v27 = vperm.slane %v880_v11, %v5533_v63  ;;  %v1949_v52 = vrot.slane %v5553_v10, 1  ;;  %v6250_v49 = vsel %vm681_vm2, %v6197_v39, %v1011_v33  ;;  %v855_v24 = vrot.slane %v6018_v5, 4 }
 0x298   : > { %v1152_v0 = vsel %vm681_vm2, %v6003_v60, %v11297_v37  ;;  %11298 = vst [vmem:[#allocation70_spill] sm:$0xff] %v6250_v49  ;;  %v768_v9 = vsel %vm681_vm2, %v5924_v4, %v767_v17  ;;  %v968_v60 = vsel %vm681_vm2, %v6073_v2, %v967_v19  ;;  %v1219_v47 = vrot.slane %v5504_v50, 4  ;;  %v11301_v4 = vld [vmem:[#allocation12_spill] sm:$0xff] }
 0x299   : > { %v1013_v20 = vrot.slane %v6224_v59, 4  ;;  %v6261_v11 = vperm.slane %v1152_v0, %v5533_v63  ;;  %v6264_v33 = vsel %vm1930_vm3, %v1949_v52, %v1950_v6  ;;  %v6267_v31 = vperm.slane %v1206_v30, %v5467_v36 }
 0x29a   : > { %11300 = vst [vmem:[#allocation72_spill] sm:$0xff] %v6264_v33  ;;  %v1217_v5 = vrot.slane %v11301_v4, 4  ;;  %v856_v2 = vsel %vm681_vm2, %v5979_v42, %v855_v24  ;;  %v10861_v17 = vrot.slane %v6250_v49, 1  ;;  %v776_v19 = vperm.slane %v768_v9, %v5533_v63 }
 0x29b   : > { %11299 = vst [vmem:[#allocation71_spill] sm:$0xff] %v6261_v11  ;;  %v901_v0 = vrot.slane %v6245_v27, 4  ;;  %v6278_v52 = vperm.slane %v968_v60, %v5533_v63  ;;  %v11302_v30 = vrot.slane %v5827_v44, 1  ;;  %v6287_v42 = vperm.slane %v1184_v25, %v5467_v36  ;;  %v11312_v44 = vld [vmem:[#allocation18_spill] sm:$0xff] }
 0x29c   : > { %2282 = vrot.lane.b32.xlu2 %v6264_v33, %s5278_s26  ;;  %v11305_v9 = vrot.slane %v6231_v62, 1  ;;  %v11307_v33 = vld [vmem:[#allocation6_spill] sm:$0xff]  ;;  %v1956_v25 = vrot.slane %v6261_v11, 1  ;;  %v787_v24 = vrot.slane %v6140_v38, 4  ;;  %v1119_v38 = vrot.slane %v6011_v15, 4 }
 0x29d   : > { %v6283_v37 = vsel %vm1930_vm3, %v1950_v6, %v11302_v30  ;;  %11304 = vst [vmem:[#allocation73_spill] sm:$0xff] %v6287_v42  ;;  %v864_v30 = vperm.slane %v856_v2, %v5533_v63  ;;  %v6306_v18 = vsel %vm681_vm2, %v1013_v20, %v6278_v52  ;;  %v6315_v2 = vpop.permute.xlu1 %653  ;;  %v1220_v20 = vsel %vm681_vm2, %v11301_v4, %v1219_v47  ;;  %v6325_v32 = vpop.permute.xlu2 %655 }
 0x29e   : > { %11303 = vst [vmem:[#allocation12_spill] sm:$0xff] %v6283_v37  ;;  %2284 = vrot.lane.b32.xlu0 %v6283_v37, %s5278_s26  ;;  %v6297_v60 = vsel %vm1930_vm3, %v10861_v17, %v11305_v9  ;;  %v791_v37 = vrot.slane %v6209_v56, 4  ;;  %v6312_v9 = vsel %vm681_vm2, %v5516_v55, %v1207_v29  ;;  %v789_v17 = vrot.slane %v776_v19, 4  ;;  %v11311_v29 = vld [vmem:[#allocation14_spill] sm:$0xff] }
 0x29f   : > { %11306 = vst [vmem:[#allocation74_spill] sm:$0xff] %v6297_v60  ;;  %2310 = vrot.lane.b32.xlu1 %v6297_v60, %s5278_s26  ;;  %v1218_v60 = vsel %vm681_vm2, %v1217_v5, %v5504_v50  ;;  %v6322_v10 = vsel %vm681_vm2, %v901_v0, %v864_v30  ;;  %v1121_v55 = vrot.slane %v6181_v3, 4  ;;  %v1958_v6 = vrot.slane %v11311_v29, 1 }
 0x2a0   : > { %11308 = vst [vmem:[#allocation6_spill] sm:$0xff] %v6306_v18  ;;  %v10873_v8 = vrot.slane %v6306_v18, 1  ;;  %v1305_v42 = vrot.slane %v11312_v44, 4  ;;  %v11313_v50 = vrot.slane %v6026_v14, 1  ;;  %v6337_v47 = vsel %vm681_vm2, %v776_v19, %v791_v37 }
 0x2a1   : > { %11309 = vst [vmem:[#allocation75_spill] sm:$0xff] %v6315_v2  ;;  %v6341_v15 = vsel %vm681_vm2, %v5992_v7, %v787_v24  ;;  %v1009_v3 = vrot.slane %v6197_v39, 4  ;;  %v1139_v4 = vrot.slane %v5983_v13, 4  ;;  %v1986_v0 = vrot.slane %v6322_v10, 1 }
 0x2a2   : > { %11310 = vst [vmem:[#allocation76_spill] sm:$0xff] %v6322_v10  ;;  %v6334_v5 = vsel %vm1930_vm3, %v11313_v50, %v1956_v25  ;;  %v6350_v25 = vsel %vm681_vm2, %v5971_v12, %v1119_v38  ;;  %v6353_v37 = vperm.slane %v1218_v60, %v5467_v36  ;;  %v6356_v19 = vperm.slane %v1220_v20, %v5467_v36  ;;  %v11329_v20 = vld [vmem:[#allocation25_spill] sm:$0xff] }
 0x2a3   : > { %11314 = vst [vmem:[#allocation18_spill] sm:$0xff] %v6334_v5  ;;  %v903_v7 = vrot.slane %v864_v30, 4  ;;  %v11319_v39 = vrot.slane %v5669_v40, 1  ;;  %v6368_v12 = vsel %vm1930_vm3, %v1986_v0, %v10873_v8  ;;  %v6372_v24 = vsel %vm681_vm2, %v1121_v55, %v6160_v22  ;;  %v11325_v55 = vld [vmem:[#allocation17_spill] sm:$0xff] }
 0x2a4   : > { %11315 = vst [vmem:[#allocation77_spill] sm:$0xff] %v6337_v47  ;;  %2288 = vrot.lane.b32.xlu2 %v6334_v5, %s5278_s26  ;;  %v1994_v60 = vrot.slane %v6337_v47, 1  ;;  %v6377_v30 = vsel %vm681_vm2, %v789_v17, %v6209_v56  ;;  %v1976_v22 = vrot.slane %v6341_v15, 1  ;;  %v1293_v50 = vrot.slane %v11325_v55, 4  ;;  %v11328_v17 = vld [vmem:[#allocation23_spill] sm:$0xff]  ;;  %v11331_v5 = vld [vmem:[#allocation46_spill] sm:$0xff] }
 0x2a5   : > { %11316 = vst [vmem:[#allocation78_spill] sm:$0xff] %v6341_v15  ;;  %v6361_v13 = vsel %vm1930_vm3, %v1958_v6, %v11319_v39  ;;  %v899_v6 = vrot.slane %v6057_v53, 4  ;;  %v6385_v38 = vsel %vm681_vm2, %v6245_v27, %v903_v7  ;;  %v11326_v39 = vld [vmem:[#allocation16_spill] sm:$0xff]  ;;  %v1140_v56 = vsel %vm681_vm2, 0.0, %v1139_v4  ;;  %v6405_v15 = vpop.permute.xlu1 %662  ;;  %v665_v40 = vpop.permute.xlu2 %664 }
 0x2a6   : > { %11317 = vst [vmem:[#allocation79_spill] sm:$0xff] %v6350_v25  ;;  %2290 = vrot.lane.b32.xlu0 %v6361_v13, %s5278_s26  ;;  %v1306_v8 = vsel %vm681_vm2, %v1305_v42, %v11326_v39  ;;  %v6394_v53 = vsel %vm681_vm2, %v1009_v3, %v6178_v35  ;;  %v1441_v47 = vrot.slane %v11331_v5, 4  ;;  %v1807_v42 = vrot.slane %v6047_v51, 4  ;;  %v11336_v51 = vld [vmem:[#allocation15_spill] sm:$0xff] }
 0x2a7   : > { %11318 = vst [vmem:[#allocation80_spill] sm:$0xff] %v6356_v19  ;;  %2316 = vrot.lane.b32.xlu1 %v6368_v12, %s5278_s26  ;;  %v6401_v7 = vsel %vm681_vm2, %v6039_v26, %v899_v6  ;;  %v1985_v35 = vrot.slane %v6377_v30, 1  ;;  %v1148_v3 = vperm.slane %v1140_v56, %v5467_v36  ;;  %v11333_v10 = vrot.slane %v6350_v25, 1  ;;  %v11343_v5 = vld [vmem:[#allocation55_spill] sm:$0xff] }
 0x2a8   : > { %11320 = vst [vmem:[#allocation81_spill] sm:$0xff] %v6361_v13  ;;  %v1329_v13 = vrot.slane %v11329_v20, 4  ;;  %v11334_v27 = vrot.slane %v5830_v61, 1  ;;  %v1970_v26 = vrot.slane %v6394_v53, 1  ;;  %v1173_v6 = vrot.slane %v6087_v58, 4 }
 0x2a9   : > { %11321 = vst [vmem:[#allocation82_spill] sm:$0xff] %v6368_v12  ;;  %v1317_v12 = vrot.slane %v11328_v17, 4  ;;  %v6421_v29 = vsel %vm681_vm2, %v1293_v50, %v11336_v51  ;;  %v6424_v4 = vperm.slane %v1306_v8, %v5467_v36  ;;  %v1553_v50 = vrot.slane %v6405_v15, 4  ;;  %v11344_v17 = vld [vmem:[#allocation53_spill] sm:$0xff] }
 0x2aa   : > { %11322 = vst [vmem:[#allocation83_spill] sm:$0xff] %v6372_v24  ;;  %v6415_v14 = vsel %vm1930_vm3, %v11334_v27, %v11333_v10  ;;  %v1977_v10 = vrot.slane %v6401_v7, 1  ;;  %v11338_v27 = vld [vmem:[#allocation19_spill] sm:$0xff]  ;;  %v11340_v8 = vrot.slane %v6372_v24, 1  ;;  %v1161_v62 = vrot.slane %v1148_v3, 4 }
 0x2ab   : > { %11323 = vst [vmem:[#allocation84_spill] sm:$0xff] %v6377_v30  ;;  %v11337_v30 = vld [vmem:[#allocation35_spill] sm:$0xff]  ;;  %v6432_v61 = vsel %vm681_vm2, %v1317_v12, %v11338_v27  ;;  %v1808_v12 = vsel %vm681_vm2, %v1807_v42, %v11344_v17  ;;  %v1103_v27 = vrot.slane %v6125_v45, 4  ;;  %v11349_v42 = vld [vmem:[#allocation45_spill] sm:$0xff] }
 0x2ac   : > { %11324 = vst [vmem:[#allocation85_spill] sm:$0xff] %v6385_v38  ;;  %v1417_v56 = vrot.slane %v11337_v30, 4  ;;  %2294 = vrot.lane.b32.xlu2 %v6415_v14, %s5278_s26  ;;  %v6442_v30 = vsel %vm1930_vm3, %v1970_v26, %v11340_v8  ;;  %v1819_v8 = vrot.slane %v665_v40, 4  ;;  %v1812_v45 = vperm.slane %v1808_v12, %v5467_v36 }
 0x2ad   : > { %11327 = vst [vmem:[#allocation17_spill] sm:$0xff] %v6394_v53  ;;  %v11339_v53 = vld [vmem:[#allocation20_spill] sm:$0xff]  ;;  %v11353_v12 = vrot.slane %v6147_v57, 1 }
 0x2ae   : > { %11330 = vst [vmem:[#allocation16_spill] sm:$0xff] %v6401_v7  ;;  %v6436_v58 = vsel %vm681_vm2, %v1329_v13, %v11339_v53  ;;  %v1801_v7 = vrot.slane %v11343_v5, 4  ;;  %2302 = vrot.lane.b32.xlu0 %v6442_v30, %s5278_s26  ;;  %v11345_v13 = vrot.slane %v6385_v38, 1  ;;  %v6460_v5 = vsel %vm681_vm2, 0.0, %v1173_v6 }
 0x2af   : > { %11332 = vst [vmem:[#allocation25_spill] sm:$0xff] %v6405_v15  ;;  %v1104_v6 = vsel %vm681_vm2, %v6083_v54, %v1103_v27  ;;  %v6490_v54 = vsel %vm1930_vm3, %v11353_v12, %v1970_v26  ;;  %v1162_v27 = vsel %vm681_vm2, %v1161_v62, %v6006_v46  ;;  %v1813_v62 = vrot.slane %v6325_v32, 4 }
 0x2b0   : > { %11335 = vst [vmem:[#allocation86_spill] sm:$0xff] %v6415_v14  ;;  %v1442_v14 = vsel %vm681_vm2, %v1441_v47, %v11342_v48  ;;  %v6454_v15 = vsel %vm1930_vm3, %v1994_v60, %v11345_v13  ;;  %v11348_v47 = vld [vmem:[#allocation30_spill] sm:$0xff]  ;;  %v6466_v48 = vsel %vm1930_vm3, %v1976_v22, %v1977_v10  ;;  %v6469_v60 = vsel %vm1930_vm3, %v1985_v35, %v1986_v0 }
 0x2b1   : > { %11341 = vst [vmem:[#allocation15_spill] sm:$0xff] %v6442_v30  ;;  %2322 = vrot.lane.b32.xlu1 %v6454_v15, %s5278_s26  ;;  %v1418_v17 = vsel %vm681_vm2, %v1417_v56, %v11348_v47  ;;  %v1429_v30 = vrot.slane %v11349_v42, 4  ;;  %v6472_v40 = vperm.slane %v1442_v14, %v5467_v36  ;;  %v1554_v13 = vsel %vm681_vm2, %v1553_v50, %v6213_v16  ;;  %v11352_v56 = vld [vmem:[#allocation50_spill] sm:$0xff] }
 0x2b2   : > { %11346 = vst [vmem:[#allocation20_spill] sm:$0xff] %v6454_v15  ;;  %v1802_v15 = vsel %vm681_vm2, %v1801_v7, %v11352_v56  ;;  %v1079_v22 = vrot.slane %v6109_v34, 4  ;;  %v1529_v42 = vrot.slane %v6033_v21, 4  ;;  %v1947_v0 = vrot.slane %v6460_v5, 1 }
 0x2b3   : > { %11347 = vst [vmem:[#allocation55_spill] sm:$0xff] %v6460_v5  ;;  %v1541_v14 = vrot.slane %v6315_v2, 4  ;;  %v1820_v35 = vsel %vm681_vm2, %v1819_v8, %v6236_v23  ;;  %v1112_v7 = vperm.slane %v1104_v6, %v5533_v63  ;;  %v6498_v50 = vperm.slane %v1554_v13, %v5467_v36  ;;  %v11358_v6 = vld [vmem:[#allocation52_spill] sm:$0xff] }
 0x2b4   : > { %11350 = vst [vmem:[#allocation53_spill] sm:$0xff] %v6466_v48  ;;  %v1080_v34 = vsel %vm681_vm2, %v6062_v1, %v1079_v22  ;;  %v11355_v56 = vrot.slane %v6006_v46, 4  ;;  %2300 = vrot.lane.b32.xlu2 %v6490_v54, %s5278_s26  ;;  %v1806_v26 = vperm.slane %v1802_v15, %v5467_v36  ;;  %v1825_v8 = vrot.slane %v1812_v45, 4  ;;  %v11361_v45 = vld [vmem:[#allocation54_spill] sm:$0xff] }
 0x2b5   : > { %11351 = vst [vmem:[#allocation30_spill] sm:$0xff] %v6469_v60  ;;  %v11356_v12 = vrot.slane %v6250_v49, 1  ;;  %v1530_v13 = vsel %vm681_vm2, %v1529_v42, %v11358_v6  ;;  %v1824_v46 = vperm.slane %v1820_v35, %v5467_v36  ;;  %v6523_v32 = vperm.slane %v1162_v27, %v5533_v63 }
 0x2b6   : > { %11354 = vst [vmem:[#allocation50_spill] sm:$0xff] %v6490_v54  ;;  %v1164_v23 = vsel %vm681_vm2, %v1148_v3, %v11355_v56  ;;  %v11359_v3 = vrot.slane %v6136_v43, 1  ;;  %v1517_v22 = vrot.slane %v11361_v45, 4  ;;  %v1542_v42 = vsel %vm681_vm2, %v1541_v14, %v6111_v28  ;;  %v11362_v56 = vld [vmem:[#allocation32_spill] sm:$0xff] }
 0x2b7   : > { %v6510_v1 = vsel %vm1930_vm3, %v1977_v10, %v11356_v12  ;;  %v1088_v10 = vperm.slane %v1080_v34, %v5533_v63  ;;  %v6530_v35 = vperm.slane %v1164_v23, %v5533_v63  ;;  %v1405_v12 = vrot.slane %v11362_v56, 4  ;;  %v11364_v14 = vld [vmem:[#allocation60_spill] sm:$0xff] }
 0x2b8   : > { %11357 = vst [vmem:[#allocation87_spill] sm:$0xff] %v6510_v1  ;;  %2308 = vrot.lane.b32.xlu0 %v6510_v1, %s5278_s26  ;;  %v6520_v15 = vsel %vm1930_vm3, %v11359_v3, %v1947_v0  ;;  %v11363_v0 = vld [vmem:[#allocation36_spill] sm:$0xff]  ;;  %v1125_v27 = vrot.slane %v1112_v7, 4  ;;  %v1589_v1 = vrot.slane %v6498_v50, 4  ;;  %v1477_v54 = vrot.slane %v6472_v40, 4 }
 0x2b9   : > { %11360 = vst [vmem:[#allocation52_spill] sm:$0xff] %v6520_v15  ;;  %2280 = vrot.lane.b32.xlu1 %v6520_v15, %s5278_s26  ;;  %v1430_v3 = vsel %vm681_vm2, %v1429_v30, %v11363_v0  ;;  %v6540_v34 = vperm.slane %v1530_v13, %v5467_v36  ;;  %v1814_v23 = vsel %vm681_vm2, %v1813_v62, %v11364_v14  ;;  %v1831_v30 = vrot.slane %v1824_v46, 4  ;;  %v11365_v45 = vld [vmem:[#allocation48_spill] sm:$0xff] }
 0x2ba   : > { %v1826_v57 = vsel %vm681_vm2, %v1825_v8, %v1806_v26  ;;  %v6546_v15 = vperm.slane %v1418_v17, %v5467_v36  ;;  %v6549_v49 = vperm.slane %v1542_v42, %v5467_v36  ;;  %v1974_v5 = vrot.slane %v6523_v32, 1  ;;  %v11368_v42 = vld [vmem:[#allocation28_spill] sm:$0xff] }
 0x2bb   : > { %v6553_v43 = vperm.slane %v1430_v3, %v5467_v36  ;;  %v1518_v13 = vsel %vm681_vm2, %v1517_v22, %v11365_v45  ;;  %v1127_v2 = vrot.slane %v1088_v10, 4  ;;  %v1179_v62 = vrot.slane %v6530_v35, 4 }
 0x2bc   : > { %v1818_v26 = vperm.slane %v1814_v23, %v5467_v36  ;;  %v1590_v17 = vsel %vm681_vm2, %v1589_v1, %v6549_v49  ;;  %2306 = vrot.lane.b32.xlu2 %v6466_v48, %s5278_s26  ;;  %v6564_v8 = vsel %vm681_vm2, %v1125_v27, %v1088_v10  ;;  %v6567_v46 = vperm.slane %v1826_v57, %v5533_v63  ;;  %v6592_v27 = vpop.permute.xlu0 %392 }
 0x2bd   : > { %11366 = vst [vmem:[#allocation32_spill] sm:$0xff] %v6564_v8  ;;  %v1406_v22 = vsel %vm681_vm2, %v1405_v12, %v11368_v42  ;;  %v1015_v3 = vrot.slane %v6278_v52, 4  ;;  %v1478_v14 = vsel %vm681_vm2, %v1477_v54, %v6553_v43  ;;  %v1565_v23 = vrot.slane %v6540_v34, 4 }
 0x2be   : > { %11367 = vst [vmem:[#allocation36_spill] sm:$0xff] %v6567_v46  ;;  %v6576_v1 = vperm.slane %v1518_v13, %v5467_v36  ;;  %v11369_v10 = vrot.slane %v6372_v24, 1  ;;  %v6586_v12 = vsel %vm681_vm2, %v1112_v7, %v1127_v2  ;;  %v1832_v52 = vsel %vm681_vm2, %v1831_v30, %v1818_v26 }
 0x2bf   : > { %11371 = vst [vmem:[#allocation48_spill] sm:$0xff] %v6586_v12  ;;  %v6590_v54 = vperm.slane %v1590_v17, %v5533_v63  ;;  %v1336_v2 = vperm.slane %v6436_v58, %v5467_v36  ;;  %v1453_v7 = vrot.slane %v6546_v15, 4  ;;  %v6608_v30 = vsel %vm681_vm2, %v6224_v59, %v1015_v3 }
 0x2c0   : > { %2314 = vrot.lane.b32.xlu0 %v6469_v60, %s5278_s26  ;;  %v6583_v57 = vsel %vm1930_vm3, %v11369_v10, %v1974_v5  ;;  %v6598_v60 = vsel %vm681_vm2, 0.0, %v1179_v62  ;;  %v6601_v5 = vperm.slane %v1832_v52, %v5533_v63  ;;  %11374 = vst [vmem:[#allocation89_spill] sm:$0xff] %v6608_v30  ;;  %v1839_v26 = vrot.slane %v6567_v46, 4 }
 0x2c1   : > { %11370 = vst [vmem:[#allocation60_spill] sm:$0xff] %v6583_v57  ;;  %2304 = vrot.lane.b32.xlu1 %v6583_v57, %s5278_s26  ;;  %v6612_v17 = vperm.slane %v1406_v22, %v5467_v36  ;;  %v6615_v62 = vperm.slane %v1478_v14, %v5533_v63  ;;  %v1566_v10 = vsel %vm681_vm2, %v1565_v23, %v6576_v1  ;;  %v1999_v52 = vrot.slane %v6586_v12, 1 }
 0x2c2   : > { %11372 = vst [vmem:[#allocation28_spill] sm:$0xff] %v6598_v60  ;;  %v11375_v58 = vrot.slane %v11307_v33, 4  ;;  %v2001_v59 = vrot.slane %v6598_v60, 1  ;;  %v1175_v3 = vrot.slane %v6261_v11, 4  ;;  %v6628_v22 = vsel %vm681_vm2, %v6601_v5, %v1839_v26 }
 0x2c3   : > { %11373 = vst [vmem:[#allocation88_spill] sm:$0xff] %v6601_v5  ;;  %v1324_v14 = vperm.slane %v6432_v61, %v5467_v36  ;;  %v11377_v23 = vrot.slane %v6564_v8, 1  ;;  %v11378_v57 = vrot.slane %v6306_v18, 1  ;;  %v1613_v46 = vrot.slane %v6590_v54, 4 }
 0x2c4   : > { %v1194_v13 = vsel %vm681_vm2, %v11375_v58, %v6592_v27  ;;  %11376 = vst [vmem:[#allocation90_spill] sm:$0xff] %v6628_v22  ;;  %v1997_v58 = vrot.slane %v6608_v30, 1  ;;  %v1253_v60 = vrot.slane %v6353_v37, 4  ;;  %v1265_v12 = vrot.slane %v6356_v19, 4 }
 0x2c5   : > { %v6637_v48 = vsel %vm1930_vm3, %v11378_v57, %v11377_v23  ;;  %v1341_v26 = vrot.slane %v6424_v4, 4  ;;  %v1454_v61 = vsel %vm681_vm2, %v1453_v7, %v6612_v17  ;;  %v6649_v22 = vperm.slane %v1566_v10, %v5533_v63 }
 0x2c6   : > { %11379 = vst [vmem:[#allocation91_spill] sm:$0xff] %v6637_v48  ;;  %2318 = vrot.lane.b32.xlu2 %v6637_v48, %s5278_s26  ;;  %v1200_v57 = vperm.slane %v1194_v13, %v5467_v36  ;;  %v6653_v23 = vsel %vm1930_vm3, %v1997_v58, %v1999_v52  ;;  %v1501_v5 = vrot.slane %v6615_v62, 4  ;;  %v1300_v18 = vperm.slane %v6421_v29, %v5467_v36 }
 0x2c7   : > { %11380 = vst [vmem:[#allocation92_spill] sm:$0xff] %v6653_v23  ;;  %v1365_v30 = vrot.slane %v1336_v2, 4  ;;  %v6661_v7 = vsel %vm1930_vm3, %v1999_v52, %v2001_v59  ;;  %v6664_v10 = vsel %vm681_vm2, 0.0, %v1175_v3  ;;  %v11382_v13 = vrot.slane %v6267_v31, 4 }
 0x2c8   : > { %2326 = vrot.lane.b32.xlu0 %v6653_v23, %s5278_s26  ;;  %11381 = vst [vmem:[#allocation93_spill] sm:$0xff] %v6661_v7  ;;  %v1367_v24 = vrot.slane %v1324_v14, 4  ;;  %v1460_v11 = vperm.slane %v1454_v61, %v5533_v63  ;;  %v6675_v29 = vsel %vm681_vm2, %v1613_v46, %v6649_v22  ;;  %v6679_v52 = vperm.slane %v6312_v9, %v5467_v36 }
 0x2c9   : > { %v1256_v48 = vsel %vm681_vm2, %v6353_v37, %v11382_v13  ;;  %2328 = vrot.lane.b32.xlu1 %v6661_v7, %s5278_s26  ;;  %11383 = vst [vmem:[#allocation94_spill] sm:$0xff] %v6675_v29  ;;  %v1254_v59 = vsel %vm681_vm2, %v1253_v60, %v6267_v31  ;;  %v1342_v3 = vsel %vm681_vm2, %v1341_v26, %v1300_v18  ;;  %v1177_v37 = vrot.slane %v6523_v32, 4 }
 0x2ca   : > { %v1368_v61 = vsel %vm681_vm2, %v1336_v2, %v1367_v24  ;;  %v1229_v13 = vrot.slane %v1200_v57, 4  ;;  %v1965_v7 = vrot.slane %v6664_v10, 1  ;;  %v6688_v23 = vsel %vm681_vm2, %v1501_v5, %v1460_v11 }
 0x2cb   : > { %11384 = vst [vmem:[#allocation95_spill] sm:$0xff] %v6688_v23  ;;  %v6691_v46 = vperm.slane %v1256_v48, %v5533_v63  ;;  %v1307_v9 = vrot.slane %v11326_v39, 4  ;;  %v1366_v19 = vsel %vm681_vm2, %v1365_v30, %v1324_v14  ;;  %v10949_v31 = vrot.slane %v6675_v29, 1  ;;  %v6717_v14 = vpop.permute.xlu1 %674 }
 0x2cc   : > { %v6698_v60 = vsel %vm681_vm2, %v1265_v12, %v6679_v52  ;;  %v1343_v24 = vrot.slane %v1300_v18, 4  ;;  %v1348_v2 = vperm.slane %v1342_v3, %v5533_v63  ;;  %v11385_v26 = vrot.slane %v6385_v38, 1 }
 0x2cd   : > { %v1295_v48 = vrot.slane %v11336_v51, 4  ;;  %v6708_v39 = vperm.slane %v1368_v61, %v5533_v63  ;;  %v6714_v12 = vsel %vm681_vm2, 0.0, %v1177_v37  ;;  %v1372_v18 = vperm.slane %v1366_v19, %v5533_v63 }
 0x2ce   : > { %v6704_v5 = vsel %vm1930_vm3, %v11385_v26, %v1997_v58  ;;  %11387 = vst [vmem:[#allocation97_spill] sm:$0xff] %v6714_v12  ;;  %v1230_v58 = vsel %vm681_vm2, %v1229_v13, %v6206_v41  ;;  %v11388_v51 = vrot.slane %v6350_v25, 1  ;;  %v1503_v61 = vrot.slane %v1460_v11, 4 }
 0x2cf   : > { %11386 = vst [vmem:[#allocation96_spill] sm:$0xff] %v6704_v5  ;;  %2324 = vrot.lane.b32.xlu2 %v6704_v5, %s5278_s26  ;;  %v6727_v26 = vperm.slane %v1254_v59, %v5533_v63  ;;  %v1308_v37 = vsel %vm681_vm2, %v11312_v44, %v1307_v9  ;;  %v1331_v30 = vrot.slane %v11339_v53, 4  ;;  %v11390_v19 = vrot.slane %v6688_v23, 1 }
 0x2d0   : > { %v6724_v3 = vsel %vm1930_vm3, %v11388_v51, %v1965_v7  ;;  %v1344_v11 = vsel %vm681_vm2, %v6424_v4, %v1343_v24  ;;  %v1983_v44 = vrot.slane %v6714_v12, 1  ;;  %v1391_v7 = vrot.slane %v1348_v2, 4 }
 0x2d1   : > { %11389 = vst [vmem:[#allocation98_spill] sm:$0xff] %v6724_v3  ;;  %2296 = vrot.lane.b32.xlu0 %v6724_v3, %s5278_s26  ;;  %v6739_v13 = vsel %vm1930_vm3, %v11390_v19, %v10949_v31  ;;  %v6748_v53 = vsel %vm681_vm2, %v6615_v62, %v1503_v61  ;;  %v1332_v59 = vsel %vm681_vm2, %v11329_v20, %v1331_v30  ;;  %v11393_v51 = vrot.slane %v6206_v41, 4 }
 0x2d2   : > { %11391 = vst [vmem:[#allocation99_spill] sm:$0xff] %v6739_v13  ;;  %2334 = vrot.lane.b32.xlu1 %v6739_v13, %s5278_s26  ;;  %v1644_v9 = vperm.slane %v6717_v14, %v5467_v36  ;;  %v6758_v24 = vperm.slane %v1230_v58, %v5533_v63  ;;  %v1296_v19 = vsel %vm681_vm2, %v11325_v55, %v1295_v48  ;;  %v1393_v31 = vrot.slane %v6708_v39, 4 }
 0x2d3   : > { %11392 = vst [vmem:[#allocation100_spill] sm:$0xff] %v6748_v53  ;;  %v1232_v4 = vsel %vm681_vm2, %v1200_v57, %v11393_v51  ;;  %v1992_v62 = vrot.slane %v6530_v35, 1  ;;  %v6765_v61 = vsel %vm681_vm2, %v1372_v18, %v1391_v7  ;;  %v6768_v20 = vperm.slane %v1308_v37, %v5467_v36  ;;  %v11395_v51 = vld [vmem:[#allocation69_spill] sm:$0xff] }
 0x2d4   : > { %11394 = vst [vmem:[#allocation101_spill] sm:$0xff] %v6765_v61  ;;  %v1277_v57 = vrot.slane %v6727_v26, 4  ;;  %v1389_v30 = vrot.slane %v1372_v18, 4  ;;  %v6773_v58 = vperm.slane %v1344_v11, %v5533_v63  ;;  %v6776_v55 = vperm.slane %v1332_v59, %v5467_v36 }
 0x2d5   : > { %v6779_v48 = vperm.slane %v1232_v4, %v5533_v63  ;;  %v11396_v7 = vrot.slane %v11395_v51, 1  ;;  %v1591_v37 = vrot.slane %v6549_v49, 4  ;;  %v1649_v41 = vrot.slane %v1644_v9, 4  ;;  %v11399_v4 = vld [vmem:[#allocation19_spill] sm:$0xff] }
 0x2d6   : > { %v6792_v11 = vsel %vm681_vm2, %v1277_v57, %v6758_v24  ;;  %v1281_v59 = vrot.slane %v6691_v46, 4  ;;  %v1319_v5 = vrot.slane %v11399_v4, 4  ;;  %v11400_v3 = vrot.slane %v6564_v8, 1 }
 0x2d7   : > { %v6784_v13 = vsel %vm1930_vm3, %v11396_v7, %v1983_v44  ;;  %11398 = vst [vmem:[#allocation103_spill] sm:$0xff] %v6792_v11  ;;  %v6803_v49 = vsel %vm681_vm2, %v1393_v31, %v6773_v58  ;;  %v11403_v7 = vld [vmem:[#allocation41_spill] sm:$0xff]  ;;  %v1592_v18 = vsel %vm681_vm2, %v6498_v50, %v1591_v37  ;;  %v11404_v57 = vrot.slane %v6748_v53, 1 }
 0x2d8   : > { %11397 = vst [vmem:[#allocation102_spill] sm:$0xff] %v6784_v13  ;;  %2312 = vrot.lane.b32.xlu2 %v6784_v13, %s5278_s26  ;;  %v6799_v44 = vsel %vm1930_vm3, %v11400_v3, %v1992_v62  ;;  %v1443_v13 = vrot.slane %v11403_v7, 4  ;;  %v11405_v4 = vrot.slane %v6765_v61, 1  ;;  %v6818_v3 = vsel %vm681_vm2, %v1389_v30, %v1348_v2  ;;  %v11409_v7 = vld [vmem:[#allocation23_spill] sm:$0xff]  ;;  %v11410_v30 = vld [vmem:[#allocation46_spill] sm:$0xff] }
 0x2d9   : > { %11401 = vst [vmem:[#allocation19_spill] sm:$0xff] %v6799_v44  ;;  %2320 = vrot.lane.b32.xlu0 %v6799_v44, %s5278_s26  ;;  %v6821_v31 = vperm.slane %v1296_v19, %v5467_v36  ;;  %v2003_v50 = vrot.slane %v6792_v11, 1  ;;  %v6829_v37 = vsel %vm681_vm2, %v1281_v59, %v6779_v48  ;;  %v1377_v2 = vrot.slane %v6776_v55, 4 }
 0x2da   : > { %11402 = vst [vmem:[#allocation104_spill] sm:$0xff] %v6803_v49  ;;  %v6815_v38 = vsel %vm1930_vm3, %v11405_v4, %v11404_v57  ;;  %v1320_v57 = vsel %vm681_vm2, %v11409_v7, %v1319_v5  ;;  %v1444_v19 = vsel %vm681_vm2, %v11410_v30, %v1443_v13  ;;  %v11411_v4 = vld [vmem:[#allocation64_spill] sm:$0xff]  ;;  %v1419_v44 = vrot.slane %v11348_v47, 4 }
 0x2db   : > { %11406 = vst [vmem:[#allocation41_spill] sm:$0xff] %v6815_v38  ;;  %2340 = vrot.lane.b32.xlu1 %v6815_v38, %s5278_s26  ;;  %v1650_v62 = vsel %vm681_vm2, %v1649_v41, %v11411_v4  ;;  %v6840_v38 = vperm.slane %v1592_v18, %v5533_v63  ;;  %v2004_v11 = vrot.slane %v6818_v3, 1  ;;  %v1479_v12 = vrot.slane %v6553_v43, 4 }
 0x2dc   : > { %11407 = vst [vmem:[#allocation105_spill] sm:$0xff] %v6818_v3  ;;  %v1567_v5 = vrot.slane %v6576_v1, 4  ;;  %v1279_v7 = vrot.slane %v6758_v24, 4  ;;  %v2021_v13 = vrot.slane %v6829_v37, 1  ;;  %v6849_v30 = vperm.slane %v1444_v19, %v5467_v36 }
 0x2dd   : > { %11408 = vst [vmem:[#allocation106_spill] sm:$0xff] %v6829_v37  ;;  %v11412_v47 = vrot.slane %v11411_v4, 4  ;;  %v6855_v18 = vsel %vm1930_vm3, %v2003_v50, %v2004_v11  ;;  %v6858_v59 = vperm.slane %v1650_v62, %v5533_v63  ;;  %v1455_v43 = vrot.slane %v6612_v17, 4 }
 0x2de   : > { %11413 = vst [vmem:[#allocation23_spill] sm:$0xff] %v6855_v18  ;;  %v1431_v1 = vrot.slane %v11363_v0, 4  ;;  %v1480_v24 = vsel %vm681_vm2, %v6472_v40, %v1479_v12  ;;  %v1568_v19 = vsel %vm681_vm2, %v6540_v34, %v1567_v5  ;;  %v1617_v4 = vrot.slane %v6840_v38, 4  ;;  %v6879_v12 = vpop.permute.xlu2 %676 }
 0x2df   : > { %v1652_v41 = vsel %vm681_vm2, %v1644_v9, %v11412_v47  ;;  %v11414_v9 = vld [vmem:[#allocation35_spill] sm:$0xff]  ;;  %v1195_v62 = vrot.slane %v6592_v27, 4  ;;  %v11415_v17 = vrot.slane %v6688_v23, 1  ;;  %v11417_v47 = vld [vmem:[#allocation45_spill] sm:$0xff]  ;;  %11418 = vst [vmem:[#allocation64_spill] sm:$0xff] %v6879_v12  ;;  %v1488_v5 = vperm.slane %v1480_v24, %v5533_v63 }
 0x2e0   : > { %2330 = vrot.lane.b32.xlu2 %v6855_v18, %s5278_s26  ;;  %v1420_v50 = vsel %vm681_vm2, %v11414_v9, %v1419_v44  ;;  %v1432_v40 = vsel %vm681_vm2, %v11417_v47, %v1431_v1  ;;  %v6882_v34 = vperm.slane %v1652_v41, %v5533_v63  ;;  %v11419_v44 = vrot.slane %v6803_v49, 1  ;;  %v6898_v41 = vpop.permute.xlu1 %394 }
 0x2e1   : > { %v6875_v0 = vsel %vm1930_vm3, %v2004_v11, %v11415_v17  ;;  %v6893_v11 = vsel %vm681_vm2, %v6727_v26, %v1279_v7  ;;  %v1489_v1 = vrot.slane %v6849_v30, 4  ;;  %v1576_v9 = vperm.slane %v1568_v19, %v5533_v63  ;;  %11422 = vst [vmem:[#allocation107_spill] sm:$0xff] %v6898_v41 }
 0x2e2   : > { %11416 = vst [vmem:[#allocation46_spill] sm:$0xff] %v6875_v0  ;;  %2332 = vrot.lane.b32.xlu0 %v6875_v0, %s5278_s26  ;;  %v6889_v27 = vsel %vm1930_vm3, %v2021_v13, %v11419_v44  ;;  %v2010_v17 = vrot.slane %v6858_v59, 1  ;;  %v6904_v13 = vperm.slane %v1320_v57, %v5467_v36  ;;  %v1407_v47 = vrot.slane %v11368_v42, 4 }
 0x2e3   : > { %11420 = vst [vmem:[#allocation35_spill] sm:$0xff] %v6889_v27  ;;  %2346 = vrot.lane.b32.xlu1 %v6889_v27, %s5278_s26  ;;  %v6908_v26 = vperm.slane %v1420_v50, %v5467_v36  ;;  %v1456_v7 = vsel %vm681_vm2, %v6546_v15, %v1455_v43  ;;  %v6913_v24 = vperm.slane %v1432_v40, %v5467_v36  ;;  %v2012_v44 = vrot.slane %v6893_v11, 1 }
 0x2e4   : > { %11421 = vst [vmem:[#allocation45_spill] sm:$0xff] %v6893_v11  ;;  %v1196_v19 = vsel %vm681_vm2, %v11307_v33, %v1195_v62  ;;  %v6919_v12 = vsel %vm681_vm2, %v1617_v4, %v1576_v9  ;;  %v1378_v42 = vsel %vm681_vm2, %v1377_v2, %v6904_v13  ;;  %v1408_v57 = vsel %vm681_vm2, %v11362_v56, %v1407_v47 }
 0x2e5   : > { %11423 = vst [vmem:[#allocation108_spill] sm:$0xff] %v6919_v12  ;;  %v2028_v50 = vrot.slane %v6882_v34, 1  ;;  %v1615_v15 = vrot.slane %v6649_v22, 4  ;;  %v1464_v43 = vperm.slane %v1456_v7, %v5533_v63  ;;  %v1490_v33 = vsel %vm681_vm2, %v1489_v1, %v6913_v24 }
 0x2e6   : > { %v1505_v62 = vrot.slane %v1488_v5, 4  ;;  %v11424_v40 = vrot.slane %v6675_v29, 1  ;;  %v1555_v2 = vrot.slane %v6213_v16, 4  ;;  %v6937_v27 = vperm.slane %v1196_v19, %v5467_v36 }
 0x2e7   : > { %v2026_v56 = vrot.slane %v6919_v12, 1  ;;  %v6944_v22 = vsel %vm681_vm2, %v6590_v54, %v1615_v15  ;;  %v11427_v1 = vrot.slane %v6768_v20, 4  ;;  %v1465_v47 = vrot.slane %v6908_v26, 4  ;;  %v11430_v54 = vld [vmem:[#allocation25_spill] sm:$0xff] }
 0x2e8   : > { %v6933_v4 = vsel %vm1930_vm3, %v11424_v40, %v2010_v17  ;;  %11426 = vst [vmem:[#allocation110_spill] sm:$0xff] %v6944_v22  ;;  %v1619_v16 = vrot.slane %v1576_v9, 4  ;;  %v11428_v7 = vrot.slane %v6765_v61, 1  ;;  %v6957_v40 = vperm.slane %v1378_v42, %v5533_v63  ;;  %v6974_v42 = vpop.permute.xlu1 %2268 }
 0x2e9   : > { %11425 = vst [vmem:[#allocation109_spill] sm:$0xff] %v6933_v4  ;;  %2336 = vrot.lane.b32.xlu2 %v6933_v4, %s5278_s26  ;;  %v1354_v17 = vsel %vm681_vm2, %v11427_v1, %v6821_v31  ;;  %v6960_v0 = vperm.slane %v1408_v57, %v5467_v36  ;;  %v1556_v15 = vsel %vm681_vm2, %v11430_v54, %v1555_v2  ;;  %v6966_v1 = vpop.permute.xlu2 %2270  ;;  %v1507_v4 = vrot.slane %v1464_v43, 4 }
 0x2ea   : > { %v6954_v19 = vsel %vm1930_vm3, %v2012_v44, %v11428_v7  ;;  %11431 = vst [vmem:[#allocation25_spill] sm:$0xff] %v6966_v1  ;;  %v6969_v9 = vsel %vm1930_vm3, %v2026_v56, %v2028_v50  ;;  %v6972_v44 = vperm.slane %v1490_v33, %v5533_v63  ;;  %v6981_v2 = vsel %vm681_vm2, %v6840_v38, %v1619_v16 }
 0x2eb   : > { %11429 = vst [vmem:[#allocation111_spill] sm:$0xff] %v6954_v19  ;;  %2338 = vrot.lane.b32.xlu0 %v6954_v19, %s5278_s26  ;;  %2352 = vrot.lane.b32.xlu1 %v6969_v9, %s5278_s26  ;;  %v6985_v7 = vperm.slane %v6698_v60, %v5533_v63  ;;  %v1531_v50 = vrot.slane %v11358_v6, 4  ;;  %v1241_v33 = vrot.slane %v6937_v27, 4  ;;  %v6990_v54 = vsel %vm681_vm2, %v1505_v62, %v1464_v43 }
 0x2ec   : > { %11432 = vst [vmem:[#allocation112_spill] sm:$0xff] %v6969_v9  ;;  %v1466_v1 = vsel %vm681_vm2, %v1465_v47, %v6960_v0  ;;  %v1543_v57 = vrot.slane %v6111_v28, 4  ;;  %v6997_v38 = vsel %vm681_vm2, %v1488_v5, %v1507_v4  ;;  %v7000_v60 = vperm.slane %v1354_v17, %v5533_v63  ;;  %v11437_v47 = vld [vmem:[#allocation75_spill] sm:$0xff] }
 0x2ed   : > { %11433 = vst [vmem:[#allocation113_spill] sm:$0xff] %v6974_v42  ;;  %v1564_v42 = vperm.slane %v1556_v15, %v5467_v36  ;;  %v1397_v6 = vrot.slane %v6957_v40, 4  ;;  %v1532_v16 = vsel %vm681_vm2, %v6033_v21, %v1531_v50  ;;  %v1509_v62 = vrot.slane %v6972_v44, 4  ;;  %v11441_v50 = vld [vmem:[#allocation73_spill] sm:$0xff] }
 0x2ee   : > { %11434 = vst [vmem:[#allocation114_spill] sm:$0xff] %v6981_v2  ;;  %v1544_v28 = vsel %vm681_vm2, %v11437_v47, %v1543_v57  ;;  %v11438_v15 = vrot.slane %v6944_v22, 1  ;;  %v11439_v5 = vrot.slane %v6748_v53, 1  ;;  %v2024_v17 = vrot.slane %v6990_v54, 1 }
 0x2ef   : > { %11435 = vst [vmem:[#allocation115_spill] sm:$0xff] %v6990_v54  ;;  %v1395_v9 = vrot.slane %v6773_v58, 4  ;;  %v7019_v21 = vperm.slane %v1466_v1, %v5533_v63  ;;  %v1242_v43 = vsel %vm681_vm2, %v1241_v33, %v11441_v50  ;;  %v2033_v57 = vrot.slane %v6997_v38, 1 }
 0x2f0   : > { %11436 = vst [vmem:[#allocation116_spill] sm:$0xff] %v6997_v38  ;;  %v7014_v4 = vsel %vm1930_vm3, %v11439_v5, %v11438_v15  ;;  %v1540_v47 = vperm.slane %v1532_v16, %v5467_v36  ;;  %v1601_v19 = vrot.slane %v1564_v42, 4  ;;  %v1639_v15 = vrot.slane %v6717_v14, 4 }
 0x2f1   : > { %11440 = vst [vmem:[#allocation75_spill] sm:$0xff] %v7014_v4  ;;  %2342 = vrot.lane.b32.xlu2 %v7014_v4, %s5278_s26  ;;  %v7029_v5 = vsel %vm1930_vm3, %v2024_v17, %v2026_v56  ;;  %v1519_v58 = vrot.slane %v11365_v45, 4  ;;  %v1552_v1 = vperm.slane %v1544_v28, %v5467_v36  ;;  %v7035_v33 = vpop.permute.xlu2 %2276  ;;  %v11444_v4 = vrot.slane %v6981_v2, 1  ;;  %v11448_v28 = vld [vmem:[#allocation24_spill] sm:$0xff] }
 0x2f2   : > { %11442 = vst [vmem:[#allocation73_spill] sm:$0xff] %v7029_v5  ;;  %v1248_v16 = vperm.slane %v1242_v43, %v5533_v63  ;;  %v7047_v45 = vsel %vm681_vm2, %v6708_v39, %v1395_v9  ;;  %v7051_v14 = vsel %vm681_vm2, %v1397_v6, %v7000_v60  ;;  %v7055_v56 = vsel %vm681_vm2, %v1509_v62, %v7019_v21  ;;  %v7064_v6 = vpop.permute.xlu1 %2274 }
 0x2f3   : > { %2350 = vrot.lane.b32.xlu0 %v7029_v5, %s5278_s26  ;;  %11443 = vst [vmem:[#allocation117_spill] sm:$0xff] %v7035_v33  ;;  %v7040_v18 = vsel %vm1930_vm3, %v2033_v57, %v11444_v4  ;;  %v1629_v4 = vrot.slane %v11448_v28, 4  ;;  %v11449_v33 = vld [vmem:[#allocation54_spill] sm:$0xff]  ;;  %v1283_v5 = vrot.slane %v6779_v48, 4  ;;  %v1577_v41 = vrot.slane %v1540_v47, 4 }
 0x2f4   : > { %11445 = vst [vmem:[#allocation118_spill] sm:$0xff] %v7040_v18  ;;  %2358 = vrot.lane.b32.xlu1 %v7040_v18, %s5278_s26  ;;  %v1520_v43 = vsel %vm681_vm2, %v11449_v33, %v1519_v58  ;;  %v1285_v18 = vrot.slane %v6985_v7, 4  ;;  %v1602_v39 = vsel %vm681_vm2, %v1601_v19, %v1552_v1  ;;  %v1640_v9 = vsel %vm681_vm2, 0.0, %v1639_v15 }
 0x2f5   : > { %11446 = vst [vmem:[#allocation119_spill] sm:$0xff] %v7047_v45  ;;  %v1603_v37 = vrot.slane %v1552_v1, 4  ;;  %v2031_v62 = vrot.slane %v7047_v45, 1  ;;  %v2040_v38 = vrot.slane %v7051_v14, 1  ;;  %v1491_v58 = vrot.slane %v6913_v24, 4 }
 0x2f6   : > { %11447 = vst [vmem:[#allocation120_spill] sm:$0xff] %v7055_v56  ;;  %v1528_v48 = vperm.slane %v1520_v43, %v5467_v36  ;;  %v1287_v33 = vrot.slane %v1248_v16, 4  ;;  %v11451_v53 = vrot.slane %v6803_v49, 1  ;;  %v1608_v1 = vperm.slane %v1602_v39, %v5533_v63 }
 0x2f7   : > { %11450 = vst [vmem:[#allocation24_spill] sm:$0xff] %v7064_v6  ;;  %v1604_v15 = vsel %vm681_vm2, %v1564_v42, %v1603_v37  ;;  %v7079_v6 = vperm.slane %v1640_v9, %v5467_v36  ;;  %v7085_v24 = vsel %vm681_vm2, %v6691_v46, %v1283_v5  ;;  %v1399_v43 = vrot.slane %v7000_v60, 4 }
 0x2f8   : > { %v7074_v19 = vsel %vm1930_vm3, %v11451_v53, %v2024_v17  ;;  %11453 = vst [vmem:[#allocation121_spill] sm:$0xff] %v7085_v24  ;;  %v1578_v28 = vsel %vm681_vm2, %v1577_v41, %v1528_v48  ;;  %v7090_v53 = vsel %vm1930_vm3, %v2031_v62, %v2033_v57  ;;  %v1630_v37 = vsel %vm681_vm2, 0.0, %v1629_v4 }
 0x2f9   : > { %11452 = vst [vmem:[#allocation54_spill] sm:$0xff] %v7074_v19  ;;  %2348 = vrot.lane.b32.xlu2 %v7074_v19, %s5278_s26  ;;  %v1492_v42 = vsel %vm681_vm2, %v6849_v30, %v1491_v58  ;;  %v7097_v17 = vpop.permute.xlu2 %2282  ;;  %v11456_v46 = vrot.slane %v7055_v56, 1  ;;  %v7105_v41 = vsel %vm681_vm2, %v1285_v18, %v1248_v16  ;;  %v7108_v60 = vperm.slane %v1604_v15, %v5533_v63  ;;  %v7123_v58 = vpop.permute.xlu0 %2266  ;;  %v11531_v19 = vld [vmem:[#allocation21_spill] sm:$0xff] }
 0x2fa   : > { %11454 = vst [vmem:[#allocation122_spill] sm:$0xff] %v7090_v53  ;;  %v2030_v30 = vrot.slane %v7085_v24, 1  ;;  %v7115_v57 = vsel %vm681_vm2, %v6985_v7, %v1287_v33  ;;  %v7119_v4 = vsel %vm681_vm2, %v6957_v40, %v1399_v43  ;;  %v1579_v39 = vrot.slane %v1528_v48, 4  ;;  %v7131_v7 = vpop.permute.xlu1 %2286 }
 0x2fb   : > { %2356 = vrot.lane.b32.xlu0 %v7090_v53, %s5278_s26  ;;  %11455 = vst [vmem:[#allocation123_spill] sm:$0xff] %v7097_v17  ;;  %v7102_v5 = vsel %vm1930_vm3, %v2040_v38, %v11456_v46  ;;  %v1584_v18 = vperm.slane %v1578_v28, %v5533_v63  ;;  %v1621_v16 = vrot.slane %v1608_v1, 4  ;;  %v1661_v9 = vrot.slane %v7079_v6, 4 }
 0x2fc   : > { %11457 = vst [vmem:[#allocation124_spill] sm:$0xff] %v7102_v5  ;;  %2364 = vrot.lane.b32.xlu1 %v7102_v5, %s5278_s26  ;;  %v7126_v15 = vperm.slane %v1630_v37, %v5467_v36  ;;  %v7129_v46 = vperm.slane %v1492_v42, %v5533_v63  ;;  %v2039_v33 = vrot.slane %v7105_v41, 1  ;;  %v1267_v40 = vrot.slane %v6679_v52, 4 }
 0x2fd   : > { %11458 = vst [vmem:[#allocation125_spill] sm:$0xff] %v7105_v41  ;;  %v1467_v48 = vrot.slane %v6960_v0, 4  ;;  %v1580_v28 = vsel %vm681_vm2, %v1540_v47, %v1579_v39  ;;  %v2048_v43 = vrot.slane %v7115_v57, 1  ;;  %v1379_v17 = vrot.slane %v6904_v13, 4 }
 0x2fe   : > { %11459 = vst [vmem:[#allocation126_spill] sm:$0xff] %v7115_v57  ;;  %v1625_v37 = vrot.slane %v7108_v60, 4  ;;  %v2049_v42 = vrot.slane %v7119_v4, 1  ;;  %v1623_v5 = vrot.slane %v1584_v18, 4  ;;  %v1662_v52 = vsel %vm681_vm2, %v1661_v9, %v7126_v15 }
 0x2ff   : > { %11460 = vst [vmem:[#allocation127_spill] sm:$0xff] %v7119_v4  ;;  %v7151_v0 = vsel %vm681_vm2, %v1621_v16, %v1584_v18  ;;  %v1380_v13 = vsel %vm681_vm2, %v6776_v55, %v1379_v17  ;;  %v1513_v47 = vrot.slane %v7129_v46, 4  ;;  %v1511_v39 = vrot.slane %v7019_v21, 4 }
 0x300   : > { %11461 = vst [vmem:[#allocation128_spill] sm:$0xff] %v7123_v58  ;;  %v7141_v58 = vsel %vm1930_vm3, %v2030_v30, %v2031_v62  ;;  %v7157_v62 = vperm.slane %v1580_v28, %v5533_v63  ;;  %v1355_v30 = vrot.slane %v6821_v31, 4  ;;  %v7169_v16 = vsel %vm1930_vm3, %v2048_v43, %v2049_v42  ;;  %v11472_v43 = vld [vmem:[#allocation80_spill] sm:$0xff] }
 0x301   : > { %11462 = vst [vmem:[#allocation129_spill] sm:$0xff] %v7131_v7  ;;  %v1468_v7 = vsel %vm681_vm2, %v6908_v26, %v1467_v48  ;;  %2354 = vrot.lane.b32.xlu2 %v7141_v58, %s5278_s26  ;;  %v7160_v26 = vsel %vm1930_vm3, %v2039_v33, %v2040_v38  ;;  %v7166_v18 = vpop.permute.xlu2 %2288  ;;  %v7172_v55 = vsel %vm681_vm2, %v1608_v1, %v1623_v5  ;;  %v10993_v31 = vrot.slane %v7151_v0, 1  ;;  %v7186_v33 = vpop.permute.xlu0 %2272 }
 0x302   : > { %11463 = vst [vmem:[#allocation130_spill] sm:$0xff] %v7141_v58  ;;  %v1476_v17 = vperm.slane %v1468_v7, %v5533_v63  ;;  %v7176_v38 = vperm.slane %v1662_v52, %v5533_v63  ;;  %v7183_v21 = vsel %vm681_vm2, %v1625_v37, %v7157_v62  ;;  %v1388_v9 = vperm.slane %v1380_v13, %v5533_v63  ;;  %v7192_v5 = vpop.permute.xlu1 %2292 }
 0x303   : > { %11464 = vst [vmem:[#allocation131_spill] sm:$0xff] %v7151_v0  ;;  %2362 = vrot.lane.b32.xlu0 %v7160_v26, %s5278_s26  ;;  %v7190_v1 = vsel %vm681_vm2, %v6972_v44, %v1511_v39  ;;  %v2053_v7 = vrot.slane %v7172_v55, 1  ;;  %v1243_v28 = vrot.slane %v11441_v50, 4  ;;  %v1268_v37 = vsel %vm681_vm2, %v11472_v43, %v1267_v40 }
 0x304   : > { %11465 = vst [vmem:[#allocation132_spill] sm:$0xff] %v7160_v26  ;;  %2370 = vrot.lane.b32.xlu1 %v7169_v16, %s5278_s26  ;;  %v7196_v48 = vsel %vm681_vm2, %v1513_v47, %v1476_v17  ;;  %v10996_v52 = vrot.slane %v7183_v21, 1  ;;  %v1356_v13 = vsel %vm681_vm2, %v6768_v20, %v1355_v30  ;;  %v11473_v44 = vrot.slane %v7055_v56, 1 }
 0x305   : > { %11466 = vst [vmem:[#allocation133_spill] sm:$0xff] %v7166_v18  ;;  %v2051_v47 = vrot.slane %v7190_v1, 1  ;;  %v1677_v18 = vrot.slane %v7176_v38, 4  ;;  %v1401_v50 = vrot.slane %v1388_v9, 4  ;;  %v2060_v40 = vrot.slane %v7196_v48, 1 }
 0x306   : > { %11467 = vst [vmem:[#allocation134_spill] sm:$0xff] %v7169_v16  ;;  %v7209_v39 = vsel %vm1930_vm3, %v11473_v44, %v10993_v31  ;;  %v1244_v20 = vsel %vm681_vm2, %v6937_v27, %v1243_v28  ;;  %v1276_v43 = vperm.slane %v1268_v37, %v5533_v63  ;;  %v1364_v44 = vperm.slane %v1356_v13, %v5533_v63 }
 0x307   : > { %11468 = vst [vmem:[#allocation135_spill] sm:$0xff] %v7172_v55  ;;  %v7219_v30 = vsel %vm1930_vm3, %v2051_v47, %v2053_v7  ;;  %v7235_v27 = vsel %vm681_vm2, 0.0, %v1677_v18  ;;  %v1252_v28 = vperm.slane %v1244_v20, %v5533_v63  ;;  %v7248_v16 = vsel %vm1930_vm3, %v2049_v42, %v2051_v47 }
 0x308   : > { %11469 = vst [vmem:[#allocation136_spill] sm:$0xff] %v7186_v33  ;;  %v7241_v13 = vsel %vm681_vm2, %v1401_v50, %v1364_v44  ;;  %v1515_v50 = vrot.slane %v1476_v17, 4 }
 0x309   : > { %11470 = vst [vmem:[#allocation137_spill] sm:$0xff] %v7190_v1  ;;  %2366 = vrot.lane.b32.xlu2 %v7209_v39, %s5278_s26  ;;  %v7225_v31 = vpop.permute.xlu2 %2294  ;;  %v7238_v37 = vpop.permute.xlu0 %2278  ;;  %v2058_v18 = vrot.slane %v7241_v13, 1 }
 0x30a   : > { %11471 = vst [vmem:[#allocation138_spill] sm:$0xff] %v7192_v5  ;;  %v7230_v5 = vsel %vm1930_vm3, %v2060_v40, %v10996_v52  ;;  %v7243_v33 = vpop.permute.xlu1 %2298  ;;  %v1673_v52 = vrot.slane %v6858_v59, 4 }
 0x30b   : > { %11474 = vst [vmem:[#allocation80_spill] sm:$0xff] %v7209_v39  ;;  %2374 = vrot.lane.b32.xlu0 %v7219_v30, %s5278_s26  ;;  %v11523_v39 = vld [vmem:[#allocation37_spill] sm:$0xff] }
 0x30c   : > { %11475 = vst [vmem:[#allocation139_spill] sm:$0xff] %v7219_v30  ;;  %2382 = vrot.lane.b32.xlu1 %v7230_v5, %s5278_s26  ;;  %v2055_v30 = vrot.slane %v7235_v27, 1  ;;  %v7267_v47 = vsel %vm681_vm2, 0.0, %v1673_v52 }
 0x30d   : > { %11476 = vst [vmem:[#allocation140_spill] sm:$0xff] %v7225_v31  ;;  %v1289_v31 = vrot.slane %v1276_v43, 4 }
 0x30e   : > { %11477 = vst [vmem:[#allocation141_spill] sm:$0xff] %v7230_v5  ;;  %v7264_v42 = vsel %vm1930_vm3, %v2053_v7, %v2055_v30  ;;  %v1403_v5 = vrot.slane %v1364_v44, 4  ;;  %v2019_v7 = vrot.slane %v7267_v47, 1 }
 0x30f   : > { %11478 = vst [vmem:[#allocation142_spill] sm:$0xff] %v7238_v37  ;;  %v7254_v20 = vsel %vm681_vm2, %v1289_v31, %v1252_v28  ;;  %v7257_v37 = vsel %vm1930_vm3, %v2058_v18, %v2060_v40  ;;  %v7274_v31 = vsel %vm681_vm2, %v7129_v46, %v1515_v50 }
 0x310   : > { %11479 = vst [vmem:[#allocation143_spill] sm:$0xff] %v7241_v13  ;;  %v2057_v17 = vrot.slane %v7254_v20, 1  ;;  %v7283_v52 = vsel %vm681_vm2, %v1388_v9, %v1403_v5  ;;  %v2069_v30 = vrot.slane %v7274_v31, 1  ;;  %v1663_v9 = vrot.slane %v7126_v15, 4 }
 0x311   : > { %11480 = vst [vmem:[#allocation144_spill] sm:$0xff] %v7243_v33  ;;  %2372 = vrot.lane.b32.xlu2 %v7248_v16, %s5278_s26  ;;  %v7261_v33 = vpop.permute.xlu2 %2300  ;;  %v7276_v40 = vpop.permute.xlu0 %2284  ;;  %v2067_v46 = vrot.slane %v7283_v52, 1  ;;  %v2046_v15 = vrot.slane %v7176_v38, 1 }
 0x312   : > { %11481 = vst [vmem:[#allocation145_spill] sm:$0xff] %v7248_v16  ;;  %v7287_v44 = vsel %vm1930_vm3, %v2057_v17, %v2058_v18  ;;  %v1664_v17 = vsel %vm681_vm2, %v7079_v6, %v1663_v9  ;;  %v11496_v16 = vrot.slane %v6981_v2, 1  ;;  %v11498_v6 = vld [vmem:[#allocation27_spill] sm:$0xff] }
 0x313   : > { %11482 = vst [vmem:[#allocation146_spill] sm:$0xff] %v7254_v20  ;;  %2380 = vrot.lane.b32.xlu0 %v7257_v37, %s5278_s26  ;;  %v7306_v18 = vsel %vm1930_vm3, %v2067_v46, %v2069_v30  ;;  %v7320_v26 = vperm.slane %v1664_v17, %v5533_v63  ;;  %v2076_v9 = vrot.slane %v11498_v6, 2 }
 0x314   : > { %11483 = vst [vmem:[#allocation147_spill] sm:$0xff] %v7257_v37  ;;  %2376 = vrot.lane.b32.xlu1 %v7264_v42, %s5278_s26  ;;  %v7279_v37 = vpop.permute.xlu1 %2310 }
 0x315   : > { %11484 = vst [vmem:[#allocation148_spill] sm:$0xff] %v7261_v33  ;;  %v1675_v33 = vrot.slane %v6882_v34, 4 }
 0x316   : > { %11485 = vst [vmem:[#allocation149_spill] sm:$0xff] %v7264_v42  ;;  %v1291_v42 = vrot.slane %v1252_v28, 4 }
 0x317   : > { %11486 = vst [vmem:[#allocation150_spill] sm:$0xff] %v7276_v40  ;;  %v7293_v50 = vsel %vm681_vm2, 0.0, %v1675_v33 }
 0x318   : > { %11487 = vst [vmem:[#allocation151_spill] sm:$0xff] %v7279_v37  ;;  %v11489_v37 = vrot.slane %v6944_v22, 1  ;;  %v2037_v33 = vrot.slane %v7293_v50, 1 }
 0x319   : > { %11488 = vst [vmem:[#allocation152_spill] sm:$0xff] %v7287_v44  ;;  %2378 = vrot.lane.b32.xlu2 %v7287_v44, %s5278_s26  ;;  %v7303_v5 = vpop.permute.xlu2 %2306  ;;  %v11495_v44 = vld [vmem:[#allocation26_spill] sm:$0xff] }
 0x31a   : > { %v7298_v40 = vsel %vm1930_vm3, %v11489_v37, %v2019_v7  ;;  %11491 = vst [vmem:[#allocation154_spill] sm:$0xff] %v7303_v5  ;;  %v7313_v37 = vpop.permute.xlu0 %2290  ;;  %v2077_v5 = vrot.slane %v11495_v44, 2 }
 0x31b   : > { %11490 = vst [vmem:[#allocation153_spill] sm:$0xff] %v7298_v40  ;;  %2344 = vrot.lane.b32.xlu0 %v7298_v40, %s5278_s26 }
 0x31c   : > { %11492 = vst [vmem:[#allocation155_spill] sm:$0xff] %v7306_v18  ;;  %2388 = vrot.lane.b32.xlu1 %v7306_v18, %s5278_s26  ;;  %v7315_v7 = vpop.permute.xlu1 %2316  ;;  %v7325_v18 = vsel %vm1930_vm3, %v11496_v16, %v2037_v33  ;;  %v2078_v17 = vsel %vm2075_vm4, %v2076_v9, %v2077_v5  ;;  %v7341_v16 = vsel %vm681_vm2, %v1276_v43, %v1291_v42  ;;  %v2064_v33 = vrot.slane %v7320_v26, 1  ;;  %v11508_v42 = vld [vmem:[#allocation58_spill] sm:$0xff] }
 0x31d   : > { %11493 = vst [vmem:[#allocation156_spill] sm:$0xff] %v7313_v37  ;;  %v11506_v9 = vrot.slane %v7183_v21, 1 }
 0x31e   : > { %11494 = vst [vmem:[#allocation157_spill] sm:$0xff] %v7315_v7  ;;  %v11499_v7 = vrot.slane %v7151_v0, 1 }
 0x31f   : > { %11497 = vst [vmem:[#allocation158_spill] sm:$0xff] %v7325_v18  ;;  %v7356_v43 = vsel %vm1930_vm3, %v11506_v9, %v2064_v33 }
 0x320   : > { %v7333_v37 = vsel %vm1930_vm3, %v11499_v7, %v2046_v15  ;;  %11502 = vst [vmem:[#allocation161_spill] sm:$0xff] %v7341_v16  ;;  %v2066_v7 = vrot.slane %v7341_v16, 1  ;;  %v1627_v15 = vrot.slane %v7157_v62, 4 }
 0x321   : > { %2360 = vrot.lane.b32.xlu2 %v7325_v18, %s5278_s26  ;;  %11500 = vst [vmem:[#allocation159_spill] sm:$0xff] %v7333_v37  ;;  %v7337_v28 = vpop.permute.xlu2 %2318 }
 0x322   : > { %11501 = vst [vmem:[#allocation160_spill] sm:$0xff] %v7337_v28  ;;  %v7345_v44 = vpop.permute.xlu0 %2302  ;;  %v1679_v28 = vrot.slane %v7320_v26, 4  ;;  %v7366_v62 = vsel %vm1930_vm3, %v2066_v7, %v2067_v46  ;;  %v11514_v7 = vld [vmem:[#allocation62_spill] sm:$0xff] }
 0x323   : > { %2368 = vrot.lane.b32.xlu0 %v7333_v37, %s5278_s26  ;;  %11503 = vst [vmem:[#allocation162_spill] sm:$0xff] %v7345_v44  ;;  %v11505_v37 = vld [vmem:[#allocation59_spill] sm:$0xff] }
 0x324   : > { %2458 = vrot.lane.b32.xlu1 %v2078_v17, %s5277_s17  ;;  %v7347_v6 = vpop.permute.xlu1 %2322  ;;  %v2083_v53 = vrot.slane %v11505_v37, 2  ;;  %11507 = vst [vmem:[#allocation59_spill] sm:$0xff] %v7356_v43  ;;  %v2081_v17 = vrot.slane %v11508_v42, 2  ;;  %v7374_v9 = vsel %vm681_vm2, 0.0, %v1679_v28 }
 0x325   : > { %11504 = vst [vmem:[#allocation163_spill] sm:$0xff] %v7347_v6  ;;  %v7363_v6 = vsel %vm681_vm2, %v7108_v60, %v1627_v15  ;;  %v2073_v46 = vrot.slane %v7374_v9, 1  ;;  %v2090_v15 = vrot.slane %v11514_v7, 2 }
 0x326   : > { %11509 = vst [vmem:[#allocation164_spill] sm:$0xff] %v7363_v6  ;;  %v2084_v33 = vsel %vm2075_vm4, %v2081_v17, %v2083_v53  ;;  %v2071_v44 = vrot.slane %v7363_v6, 1  ;;  %v11516_v53 = vld [vmem:[#allocation39_spill] sm:$0xff] }
 0x327   : > { %11510 = vst [vmem:[#allocation165_spill] sm:$0xff] %v7366_v62  ;;  %v2088_v28 = vrot.slane %v11516_v53, 2 }
 0x329   : > { %2384 = vrot.lane.b32.xlu2 %v7356_v43, %s5278_s26  ;;  %v7370_v37 = vpop.permute.xlu2 %2324 }
 0x32a   : > { %11511 = vst [vmem:[#allocation166_spill] sm:$0xff] %v7370_v37  ;;  %v7378_v42 = vpop.permute.xlu0 %2308 }
 0x32b   : > { %2386 = vrot.lane.b32.xlu0 %v7366_v62, %s5278_s26  ;;  %11512 = vst [vmem:[#allocation167_spill] sm:$0xff] %v7378_v42  ;;  %v7385_v62 = vsel %vm1930_vm3, %v2069_v30, %v2071_v44  ;;  %v7398_v42 = vsel %vm2075_vm4, %v2088_v28, %v2090_v15  ;;  %v11520_v30 = vld [vmem:[#allocation40_spill] sm:$0xff] }
 0x32c   : > { %2464 = vrot.lane.b32.xlu1 %v2084_v33, %s5277_s17  ;;  %v7380_v60 = vpop.permute.xlu1 %2280  ;;  %11515 = vst [vmem:[#allocation169_spill] sm:$0xff] %v7385_v62  ;;  %v7391_v33 = vsel %vm1930_vm3, %v2071_v44, %v2073_v46  ;;  %v2097_v44 = vrot.slane %v11523_v39, 2 }
 0x32d   : > { %11513 = vst [vmem:[#allocation168_spill] sm:$0xff] %v7380_v60  ;;  %v2079_v60 = vrot.slane %v11520_v30, 2 }
 0x32e   : > { %11517 = vst [vmem:[#allocation170_spill] sm:$0xff] %v7391_v33 }
 0x32f   : > { %11519 = vst [vmem:[#allocation172_spill] sm:$0xff] %v7398_v42  ;;  %v2080_v46 = vsel %vm2075_vm4, %v2077_v5, %v2079_v60  ;;  %v2082_v18 = vsel %vm2075_vm4, %v2079_v60, %v2081_v17  ;;  %v11529_v5 = vld [vmem:[#allocation43_spill] sm:$0xff]  ;;  %v2104_v17 = vrot.slane %v11531_v19, 2  ;;  %v11533_v60 = vld [vmem:[#allocation14_spill] sm:$0xff] }
 0x331   : > { %2390 = vrot.lane.b32.xlu2 %v7385_v62, %s5278_s26 }
 0x332   : > { %v7395_v37 = vpop.permute.xlu2 %2312  ;;  %v7403_v43 = vpop.permute.xlu0 %2314 }
 0x333   : > { %2392 = vrot.lane.b32.xlu0 %v7391_v33, %s5278_s26  ;;  %11518 = vst [vmem:[#allocation171_spill] sm:$0xff] %v7395_v37  ;;  %v11524_v33 = vld [vmem:[#allocation22_spill] sm:$0xff] }
 0x334   : > { %2470 = vrot.lane.b32.xlu1 %v7398_v42, %s5277_s17  ;;  %11521 = vst [vmem:[#allocation173_spill] sm:$0xff] %v7403_v43  ;;  %v7405_v62 = vpop.permute.xlu1 %2304  ;;  %v2095_v37 = vrot.slane %v11524_v33, 2  ;;  %v11527_v43 = vld [vmem:[#allocation42_spill] sm:$0xff] }
 0x335   : > { %11522 = vst [vmem:[#allocation174_spill] sm:$0xff] %v7405_v62  ;;  %v2086_v62 = vrot.slane %v11527_v43, 2 }
 0x336   : > { %v7416_v30 = vsel %vm2075_vm4, %v2095_v37, %v2097_v44 }
 0x337   : > { %11526 = vst [vmem:[#allocation176_spill] sm:$0xff] %v7416_v30 }
 0x339   : > { %2460 = vrot.lane.b32.xlu2 %v2080_v46, %s5277_s17  ;;  %v2085_v46 = vrot.slane %v11529_v5, 2 }
 0x33a   : > { %v7413_v40 = vpop.permute.xlu2 %2330  ;;  %v7421_v42 = vpop.permute.xlu0 %2326 }
 0x33b   : > { %2462 = vrot.lane.b32.xlu0 %v2082_v18, %s5277_s17  ;;  %11525 = vst [vmem:[#allocation175_spill] sm:$0xff] %v7413_v40  ;;  %v7428_v18 = vsel %vm2075_vm4, %v2085_v46, %v2086_v62  ;;  %v2103_v40 = vrot.slane %v11533_v60, 2  ;;  %v11537_v46 = vld [vmem:[#allocation55_spill] sm:$0xff] }
 0x33c   : > { %2476 = vrot.lane.b32.xlu1 %v7416_v30, %s5277_s17  ;;  %11528 = vst [vmem:[#allocation177_spill] sm:$0xff] %v7421_v42  ;;  %v7424_v58 = vpop.permute.xlu1 %2328  ;;  %v7434_v30 = vsel %vm2075_vm4, %v2086_v62, %v2088_v28  ;;  %v2092_v63 = vrot.slane %v11537_v46, 2  ;;  %v2110_v62 = vrot.slane %v6664_v10, 2 }
 0x33d   : > { %11530 = vst [vmem:[#allocation178_spill] sm:$0xff] %v7424_v58  ;;  %v7441_v58 = vsel %vm2075_vm4, %v2103_v40, %v2104_v17  ;;  %v2108_v40 = vrot.slane %v6350_v25, 2 }
 0x33e   : > { %11532 = vst [vmem:[#allocation179_spill] sm:$0xff] %v7428_v18  ;;  %v7452_v28 = vsel %vm2075_vm4, %v2090_v15, %v2092_v63  ;;  %v11545_v63 = vld [vmem:[#allocation56_spill] sm:$0xff] }
 0x33f   : > { %11534 = vst [vmem:[#allocation180_spill] sm:$0xff] %v7434_v30  ;;  %v7466_v10 = vsel %vm2075_vm4, %v2108_v40, %v2110_v62  ;;  %v2099_v15 = vrot.slane %v11545_v63, 2  ;;  %v11551_v62 = vld [vmem:[#allocation17_spill] sm:$0xff] }
 0x340   : > { %11536 = vst [vmem:[#allocation182_spill] sm:$0xff] %v7441_v58 }
 0x341   : > { %2466 = vrot.lane.b32.xlu2 %v7428_v18, %s5277_s17  ;;  %11540 = vst [vmem:[#allocation184_spill] sm:$0xff] %v7452_v28 }
 0x342   : > { %11544 = vst [vmem:[#allocation187_spill] sm:$0xff] %v7466_v10 }
 0x343   : > { %2468 = vrot.lane.b32.xlu0 %v7434_v30, %s5277_s17  ;;  %v7438_v42 = vpop.permute.xlu2 %2336  ;;  %v7446_v36 = vpop.permute.xlu0 %2296  ;;  %v11541_v30 = vld [vmem:[#allocation13_spill] sm:$0xff] }
 0x344   : > { %11535 = vst [vmem:[#allocation181_spill] sm:$0xff] %v7438_v42  ;;  %2482 = vrot.lane.b32.xlu1 %v7441_v58, %s5277_s17  ;;  %v7448_v18 = vpop.permute.xlu1 %2334  ;;  %v2094_v19 = vrot.slane %v11541_v30, 2  ;;  %v11548_v58 = vld [vmem:[#allocation71_spill] sm:$0xff] }
 0x345   : > { %11538 = vst [vmem:[#allocation55_spill] sm:$0xff] %v7446_v36 }
 0x346   : > { %11539 = vst [vmem:[#allocation183_spill] sm:$0xff] %v7448_v18  ;;  %v7459_v42 = vsel %vm2075_vm4, %v2094_v19, %v2095_v37  ;;  %v2101_v19 = vrot.slane %v11548_v58, 2  ;;  %v11549_v37 = vld [vmem:[#allocation83_spill] sm:$0xff] }
 0x347   : > { %11542 = vst [vmem:[#allocation185_spill] sm:$0xff] %v7459_v42 }
 0x349   : > { %2472 = vrot.lane.b32.xlu2 %v7452_v28, %s5277_s17  ;;  %v2117_v28 = vrot.slane %v11549_v37, 2 }
 0x34b   : > { %2474 = vrot.lane.b32.xlu0 %v7459_v42, %s5277_s17  ;;  %v7463_v46 = vpop.permute.xlu2 %2342  ;;  %v7471_v18 = vpop.permute.xlu0 %2320  ;;  %v7478_v42 = vsel %vm2075_vm4, %v2097_v44, %v2099_v15  ;;  %v11555_v44 = vld [vmem:[#allocation38_spill] sm:$0xff] }
 0x34c   : > { %11543 = vst [vmem:[#allocation186_spill] sm:$0xff] %v7463_v46  ;;  %2488 = vrot.lane.b32.xlu1 %v7466_v10, %s5277_s17  ;;  %v2115_v46 = vrot.slane %v11551_v62, 2  ;;  %v7484_v10 = vsel %vm2075_vm4, %v2099_v15, %v2101_v19  ;;  %v11558_v62 = vld [vmem:[#allocation70_spill] sm:$0xff] }
 0x34d   : > { %11546 = vst [vmem:[#allocation188_spill] sm:$0xff] %v7471_v18  ;;  %v7473_v36 = vpop.permute.xlu1 %2340  ;;  %v2124_v15 = vrot.slane %v11558_v62, 2 }
 0x34e   : > { %11547 = vst [vmem:[#allocation189_spill] sm:$0xff] %v7473_v36  ;;  %v7491_v58 = vsel %vm2075_vm4, %v2115_v46, %v2117_v28  ;;  %v2106_v36 = vrot.slane %v11555_v44, 2 }
 0x34f   : > { %11550 = vst [vmem:[#allocation71_spill] sm:$0xff] %v7478_v42 }
 0x350   : > { %11552 = vst [vmem:[#allocation190_spill] sm:$0xff] %v7484_v10  ;;  %v7502_v19 = vsel %vm2075_vm4, %v2104_v17, %v2106_v36  ;;  %v7508_v63 = vsel %vm2075_vm4, %v2106_v36, %v2108_v40  ;;  %v11564_v17 = vld [vmem:[#allocation63_spill] sm:$0xff]  ;;  %v11568_v36 = vld [vmem:[#allocation76_spill] sm:$0xff] }
 0x351   : > { %2478 = vrot.lane.b32.xlu2 %v7478_v42, %s5277_s17  ;;  %11554 = vst [vmem:[#allocation192_spill] sm:$0xff] %v7491_v58  ;;  %v2131_v40 = vrot.slane %v11568_v36, 2 }
 0x352   : > { %11559 = vst [vmem:[#allocation195_spill] sm:$0xff] %v7502_v19 }
 0x353   : > { %2480 = vrot.lane.b32.xlu0 %v7484_v10, %s5277_s17  ;;  %v7488_v18 = vpop.permute.xlu2 %2348  ;;  %11561 = vst [vmem:[#allocation196_spill] sm:$0xff] %v7508_v63 }
 0x354   : > { %11553 = vst [vmem:[#allocation191_spill] sm:$0xff] %v7488_v18  ;;  %2494 = vrot.lane.b32.xlu1 %v7491_v58, %s5277_s17  ;;  %v7496_v37 = vpop.permute.xlu0 %2332  ;;  %v11560_v18 = vld [vmem:[#allocation16_spill] sm:$0xff] }
 0x355   : > { %11556 = vst [vmem:[#allocation193_spill] sm:$0xff] %v7496_v37  ;;  %v7498_v42 = vpop.permute.xlu1 %2346  ;;  %v2122_v10 = vrot.slane %v11560_v18, 2  ;;  %v2113_v37 = vrot.slane %v11564_v17, 2 }
 0x356   : > { %11557 = vst [vmem:[#allocation194_spill] sm:$0xff] %v7498_v42 }
 0x357   : > { %v7515_v42 = vsel %vm2075_vm4, %v2122_v10, %v2124_v15 }
 0x358   : > { %11563 = vst [vmem:[#allocation198_spill] sm:$0xff] %v7515_v42 }
 0x359   : > { %2484 = vrot.lane.b32.xlu2 %v7502_v19, %s5277_s17  ;;  %v11566_v19 = vld [vmem:[#allocation65_spill] sm:$0xff] }
 0x35a   : > { %v2112_v18 = vrot.slane %v11566_v19, 2 }
 0x35b   : > { %2486 = vrot.lane.b32.xlu0 %v7508_v63, %s5277_s17  ;;  %v7512_v58 = vpop.permute.xlu2 %2354 }
 0x35c   : > { %11562 = vst [vmem:[#allocation197_spill] sm:$0xff] %v7512_v58  ;;  %2500 = vrot.lane.b32.xlu1 %v7515_v42, %s5277_s17  ;;  %v7527_v63 = vsel %vm2075_vm4, %v2112_v18, %v2113_v37  ;;  %v11570_v58 = vld [vmem:[#allocation84_spill] sm:$0xff]  ;;  %v7533_v42 = vsel %vm2075_vm4, %v2113_v37, %v2115_v46  ;;  %v2119_v18 = vrot.slane %v6523_v32, 2  ;;  %v2137_v46 = vrot.slane %v6530_v35, 2 }
 0x35d   : > { %v7520_v62 = vpop.permute.xlu0 %2338  ;;  %v7523_v44 = vpop.permute.xlu1 %2352  ;;  %11569 = vst [vmem:[#allocation201_spill] sm:$0xff] %v7527_v63  ;;  %v2130_v39 = vrot.slane %v11570_v58, 2 }
 0x35e   : > { %11565 = vst [vmem:[#allocation199_spill] sm:$0xff] %v7520_v62  ;;  %v7551_v37 = vsel %vm2075_vm4, %v2117_v28, %v2119_v18  ;;  %v2126_v28 = vrot.slane %v11395_v51, 2 }
 0x35f   : > { %11567 = vst [vmem:[#allocation200_spill] sm:$0xff] %v7523_v44  ;;  %v7540_v44 = vsel %vm2075_vm4, %v2130_v39, %v2131_v40  ;;  %v2135_v39 = vrot.slane %v6564_v8, 2 }
 0x360   : > { %11571 = vst [vmem:[#allocation202_spill] sm:$0xff] %v7533_v42 }
 0x361   : > { %2490 = vrot.lane.b32.xlu2 %v7527_v63, %s5277_s17  ;;  %11573 = vst [vmem:[#allocation204_spill] sm:$0xff] %v7540_v44  ;;  %v7565_v35 = vsel %vm2075_vm4, %v2135_v39, %v2137_v46  ;;  %v11586_v46 = vld [vmem:[#allocation89_spill] sm:$0xff] }
 0x362   : > { %11576 = vst [vmem:[#allocation207_spill] sm:$0xff] %v7551_v37 }
 0x363   : > { %2492 = vrot.lane.b32.xlu0 %v7533_v42, %s5277_s17  ;;  %v7537_v62 = vpop.permute.xlu2 %2366  ;;  %v11577_v42 = vld [vmem:[#allocation78_spill] sm:$0xff]  ;;  %11580 = vst [vmem:[#allocation210_spill] sm:$0xff] %v7565_v35 }
 0x364   : > { %11572 = vst [vmem:[#allocation203_spill] sm:$0xff] %v7537_v62  ;;  %2506 = vrot.lane.b32.xlu1 %v7540_v44, %s5277_s17  ;;  %v2121_v58 = vrot.slane %v11577_v42, 2 }
 0x365   : > { %v7545_v36 = vpop.permute.xlu0 %2350 }
 0x366   : > { %11574 = vst [vmem:[#allocation205_spill] sm:$0xff] %v7545_v36  ;;  %v7547_v63 = vpop.permute.xlu1 %2358  ;;  %v7558_v62 = vsel %vm2075_vm4, %v2121_v58, %v2122_v10  ;;  %v11584_v58 = vld [vmem:[#allocation48_spill] sm:$0xff] }
 0x367   : > { %11575 = vst [vmem:[#allocation206_spill] sm:$0xff] %v7547_v63  ;;  %v11583_v63 = vld [vmem:[#allocation97_spill] sm:$0xff]  ;;  %v2144_v44 = vrot.slane %v11584_v58, 2 }
 0x368   : > { %11578 = vst [vmem:[#allocation208_spill] sm:$0xff] %v7558_v62  ;;  %v2128_v10 = vrot.slane %v11583_v63, 2 }
 0x369   : > { %2496 = vrot.lane.b32.xlu2 %v7551_v37, %s5277_s17 }
 0x36b   : > { %2498 = vrot.lane.b32.xlu0 %v7558_v62, %s5277_s17  ;;  %v7562_v32 = vpop.permute.xlu2 %2372  ;;  %v7577_v62 = vsel %vm2075_vm4, %v2124_v15, %v2126_v28  ;;  %v11590_v15 = vld [vmem:[#allocation6_spill] sm:$0xff] }
 0x36c   : > { %11579 = vst [vmem:[#allocation209_spill] sm:$0xff] %v7562_v32  ;;  %2512 = vrot.lane.b32.xlu1 %v7565_v35, %s5277_s17  ;;  %v2142_v32 = vrot.slane %v11586_v46, 2  ;;  %v7583_v35 = vsel %vm2075_vm4, %v2126_v28, %v2128_v10  ;;  %v2151_v28 = vrot.slane %v6688_v23, 2 }
 0x36d   : > { %v7570_v18 = vpop.permute.xlu0 %2356  ;;  %11585 = vst [vmem:[#allocation97_spill] sm:$0xff] %v7577_v62 }
 0x36e   : > { %11581 = vst [vmem:[#allocation211_spill] sm:$0xff] %v7570_v18  ;;  %v7572_v36 = vpop.permute.xlu1 %2364  ;;  %v7590_v63 = vsel %vm2075_vm4, %v2142_v32, %v2144_v44 }
 0x36f   : > { %11582 = vst [vmem:[#allocation212_spill] sm:$0xff] %v7572_v36  ;;  %v2133_v36 = vrot.slane %v11590_v15, 2 }
 0x370   : > { %11587 = vst [vmem:[#allocation213_spill] sm:$0xff] %v7583_v35 }
 0x371   : > { %2502 = vrot.lane.b32.xlu2 %v7577_v62, %s5277_s17  ;;  %11589 = vst [vmem:[#allocation215_spill] sm:$0xff] %v7590_v63  ;;  %v7601_v10 = vsel %vm2075_vm4, %v2131_v40, %v2133_v36  ;;  %v11597_v40 = vld [vmem:[#allocation85_spill] sm:$0xff] }
 0x372   : > { %11593 = vst [vmem:[#allocation218_spill] sm:$0xff] %v7601_v10 }
 0x373   : > { %2504 = vrot.lane.b32.xlu0 %v7583_v35, %s5277_s17  ;;  %v7587_v18 = vpop.permute.xlu2 %2378  ;;  %v7607_v35 = vsel %vm2075_vm4, %v2133_v36, %v2135_v39  ;;  %v2157_v36 = vrot.slane %v6893_v11, 2 }
 0x374   : > { %11588 = vst [vmem:[#allocation214_spill] sm:$0xff] %v7587_v18  ;;  %2518 = vrot.lane.b32.xlu1 %v7590_v63, %s5277_s17  ;;  %v2149_v18 = vrot.slane %v6818_v3, 2 }
 0x375   : > { %v7595_v37 = vpop.permute.xlu0 %2362  ;;  %11594 = vst [vmem:[#allocation219_spill] sm:$0xff] %v7607_v35 }
 0x376   : > { %11591 = vst [vmem:[#allocation216_spill] sm:$0xff] %v7595_v37  ;;  %v7597_v62 = vpop.permute.xlu1 %2370  ;;  %v7614_v37 = vsel %vm2075_vm4, %v2149_v18, %v2151_v28 }
 0x377   : > { %11592 = vst [vmem:[#allocation217_spill] sm:$0xff] %v7597_v62  ;;  %v2140_v62 = vrot.slane %v11597_v40, 2 }
 0x378   : > { %11596 = vst [vmem:[#allocation221_spill] sm:$0xff] %v7614_v37 }
 0x379   : > { %2508 = vrot.lane.b32.xlu2 %v7601_v10, %s5277_s17  ;;  %v11599_v10 = vld [vmem:[#allocation77_spill] sm:$0xff] }
 0x37a   : > { %v2139_v58 = vrot.slane %v11599_v10, 2 }
 0x37b   : > { %2510 = vrot.lane.b32.xlu0 %v7607_v35, %s5277_s17  ;;  %v7611_v63 = vpop.permute.xlu2 %2360 }
 0x37c   : > { %11595 = vst [vmem:[#allocation220_spill] sm:$0xff] %v7611_v63  ;;  %2524 = vrot.lane.b32.xlu1 %v7614_v37, %s5277_s17  ;;  %v7626_v39 = vsel %vm2075_vm4, %v2139_v58, %v2140_v62  ;;  %v2158_v63 = vrot.slane %v6765_v61, 2  ;;  %v7632_v37 = vsel %vm2075_vm4, %v2140_v62, %v2142_v32  ;;  %v11605_v58 = vld [vmem:[#allocation28_spill] sm:$0xff]  ;;  %v11608_v61 = vld [vmem:[#allocation103_spill] sm:$0xff]  ;;  %v2164_v32 = vrot.slane %v7267_v47, 2 }
 0x37d   : > { %v7619_v23 = vpop.permute.xlu0 %2374  ;;  %11601 = vst [vmem:[#allocation224_spill] sm:$0xff] %v7626_v39  ;;  %v2146_v35 = vrot.slane %v11605_v58, 2  ;;  %v2148_v62 = vrot.slane %v11608_v61, 2  ;;  %v2153_v47 = vrot.slane %v6675_v29, 2 }
 0x37e   : > { %11598 = vst [vmem:[#allocation222_spill] sm:$0xff] %v7619_v23  ;;  %v7622_v3 = vpop.permute.xlu1 %2382 }
 0x37f   : > { %11600 = vst [vmem:[#allocation223_spill] sm:$0xff] %v7622_v3  ;;  %v7639_v3 = vsel %vm2075_vm4, %v2157_v36, %v2158_v63  ;;  %v2162_v36 = vrot.slane %v6944_v22, 2 }
 0x380   : > { %11602 = vst [vmem:[#allocation225_spill] sm:$0xff] %v7632_v37 }
 0x381   : > { %2514 = vrot.lane.b32.xlu2 %v7626_v39, %s5277_s17  ;;  %11604 = vst [vmem:[#allocation227_spill] sm:$0xff] %v7639_v3 }
 0x383   : > { %2516 = vrot.lane.b32.xlu0 %v7632_v37, %s5277_s17  ;;  %v7636_v23 = vpop.permute.xlu2 %2384  ;;  %v7651_v37 = vsel %vm2075_vm4, %v2144_v44, %v2146_v35 }
 0x384   : > { %11603 = vst [vmem:[#allocation226_spill] sm:$0xff] %v7636_v23  ;;  %2530 = vrot.lane.b32.xlu1 %v7639_v3, %s5277_s17  ;;  %v7657_v23 = vsel %vm2075_vm4, %v2148_v62, %v2149_v18  ;;  %v2155_v18 = vrot.slane %v6858_v59, 2  ;;  %v2171_v62 = vrot.slane %v6919_v12, 2 }
 0x385   : > { %v7644_v11 = vpop.permute.xlu0 %2380  ;;  %11609 = vst [vmem:[#allocation229_spill] sm:$0xff] %v7651_v37 }
 0x386   : > { %11606 = vst [vmem:[#allocation28_spill] sm:$0xff] %v7644_v11  ;;  %v7646_v39 = vpop.permute.xlu1 %2376  ;;  %v7664_v11 = vsel %vm2075_vm4, %v2162_v36, %v2164_v32  ;;  %v2169_v32 = vrot.slane %v6990_v54, 2 }
 0x387   : > { %11607 = vst [vmem:[#allocation228_spill] sm:$0xff] %v7646_v39  ;;  %v7676_v39 = vsel %vm2075_vm4, %v2151_v28, %v2153_v47  ;;  %v11619_v28 = vld [vmem:[#allocation100_spill] sm:$0xff] }
 0x388   : > { %11610 = vst [vmem:[#allocation230_spill] sm:$0xff] %v7657_v23  ;;  %v7689_v59 = vsel %vm2075_vm4, %v2169_v32, %v2171_v62 }
 0x389   : > { %2520 = vrot.lane.b32.xlu2 %v7651_v37, %s5277_s17  ;;  %11612 = vst [vmem:[#allocation232_spill] sm:$0xff] %v7664_v11 }
 0x38a   : > { %11615 = vst [vmem:[#allocation235_spill] sm:$0xff] %v7676_v39 }
 0x38b   : > { %2522 = vrot.lane.b32.xlu0 %v7657_v23, %s5277_s17  ;;  %v7661_v58 = vpop.permute.xlu2 %2390  ;;  %11618 = vst [vmem:[#allocation238_spill] sm:$0xff] %v7689_v59  ;;  %v11622_v23 = vld [vmem:[#allocation116_spill] sm:$0xff] }
 0x38c   : > { %11611 = vst [vmem:[#allocation231_spill] sm:$0xff] %v7661_v58  ;;  %2536 = vrot.lane.b32.xlu1 %v7664_v11, %s5277_s17  ;;  %v7682_v58 = vsel %vm2075_vm4, %v2153_v47, %v2155_v18  ;;  %v2178_v47 = vrot.slane %v11622_v23, 2 }
 0x38d   : > { %v7669_v44 = vpop.permute.xlu0 %2344  ;;  %11616 = vst [vmem:[#allocation236_spill] sm:$0xff] %v7682_v58 }
 0x38e   : > { %11613 = vst [vmem:[#allocation233_spill] sm:$0xff] %v7669_v44  ;;  %v7671_v35 = vpop.permute.xlu1 %2388 }
 0x38f   : > { %11614 = vst [vmem:[#allocation234_spill] sm:$0xff] %v7671_v35  ;;  %v2160_v35 = vrot.slane %v11619_v28, 2 }
 0x391   : > { %2526 = vrot.lane.b32.xlu2 %v7676_v39, %s5277_s17  ;;  %v7700_v18 = vsel %vm2075_vm4, %v2158_v63, %v2160_v35  ;;  %v11627_v63 = vld [vmem:[#allocation106_spill] sm:$0xff] }
 0x392   : > { %11623 = vst [vmem:[#allocation241_spill] sm:$0xff] %v7700_v18 }
 0x393   : > { %2528 = vrot.lane.b32.xlu0 %v7682_v58, %s5277_s17  ;;  %v7686_v44 = vpop.permute.xlu2 %2460  ;;  %v7706_v58 = vsel %vm2075_vm4, %v2160_v35, %v2162_v36  ;;  %v2184_v36 = vrot.slane %v7105_v41, 2 }
 0x394   : > { %11617 = vst [vmem:[#allocation237_spill] sm:$0xff] %v7686_v44  ;;  %2542 = vrot.lane.b32.xlu1 %v7689_v59, %s5277_s17  ;;  %v2176_v44 = vrot.slane %v7047_v45, 2 }
 0x395   : > { %v7694_v11 = vpop.permute.xlu0 %2368  ;;  %11624 = vst [vmem:[#allocation242_spill] sm:$0xff] %v7706_v58 }
 0x396   : > { %11620 = vst [vmem:[#allocation239_spill] sm:$0xff] %v7694_v11  ;;  %v7696_v3 = vpop.permute.xlu1 %2458  ;;  %v2166_v11 = vrot.slane %v11627_v63, 2 }
 0x397   : > { %11621 = vst [vmem:[#allocation240_spill] sm:$0xff] %v7696_v3  ;;  %v7713_v3 = vsel %vm2075_vm4, %v2176_v44, %v2178_v47 }
 0x398   : > { %11626 = vst [vmem:[#allocation244_spill] sm:$0xff] %v7713_v3 }
 0x399   : > { %2532 = vrot.lane.b32.xlu2 %v7700_v18, %s5277_s17  ;;  %v2167_v18 = vrot.slane %v6803_v49, 2 }
 0x39b   : > { %2534 = vrot.lane.b32.xlu0 %v7706_v58, %s5277_s17  ;;  %v7710_v59 = vpop.permute.xlu2 %2466  ;;  %v7725_v35 = vsel %vm2075_vm4, %v2166_v11, %v2167_v18  ;;  %v2173_v11 = vrot.slane %v6882_v34, 2 }
 0x39c   : > { %11625 = vst [vmem:[#allocation243_spill] sm:$0xff] %v7710_v59  ;;  %2548 = vrot.lane.b32.xlu1 %v7713_v3, %s5277_s17  ;;  %v2185_v59 = vrot.slane %v7051_v14, 2  ;;  %v7731_v3 = vsel %vm2075_vm4, %v2167_v18, %v2169_v32  ;;  %v2175_v32 = vrot.slane %v7085_v24, 2  ;;  %v2191_v18 = vrot.slane %v7176_v38, 2 }
 0x39d   : > { %v7718_v39 = vpop.permute.xlu0 %2386  ;;  %11630 = vst [vmem:[#allocation247_spill] sm:$0xff] %v7725_v35  ;;  %v2180_v38 = vrot.slane %v6981_v2, 2 }
 0x39e   : > { %11628 = vst [vmem:[#allocation245_spill] sm:$0xff] %v7718_v39  ;;  %v7721_v37 = vpop.permute.xlu1 %2464 }
 0x39f   : > { %11629 = vst [vmem:[#allocation246_spill] sm:$0xff] %v7721_v37  ;;  %v7738_v37 = vsel %vm2075_vm4, %v2184_v36, %v2185_v59  ;;  %v2189_v36 = vrot.slane %v7151_v0, 2 }
 0x3a0   : > { %11631 = vst [vmem:[#allocation248_spill] sm:$0xff] %v7731_v3 }
 0x3a1   : > { %2538 = vrot.lane.b32.xlu2 %v7725_v35, %s5277_s17  ;;  %11633 = vst [vmem:[#allocation250_spill] sm:$0xff] %v7738_v37 }
 0x3a3   : > { %2540 = vrot.lane.b32.xlu0 %v7731_v3, %s5277_s17  ;;  %v7735_v39 = vpop.permute.xlu2 %2472  ;;  %v7750_v3 = vsel %vm2075_vm4, %v2171_v62, %v2173_v11 }
 0x3a4   : > { %11632 = vst [vmem:[#allocation249_spill] sm:$0xff] %v7735_v39  ;;  %2554 = vrot.lane.b32.xlu1 %v7738_v37, %s5277_s17  ;;  %v7756_v39 = vsel %vm2075_vm4, %v2175_v32, %v2176_v44  ;;  %v2182_v44 = vrot.slane %v7293_v50, 2  ;;  %v2198_v32 = vrot.slane %v7172_v55, 2 }
 0x3a5   : > { %v7743_v58 = vpop.permute.xlu0 %2392  ;;  %11636 = vst [vmem:[#allocation253_spill] sm:$0xff] %v7750_v3 }
 0x3a6   : > { %11634 = vst [vmem:[#allocation251_spill] sm:$0xff] %v7743_v58  ;;  %v7745_v35 = vpop.permute.xlu1 %2470  ;;  %v7775_v58 = vsel %vm2075_vm4, %v2178_v47, %v2180_v38  ;;  %v2187_v47 = vrot.slane %v7055_v56, 2 }
 0x3a7   : > { %11635 = vst [vmem:[#allocation252_spill] sm:$0xff] %v7745_v35  ;;  %v7763_v35 = vsel %vm2075_vm4, %v2189_v36, %v2191_v18  ;;  %v2196_v18 = vrot.slane %v7190_v1, 2 }
 0x3a8   : > { %11637 = vst [vmem:[#allocation254_spill] sm:$0xff] %v7756_v39  ;;  %v7805_v37 = vsel %vm2075_vm4, %v2187_v47, %v2189_v36  ;;  %v2211_v36 = vrot.slane %v7341_v16, 2 }
 0x3a9   : > { %2544 = vrot.lane.b32.xlu2 %v7750_v3, %s5277_s17  ;;  %11639 = vst [vmem:[#allocation256_spill] sm:$0xff] %v7763_v35  ;;  %v7788_v50 = vsel %vm2075_vm4, %v2196_v18, %v2198_v32 }
 0x3aa   : > { %11642 = vst [vmem:[#allocation259_spill] sm:$0xff] %v7775_v58 }
 0x3ab   : > { %2546 = vrot.lane.b32.xlu0 %v7756_v39, %s5277_s17  ;;  %v7760_v34 = vpop.permute.xlu2 %2478  ;;  %11645 = vst [vmem:[#allocation262_spill] sm:$0xff] %v7788_v50 }
 0x3ac   : > { %11638 = vst [vmem:[#allocation255_spill] sm:$0xff] %v7760_v34  ;;  %2560 = vrot.lane.b32.xlu1 %v7763_v35, %s5277_s17  ;;  %v7781_v34 = vsel %vm2075_vm4, %v2180_v38, %v2182_v44  ;;  %v2205_v38 = vrot.slane %v7196_v48, 2  ;;  %v7799_v44 = vsel %vm2075_vm4, %v2185_v59, %v2187_v47  ;;  %v2193_v59 = vrot.slane %v7115_v57, 2 }
 0x3ad   : > { %v7768_v62 = vpop.permute.xlu0 %2462  ;;  %11643 = vst [vmem:[#allocation260_spill] sm:$0xff] %v7781_v34 }
 0x3ae   : > { %11640 = vst [vmem:[#allocation257_spill] sm:$0xff] %v7768_v62  ;;  %v7770_v11 = vpop.permute.xlu1 %2476 }
 0x3af   : > { %11641 = vst [vmem:[#allocation258_spill] sm:$0xff] %v7770_v11 }
 0x3b0   : > { %11648 = vst [vmem:[#allocation265_spill] sm:$0xff] %v7799_v44 }
 0x3b1   : > { %2550 = vrot.lane.b32.xlu2 %v7775_v58, %s5277_s17  ;;  %11649 = vst [vmem:[#allocation266_spill] sm:$0xff] %v7805_v37 }
 0x3b3   : > { %2552 = vrot.lane.b32.xlu0 %v7781_v34, %s5277_s17  ;;  %v7785_v62 = vpop.permute.xlu2 %2484  ;;  %v2194_v34 = vrot.slane %v7119_v4, 2 }
 0x3b4   : > { %11644 = vst [vmem:[#allocation261_spill] sm:$0xff] %v7785_v62  ;;  %2566 = vrot.lane.b32.xlu1 %v7788_v50, %s5277_s17  ;;  %v2203_v62 = vrot.slane %v7241_v13, 2 }
 0x3b5   : > { %v7793_v11 = vpop.permute.xlu0 %2468  ;;  %v7824_v47 = vsel %vm2075_vm4, %v2193_v59, %v2194_v34  ;;  %v2200_v59 = vrot.slane %v7235_v27, 2 }
 0x3b6   : > { %11646 = vst [vmem:[#allocation263_spill] sm:$0xff] %v7793_v11  ;;  %v7795_v35 = vpop.permute.xlu1 %2482 }
 0x3b7   : > { %11647 = vst [vmem:[#allocation264_spill] sm:$0xff] %v7795_v35  ;;  %v7812_v35 = vsel %vm2075_vm4, %v2203_v62, %v2205_v38 }
 0x3b8   : > { %11651 = vst [vmem:[#allocation268_spill] sm:$0xff] %v7812_v35 }
 0x3b9   : > { %2556 = vrot.lane.b32.xlu2 %v7799_v44, %s5277_s17  ;;  %11654 = vst [vmem:[#allocation271_spill] sm:$0xff] %v7824_v47 }
 0x3bb   : > { %2558 = vrot.lane.b32.xlu0 %v7805_v37, %s5277_s17  ;;  %v7809_v50 = vpop.permute.xlu2 %2490 }
 0x3bc   : > { %11650 = vst [vmem:[#allocation267_spill] sm:$0xff] %v7809_v50  ;;  %2572 = vrot.lane.b32.xlu1 %v7812_v35, %s5277_s17  ;;  %v2212_v50 = vrot.slane %v7283_v52, 2  ;;  %v7830_v35 = vsel %vm2075_vm4, %v2194_v34, %v2196_v18  ;;  %v2202_v34 = vrot.slane %v7254_v20, 2  ;;  %v2218_v18 = vrot.slane %v7374_v9, 2 }
 0x3bd   : > { %v7817_v11 = vpop.permute.xlu0 %2474  ;;  %11655 = vst [vmem:[#allocation272_spill] sm:$0xff] %v7830_v35  ;;  %v2207_v9 = vrot.slane %v7183_v21, 2 }
 0x3be   : > { %11652 = vst [vmem:[#allocation269_spill] sm:$0xff] %v7817_v11  ;;  %v7820_v39 = vpop.permute.xlu1 %2488 }
 0x3bf   : > { %11653 = vst [vmem:[#allocation270_spill] sm:$0xff] %v7820_v39  ;;  %v7837_v39 = vsel %vm2075_vm4, %v2211_v36, %v2212_v50  ;;  %v2216_v36 = vrot.slane %v7363_v6, 2 }
 0x3c1   : > { %2562 = vrot.lane.b32.xlu2 %v7824_v47, %s5277_s17 }
 0x3c3   : > { %2564 = vrot.lane.b32.xlu0 %v7830_v35, %s5277_s17  ;;  %v7834_v11 = vpop.permute.xlu2 %2496  ;;  %v7849_v35 = vsel %vm2075_vm4, %v2198_v32, %v2200_v59 }
 0x3c4   : > { %11656 = vst [vmem:[#allocation273_spill] sm:$0xff] %v7834_v11  ;;  %2578 = vrot.lane.b32.xlu1 %v7837_v39, %s5277_s17  ;;  %v7855_v11 = vsel %vm2075_vm4, %v2202_v34, %v2203_v62  ;;  %v2209_v62 = vrot.slane %v7320_v26, 2  ;;  %v7873_v34 = vsel %vm2075_vm4, %v2205_v38, %v2207_v9 }
 0x3c5   : > { %v7842_v37 = vpop.permute.xlu0 %2480 }
 0x3c6   : > { %11657 = vst [vmem:[#allocation274_spill] sm:$0xff] %v7842_v37  ;;  %v7844_v47 = vpop.permute.xlu1 %2494  ;;  %v7862_v37 = vsel %vm2075_vm4, %v2216_v36, %v2218_v18  ;;  %v7878_v18 = vsel %vm2075_vm4, %v2207_v9, %v2209_v62 }
 0x3c7   : > { %11658 = vst [vmem:[#allocation275_spill] sm:$0xff] %v7844_v47  ;;  %v11680_v47 = vld [vmem:[#allocation17_spill] sm:$0xff] }
 0x3c8   : > { %11660 = vst [vmem:[#allocation277_spill] sm:$0xff] %v7862_v37 }
 0x3c9   : > { %2568 = vrot.lane.b32.xlu2 %v7849_v35, %s5277_s17 }
 0x3cb   : > { %2570 = vrot.lane.b32.xlu0 %v7855_v11, %s5277_s17  ;;  %v7859_v27 = vpop.permute.xlu2 %2502 }
 0x3cc   : > { %11659 = vst [vmem:[#allocation276_spill] sm:$0xff] %v7859_v27  ;;  %2584 = vrot.lane.b32.xlu1 %v7862_v37, %s5277_s17 }
 0x3cd   : > { %v7867_v32 = vpop.permute.xlu0 %2486 }
 0x3ce   : > { %11661 = vst [vmem:[#allocation278_spill] sm:$0xff] %v7867_v32  ;;  %v7869_v59 = vpop.permute.xlu1 %2500 }
 0x3cf   : > { %11662 = vst [vmem:[#allocation279_spill] sm:$0xff] %v7869_v59  ;;  %v2214_v59 = vrot.slane %v7274_v31, 2 }
 0x3d1   : > { %2574 = vrot.lane.b32.xlu2 %v7873_v34, %s5277_s17  ;;  %v7892_v32 = vsel %vm2075_vm4, %v2212_v50, %v2214_v59  ;;  %v7897_v9 = vsel %vm2075_vm4, %v2214_v59, %v2216_v36 }
 0x3d2   : > { %11666 = vst [vmem:[#allocation283_spill] sm:$0xff] %v7892_v32 }
 0x3d3   : > { %2576 = vrot.lane.b32.xlu0 %v7878_v18, %s5277_s17  ;;  %v7882_v27 = vpop.permute.xlu2 %2508  ;;  %11667 = vst [vmem:[#allocation284_spill] sm:$0xff] %v7897_v9 }
 0x3d4   : > { %11663 = vst [vmem:[#allocation280_spill] sm:$0xff] %v7882_v27  ;;  %2654 = vrot.lane.b32.xlu1 %v11516_v53, %s5276_s16  ;;  %v11686_v53 = vld [vmem:[#allocation16_spill] sm:$0xff] }
 0x3d5   : > { %v7887_v26 = vpop.permute.xlu0 %2492 }
 0x3d6   : > { %11664 = vst [vmem:[#allocation281_spill] sm:$0xff] %v7887_v26  ;;  %v7889_v38 = vpop.permute.xlu1 %2506 }
 0x3d7   : > { %11665 = vst [vmem:[#allocation282_spill] sm:$0xff] %v7889_v38 }
 0x3d9   : > { %2580 = vrot.lane.b32.xlu2 %v7892_v32, %s5277_s17 }
 0x3db   : > { %2582 = vrot.lane.b32.xlu0 %v7897_v9, %s5277_s17  ;;  %v7901_v62 = vpop.permute.xlu2 %2514 }
 0x3dc   : > { %11668 = vst [vmem:[#allocation285_spill] sm:$0xff] %v7901_v62  ;;  %2660 = vrot.lane.b32.xlu1 %v11524_v33, %s5276_s16 }
 0x3dd   : > { %v7905_v27 = vpop.permute.xlu0 %2498 }
 0x3de   : > { %11669 = vst [vmem:[#allocation286_spill] sm:$0xff] %v7905_v27  ;;  %v7907_v38 = vpop.permute.xlu1 %2512  ;;  %v11677_v27 = vld [vmem:[#allocation37_spill] sm:$0xff] }
 0x3df   : > { %11670 = vst [vmem:[#allocation287_spill] sm:$0xff] %v7907_v38 }
 0x3e1   : > { %2650 = vrot.lane.b32.xlu2 %v11529_v5, %s5276_s16 }
 0x3e3   : > { %2652 = vrot.lane.b32.xlu0 %v11527_v43, %s5276_s16  ;;  %v7913_v50 = vpop.permute.xlu2 %2520 }
 0x3e4   : > { %11671 = vst [vmem:[#allocation288_spill] sm:$0xff] %v7913_v50  ;;  %2666 = vrot.lane.b32.xlu1 %v11533_v60, %s5276_s16 }
 0x3e5   : > { %v7917_v36 = vpop.permute.xlu0 %2504 }
 0x3e6   : > { %11672 = vst [vmem:[#allocation289_spill] sm:$0xff] %v7917_v36  ;;  %v7919_v59 = vpop.permute.xlu1 %2518 }
 0x3e7   : > { %11673 = vst [vmem:[#allocation290_spill] sm:$0xff] %v7919_v59  ;;  %v11678_v59 = vld [vmem:[#allocation56_spill] sm:$0xff] }
 0x3e9   : > { %2656 = vrot.lane.b32.xlu2 %v11514_v7, %s5276_s16  ;;  %v11683_v7 = vld [vmem:[#allocation21_spill] sm:$0xff] }
 0x3eb   : > { %2658 = vrot.lane.b32.xlu0 %v11541_v30, %s5276_s16  ;;  %v7925_v62 = vpop.permute.xlu2 %2526 }
 0x3ec   : > { %11674 = vst [vmem:[#allocation291_spill] sm:$0xff] %v7925_v62  ;;  %2672 = vrot.lane.b32.xlu1 %v6350_v25, %s5276_s16 }
 0x3ed   : > { %v7929_v38 = vpop.permute.xlu0 %2510 }
 0x3ee   : > { %11675 = vst [vmem:[#allocation292_spill] sm:$0xff] %v7929_v38  ;;  %v7931_v50 = vpop.permute.xlu1 %2524  ;;  %v11684_v38 = vld [vmem:[#allocation38_spill] sm:$0xff] }
 0x3ef   : > { %11676 = vst [vmem:[#allocation293_spill] sm:$0xff] %v7931_v50 }
 0x3f1   : > { %2662 = vrot.lane.b32.xlu2 %v11677_v27, %s5276_s16 }
 0x3f3   : > { %2664 = vrot.lane.b32.xlu0 %v11678_v59, %s5276_s16  ;;  %v7937_v36 = vpop.permute.xlu2 %2532 }
 0x3f4   : > { %11679 = vst [vmem:[#allocation294_spill] sm:$0xff] %v7937_v36  ;;  %2678 = vrot.lane.b32.xlu1 %v11680_v47, %s5276_s16 }
 0x3f5   : > { %v7941_v26 = vpop.permute.xlu0 %2516 }
 0x3f6   : > { %11681 = vst [vmem:[#allocation295_spill] sm:$0xff] %v7941_v26  ;;  %v7943_v62 = vpop.permute.xlu1 %2530 }
 0x3f7   : > { %11682 = vst [vmem:[#allocation296_spill] sm:$0xff] %v7943_v62  ;;  %v11690_v62 = vld [vmem:[#allocation84_spill] sm:$0xff] }
 0x3f9   : > { %2668 = vrot.lane.b32.xlu2 %v11683_v7, %s5276_s16 }
 0x3fb   : > { %2670 = vrot.lane.b32.xlu0 %v11684_v38, %s5276_s16  ;;  %v7949_v50 = vpop.permute.xlu2 %2538 }
 0x3fc   : > { %11685 = vst [vmem:[#allocation297_spill] sm:$0xff] %v7949_v50  ;;  %2684 = vrot.lane.b32.xlu1 %v11686_v53, %s5276_s16  ;;  %v11693_v53 = vld [vmem:[#allocation83_spill] sm:$0xff] }
 0x3fd   : > { %v7953_v43 = vpop.permute.xlu0 %2522 }
 0x3fe   : > { %11687 = vst [vmem:[#allocation298_spill] sm:$0xff] %v7953_v43  ;;  %v7955_v36 = vpop.permute.xlu1 %2536 }
 0x3ff   : > { %11688 = vst [vmem:[#allocation299_spill] sm:$0xff] %v7955_v36 }
 0x401   : > { %2674 = vrot.lane.b32.xlu2 %v11566_v19, %s5276_s16 }
 0x403   : > { %2676 = vrot.lane.b32.xlu0 %v11564_v17, %s5276_s16  ;;  %v7961_v26 = vpop.permute.xlu2 %2544 }
 0x404   : > { %11689 = vst [vmem:[#allocation300_spill] sm:$0xff] %v7961_v26  ;;  %2690 = vrot.lane.b32.xlu1 %v11690_v62, %s5276_s16  ;;  %v11697_v62 = vld [vmem:[#allocation70_spill] sm:$0xff] }
 0x405   : > { %v7965_v5 = vpop.permute.xlu0 %2528 }
 0x406   : > { %11691 = vst [vmem:[#allocation301_spill] sm:$0xff] %v7965_v5  ;;  %v7967_v50 = vpop.permute.xlu1 %2542 }
 0x407   : > { %11692 = vst [vmem:[#allocation302_spill] sm:$0xff] %v7967_v50 }
 0x409   : > { %2680 = vrot.lane.b32.xlu2 %v11693_v53, %s5276_s16 }
 0x40b   : > { %2682 = vrot.lane.b32.xlu0 %v11577_v42, %s5276_s16  ;;  %v7973_v36 = vpop.permute.xlu2 %2550 }
 0x40c   : > { %11694 = vst [vmem:[#allocation303_spill] sm:$0xff] %v7973_v36  ;;  %2696 = vrot.lane.b32.xlu1 %v6564_v8, %s5276_s16  ;;  %v11701_v8 = vld [vmem:[#allocation76_spill] sm:$0xff] }
 0x40d   : > { %v7977_v43 = vpop.permute.xlu0 %2534 }
 0x40e   : > { %11695 = vst [vmem:[#allocation304_spill] sm:$0xff] %v7977_v43  ;;  %v7979_v26 = vpop.permute.xlu1 %2548 }
 0x40f   : > { %11696 = vst [vmem:[#allocation305_spill] sm:$0xff] %v7979_v26  ;;  %v11703_v26 = vld [vmem:[#allocation105_spill] sm:$0xff] }
 0x411   : > { %2686 = vrot.lane.b32.xlu2 %v11697_v62, %s5276_s16 }
 0x413   : > { %2688 = vrot.lane.b32.xlu0 %v11395_v51, %s5276_s16  ;;  %v7985_v50 = vpop.permute.xlu2 %2556 }
 0x414   : > { %11698 = vst [vmem:[#allocation306_spill] sm:$0xff] %v7985_v50  ;;  %2702 = vrot.lane.b32.xlu1 %v11586_v46, %s5276_s16 }
 0x415   : > { %v7989_v5 = vpop.permute.xlu0 %2540 }
 0x416   : > { %11699 = vst [vmem:[#allocation307_spill] sm:$0xff] %v7989_v5  ;;  %v7991_v36 = vpop.permute.xlu1 %2554 }
 0x417   : > { %11700 = vst [vmem:[#allocation308_spill] sm:$0xff] %v7991_v36  ;;  %v11707_v36 = vld [vmem:[#allocation45_spill] sm:$0xff] }
 0x419   : > { %2692 = vrot.lane.b32.xlu2 %v11701_v8, %s5276_s16 }
 0x41b   : > { %2694 = vrot.lane.b32.xlu0 %v11590_v15, %s5276_s16  ;;  %v7997_v43 = vpop.permute.xlu2 %2562 }
 0x41c   : > { %11702 = vst [vmem:[#allocation309_spill] sm:$0xff] %v7997_v43  ;;  %2708 = vrot.lane.b32.xlu1 %v11703_v26, %s5276_s16  ;;  %v11710_v26 = vld [vmem:[#allocation48_spill] sm:$0xff] }
 0x41d   : > { %v8001_v51 = vpop.permute.xlu0 %2546 }
 0x41e   : > { %11704 = vst [vmem:[#allocation310_spill] sm:$0xff] %v8001_v51  ;;  %v8003_v50 = vpop.permute.xlu1 %2560 }
 0x41f   : > { %11705 = vst [vmem:[#allocation311_spill] sm:$0xff] %v8003_v50 }
 0x421   : > { %2698 = vrot.lane.b32.xlu2 %v11599_v10, %s5276_s16 }
 0x423   : > { %2700 = vrot.lane.b32.xlu0 %v11597_v40, %s5276_s16  ;;  %v8009_v5 = vpop.permute.xlu2 %2568 }
 0x424   : > { %11706 = vst [vmem:[#allocation312_spill] sm:$0xff] %v8009_v5  ;;  %2714 = vrot.lane.b32.xlu1 %v11707_v36, %s5276_s16  ;;  %v11714_v36 = vld [vmem:[#allocation95_spill] sm:$0xff] }
 0x425   : > { %v8013_v46 = vpop.permute.xlu0 %2552 }
 0x426   : > { %11708 = vst [vmem:[#allocation313_spill] sm:$0xff] %v8013_v46  ;;  %v8015_v43 = vpop.permute.xlu1 %2566 }
 0x427   : > { %11709 = vst [vmem:[#allocation314_spill] sm:$0xff] %v8015_v43 }
 0x429   : > { %2704 = vrot.lane.b32.xlu2 %v11710_v26, %s5276_s16 }
 0x42b   : > { %2706 = vrot.lane.b32.xlu0 %v11608_v61, %s5276_s16  ;;  %v8021_v51 = vpop.permute.xlu2 %2574 }
 0x42c   : > { %11711 = vst [vmem:[#allocation315_spill] sm:$0xff] %v8021_v51  ;;  %2720 = vrot.lane.b32.xlu1 %v6944_v22, %s5276_s16  ;;  %v11718_v22 = vld [vmem:[#allocation101_spill] sm:$0xff] }
 0x42d   : > { %v8025_v50 = vpop.permute.xlu0 %2558 }
 0x42e   : > { %11712 = vst [vmem:[#allocation316_spill] sm:$0xff] %v8025_v50  ;;  %v8027_v5 = vpop.permute.xlu1 %2572 }
 0x42f   : > { %11713 = vst [vmem:[#allocation317_spill] sm:$0xff] %v8027_v5 }
 0x431   : > { %2710 = vrot.lane.b32.xlu2 %v11714_v36, %s5276_s16 }
 0x433   : > { %2712 = vrot.lane.b32.xlu0 %v6675_v29, %s5276_s16  ;;  %v8033_v46 = vpop.permute.xlu2 %2580 }
 0x434   : > { %11715 = vst [vmem:[#allocation318_spill] sm:$0xff] %v8033_v46  ;;  %2726 = vrot.lane.b32.xlu1 %v6990_v54, %s5276_s16 }
 0x435   : > { %v8037_v43 = vpop.permute.xlu0 %2564 }
 0x436   : > { %11716 = vst [vmem:[#allocation319_spill] sm:$0xff] %v8037_v43  ;;  %v8039_v51 = vpop.permute.xlu1 %2578 }
 0x437   : > { %11717 = vst [vmem:[#allocation320_spill] sm:$0xff] %v8039_v51 }
 0x439   : > { %2716 = vrot.lane.b32.xlu2 %v11718_v22, %s5276_s16 }
 0x43b   : > { %2718 = vrot.lane.b32.xlu0 %v11619_v28, %s5276_s16  ;;  %v8045_v5 = vpop.permute.xlu2 %2650 }
 0x43c   : > { %11719 = vst [vmem:[#allocation321_spill] sm:$0xff] %v8045_v5  ;;  %2732 = vrot.lane.b32.xlu1 %v7047_v45, %s5276_s16 }
 0x43d   : > { %v8049_v50 = vpop.permute.xlu0 %2570 }
 0x43e   : > { %11720 = vst [vmem:[#allocation322_spill] sm:$0xff] %v8049_v50  ;;  %v8051_v46 = vpop.permute.xlu1 %2584 }
 0x43f   : > { %11721 = vst [vmem:[#allocation323_spill] sm:$0xff] %v8051_v46 }
 0x441   : > { %2722 = vrot.lane.b32.xlu2 %v11627_v63, %s5276_s16 }
 0x443   : > { %2724 = vrot.lane.b32.xlu0 %v6803_v49, %s5276_s16  ;;  %v8057_v51 = vpop.permute.xlu2 %2656 }
 0x444   : > { %11722 = vst [vmem:[#allocation324_spill] sm:$0xff] %v8057_v51  ;;  %2738 = vrot.lane.b32.xlu1 %v7105_v41, %s5276_s16 }
 0x445   : > { %v8061_v43 = vpop.permute.xlu0 %2576 }
 0x446   : > { %11723 = vst [vmem:[#allocation325_spill] sm:$0xff] %v8061_v43  ;;  %v8063_v5 = vpop.permute.xlu1 %2654 }
 0x447   : > { %11724 = vst [vmem:[#allocation326_spill] sm:$0xff] %v8063_v5 }
 0x449   : > { %2728 = vrot.lane.b32.xlu2 %v6919_v12, %s5276_s16 }
 0x44b   : > { %2730 = vrot.lane.b32.xlu0 %v7085_v24, %s5276_s16  ;;  %v8069_v46 = vpop.permute.xlu2 %2662 }
 0x44c   : > { %11725 = vst [vmem:[#allocation327_spill] sm:$0xff] %v8069_v46  ;;  %2744 = vrot.lane.b32.xlu1 %v7151_v0, %s5276_s16 }
 0x44d   : > { %v8073_v50 = vpop.permute.xlu0 %2582 }
 0x44e   : > { %11726 = vst [vmem:[#allocation328_spill] sm:$0xff] %v8073_v50  ;;  %v8075_v51 = vpop.permute.xlu1 %2660 }
 0x44f   : > { %11727 = vst [vmem:[#allocation329_spill] sm:$0xff] %v8075_v51 }
 0x451   : > { %2734 = vrot.lane.b32.xlu2 %v11622_v23, %s5276_s16 }
 0x453   : > { %2736 = vrot.lane.b32.xlu0 %v6981_v2, %s5276_s16  ;;  %v8081_v5 = vpop.permute.xlu2 %2668 }
 0x454   : > { %11728 = vst [vmem:[#allocation330_spill] sm:$0xff] %v8081_v5  ;;  %2750 = vrot.lane.b32.xlu1 %v7190_v1, %s5276_s16 }
 0x455   : > { %v8085_v43 = vpop.permute.xlu0 %2652 }
 0x456   : > { %11729 = vst [vmem:[#allocation331_spill] sm:$0xff] %v8085_v43  ;;  %v8087_v46 = vpop.permute.xlu1 %2666 }
 0x457   : > { %11730 = vst [vmem:[#allocation332_spill] sm:$0xff] %v8087_v46 }
 0x459   : > { %2740 = vrot.lane.b32.xlu2 %v7051_v14, %s5276_s16 }
 0x45b   : > { %2742 = vrot.lane.b32.xlu0 %v7055_v56, %s5276_s16  ;;  %v8093_v51 = vpop.permute.xlu2 %2674  ;;  %v11741_v56 = vld [vmem:[#allocation8_spill] sm:$0xff] }
 0x45c   : > { %11731 = vst [vmem:[#allocation333_spill] sm:$0xff] %v8093_v51  ;;  %2756 = vrot.lane.b32.xlu1 %v7241_v13, %s5276_s16  ;;  %v11737_v13 = vld [vmem:[#allocation10_spill] sm:$0xff] }
 0x45d   : > { %v8097_v50 = vpop.permute.xlu0 %2658  ;;  %v1699_v1 = vrot.slane %v11737_v13, 4  ;;  %v11743_v13 = vld [vmem:[#allocation107_spill] sm:$0xff] }
 0x45e   : > { %11732 = vst [vmem:[#allocation334_spill] sm:$0xff] %v8097_v50  ;;  %v8099_v5 = vpop.permute.xlu1 %2672  ;;  %v11739_v50 = vld [vmem:[#allocation4_spill] sm:$0xff] }
 0x45f   : > { %11733 = vst [vmem:[#allocation335_spill] sm:$0xff] %v8099_v5 }
 0x461   : > { %2746 = vrot.lane.b32.xlu2 %v7115_v57, %s5276_s16 }
 0x463   : > { %2748 = vrot.lane.b32.xlu0 %v7119_v4, %s5276_s16  ;;  %v8105_v46 = vpop.permute.xlu2 %2680  ;;  %v1687_v4 = vrot.slane %v11739_v50, 4  ;;  %v11747_v50 = vld [vmem:[#allocation3_spill] sm:$0xff] }
 0x464   : > { %11734 = vst [vmem:[#allocation336_spill] sm:$0xff] %v8105_v46  ;;  %2762 = vrot.lane.b32.xlu1 %v7341_v16, %s5276_s16  ;;  %v11740_v46 = vld [vmem:[#allocation9_spill] sm:$0xff]  ;;  %v1700_v16 = vsel %vm681_vm2, %v1699_v1, %v11741_v56  ;;  %v1681_v57 = vrot.slane %v11747_v50, 4 }
 0x465   : > { %v8109_v43 = vpop.permute.xlu0 %2664  ;;  %v1693_v0 = vrot.slane %v11740_v46, 4  ;;  %v11748_v46 = vld [vmem:[#allocation7_spill] sm:$0xff] }
 0x466   : > { %11735 = vst [vmem:[#allocation337_spill] sm:$0xff] %v8109_v43  ;;  %v8111_v51 = vpop.permute.xlu1 %2678  ;;  %v1688_v43 = vsel %vm681_vm2, %v1687_v4, %v11743_v13  ;;  %v11751_v13 = vld [vmem:[#allocation2_spill] sm:$0xff] }
 0x467   : > { %11736 = vst [vmem:[#allocation338_spill] sm:$0xff] %v8111_v51  ;;  %v1694_v45 = vsel %vm681_vm2, %v1693_v0, %v11748_v46  ;;  %v1682_v0 = vsel %vm681_vm2, %v1681_v57, %v11751_v13 }
 0x469   : > { %2752 = vrot.lane.b32.xlu2 %v7172_v55, %s5276_s16 }
 0x46b   : > { %2754 = vrot.lane.b32.xlu0 %v7254_v20, %s5276_s16  ;;  %v8118_v5 = vpop.permute.xlu2 %2686  ;;  %v11745_v20 = vld [vmem:[#allocation5_spill] sm:$0xff] }
 0x46c   : > { %11738 = vst [vmem:[#allocation10_spill] sm:$0xff] %v8118_v5  ;;  %2768 = vrot.lane.b32.xlu1 %v7363_v6, %s5276_s16  ;;  %v1704_v41 = vperm.slane %v1700_v16, %v11745_v20  ;;  %v11746_v5 = vld [vmem:[#allocation49_spill] sm:$0xff]  ;;  %v1692_v56 = vperm.slane %v1688_v43, %v11745_v20  ;;  %v1698_v1 = vperm.slane %v1694_v45, %v11745_v20  ;;  %v11750_v16 = vld [vmem:[#allocation47_spill] sm:$0xff] }
 0x46d   : > { %v8126_v51 = vpop.permute.xlu0 %2670  ;;  %v1797_v2 = vrot.slane %v11746_v5, 4 }
 0x46e   : > { %11742 = vst [vmem:[#allocation4_spill] sm:$0xff] %v8126_v51  ;;  %v8130_v55 = vpop.permute.xlu1 %2684  ;;  %v1711_v51 = vrot.slane %v1704_v41, 4  ;;  %v1705_v43 = vrot.slane %v1692_v56, 4  ;;  %v1686_v41 = vperm.slane %v1682_v0, %v11745_v20  ;;  %v11757_v56 = vld [vmem:[#allocation66_spill] sm:$0xff]  ;;  %v11761_v0 = vld [vmem:[#allocation33_spill] sm:$0xff] }
 0x46f   : > { %11744 = vst [vmem:[#allocation9_spill] sm:$0xff] %v8130_v55  ;;  %v8147_v5 = vsel %vm681_vm2, %v1797_v2, %v11750_v16  ;;  %v11754_v2 = vld [vmem:[#allocation11_spill] sm:$0xff]  ;;  %v11777_v55 = vld [vmem:[#allocation86_spill] sm:$0xff] }
 0x470   : > { %v1712_v46 = vsel %vm681_vm2, %v1711_v51, %v1698_v1 }
 0x471   : > { %2758 = vrot.lane.b32.xlu2 %v7196_v48, %s5276_s16  ;;  %v8163_v16 = vperm.slane %v1712_v46, %v11754_v2  ;;  %v11762_v46 = vld [vmem:[#allocation31_spill] sm:$0xff] }
 0x473   : > { %2760 = vrot.lane.b32.xlu0 %v7183_v21, %s5276_s16  ;;  %v8143_v4 = vpop.permute.xlu2 %2692  ;;  %11755 = vst [vmem:[#allocation49_spill] sm:$0xff] %v8163_v16  ;;  %v1717_v1 = vrot.slane %v8163_v16, 4  ;;  %v11883_v16 = vld [vmem:[#allocation64_spill] sm:$0xff] }
 0x474   : > { %11749 = vst [vmem:[#allocation8_spill] sm:$0xff] %v8143_v4  ;;  %2774 = vrot.lane.b32.xlu1 %v8147_v5, %s5276_s16  ;;  %v1706_v4 = vsel %vm681_vm2, %v1705_v43, %v1686_v41  ;;  %v1757_v43 = vrot.slane %v11761_v0, 4  ;;  %v11765_v0 = vld [vmem:[#allocation88_spill] sm:$0xff] }
 0x475   : > { %v8153_v50 = vpop.permute.xlu0 %2676  ;;  %v8172_v20 = vperm.slane %v1706_v4, %v11754_v2 }
 0x476   : > { %11752 = vst [vmem:[#allocation107_spill] sm:$0xff] %v8153_v50  ;;  %v8155_v45 = vpop.permute.xlu1 %2690 }
 0x477   : > { %11753 = vst [vmem:[#allocation5_spill] sm:$0xff] %v8155_v45  ;;  %v8182_v41 = vsel %vm681_vm2, %v1717_v1, %v8172_v20  ;;  %v11768_v45 = vld [vmem:[#allocation36_spill] sm:$0xff] }
 0x478   : > { %11758 = vst [vmem:[#allocation7_spill] sm:$0xff] %v8172_v20  ;;  %v11884_v20 = vld [vmem:[#allocation155_spill] sm:$0xff] }
 0x479   : > { %2764 = vrot.lane.b32.xlu2 %v7283_v52, %s5276_s16 }
 0x47b   : > { %2766 = vrot.lane.b32.xlu0 %v7274_v31, %s5276_s16  ;;  %v8167_v57 = vpop.permute.xlu2 %2698 }
 0x47c   : > { %11756 = vst [vmem:[#allocation3_spill] sm:$0xff] %v8167_v57  ;;  %2844 = vrot.lane.b32.xlu1 %v11757_v56, %s5275_s15  ;;  %v8188_v56 = vsel %vm681_vm2, %v1757_v43, %v11762_v46  ;;  %v11764_v57 = vld [vmem:[#allocation72_spill] sm:$0xff] }
 0x47d   : > { %v8174_v51 = vpop.permute.xlu0 %2682  ;;  %v11769_v43 = vld [vmem:[#allocation44_spill] sm:$0xff] }
 0x47e   : > { %11759 = vst [vmem:[#allocation47_spill] sm:$0xff] %v8174_v51  ;;  %v8177_v13 = vpop.permute.xlu1 %2696 }
 0x47f   : > { %11760 = vst [vmem:[#allocation2_spill] sm:$0xff] %v8177_v13  ;;  %v1837_v13 = vrot.slane %v11765_v0, 4 }
 0x481   : > { %2770 = vrot.lane.b32.xlu2 %v8182_v41, %s5276_s16  ;;  %v8203_v50 = vsel %vm681_vm2, %v1837_v13, %v11768_v45  ;;  %v11775_v45 = vld [vmem:[#allocation52_spill] sm:$0xff] }
 0x483   : > { %2772 = vrot.lane.b32.xlu0 %v8188_v56, %s5276_s16  ;;  %v8192_v4 = vpop.permute.xlu2 %2704 }
 0x484   : > { %11763 = vst [vmem:[#allocation11_spill] sm:$0xff] %v8192_v4  ;;  %2850 = vrot.lane.b32.xlu1 %v11764_v57, %s5275_s15  ;;  %v11771_v4 = vld [vmem:[#allocation18_spill] sm:$0xff]  ;;  %v11789_v57 = vld [vmem:[#allocation53_spill] sm:$0xff] }
 0x485   : > { %v8197_v51 = vpop.permute.xlu0 %2688 }
 0x486   : > { %11766 = vst [vmem:[#allocation66_spill] sm:$0xff] %v8197_v51  ;;  %v8199_v1 = vpop.permute.xlu1 %2702 }
 0x487   : > { %11767 = vst [vmem:[#allocation33_spill] sm:$0xff] %v8199_v1  ;;  %v11774_v1 = vld [vmem:[#allocation67_spill] sm:$0xff] }
 0x489   : > { %2776 = vrot.lane.b32.xlu2 %v8203_v50, %s5276_s16 }
 0x48b   : > { %2842 = vrot.lane.b32.xlu0 %v11769_v43, %s5275_s15  ;;  %v8209_v46 = vpop.permute.xlu2 %2710 }
 0x48c   : > { %11770 = vst [vmem:[#allocation31_spill] sm:$0xff] %v8209_v46  ;;  %2856 = vrot.lane.b32.xlu1 %v11771_v4, %s5275_s15  ;;  %v11780_v4 = vld [vmem:[#allocation12_spill] sm:$0xff] }
 0x48d   : > { %v8213_v0 = vpop.permute.xlu0 %2694 }
 0x48e   : > { %11772 = vst [vmem:[#allocation88_spill] sm:$0xff] %v8213_v0  ;;  %v8215_v51 = vpop.permute.xlu1 %2708 }
 0x48f   : > { %11773 = vst [vmem:[#allocation36_spill] sm:$0xff] %v8215_v51  ;;  %v11781_v51 = vld [vmem:[#allocation57_spill] sm:$0xff] }
 0x491   : > { %2846 = vrot.lane.b32.xlu2 %v11774_v1, %s5275_s15  ;;  %v11783_v1 = vld [vmem:[#allocation50_spill] sm:$0xff] }
 0x493   : > { %2848 = vrot.lane.b32.xlu0 %v11775_v45, %s5275_s15  ;;  %v8221_v13 = vpop.permute.xlu2 %2716 }
 0x494   : > { %11776 = vst [vmem:[#allocation44_spill] sm:$0xff] %v8221_v13  ;;  %2862 = vrot.lane.b32.xlu1 %v11777_v55, %s5275_s15  ;;  %v11786_v55 = vld [vmem:[#allocation81_spill] sm:$0xff] }
 0x495   : > { %v8225_v43 = vpop.permute.xlu0 %2700 }
 0x496   : > { %11778 = vst [vmem:[#allocation67_spill] sm:$0xff] %v8225_v43  ;;  %v8227_v46 = vpop.permute.xlu1 %2714  ;;  %v11787_v43 = vld [vmem:[#allocation61_spill] sm:$0xff] }
 0x497   : > { %11779 = vst [vmem:[#allocation52_spill] sm:$0xff] %v8227_v46 }
 0x499   : > { %2852 = vrot.lane.b32.xlu2 %v11780_v4, %s5275_s15 }
 0x49b   : > { %2854 = vrot.lane.b32.xlu0 %v11781_v51, %s5275_s15  ;;  %v8233_v0 = vpop.permute.xlu2 %2722 }
 0x49c   : > { %11782 = vst [vmem:[#allocation339_spill] sm:$0xff] %v8233_v0  ;;  %2868 = vrot.lane.b32.xlu1 %v11783_v1, %s5275_s15  ;;  %v11792_v1 = vld [vmem:[#allocation98_spill] sm:$0xff] }
 0x49d   : > { %v8237_v45 = vpop.permute.xlu0 %2706 }
 0x49e   : > { %11784 = vst [vmem:[#allocation340_spill] sm:$0xff] %v8237_v45  ;;  %v8239_v13 = vpop.permute.xlu1 %2720  ;;  %v11793_v45 = vld [vmem:[#allocation68_spill] sm:$0xff] }
 0x49f   : > { %11785 = vst [vmem:[#allocation341_spill] sm:$0xff] %v8239_v13 }
 0x4a1   : > { %2858 = vrot.lane.b32.xlu2 %v11786_v55, %s5275_s15  ;;  %v11795_v55 = vld [vmem:[#allocation102_spill] sm:$0xff] }
 0x4a3   : > { %2860 = vrot.lane.b32.xlu0 %v11787_v43, %s5275_s15  ;;  %v8245_v46 = vpop.permute.xlu2 %2728 }
 0x4a4   : > { %11788 = vst [vmem:[#allocation342_spill] sm:$0xff] %v8245_v46  ;;  %2874 = vrot.lane.b32.xlu1 %v11789_v57, %s5275_s15  ;;  %v11798_v57 = vld [vmem:[#allocation15_spill] sm:$0xff] }
 0x4a5   : > { %v8249_v51 = vpop.permute.xlu0 %2712 }
 0x4a6   : > { %11790 = vst [vmem:[#allocation343_spill] sm:$0xff] %v8249_v51  ;;  %v8251_v0 = vpop.permute.xlu1 %2726  ;;  %v11799_v51 = vld [vmem:[#allocation60_spill] sm:$0xff] }
 0x4a7   : > { %11791 = vst [vmem:[#allocation344_spill] sm:$0xff] %v8251_v0 }
 0x4a9   : > { %2864 = vrot.lane.b32.xlu2 %v11792_v1, %s5275_s15  ;;  %v11801_v1 = vld [vmem:[#allocation91_spill] sm:$0xff] }
 0x4ab   : > { %2866 = vrot.lane.b32.xlu0 %v11793_v45, %s5275_s15  ;;  %v8257_v13 = vpop.permute.xlu2 %2734 }
 0x4ac   : > { %11794 = vst [vmem:[#allocation345_spill] sm:$0xff] %v8257_v13  ;;  %2880 = vrot.lane.b32.xlu1 %v11795_v55, %s5275_s15  ;;  %v11804_v55 = vld [vmem:[#allocation87_spill] sm:$0xff] }
 0x4ad   : > { %v8261_v43 = vpop.permute.xlu0 %2718 }
 0x4ae   : > { %11796 = vst [vmem:[#allocation346_spill] sm:$0xff] %v8261_v43  ;;  %v8263_v46 = vpop.permute.xlu1 %2732 }
 0x4af   : > { %11797 = vst [vmem:[#allocation347_spill] sm:$0xff] %v8263_v46  ;;  %v11805_v46 = vld [vmem:[#allocation74_spill] sm:$0xff] }
 0x4b1   : > { %2870 = vrot.lane.b32.xlu2 %v11798_v57, %s5275_s15  ;;  %v11807_v57 = vld [vmem:[#allocation96_spill] sm:$0xff] }
 0x4b3   : > { %2872 = vrot.lane.b32.xlu0 %v11799_v51, %s5275_s15  ;;  %v8269_v0 = vpop.permute.xlu2 %2740 }
 0x4b4   : > { %11800 = vst [vmem:[#allocation348_spill] sm:$0xff] %v8269_v0  ;;  %2886 = vrot.lane.b32.xlu1 %v11801_v1, %s5275_s15  ;;  %v11810_v1 = vld [vmem:[#allocation30_spill] sm:$0xff] }
 0x4b5   : > { %v8273_v45 = vpop.permute.xlu0 %2724 }
 0x4b6   : > { %11802 = vst [vmem:[#allocation349_spill] sm:$0xff] %v8273_v45  ;;  %v8275_v13 = vpop.permute.xlu1 %2738 }
 0x4b7   : > { %11803 = vst [vmem:[#allocation350_spill] sm:$0xff] %v8275_v13  ;;  %v11811_v13 = vld [vmem:[#allocation82_spill] sm:$0xff] }
 0x4b9   : > { %2876 = vrot.lane.b32.xlu2 %v11804_v55, %s5275_s15  ;;  %v11813_v55 = vld [vmem:[#allocation23_spill] sm:$0xff] }
 0x4bb   : > { %2878 = vrot.lane.b32.xlu0 %v11805_v46, %s5275_s15  ;;  %v8281_v43 = vpop.permute.xlu2 %2746 }
 0x4bc   : > { %11806 = vst [vmem:[#allocation351_spill] sm:$0xff] %v8281_v43  ;;  %2892 = vrot.lane.b32.xlu1 %v11807_v57, %s5275_s15  ;;  %v11816_v57 = vld [vmem:[#allocation19_spill] sm:$0xff] }
 0x4bd   : > { %v8285_v51 = vpop.permute.xlu0 %2730 }
 0x4be   : > { %11808 = vst [vmem:[#allocation352_spill] sm:$0xff] %v8285_v51  ;;  %v8287_v0 = vpop.permute.xlu1 %2744  ;;  %v11817_v51 = vld [vmem:[#allocation20_spill] sm:$0xff] }
 0x4bf   : > { %11809 = vst [vmem:[#allocation353_spill] sm:$0xff] %v8287_v0 }
 0x4c1   : > { %2882 = vrot.lane.b32.xlu2 %v11810_v1, %s5275_s15  ;;  %v11819_v1 = vld [vmem:[#allocation109_spill] sm:$0xff] }
 0x4c3   : > { %2884 = vrot.lane.b32.xlu0 %v11811_v13, %s5275_s15  ;;  %v8293_v45 = vpop.permute.xlu2 %2752 }
 0x4c4   : > { %11812 = vst [vmem:[#allocation354_spill] sm:$0xff] %v8293_v45  ;;  %2898 = vrot.lane.b32.xlu1 %v11813_v55, %s5275_s15  ;;  %v11822_v55 = vld [vmem:[#allocation92_spill] sm:$0xff] }
 0x4c5   : > { %v8297_v46 = vpop.permute.xlu0 %2736 }
 0x4c6   : > { %11814 = vst [vmem:[#allocation355_spill] sm:$0xff] %v8297_v46  ;;  %v8299_v43 = vpop.permute.xlu1 %2750  ;;  %v11823_v46 = vld [vmem:[#allocation93_spill] sm:$0xff] }
 0x4c7   : > { %11815 = vst [vmem:[#allocation356_spill] sm:$0xff] %v8299_v43 }
 0x4c9   : > { %2888 = vrot.lane.b32.xlu2 %v11816_v57, %s5275_s15  ;;  %v11825_v57 = vld [vmem:[#allocation75_spill] sm:$0xff] }
 0x4cb   : > { %2890 = vrot.lane.b32.xlu0 %v11817_v51, %s5275_s15  ;;  %v8305_v0 = vpop.permute.xlu2 %2758 }
 0x4cc   : > { %11818 = vst [vmem:[#allocation357_spill] sm:$0xff] %v8305_v0  ;;  %2904 = vrot.lane.b32.xlu1 %v11819_v1, %s5275_s15  ;;  %v11828_v1 = vld [vmem:[#allocation46_spill] sm:$0xff] }
 0x4cd   : > { %v8309_v13 = vpop.permute.xlu0 %2742 }
 0x4ce   : > { %11820 = vst [vmem:[#allocation358_spill] sm:$0xff] %v8309_v13  ;;  %v8311_v45 = vpop.permute.xlu1 %2756  ;;  %v11829_v13 = vld [vmem:[#allocation99_spill] sm:$0xff] }
 0x4cf   : > { %11821 = vst [vmem:[#allocation359_spill] sm:$0xff] %v8311_v45 }
 0x4d1   : > { %2894 = vrot.lane.b32.xlu2 %v11822_v55, %s5275_s15  ;;  %v11831_v55 = vld [vmem:[#allocation54_spill] sm:$0xff] }
 0x4d3   : > { %2896 = vrot.lane.b32.xlu0 %v11823_v46, %s5275_s15  ;;  %v8317_v43 = vpop.permute.xlu2 %2764 }
 0x4d4   : > { %11824 = vst [vmem:[#allocation360_spill] sm:$0xff] %v8317_v43  ;;  %2910 = vrot.lane.b32.xlu1 %v11825_v57, %s5275_s15  ;;  %v11834_v57 = vld [vmem:[#allocation111_spill] sm:$0xff] }
 0x4d5   : > { %v8321_v51 = vpop.permute.xlu0 %2748 }
 0x4d6   : > { %11826 = vst [vmem:[#allocation361_spill] sm:$0xff] %v8321_v51  ;;  %v8323_v0 = vpop.permute.xlu1 %2762 }
 0x4d7   : > { %11827 = vst [vmem:[#allocation362_spill] sm:$0xff] %v8323_v0  ;;  %v11835_v0 = vld [vmem:[#allocation41_spill] sm:$0xff] }
 0x4d9   : > { %2900 = vrot.lane.b32.xlu2 %v11828_v1, %s5275_s15  ;;  %v11837_v1 = vld [vmem:[#allocation130_spill] sm:$0xff] }
 0x4db   : > { %2902 = vrot.lane.b32.xlu0 %v11829_v13, %s5275_s15  ;;  %v8329_v45 = vpop.permute.xlu2 %2770 }
 0x4dc   : > { %11830 = vst [vmem:[#allocation363_spill] sm:$0xff] %v8329_v45  ;;  %2916 = vrot.lane.b32.xlu1 %v11831_v55, %s5275_s15  ;;  %v11840_v55 = vld [vmem:[#allocation153_spill] sm:$0xff] }
 0x4dd   : > { %v8333_v46 = vpop.permute.xlu0 %2754 }
 0x4de   : > { %11832 = vst [vmem:[#allocation364_spill] sm:$0xff] %v8333_v46  ;;  %v8335_v43 = vpop.permute.xlu1 %2768 }
 0x4df   : > { %11833 = vst [vmem:[#allocation365_spill] sm:$0xff] %v8335_v43  ;;  %v11841_v43 = vld [vmem:[#allocation35_spill] sm:$0xff] }
 0x4e1   : > { %2906 = vrot.lane.b32.xlu2 %v11834_v57, %s5275_s15  ;;  %v11843_v57 = vld [vmem:[#allocation158_spill] sm:$0xff] }
 0x4e3   : > { %2908 = vrot.lane.b32.xlu0 %v11835_v0, %s5275_s15  ;;  %v8341_v51 = vpop.permute.xlu2 %2776 }
 0x4e4   : > { %11836 = vst [vmem:[#allocation366_spill] sm:$0xff] %v8341_v51  ;;  %2922 = vrot.lane.b32.xlu1 %v11837_v1, %s5275_s15  ;;  %v11846_v1 = vld [vmem:[#allocation73_spill] sm:$0xff] }
 0x4e5   : > { %v8345_v13 = vpop.permute.xlu0 %2760 }
 0x4e6   : > { %11838 = vst [vmem:[#allocation367_spill] sm:$0xff] %v8345_v13  ;;  %v8347_v45 = vpop.permute.xlu1 %2774 }
 0x4e7   : > { %11839 = vst [vmem:[#allocation368_spill] sm:$0xff] %v8347_v45  ;;  %v11847_v45 = vld [vmem:[#allocation112_spill] sm:$0xff] }
 0x4e9   : > { %2912 = vrot.lane.b32.xlu2 %v11840_v55, %s5275_s15  ;;  %v11849_v55 = vld [vmem:[#allocation80_spill] sm:$0xff] }
 0x4eb   : > { %2914 = vrot.lane.b32.xlu0 %v11841_v43, %s5275_s15  ;;  %v8353_v46 = vpop.permute.xlu2 %2846 }
 0x4ec   : > { %11842 = vst [vmem:[#allocation369_spill] sm:$0xff] %v8353_v46  ;;  %2928 = vrot.lane.b32.xlu1 %v11843_v57, %s5275_s15  ;;  %v11852_v57 = vld [vmem:[#allocation122_spill] sm:$0xff] }
 0x4ed   : > { %v8357_v0 = vpop.permute.xlu0 %2766 }
 0x4ee   : > { %11844 = vst [vmem:[#allocation370_spill] sm:$0xff] %v8357_v0  ;;  %v8359_v51 = vpop.permute.xlu1 %2844 }
 0x4ef   : > { %11845 = vst [vmem:[#allocation371_spill] sm:$0xff] %v8359_v51  ;;  %v11853_v51 = vld [vmem:[#allocation118_spill] sm:$0xff] }
 0x4f1   : > { %2918 = vrot.lane.b32.xlu2 %v11846_v1, %s5275_s15  ;;  %v11855_v1 = vld [vmem:[#allocation145_spill] sm:$0xff] }
 0x4f3   : > { %2920 = vrot.lane.b32.xlu0 %v11847_v45, %s5275_s15  ;;  %v8365_v13 = vpop.permute.xlu2 %2852 }
 0x4f4   : > { %11848 = vst [vmem:[#allocation372_spill] sm:$0xff] %v8365_v13  ;;  %2934 = vrot.lane.b32.xlu1 %v11849_v55, %s5275_s15  ;;  %v11858_v55 = vld [vmem:[#allocation132_spill] sm:$0xff] }
 0x4f5   : > { %v8369_v43 = vpop.permute.xlu0 %2772 }
 0x4f6   : > { %11850 = vst [vmem:[#allocation373_spill] sm:$0xff] %v8369_v43  ;;  %v8371_v46 = vpop.permute.xlu1 %2850 }
 0x4f7   : > { %11851 = vst [vmem:[#allocation374_spill] sm:$0xff] %v8371_v46  ;;  %v11859_v46 = vld [vmem:[#allocation124_spill] sm:$0xff] }
 0x4f9   : > { %2924 = vrot.lane.b32.xlu2 %v11852_v57, %s5275_s15  ;;  %v11861_v57 = vld [vmem:[#allocation152_spill] sm:$0xff] }
 0x4fb   : > { %2926 = vrot.lane.b32.xlu0 %v11853_v51, %s5275_s15  ;;  %v8377_v0 = vpop.permute.xlu2 %2858 }
 0x4fc   : > { %11854 = vst [vmem:[#allocation375_spill] sm:$0xff] %v8377_v0  ;;  %2940 = vrot.lane.b32.xlu1 %v11855_v1, %s5275_s15  ;;  %v11864_v1 = vld [vmem:[#allocation159_spill] sm:$0xff] }
 0x4fd   : > { %v8381_v45 = vpop.permute.xlu0 %2842 }
 0x4fe   : > { %11856 = vst [vmem:[#allocation376_spill] sm:$0xff] %v8381_v45  ;;  %v8383_v13 = vpop.permute.xlu1 %2856 }
 0x4ff   : > { %11857 = vst [vmem:[#allocation377_spill] sm:$0xff] %v8383_v13  ;;  %v11865_v13 = vld [vmem:[#allocation134_spill] sm:$0xff] }
 0x501   : > { %2930 = vrot.lane.b32.xlu2 %v11858_v55, %s5275_s15  ;;  %v11867_v55 = vld [vmem:[#allocation59_spill] sm:$0xff] }
 0x503   : > { %2932 = vrot.lane.b32.xlu0 %v11859_v46, %s5275_s15  ;;  %v8389_v43 = vpop.permute.xlu2 %2864 }
 0x504   : > { %11860 = vst [vmem:[#allocation378_spill] sm:$0xff] %v8389_v43  ;;  %2946 = vrot.lane.b32.xlu1 %v11861_v57, %s5275_s15  ;;  %v11870_v57 = vld [vmem:[#allocation139_spill] sm:$0xff] }
 0x505   : > { %v8393_v51 = vpop.permute.xlu0 %2848 }
 0x506   : > { %11862 = vst [vmem:[#allocation379_spill] sm:$0xff] %v8393_v51  ;;  %v8395_v0 = vpop.permute.xlu1 %2862 }
 0x507   : > { %11863 = vst [vmem:[#allocation380_spill] sm:$0xff] %v8395_v0  ;;  %v11871_v0 = vld [vmem:[#allocation149_spill] sm:$0xff] }
 0x509   : > { %2936 = vrot.lane.b32.xlu2 %v11864_v1, %s5275_s15  ;;  %v11873_v1 = vld [vmem:[#allocation169_spill] sm:$0xff] }
 0x50b   : > { %2938 = vrot.lane.b32.xlu0 %v11865_v13, %s5275_s15  ;;  %v8401_v45 = vpop.permute.xlu2 %2870 }
 0x50c   : > { %11866 = vst [vmem:[#allocation381_spill] sm:$0xff] %v8401_v45  ;;  %2952 = vrot.lane.b32.xlu1 %v11867_v55, %s5275_s15  ;;  %v2228_v55 = vrot.slane %v8147_v5, 1 }
 0x50d   : > { %v8405_v46 = vpop.permute.xlu0 %2854 }
 0x50e   : > { %11868 = vst [vmem:[#allocation382_spill] sm:$0xff] %v8405_v46  ;;  %v8407_v43 = vpop.permute.xlu1 %2868  ;;  %v2226_v46 = vrot.slane %v8188_v56, 1 }
 0x50f   : > { %11869 = vst [vmem:[#allocation383_spill] sm:$0xff] %v8407_v43  ;;  %v11876_v43 = vld [vmem:[#allocation147_spill] sm:$0xff] }
 0x511   : > { %2942 = vrot.lane.b32.xlu2 %v11870_v57, %s5275_s15  ;;  %v11877_v57 = vld [vmem:[#allocation141_spill] sm:$0xff] }
 0x513   : > { %2944 = vrot.lane.b32.xlu0 %v11871_v0, %s5275_s15  ;;  %v8413_v51 = vpop.permute.xlu2 %2876 }
 0x514   : > { %11872 = vst [vmem:[#allocation384_spill] sm:$0xff] %v8413_v51  ;;  %2958 = vrot.lane.b32.xlu1 %v11873_v1, %s5275_s15  ;;  %v8430_v51 = vsel %vm1930_vm3, %v2226_v46, %v2228_v55  ;;  %v11882_v1 = vld [vmem:[#allocation165_spill] sm:$0xff] }
 0x515   : > { %v8417_v13 = vpop.permute.xlu0 %2860  ;;  %11879 = vst [vmem:[#allocation388_spill] sm:$0xff] %v8430_v51 }
 0x516   : > { %11874 = vst [vmem:[#allocation385_spill] sm:$0xff] %v8417_v13  ;;  %v8419_v45 = vpop.permute.xlu1 %2874 }
 0x517   : > { %11875 = vst [vmem:[#allocation386_spill] sm:$0xff] %v8419_v45 }
 0x519   : > { %2948 = vrot.lane.b32.xlu2 %v11876_v43, %s5275_s15  ;;  %v1842_v43 = vrot.slane %v11883_v16, 4 }
 0x51b   : > { %2950 = vrot.lane.b32.xlu0 %v11877_v57, %s5275_s15  ;;  %v8427_v0 = vpop.permute.xlu2 %2882 }
 0x51c   : > { %11878 = vst [vmem:[#allocation387_spill] sm:$0xff] %v8427_v0  ;;  %2964 = vrot.lane.b32.xlu1 %v8430_v51, %s5275_s15  ;;  %v11886_v0 = vld [vmem:[#allocation179_spill] sm:$0xff]  ;;  %v2225_v51 = vrot.slane %v8182_v41, 1 }
 0x51d   : > { %v8434_v13 = vpop.permute.xlu0 %2866 }
 0x51e   : > { %11880 = vst [vmem:[#allocation389_spill] sm:$0xff] %v8434_v13  ;;  %v8436_v45 = vpop.permute.xlu1 %2880 }
 0x51f   : > { %11881 = vst [vmem:[#allocation390_spill] sm:$0xff] %v8436_v45  ;;  %v11889_v45 = vld [vmem:[#allocation29_spill] sm:$0xff] }
 0x520   : > { %v1843_v6 = vsel %vm681_vm2, %v1842_v43, %v11889_v45 }
 0x521   : > { %2954 = vrot.lane.b32.xlu2 %v11882_v1, %s5275_s15  ;;  %v11890_v1 = vld [vmem:[#allocation170_spill] sm:$0xff]  ;;  %v8457_v16 = vperm.slane %v1843_v6, %v11754_v2 }
 0x523   : > { %2956 = vrot.lane.b32.xlu0 %v11884_v20, %s5275_s15  ;;  %v8443_v57 = vpop.permute.xlu2 %2888  ;;  %v2232_v6 = vrot.slane %v8457_v16, 1 }
 0x524   : > { %11885 = vst [vmem:[#allocation64_spill] sm:$0xff] %v8443_v57  ;;  %3034 = vrot.lane.b32.xlu1 %v11886_v0, %s5274_s14  ;;  %v8460_v57 = vsel %vm1930_vm3, %v2225_v51, %v2226_v46  ;;  %v2230_v0 = vrot.slane %v8203_v50, 1 }
 0x525   : > { %v8447_v4 = vpop.permute.xlu0 %2872 }
 0x526   : > { %11887 = vst [vmem:[#allocation179_spill] sm:$0xff] %v8447_v4  ;;  %v8450_v13 = vpop.permute.xlu1 %2886  ;;  %v8475_v2 = vsel %vm1930_vm3, %v2228_v55, %v2230_v0  ;;  %v8480_v51 = vsel %vm1930_vm3, %v2230_v0, %v2232_v6  ;;  %v11900_v55 = vld [vmem:[#allocation180_spill] sm:$0xff]  ;;  %v11903_v6 = vld [vmem:[#allocation195_spill] sm:$0xff] }
 0x527   : > { %11888 = vst [vmem:[#allocation391_spill] sm:$0xff] %v8450_v13  ;;  %v11892_v13 = vld [vmem:[#allocation184_spill] sm:$0xff] }
 0x528   : > { %11895 = vst [vmem:[#allocation392_spill] sm:$0xff] %v8480_v51  ;;  %v11902_v0 = vld [vmem:[#allocation172_spill] sm:$0xff] }
 0x529   : > { %2960 = vrot.lane.b32.xlu2 %v11890_v1, %s5275_s15 }
 0x52b   : > { %v8462_v20 = vpop.permute.xlu2 %2894  ;;  %2962 = vrot.lane.b32.xlu0 %v8460_v57, %s5275_s15 }
 0x52c   : > { %11891 = vst [vmem:[#allocation29_spill] sm:$0xff] %v8462_v20  ;;  %3040 = vrot.lane.b32.xlu1 %v11892_v13, %s5274_s14  ;;  %v11897_v13 = vld [vmem:[#allocation71_spill] sm:$0xff] }
 0x52d   : > { %v8469_v43 = vpop.permute.xlu0 %2878 }
 0x52e   : > { %11893 = vst [vmem:[#allocation170_spill] sm:$0xff] %v8469_v43  ;;  %v8471_v45 = vpop.permute.xlu1 %2892 }
 0x52f   : > { %11894 = vst [vmem:[#allocation184_spill] sm:$0xff] %v8471_v45 }
 0x531   : > { %2966 = vrot.lane.b32.xlu2 %v8475_v2, %s5275_s15 }
 0x533   : > { %v8482_v46 = vpop.permute.xlu2 %2900  ;;  %2968 = vrot.lane.b32.xlu0 %v8480_v51, %s5275_s15 }
 0x534   : > { %11896 = vst [vmem:[#allocation393_spill] sm:$0xff] %v8482_v46  ;;  %3046 = vrot.lane.b32.xlu1 %v11897_v13, %s5274_s14  ;;  %v11906_v13 = vld [vmem:[#allocation185_spill] sm:$0xff] }
 0x535   : > { %v8488_v20 = vpop.permute.xlu0 %2884 }
 0x536   : > { %11898 = vst [vmem:[#allocation394_spill] sm:$0xff] %v8488_v20  ;;  %v8490_v45 = vpop.permute.xlu1 %2898 }
 0x537   : > { %11899 = vst [vmem:[#allocation395_spill] sm:$0xff] %v8490_v45  ;;  %v11908_v45 = vld [vmem:[#allocation176_spill] sm:$0xff] }
 0x539   : > { %3036 = vrot.lane.b32.xlu2 %v11900_v55, %s5274_s14  ;;  %v11909_v55 = vld [vmem:[#allocation201_spill] sm:$0xff] }
 0x53b   : > { %v8494_v4 = vpop.permute.xlu2 %2906  ;;  %3038 = vrot.lane.b32.xlu0 %v11902_v0, %s5274_s14 }
 0x53c   : > { %11901 = vst [vmem:[#allocation180_spill] sm:$0xff] %v8494_v4  ;;  %3052 = vrot.lane.b32.xlu1 %v11903_v6, %s5274_s14  ;;  %v11912_v6 = vld [vmem:[#allocation190_spill] sm:$0xff] }
 0x53d   : > { %v8500_v46 = vpop.permute.xlu0 %2890 }
 0x53e   : > { %11904 = vst [vmem:[#allocation172_spill] sm:$0xff] %v8500_v46  ;;  %v8502_v43 = vpop.permute.xlu1 %2904 }
 0x53f   : > { %11905 = vst [vmem:[#allocation396_spill] sm:$0xff] %v8502_v43  ;;  %v11914_v43 = vld [vmem:[#allocation182_spill] sm:$0xff] }
 0x541   : > { %3042 = vrot.lane.b32.xlu2 %v11906_v13, %s5274_s14 }
 0x543   : > { %v8506_v20 = vpop.permute.xlu2 %2912  ;;  %3044 = vrot.lane.b32.xlu0 %v11908_v45, %s5274_s14 }
 0x544   : > { %11907 = vst [vmem:[#allocation185_spill] sm:$0xff] %v8506_v20  ;;  %3058 = vrot.lane.b32.xlu1 %v11909_v55, %s5274_s14  ;;  %v11915_v20 = vld [vmem:[#allocation207_spill] sm:$0xff]  ;;  %v11918_v55 = vld [vmem:[#allocation196_spill] sm:$0xff] }
 0x545   : > { %v8512_v4 = vpop.permute.xlu0 %2896 }
 0x546   : > { %11910 = vst [vmem:[#allocation397_spill] sm:$0xff] %v8512_v4  ;;  %v8514_v0 = vpop.permute.xlu1 %2910 }
 0x547   : > { %11911 = vst [vmem:[#allocation398_spill] sm:$0xff] %v8514_v0  ;;  %v11920_v0 = vld [vmem:[#allocation187_spill] sm:$0xff] }
 0x549   : > { %3048 = vrot.lane.b32.xlu2 %v11912_v6, %s5274_s14 }
 0x54b   : > { %v8518_v46 = vpop.permute.xlu2 %2918  ;;  %3050 = vrot.lane.b32.xlu0 %v11914_v43, %s5274_s14 }
 0x54c   : > { %11913 = vst [vmem:[#allocation399_spill] sm:$0xff] %v8518_v46  ;;  %3064 = vrot.lane.b32.xlu1 %v11915_v20, %s5274_s14  ;;  %v11921_v46 = vld [vmem:[#allocation97_spill] sm:$0xff]  ;;  %v11924_v20 = vld [vmem:[#allocation202_spill] sm:$0xff] }
 0x54d   : > { %v8524_v51 = vpop.permute.xlu0 %2902 }
 0x54e   : > { %11916 = vst [vmem:[#allocation400_spill] sm:$0xff] %v8524_v51  ;;  %v8526_v45 = vpop.permute.xlu1 %2916 }
 0x54f   : > { %11917 = vst [vmem:[#allocation401_spill] sm:$0xff] %v8526_v45  ;;  %v11926_v45 = vld [vmem:[#allocation192_spill] sm:$0xff] }
 0x551   : > { %3054 = vrot.lane.b32.xlu2 %v11918_v55, %s5274_s14 }
 0x553   : > { %v8530_v4 = vpop.permute.xlu2 %2924  ;;  %3056 = vrot.lane.b32.xlu0 %v11920_v0, %s5274_s14 }
 0x554   : > { %11919 = vst [vmem:[#allocation402_spill] sm:$0xff] %v8530_v4  ;;  %3070 = vrot.lane.b32.xlu1 %v11921_v46, %s5274_s14  ;;  %v11927_v4 = vld [vmem:[#allocation218_spill] sm:$0xff]  ;;  %v11930_v46 = vld [vmem:[#allocation208_spill] sm:$0xff] }
 0x555   : > { %v8536_v6 = vpop.permute.xlu0 %2908 }
 0x556   : > { %11922 = vst [vmem:[#allocation403_spill] sm:$0xff] %v8536_v6  ;;  %v8538_v43 = vpop.permute.xlu1 %2922 }
 0x557   : > { %11923 = vst [vmem:[#allocation404_spill] sm:$0xff] %v8538_v43  ;;  %v11932_v43 = vld [vmem:[#allocation198_spill] sm:$0xff] }
 0x559   : > { %3060 = vrot.lane.b32.xlu2 %v11924_v20, %s5274_s14 }
 0x55b   : > { %v8542_v51 = vpop.permute.xlu2 %2930  ;;  %3062 = vrot.lane.b32.xlu0 %v11926_v45, %s5274_s14 }
 0x55c   : > { %11925 = vst [vmem:[#allocation405_spill] sm:$0xff] %v8542_v51  ;;  %3076 = vrot.lane.b32.xlu1 %v11927_v4, %s5274_s14  ;;  %v11933_v51 = vld [vmem:[#allocation224_spill] sm:$0xff]  ;;  %v11936_v4 = vld [vmem:[#allocation213_spill] sm:$0xff] }
 0x55d   : > { %v8548_v55 = vpop.permute.xlu0 %2914 }
 0x55e   : > { %11928 = vst [vmem:[#allocation406_spill] sm:$0xff] %v8548_v55  ;;  %v8550_v0 = vpop.permute.xlu1 %2928 }
 0x55f   : > { %11929 = vst [vmem:[#allocation407_spill] sm:$0xff] %v8550_v0  ;;  %v11938_v0 = vld [vmem:[#allocation204_spill] sm:$0xff] }
 0x561   : > { %3066 = vrot.lane.b32.xlu2 %v11930_v46, %s5274_s14 }
 0x563   : > { %v8554_v6 = vpop.permute.xlu2 %2936  ;;  %3068 = vrot.lane.b32.xlu0 %v11932_v43, %s5274_s14 }
 0x564   : > { %11931 = vst [vmem:[#allocation408_spill] sm:$0xff] %v8554_v6  ;;  %3082 = vrot.lane.b32.xlu1 %v11933_v51, %s5274_s14  ;;  %v11939_v6 = vld [vmem:[#allocation229_spill] sm:$0xff]  ;;  %v11942_v51 = vld [vmem:[#allocation219_spill] sm:$0xff] }
 0x565   : > { %v8560_v20 = vpop.permute.xlu0 %2920 }
 0x566   : > { %11934 = vst [vmem:[#allocation409_spill] sm:$0xff] %v8560_v20  ;;  %v8562_v45 = vpop.permute.xlu1 %2934 }
 0x567   : > { %11935 = vst [vmem:[#allocation410_spill] sm:$0xff] %v8562_v45  ;;  %v11944_v45 = vld [vmem:[#allocation210_spill] sm:$0xff] }
 0x569   : > { %3072 = vrot.lane.b32.xlu2 %v11936_v4, %s5274_s14 }
 0x56b   : > { %v8566_v55 = vpop.permute.xlu2 %2942  ;;  %3074 = vrot.lane.b32.xlu0 %v11938_v0, %s5274_s14 }
 0x56c   : > { %11937 = vst [vmem:[#allocation411_spill] sm:$0xff] %v8566_v55  ;;  %3088 = vrot.lane.b32.xlu1 %v11939_v6, %s5274_s14  ;;  %v11945_v55 = vld [vmem:[#allocation235_spill] sm:$0xff]  ;;  %v11948_v6 = vld [vmem:[#allocation225_spill] sm:$0xff] }
 0x56d   : > { %v8572_v46 = vpop.permute.xlu0 %2926 }
 0x56e   : > { %11940 = vst [vmem:[#allocation412_spill] sm:$0xff] %v8572_v46  ;;  %v8574_v43 = vpop.permute.xlu1 %2940 }
 0x56f   : > { %11941 = vst [vmem:[#allocation413_spill] sm:$0xff] %v8574_v43  ;;  %v11950_v43 = vld [vmem:[#allocation215_spill] sm:$0xff] }
 0x571   : > { %3078 = vrot.lane.b32.xlu2 %v11942_v51, %s5274_s14 }
 0x573   : > { %v8578_v20 = vpop.permute.xlu2 %2948  ;;  %3080 = vrot.lane.b32.xlu0 %v11944_v45, %s5274_s14 }
 0x574   : > { %11943 = vst [vmem:[#allocation414_spill] sm:$0xff] %v8578_v20  ;;  %3094 = vrot.lane.b32.xlu1 %v11945_v55, %s5274_s14  ;;  %v11951_v20 = vld [vmem:[#allocation241_spill] sm:$0xff]  ;;  %v11954_v55 = vld [vmem:[#allocation230_spill] sm:$0xff] }
 0x575   : > { %v8584_v4 = vpop.permute.xlu0 %2932 }
 0x576   : > { %11946 = vst [vmem:[#allocation415_spill] sm:$0xff] %v8584_v4  ;;  %v8586_v0 = vpop.permute.xlu1 %2946 }
 0x577   : > { %11947 = vst [vmem:[#allocation416_spill] sm:$0xff] %v8586_v0  ;;  %v11955_v0 = vld [vmem:[#allocation221_spill] sm:$0xff] }
 0x579   : > { %3084 = vrot.lane.b32.xlu2 %v11948_v6, %s5274_s14 }
 0x57b   : > { %v8590_v46 = vpop.permute.xlu2 %2954  ;;  %3086 = vrot.lane.b32.xlu0 %v11950_v43, %s5274_s14 }
 0x57c   : > { %11949 = vst [vmem:[#allocation417_spill] sm:$0xff] %v8590_v46  ;;  %3100 = vrot.lane.b32.xlu1 %v11951_v20, %s5274_s14  ;;  %v11956_v46 = vld [vmem:[#allocation247_spill] sm:$0xff]  ;;  %v11959_v20 = vld [vmem:[#allocation236_spill] sm:$0xff] }
 0x57d   : > { %v8596_v51 = vpop.permute.xlu0 %2938 }
 0x57e   : > { %11952 = vst [vmem:[#allocation418_spill] sm:$0xff] %v8596_v51  ;;  %v8598_v45 = vpop.permute.xlu1 %2952 }
 0x57f   : > { %11953 = vst [vmem:[#allocation419_spill] sm:$0xff] %v8598_v45  ;;  %v11960_v45 = vld [vmem:[#allocation227_spill] sm:$0xff] }
 0x581   : > { %3090 = vrot.lane.b32.xlu2 %v11954_v55, %s5274_s14 }
 0x583   : > { %v8602_v4 = vpop.permute.xlu2 %2960  ;;  %3092 = vrot.lane.b32.xlu0 %v11955_v0, %s5274_s14 }
 0x584   : > { %3106 = vrot.lane.b32.xlu1 %v11956_v46, %s5274_s14  ;;  %v11963_v46 = vld [vmem:[#allocation242_spill] sm:$0xff] }
 0x585   : > { %v8608_v6 = vpop.permute.xlu0 %2944 }
 0x586   : > { %11957 = vst [vmem:[#allocation420_spill] sm:$0xff] %v8608_v6  ;;  %v8610_v43 = vpop.permute.xlu1 %2958 }
 0x587   : > { %11958 = vst [vmem:[#allocation421_spill] sm:$0xff] %v8610_v43  ;;  %v11965_v43 = vld [vmem:[#allocation232_spill] sm:$0xff] }
 0x589   : > { %3096 = vrot.lane.b32.xlu2 %v11959_v20, %s5274_s14 }
 0x58b   : > { %v8614_v51 = vpop.permute.xlu2 %2966  ;;  %3098 = vrot.lane.b32.xlu0 %v11960_v45, %s5274_s14 }
 0x58c   : > { %3112 = vrot.lane.b32.xlu1 %v7750_v3, %s5274_s14  ;;  %v11968_v3 = vld [vmem:[#allocation248_spill] sm:$0xff] }
 0x58d   : > { %v8620_v55 = vpop.permute.xlu0 %2950 }
 0x58e   : > { %11961 = vst [vmem:[#allocation422_spill] sm:$0xff] %v8620_v55  ;;  %v8622_v0 = vpop.permute.xlu1 %2964 }
 0x58f   : > { %11962 = vst [vmem:[#allocation423_spill] sm:$0xff] %v8622_v0  ;;  %v11970_v0 = vld [vmem:[#allocation238_spill] sm:$0xff] }
 0x591   : > { %3102 = vrot.lane.b32.xlu2 %v11963_v46, %s5274_s14 }
 0x593   : > { %v8626_v6 = vpop.permute.xlu2 %3036  ;;  %3104 = vrot.lane.b32.xlu0 %v11965_v43, %s5274_s14 }
 0x594   : > { %11964 = vst [vmem:[#allocation424_spill] sm:$0xff] %v8626_v6  ;;  %3118 = vrot.lane.b32.xlu1 %v7775_v58, %s5274_s14  ;;  %v11973_v58 = vld [vmem:[#allocation254_spill] sm:$0xff] }
 0x595   : > { %v8632_v20 = vpop.permute.xlu0 %2956 }
 0x596   : > { %11966 = vst [vmem:[#allocation425_spill] sm:$0xff] %v8632_v20  ;;  %v8634_v45 = vpop.permute.xlu1 %3034  ;;  %v2241_v20 = vrot.slane %v8457_v16, 2 }
 0x597   : > { %11967 = vst [vmem:[#allocation426_spill] sm:$0xff] %v8634_v45  ;;  %v11975_v45 = vld [vmem:[#allocation244_spill] sm:$0xff] }
 0x599   : > { %3108 = vrot.lane.b32.xlu2 %v11968_v3, %s5274_s14 }
 0x59b   : > { %v8638_v55 = vpop.permute.xlu2 %3042  ;;  %3110 = vrot.lane.b32.xlu0 %v11970_v0, %s5274_s14 }
 0x59c   : > { %11969 = vst [vmem:[#allocation427_spill] sm:$0xff] %v8638_v55  ;;  %3124 = vrot.lane.b32.xlu1 %v7799_v44, %s5274_s14  ;;  %v11976_v55 = vld [vmem:[#allocation271_spill] sm:$0xff]  ;;  %v11979_v44 = vld [vmem:[#allocation260_spill] sm:$0xff] }
 0x59d   : > { %v8644_v46 = vpop.permute.xlu0 %2962 }
 0x59e   : > { %11971 = vst [vmem:[#allocation428_spill] sm:$0xff] %v8644_v46  ;;  %v8646_v43 = vpop.permute.xlu1 %3040 }
 0x59f   : > { %11972 = vst [vmem:[#allocation429_spill] sm:$0xff] %v8646_v43  ;;  %v11981_v43 = vld [vmem:[#allocation250_spill] sm:$0xff] }
 0x5a1   : > { %3114 = vrot.lane.b32.xlu2 %v11973_v58, %s5274_s14 }
 0x5a3   : > { %v8650_v6 = vpop.permute.xlu2 %3048  ;;  %3116 = vrot.lane.b32.xlu0 %v11975_v45, %s5274_s14 }
 0x5a4   : > { %11974 = vst [vmem:[#allocation430_spill] sm:$0xff] %v8650_v6  ;;  %3130 = vrot.lane.b32.xlu1 %v11976_v55, %s5274_s14  ;;  %v11984_v55 = vld [vmem:[#allocation266_spill] sm:$0xff] }
 0x5a5   : > { %v8656_v3 = vpop.permute.xlu0 %2968 }
 0x5a6   : > { %11977 = vst [vmem:[#allocation431_spill] sm:$0xff] %v8656_v3  ;;  %v8658_v0 = vpop.permute.xlu1 %3046 }
 0x5a7   : > { %11978 = vst [vmem:[#allocation432_spill] sm:$0xff] %v8658_v0  ;;  %v11986_v0 = vld [vmem:[#allocation256_spill] sm:$0xff] }
 0x5a9   : > { %3120 = vrot.lane.b32.xlu2 %v11979_v44, %s5274_s14  ;;  %v11989_v44 = vld [vmem:[#allocation272_spill] sm:$0xff] }
 0x5ab   : > { %v8662_v46 = vpop.permute.xlu2 %3054  ;;  %3122 = vrot.lane.b32.xlu0 %v11981_v43, %s5274_s14 }
 0x5ac   : > { %11980 = vst [vmem:[#allocation433_spill] sm:$0xff] %v8662_v46  ;;  %3136 = vrot.lane.b32.xlu1 %v7849_v35, %s5274_s14 }
 0x5ad   : > { %v8668_v6 = vpop.permute.xlu0 %3038 }
 0x5ae   : > { %11982 = vst [vmem:[#allocation434_spill] sm:$0xff] %v8668_v6  ;;  %v8670_v45 = vpop.permute.xlu1 %3052 }
 0x5af   : > { %11983 = vst [vmem:[#allocation435_spill] sm:$0xff] %v8670_v45  ;;  %v11991_v45 = vld [vmem:[#allocation262_spill] sm:$0xff] }
 0x5b1   : > { %3126 = vrot.lane.b32.xlu2 %v11984_v55, %s5274_s14  ;;  %v2234_v55 = vrot.slane %v8182_v41, 2 }
 0x5b3   : > { %v8674_v58 = vpop.permute.xlu2 %3060  ;;  %3128 = vrot.lane.b32.xlu0 %v11986_v0, %s5274_s14 }
 0x5b4   : > { %11985 = vst [vmem:[#allocation436_spill] sm:$0xff] %v8674_v58  ;;  %3142 = vrot.lane.b32.xlu1 %v7873_v34, %s5274_s14 }
 0x5b5   : > { %v8680_v46 = vpop.permute.xlu0 %3044 }
 0x5b6   : > { %11987 = vst [vmem:[#allocation437_spill] sm:$0xff] %v8680_v46  ;;  %v8682_v43 = vpop.permute.xlu1 %3058  ;;  %v2235_v46 = vrot.slane %v8188_v56, 2 }
 0x5b7   : > { %11988 = vst [vmem:[#allocation438_spill] sm:$0xff] %v8682_v43 }
 0x5b8   : > { %v8705_v3 = vsel %vm2075_vm4, %v2234_v55, %v2235_v46 }
 0x5b9   : > { %3132 = vrot.lane.b32.xlu2 %v11989_v44, %s5274_s14 }
 0x5bb   : > { %v8686_v6 = vpop.permute.xlu2 %3066  ;;  %3134 = vrot.lane.b32.xlu0 %v11991_v45, %s5274_s14 }
 0x5bc   : > { %11990 = vst [vmem:[#allocation272_spill] sm:$0xff] %v8686_v6  ;;  %3148 = vrot.lane.b32.xlu1 %v7892_v32, %s5274_s14  ;;  %v11995_v6 = vld [vmem:[#allocation268_spill] sm:$0xff]  ;;  %v2239_v32 = vrot.slane %v8203_v50, 2 }
 0x5bd   : > { %v8692_v58 = vpop.permute.xlu0 %3050  ;;  %11996 = vst [vmem:[#allocation268_spill] sm:$0xff] %v8705_v3 }
 0x5be   : > { %11992 = vst [vmem:[#allocation262_spill] sm:$0xff] %v8692_v58  ;;  %v8694_v0 = vpop.permute.xlu1 %3064  ;;  %v8722_v55 = vsel %vm2075_vm4, %v2239_v32, %v2241_v20 }
 0x5bf   : > { %11993 = vst [vmem:[#allocation439_spill] sm:$0xff] %v8694_v0 }
 0x5c0   : > { %12000 = vst [vmem:[#allocation444_spill] sm:$0xff] %v8722_v55 }
 0x5c1   : > { %3138 = vrot.lane.b32.xlu2 %v7855_v11, %s5274_s14 }
 0x5c3   : > { %v8700_v43 = vpop.permute.xlu2 %3072  ;;  %3140 = vrot.lane.b32.xlu0 %v11995_v6, %s5274_s14 }
 0x5c4   : > { %11994 = vst [vmem:[#allocation440_spill] sm:$0xff] %v8700_v43  ;;  %3154 = vrot.lane.b32.xlu1 %v8705_v3, %s5274_s14 }
 0x5c5   : > { %v8709_v58 = vpop.permute.xlu0 %3056 }
 0x5c6   : > { %11997 = vst [vmem:[#allocation441_spill] sm:$0xff] %v8709_v58  ;;  %v8711_v0 = vpop.permute.xlu1 %3070 }
 0x5c7   : > { %11998 = vst [vmem:[#allocation442_spill] sm:$0xff] %v8711_v0 }
 0x5c9   : > { %3144 = vrot.lane.b32.xlu2 %v7878_v18, %s5274_s14 }
 0x5cb   : > { %v8717_v43 = vpop.permute.xlu2 %3078  ;;  %3146 = vrot.lane.b32.xlu0 %v7837_v39, %s5274_s14 }
 0x5cc   : > { %11999 = vst [vmem:[#allocation443_spill] sm:$0xff] %v8717_v43  ;;  %3160 = vrot.lane.b32.xlu1 %v8722_v55, %s5274_s14  ;;  %v2237_v43 = vrot.slane %v8147_v5, 2 }
 0x5cd   : > { %v8726_v58 = vpop.permute.xlu0 %3062 }
 0x5ce   : > { %12001 = vst [vmem:[#allocation445_spill] sm:$0xff] %v8726_v58  ;;  %v8728_v0 = vpop.permute.xlu1 %3076  ;;  %v8744_v58 = vsel %vm2075_vm4, %v2235_v46, %v2237_v43 }
 0x5cf   : > { %12002 = vst [vmem:[#allocation446_spill] sm:$0xff] %v8728_v0 }
 0x5d0   : > { %12006 = vst [vmem:[#allocation450_spill] sm:$0xff] %v8744_v58 }
 0x5d1   : > { %3150 = vrot.lane.b32.xlu2 %v7897_v9, %s5274_s14  ;;  %v12145_v9 = vld [vmem:[#allocation75_spill] sm:$0xff] }
 0x5d3   : > { %v8732_v3 = vpop.permute.xlu2 %3084  ;;  %3152 = vrot.lane.b32.xlu0 %v7862_v37, %s5274_s14  ;;  %v12141_v37 = vld [vmem:[#allocation109_spill] sm:$0xff] }
 0x5d4   : > { %12003 = vst [vmem:[#allocation447_spill] sm:$0xff] %v8732_v3  ;;  %3230 = vrot.lane.b32.xlu1 %v11677_v27, %s5273_s13  ;;  %v8749_v3 = vsel %vm2075_vm4, %v2237_v43, %v2239_v32 }
 0x5d5   : > { %v8739_v20 = vpop.permute.xlu0 %3068  ;;  %12007 = vst [vmem:[#allocation451_spill] sm:$0xff] %v8749_v3 }
 0x5d6   : > { %12004 = vst [vmem:[#allocation448_spill] sm:$0xff] %v8739_v20  ;;  %v8741_v55 = vpop.permute.xlu1 %3082 }
 0x5d7   : > { %12005 = vst [vmem:[#allocation449_spill] sm:$0xff] %v8741_v55 }
 0x5d9   : > { %3156 = vrot.lane.b32.xlu2 %v8744_v58, %s5274_s14 }
 0x5db   : > { %v8751_v0 = vpop.permute.xlu2 %3090  ;;  %3158 = vrot.lane.b32.xlu0 %v8749_v3, %s5274_s14  ;;  %s5037_s14 = sshll.u32 %s12729_s19, 3 }
 0x5dc   : > { %12008 = vst [vmem:[#allocation452_spill] sm:$0xff] %v8751_v0  ;;  %3236 = vrot.lane.b32.xlu1 %v11683_v7, %s5273_s13 }
 0x5dd   : > { %v8757_v20 = vpop.permute.xlu0 %3074 }
 0x5de   : > { %12009 = vst [vmem:[#allocation453_spill] sm:$0xff] %v8757_v20  ;;  %v8759_v55 = vpop.permute.xlu1 %3088  ;;  %v12049_v20 = vld [vmem:[#allocation114_spill] sm:$0xff] }
 0x5df   : > { %12010 = vst [vmem:[#allocation454_spill] sm:$0xff] %v8759_v55 }
 0x5e1   : > { %3226 = vrot.lane.b32.xlu2 %v11541_v30, %s5273_s13  ;;  %v12059_v30 = vld [vmem:[#allocation127_spill] sm:$0xff] }
 0x5e3   : > { %v8763_v46 = vpop.permute.xlu2 %3096  ;;  %3228 = vrot.lane.b32.xlu0 %v11524_v33, %s5273_s13  ;;  %v12056_v33 = vld [vmem:[#allocation131_spill] sm:$0xff] }
 0x5e4   : > { %12011 = vst [vmem:[#allocation455_spill] sm:$0xff] %v8763_v46  ;;  %3242 = vrot.lane.b32.xlu1 %v11566_v19, %s5273_s13 }
 0x5e5   : > { %v8769_v32 = vpop.permute.xlu0 %3080 }
 0x5e6   : > { %12012 = vst [vmem:[#allocation456_spill] sm:$0xff] %v8769_v32  ;;  %v8771_v43 = vpop.permute.xlu1 %3094 }
 0x5e7   : > { %12013 = vst [vmem:[#allocation457_spill] sm:$0xff] %v8771_v43 }
 0x5e9   : > { %3232 = vrot.lane.b32.xlu2 %v11678_v59, %s5273_s13 }
 0x5eb   : > { %v8775_v0 = vpop.permute.xlu2 %3102  ;;  %3234 = vrot.lane.b32.xlu0 %v11533_v60, %s5273_s13 }
 0x5ec   : > { %12014 = vst [vmem:[#allocation458_spill] sm:$0xff] %v8775_v0  ;;  %3248 = vrot.lane.b32.xlu1 %v11693_v53, %s5273_s13 }
 0x5ed   : > { %v8781_v46 = vpop.permute.xlu0 %3086 }
 0x5ee   : > { %12015 = vst [vmem:[#allocation459_spill] sm:$0xff] %v8781_v46  ;;  %v8783_v55 = vpop.permute.xlu1 %3100 }
 0x5ef   : > { %12016 = vst [vmem:[#allocation460_spill] sm:$0xff] %v8783_v55 }
 0x5f1   : > { %3238 = vrot.lane.b32.xlu2 %v11684_v38, %s5273_s13  ;;  %v12051_v38 = vld [vmem:[#allocation125_spill] sm:$0xff] }
 0x5f3   : > { %v8787_v32 = vpop.permute.xlu2 %3108  ;;  %3240 = vrot.lane.b32.xlu0 %v6350_v25, %s5273_s13  ;;  %v12046_v25 = vld [vmem:[#allocation119_spill] sm:$0xff] }
 0x5f4   : > { %12017 = vst [vmem:[#allocation461_spill] sm:$0xff] %v8787_v32  ;;  %3254 = vrot.lane.b32.xlu1 %v11697_v62, %s5273_s13 }
 0x5f5   : > { %v8793_v43 = vpop.permute.xlu0 %3092 }
 0x5f6   : > { %12018 = vst [vmem:[#allocation462_spill] sm:$0xff] %v8793_v43  ;;  %v8795_v0 = vpop.permute.xlu1 %3106 }
 0x5f7   : > { %12019 = vst [vmem:[#allocation463_spill] sm:$0xff] %v8795_v0  ;;  %v12024_v0 = vld [vmem:[#allocation16_spill] sm:$0xff] }
 0x5f9   : > { %3244 = vrot.lane.b32.xlu2 %v11564_v17, %s5273_s13  ;;  %v12061_v17 = vld [vmem:[#allocation137_spill] sm:$0xff] }
 0x5fb   : > { %v8799_v46 = vpop.permute.xlu2 %3114  ;;  %3246 = vrot.lane.b32.xlu0 %v11680_v47, %s5273_s13  ;;  %v12054_v47 = vld [vmem:[#allocation120_spill] sm:$0xff] }
 0x5fc   : > { %12020 = vst [vmem:[#allocation464_spill] sm:$0xff] %v8799_v46  ;;  %3260 = vrot.lane.b32.xlu1 %v11701_v8, %s5273_s13  ;;  %v12027_v8 = vld [vmem:[#allocation69_spill] sm:$0xff] }
 0x5fd   : > { %v8805_v32 = vpop.permute.xlu0 %3098 }
 0x5fe   : > { %12021 = vst [vmem:[#allocation465_spill] sm:$0xff] %v8805_v32  ;;  %v8807_v55 = vpop.permute.xlu1 %3112 }
 0x5ff   : > { %12022 = vst [vmem:[#allocation466_spill] sm:$0xff] %v8807_v55  ;;  %v12029_v55 = vld [vmem:[#allocation84_spill] sm:$0xff] }
 0x601   : > { %3250 = vrot.lane.b32.xlu2 %v11577_v42, %s5273_s13 }
 0x603   : > { %v8811_v43 = vpop.permute.xlu2 %3120  ;;  %3252 = vrot.lane.b32.xlu0 %v12024_v0, %s5273_s13 }
 0x604   : > { %12023 = vst [vmem:[#allocation467_spill] sm:$0xff] %v8811_v43  ;;  %3266 = vrot.lane.b32.xlu1 %v11599_v10, %s5273_s13 }
 0x605   : > { %v8817_v46 = vpop.permute.xlu0 %3104 }
 0x606   : > { %12025 = vst [vmem:[#allocation468_spill] sm:$0xff] %v8817_v46  ;;  %v8819_v62 = vpop.permute.xlu1 %3118 }
 0x607   : > { %12026 = vst [vmem:[#allocation469_spill] sm:$0xff] %v8819_v62  ;;  %v12032_v62 = vld [vmem:[#allocation32_spill] sm:$0xff] }
 0x609   : > { %3256 = vrot.lane.b32.xlu2 %v12027_v8, %s5273_s13 }
 0x60b   : > { %v8823_v32 = vpop.permute.xlu2 %3126  ;;  %3258 = vrot.lane.b32.xlu0 %v12029_v55, %s5273_s13 }
 0x60c   : > { %12028 = vst [vmem:[#allocation470_spill] sm:$0xff] %v8823_v32  ;;  %3272 = vrot.lane.b32.xlu1 %v11710_v26, %s5273_s13 }
 0x60d   : > { %v8829_v43 = vpop.permute.xlu0 %3110 }
 0x60e   : > { %12030 = vst [vmem:[#allocation471_spill] sm:$0xff] %v8829_v43  ;;  %v8831_v19 = vpop.permute.xlu1 %3124  ;;  %v12035_v43 = vld [vmem:[#allocation89_spill] sm:$0xff] }
 0x60f   : > { %12031 = vst [vmem:[#allocation472_spill] sm:$0xff] %v8831_v19 }
 0x611   : > { %3262 = vrot.lane.b32.xlu2 %v11590_v15, %s5273_s13 }
 0x613   : > { %v8835_v10 = vpop.permute.xlu2 %3132  ;;  %3264 = vrot.lane.b32.xlu0 %v12032_v62, %s5273_s13 }
 0x614   : > { %3278 = vrot.lane.b32.xlu1 %v11714_v36, %s5273_s13  ;;  %v12037_v36 = vld [vmem:[#allocation105_spill] sm:$0xff] }
 0x615   : > { %v8841_v46 = vpop.permute.xlu0 %3116 }
 0x616   : > { %12033 = vst [vmem:[#allocation473_spill] sm:$0xff] %v8841_v46  ;;  %v8843_v55 = vpop.permute.xlu1 %3130 }
 0x617   : > { %12034 = vst [vmem:[#allocation474_spill] sm:$0xff] %v8843_v55 }
 0x619   : > { %3268 = vrot.lane.b32.xlu2 %v11597_v40, %s5273_s13 }
 0x61b   : > { %v8847_v26 = vpop.permute.xlu2 %3138  ;;  %3270 = vrot.lane.b32.xlu0 %v12035_v43, %s5273_s13 }
 0x61c   : > { %3284 = vrot.lane.b32.xlu1 %v11718_v22, %s5273_s13  ;;  %v12039_v22 = vld [vmem:[#allocation45_spill] sm:$0xff] }
 0x61d   : > { %v8853_v15 = vpop.permute.xlu0 %3122 }
 0x61e   : > { %12036 = vst [vmem:[#allocation475_spill] sm:$0xff] %v8853_v15  ;;  %v8855_v62 = vpop.permute.xlu1 %3136 }
 0x621   : > { %3274 = vrot.lane.b32.xlu2 %v11608_v61, %s5273_s13  ;;  %v12041_v61 = vld [vmem:[#allocation110_spill] sm:$0xff] }
 0x623   : > { %v8859_v46 = vpop.permute.xlu2 %3144  ;;  %3276 = vrot.lane.b32.xlu0 %v12037_v36, %s5273_s13 }
 0x624   : > { %3290 = vrot.lane.b32.xlu1 %v11627_v63, %s5273_s13 }
 0x625   : > { %v8865_v40 = vpop.permute.xlu0 %3128 }
 0x626   : > { %12038 = vst [vmem:[#allocation476_spill] sm:$0xff] %v8865_v40  ;;  %v8867_v43 = vpop.permute.xlu1 %3142 }
 0x629   : > { %3280 = vrot.lane.b32.xlu2 %v6675_v29, %s5273_s13 }
 0x62b   : > { %v8871_v15 = vpop.permute.xlu2 %3150  ;;  %3282 = vrot.lane.b32.xlu0 %v12039_v22, %s5273_s13 }
 0x62c   : > { %3296 = vrot.lane.b32.xlu1 %v6919_v12, %s5273_s13 }
 0x62d   : > { %v8877_v8 = vpop.permute.xlu0 %3134 }
 0x62e   : > { %v8879_v36 = vpop.permute.xlu1 %3148 }
 0x62f   : > { %12040 = vst [vmem:[#allocation477_spill] sm:$0xff] %v8879_v36 }
 0x631   : > { %3286 = vrot.lane.b32.xlu2 %v11619_v28, %s5273_s13 }
 0x633   : > { %v8883_v63 = vpop.permute.xlu2 %3156  ;;  %3288 = vrot.lane.b32.xlu0 %v12041_v61, %s5273_s13 }
 0x634   : > { %3302 = vrot.lane.b32.xlu1 %v11622_v23, %s5273_s13 }
 0x635   : > { %v8889_v29 = vpop.permute.xlu0 %3140 }
 0x636   : > { %v8891_v22 = vpop.permute.xlu1 %3154 }
 0x637   : > { %12042 = vst [vmem:[#allocation478_spill] sm:$0xff] %v8891_v22 }
 0x639   : > { %3292 = vrot.lane.b32.xlu2 %v6803_v49, %s5273_s13  ;;  %v12047_v49 = vld [vmem:[#allocation126_spill] sm:$0xff] }
 0x63b   : > { %v8895_v12 = vpop.permute.xlu2 %3226  ;;  %3294 = vrot.lane.b32.xlu0 %v6990_v54, %s5273_s13 }
 0x63c   : > { %12043 = vst [vmem:[#allocation479_spill] sm:$0xff] %v8895_v12  ;;  %3308 = vrot.lane.b32.xlu1 %v7051_v14, %s5273_s13  ;;  %v12158_v12 = vld [vmem:[#allocation158_spill] sm:$0xff] }
 0x63d   : > { %v8901_v28 = vpop.permute.xlu0 %3146 }
 0x63e   : > { %v8903_v61 = vpop.permute.xlu1 %3160 }
 0x63f   : > { %12044 = vst [vmem:[#allocation480_spill] sm:$0xff] %v8903_v61 }
 0x641   : > { %3298 = vrot.lane.b32.xlu2 %v7085_v24, %s5273_s13  ;;  %v12052_v24 = vld [vmem:[#allocation135_spill] sm:$0xff] }
 0x643   : > { %v8907_v0 = vpop.permute.xlu2 %3232  ;;  %3300 = vrot.lane.b32.xlu0 %v12046_v25, %s5273_s13 }
 0x644   : > { %12045 = vst [vmem:[#allocation481_spill] sm:$0xff] %v8907_v0  ;;  %3314 = vrot.lane.b32.xlu1 %v12047_v49, %s5273_s13 }
 0x645   : > { %v8913_v59 = vpop.permute.xlu0 %3152 }
 0x646   : > { %v8915_v54 = vpop.permute.xlu1 %3230 }
 0x647   : > { %12048 = vst [vmem:[#allocation126_spill] sm:$0xff] %v8915_v54 }
 0x649   : > { %3304 = vrot.lane.b32.xlu2 %v12049_v20, %s5273_s13 }
 0x64b   : > { %v8919_v42 = vpop.permute.xlu2 %3238  ;;  %3306 = vrot.lane.b32.xlu0 %v12051_v38, %s5273_s13 }
 0x64c   : > { %12050 = vst [vmem:[#allocation482_spill] sm:$0xff] %v8919_v42  ;;  %3320 = vrot.lane.b32.xlu1 %v12052_v24, %s5273_s13  ;;  %v12064_v42 = vld [vmem:[#allocation146_spill] sm:$0xff] }
 0x64d   : > { %v8925_v53 = vpop.permute.xlu0 %3158 }
 0x64e   : > { %v8927_v55 = vpop.permute.xlu1 %3236 }
 0x64f   : > { %12053 = vst [vmem:[#allocation135_spill] sm:$0xff] %v8927_v55 }
 0x651   : > { %3310 = vrot.lane.b32.xlu2 %v12054_v47, %s5273_s13 }
 0x653   : > { %v8931_v60 = vpop.permute.xlu2 %3244  ;;  %3312 = vrot.lane.b32.xlu0 %v12056_v33, %s5273_s13 }
 0x654   : > { %12055 = vst [vmem:[#allocation120_spill] sm:$0xff] %v8931_v60  ;;  %3326 = vrot.lane.b32.xlu1 %v7196_v48, %s5273_s13 }
 0x655   : > { %v8937_v7 = vpop.permute.xlu0 %3228 }
 0x656   : > { %12057 = vst [vmem:[#allocation131_spill] sm:$0xff] %v8937_v7  ;;  %v8939_v38 = vpop.permute.xlu1 %3242  ;;  %v12149_v7 = vld [vmem:[#allocation54_spill] sm:$0xff] }
 0x657   : > { %12058 = vst [vmem:[#allocation483_spill] sm:$0xff] %v8939_v38  ;;  %v12066_v38 = vld [vmem:[#allocation143_spill] sm:$0xff] }
 0x659   : > { %3316 = vrot.lane.b32.xlu2 %v12059_v30, %s5273_s13 }
 0x65b   : > { %v8943_v40 = vpop.permute.xlu2 %3250  ;;  %3318 = vrot.lane.b32.xlu0 %v12061_v17, %s5273_s13 }
 0x65c   : > { %12060 = vst [vmem:[#allocation127_spill] sm:$0xff] %v8943_v40  ;;  %3332 = vrot.lane.b32.xlu1 %v7283_v52, %s5273_s13 }
 0x65d   : > { %v8949_v60 = vpop.permute.xlu0 %3234 }
 0x65e   : > { %12062 = vst [vmem:[#allocation137_spill] sm:$0xff] %v8949_v60  ;;  %v8951_v20 = vpop.permute.xlu1 %3248 }
 0x65f   : > { %12063 = vst [vmem:[#allocation484_spill] sm:$0xff] %v8951_v20  ;;  %v12070_v20 = vld [vmem:[#allocation161_spill] sm:$0xff] }
 0x661   : > { %3322 = vrot.lane.b32.xlu2 %v12064_v42, %s5273_s13 }
 0x663   : > { %v8955_v32 = vpop.permute.xlu2 %3256  ;;  %3324 = vrot.lane.b32.xlu0 %v12066_v38, %s5273_s13 }
 0x664   : > { %12065 = vst [vmem:[#allocation146_spill] sm:$0xff] %v8955_v32  ;;  %3338 = vrot.lane.b32.xlu1 %v8182_v41, %s5273_s13 }
 0x665   : > { %v8961_v40 = vpop.permute.xlu0 %3240 }
 0x666   : > { %12067 = vst [vmem:[#allocation485_spill] sm:$0xff] %v8961_v40  ;;  %v8963_v27 = vpop.permute.xlu1 %3254 }
 0x667   : > { %12068 = vst [vmem:[#allocation486_spill] sm:$0xff] %v8963_v27  ;;  %v12074_v27 = vld [vmem:[#allocation164_spill] sm:$0xff] }
 0x669   : > { %3328 = vrot.lane.b32.xlu2 %v7183_v21, %s5273_s13 }
 0x66b   : > { %v8967_v23 = vpop.permute.xlu2 %3262  ;;  %3330 = vrot.lane.b32.xlu0 %v12070_v20, %s5273_s13  ;;  %v12153_v20 = vld [vmem:[#allocation130_spill] sm:$0xff] }
 0x66c   : > { %12069 = vst [vmem:[#allocation487_spill] sm:$0xff] %v8967_v23  ;;  %3344 = vrot.lane.b32.xlu1 %v8203_v50, %s5273_s13  ;;  %v12075_v23 = vld [vmem:[#allocation51_spill] sm:$0xff] }
 0x66d   : > { %v8973_v32 = vpop.permute.xlu0 %3246 }
 0x66e   : > { %12071 = vst [vmem:[#allocation488_spill] sm:$0xff] %v8973_v32  ;;  %v8975_v55 = vpop.permute.xlu1 %3260 }
 0x66f   : > { %12072 = vst [vmem:[#allocation489_spill] sm:$0xff] %v8975_v55  ;;  %v12080_v55 = vld [vmem:[#allocation7_spill] sm:$0xff] }
 0x670   : > { %v1719_v32 = vrot.slane %v12080_v55, 4 }
 0x671   : > { %3334 = vrot.lane.b32.xlu2 %v7274_v31, %s5273_s13 }
 0x673   : > { %v8979_v41 = vpop.permute.xlu2 %3268  ;;  %3336 = vrot.lane.b32.xlu0 %v12074_v27, %s5273_s13 }
 0x674   : > { %12073 = vst [vmem:[#allocation490_spill] sm:$0xff] %v8979_v41  ;;  %3350 = vrot.lane.b32.xlu1 %v12075_v23, %s5273_s13  ;;  %v12079_v41 = vld [vmem:[#allocation12_spill] sm:$0xff] }
 0x675   : > { %v8985_v40 = vpop.permute.xlu0 %3252 }
 0x676   : > { %12076 = vst [vmem:[#allocation51_spill] sm:$0xff] %v8985_v40  ;;  %v8987_v58 = vpop.permute.xlu1 %3266  ;;  %v12083_v40 = vld [vmem:[#allocation49_spill] sm:$0xff] }
 0x677   : > { %12077 = vst [vmem:[#allocation491_spill] sm:$0xff] %v8987_v58  ;;  %v9004_v58 = vsel %vm681_vm2, %v12083_v40, %v1719_v32  ;;  %v12091_v32 = vld [vmem:[#allocation72_spill] sm:$0xff] }
 0x679   : > { %3340 = vrot.lane.b32.xlu2 %v8188_v56, %s5273_s13 }
 0x67b   : > { %v8991_v50 = vpop.permute.xlu2 %3274  ;;  %3342 = vrot.lane.b32.xlu0 %v8147_v5, %s5273_s13  ;;  %v12085_v5 = vld [vmem:[#allocation34_spill] sm:$0xff] }
 0x67c   : > { %12078 = vst [vmem:[#allocation492_spill] sm:$0xff] %v8991_v50  ;;  %3420 = vrot.lane.b32.xlu1 %v12079_v41, %s5272_s12  ;;  %v12086_v41 = vld [vmem:[#allocation81_spill] sm:$0xff] }
 0x67d   : > { %v8998_v19 = vpop.permute.xlu0 %3258 }
 0x67e   : > { %12081 = vst [vmem:[#allocation12_spill] sm:$0xff] %v8998_v19  ;;  %v9000_v25 = vpop.permute.xlu1 %3272 }
 0x67f   : > { %12082 = vst [vmem:[#allocation7_spill] sm:$0xff] %v9000_v25  ;;  %v12089_v25 = vld [vmem:[#allocation90_spill] sm:$0xff] }
 0x681   : > { %3346 = vrot.lane.b32.xlu2 %v9004_v58, %s5273_s13 }
 0x683   : > { %v9008_v56 = vpop.permute.xlu2 %3280  ;;  %3348 = vrot.lane.b32.xlu0 %v12085_v5, %s5273_s13 }
 0x684   : > { %12084 = vst [vmem:[#allocation49_spill] sm:$0xff] %v9008_v56  ;;  %3426 = vrot.lane.b32.xlu1 %v12086_v41, %s5272_s12  ;;  %v12092_v56 = vld [vmem:[#allocation98_spill] sm:$0xff]  ;;  %v12095_v41 = vld [vmem:[#allocation57_spill] sm:$0xff] }
 0x685   : > { %v9014_v55 = vpop.permute.xlu0 %3264 }
 0x686   : > { %12087 = vst [vmem:[#allocation34_spill] sm:$0xff] %v9014_v55  ;;  %v9016_v50 = vpop.permute.xlu1 %3278 }
 0x687   : > { %12088 = vst [vmem:[#allocation81_spill] sm:$0xff] %v9016_v50  ;;  %v12097_v50 = vld [vmem:[#allocation18_spill] sm:$0xff] }
 0x689   : > { %3352 = vrot.lane.b32.xlu2 %v12089_v25, %s5273_s13  ;;  %s5036_s13 = sshll.u32 %s5228_s18, 2 }
 0x68a   : > { %p261_p7 = scmp.lt.s32.totalorder %s5036_s13, 7 }
 0x68b   : > { %v9020_v40 = vpop.permute.xlu2 %3286  ;;  %3418 = vrot.lane.b32.xlu0 %v12091_v32, %s5272_s12 }
 0x68c   : > { %12090 = vst [vmem:[#allocation90_spill] sm:$0xff] %v9020_v40  ;;  %3432 = vrot.lane.b32.xlu1 %v12092_v56, %s5272_s12  ;;  %v12098_v40 = vld [vmem:[#allocation15_spill] sm:$0xff]  ;;  %v12101_v56 = vld [vmem:[#allocation61_spill] sm:$0xff]  ;;  %s12731_s13 = smov (!%p261_p7, %s5036_s13), 7 }
 0x68d   : > { %v9026_v19 = vpop.permute.xlu0 %3270  ;;  %s264_s18 = sadd.s32 %s5037_s14, %s12731_s13 }
 0x68e   : > { %12093 = vst [vmem:[#allocation72_spill] sm:$0xff] %v9026_v19  ;;  %v9028_v60 = vpop.permute.xlu1 %3284  ;;  %s5038_s15 = sshll.u32 %s264_s18, 3 }
 0x68f   : > { %12094 = vst [vmem:[#allocation98_spill] sm:$0xff] %v9028_v60  ;;  %v12103_v60 = vld [vmem:[#allocation86_spill] sm:$0xff]  ;;  %s10760_s17 = scalar_lea.vmem %s10796_s5, %s5038_s15 }
 0x691   : > { %3422 = vrot.lane.b32.xlu2 %v12095_v41, %s5272_s12  ;;  %v12104_v41 = vld [vmem:[#allocation87_spill] sm:$0xff] }
 0x693   : > { %v9032_v55 = vpop.permute.xlu2 %3292  ;;  %3424 = vrot.lane.b32.xlu0 %v12097_v50, %s5272_s12 }
 0x694   : > { %12096 = vst [vmem:[#allocation57_spill] sm:$0xff] %v9032_v55  ;;  %3438 = vrot.lane.b32.xlu1 %v12098_v40, %s5272_s12  ;;  %v12107_v40 = vld [vmem:[#allocation68_spill] sm:$0xff] }
 0x695   : > { %v9038_v3 = vpop.permute.xlu0 %3276 }
 0x696   : > { %12099 = vst [vmem:[#allocation18_spill] sm:$0xff] %v9038_v3  ;;  %v9040_v32 = vpop.permute.xlu1 %3290 }
 0x697   : > { %12100 = vst [vmem:[#allocation15_spill] sm:$0xff] %v9040_v32  ;;  %v12109_v32 = vld [vmem:[#allocation50_spill] sm:$0xff] }
 0x699   : > { %3428 = vrot.lane.b32.xlu2 %v12101_v56, %s5272_s12  ;;  %v12110_v56 = vld [vmem:[#allocation30_spill] sm:$0xff] }
 0x69b   : > { %v9044_v19 = vpop.permute.xlu2 %3298  ;;  %3430 = vrot.lane.b32.xlu0 %v12103_v60, %s5272_s12 }
 0x69c   : > { %12102 = vst [vmem:[#allocation61_spill] sm:$0xff] %v9044_v19  ;;  %3444 = vrot.lane.b32.xlu1 %v12104_v41, %s5272_s12  ;;  %v12113_v41 = vld [vmem:[#allocation60_spill] sm:$0xff] }
 0x69d   : > { %v9050_v55 = vpop.permute.xlu0 %3282 }
 0x69e   : > { %12105 = vst [vmem:[#allocation86_spill] sm:$0xff] %v9050_v55  ;;  %v9052_v50 = vpop.permute.xlu1 %3296 }
 0x69f   : > { %12106 = vst [vmem:[#allocation87_spill] sm:$0xff] %v9052_v50  ;;  %v12115_v50 = vld [vmem:[#allocation53_spill] sm:$0xff] }
 0x6a1   : > { %3434 = vrot.lane.b32.xlu2 %v12107_v40, %s5272_s12  ;;  %v12116_v40 = vld [vmem:[#allocation19_spill] sm:$0xff] }
 0x6a3   : > { %v9056_v3 = vpop.permute.xlu2 %3304  ;;  %3436 = vrot.lane.b32.xlu0 %v12109_v32, %s5272_s12 }
 0x6a4   : > { %12108 = vst [vmem:[#allocation68_spill] sm:$0xff] %v9056_v3  ;;  %3450 = vrot.lane.b32.xlu1 %v12110_v56, %s5272_s12  ;;  %v12119_v56 = vld [vmem:[#allocation74_spill] sm:$0xff] }
 0x6a5   : > { %v9062_v19 = vpop.permute.xlu0 %3288 }
 0x6a6   : > { %12111 = vst [vmem:[#allocation50_spill] sm:$0xff] %v9062_v19  ;;  %v9064_v60 = vpop.permute.xlu1 %3302 }
 0x6a7   : > { %12112 = vst [vmem:[#allocation30_spill] sm:$0xff] %v9064_v60  ;;  %v12121_v60 = vld [vmem:[#allocation102_spill] sm:$0xff] }
 0x6a9   : > { %3440 = vrot.lane.b32.xlu2 %v12113_v41, %s5272_s12  ;;  %v12122_v41 = vld [vmem:[#allocation92_spill] sm:$0xff] }
 0x6ab   : > { %v9068_v55 = vpop.permute.xlu2 %3310  ;;  %3442 = vrot.lane.b32.xlu0 %v12115_v50, %s5272_s12 }
 0x6ac   : > { %12114 = vst [vmem:[#allocation60_spill] sm:$0xff] %v9068_v55  ;;  %3456 = vrot.lane.b32.xlu1 %v12116_v40, %s5272_s12  ;;  %v12125_v40 = vld [vmem:[#allocation82_spill] sm:$0xff] }
 0x6ad   : > { %v9074_v3 = vpop.permute.xlu0 %3294 }
 0x6ae   : > { %12117 = vst [vmem:[#allocation53_spill] sm:$0xff] %v9074_v3  ;;  %v9076_v32 = vpop.permute.xlu1 %3308 }
 0x6af   : > { %12118 = vst [vmem:[#allocation19_spill] sm:$0xff] %v9076_v32  ;;  %v12127_v32 = vld [vmem:[#allocation91_spill] sm:$0xff] }
 0x6b1   : > { %3446 = vrot.lane.b32.xlu2 %v12119_v56, %s5272_s12  ;;  %v12128_v56 = vld [vmem:[#allocation46_spill] sm:$0xff] }
 0x6b3   : > { %v9080_v19 = vpop.permute.xlu2 %3316  ;;  %3448 = vrot.lane.b32.xlu0 %v12121_v60, %s5272_s12 }
 0x6b4   : > { %12120 = vst [vmem:[#allocation74_spill] sm:$0xff] %v9080_v19  ;;  %3462 = vrot.lane.b32.xlu1 %v12122_v41, %s5272_s12  ;;  %v12131_v41 = vld [vmem:[#allocation20_spill] sm:$0xff] }
 0x6b5   : > { %v9086_v55 = vpop.permute.xlu0 %3300 }
 0x6b6   : > { %12123 = vst [vmem:[#allocation102_spill] sm:$0xff] %v9086_v55  ;;  %v9088_v50 = vpop.permute.xlu1 %3314 }
 0x6b7   : > { %12124 = vst [vmem:[#allocation92_spill] sm:$0xff] %v9088_v50  ;;  %v12132_v50 = vld [vmem:[#allocation96_spill] sm:$0xff] }
 0x6b9   : > { %3452 = vrot.lane.b32.xlu2 %v12125_v40, %s5272_s12  ;;  %v12133_v40 = vld [vmem:[#allocation111_spill] sm:$0xff] }
 0x6bb   : > { %v9092_v3 = vpop.permute.xlu2 %3322  ;;  %3454 = vrot.lane.b32.xlu0 %v12127_v32, %s5272_s12 }
 0x6bc   : > { %12126 = vst [vmem:[#allocation82_spill] sm:$0xff] %v9092_v3  ;;  %3468 = vrot.lane.b32.xlu1 %v12128_v56, %s5272_s12  ;;  %v12135_v56 = vld [vmem:[#allocation93_spill] sm:$0xff] }
 0x6bd   : > { %v9098_v19 = vpop.permute.xlu0 %3306 }
 0x6be   : > { %12129 = vst [vmem:[#allocation91_spill] sm:$0xff] %v9098_v19  ;;  %v9100_v60 = vpop.permute.xlu1 %3320 }
 0x6bf   : > { %12130 = vst [vmem:[#allocation46_spill] sm:$0xff] %v9100_v60  ;;  %v12136_v60 = vld [vmem:[#allocation23_spill] sm:$0xff] }
 0x6c1   : > { %3458 = vrot.lane.b32.xlu2 %v12131_v41, %s5272_s12  ;;  %v12137_v41 = vld [vmem:[#allocation153_spill] sm:$0xff] }
 0x6c3   : > { %v9104_v55 = vpop.permute.xlu2 %3328  ;;  %3460 = vrot.lane.b32.xlu0 %v12132_v50, %s5272_s12 }
 0x6c4   : > { %3474 = vrot.lane.b32.xlu1 %v12133_v40, %s5272_s12  ;;  %v12139_v40 = vld [vmem:[#allocation99_spill] sm:$0xff] }
 0x6c5   : > { %v9110_v3 = vpop.permute.xlu0 %3312 }
 0x6c6   : > { %12134 = vst [vmem:[#allocation20_spill] sm:$0xff] %v9110_v3  ;;  %v9112_v32 = vpop.permute.xlu1 %3326 }
 0x6c9   : > { %3464 = vrot.lane.b32.xlu2 %v12135_v56, %s5272_s12  ;;  %v12142_v56 = vld [vmem:[#allocation73_spill] sm:$0xff] }
 0x6cb   : > { %v9116_v19 = vpop.permute.xlu2 %3334  ;;  %3466 = vrot.lane.b32.xlu0 %v12136_v60, %s5272_s12 }
 0x6cc   : > { %3480 = vrot.lane.b32.xlu1 %v12137_v41, %s5272_s12  ;;  %v12143_v41 = vld [vmem:[#allocation41_spill] sm:$0xff] }
 0x6cd   : > { %v9122_v0 = vpop.permute.xlu0 %3318 }
 0x6ce   : > { %12138 = vst [vmem:[#allocation96_spill] sm:$0xff] %v9122_v0  ;;  %v9124_v50 = vpop.permute.xlu1 %3332 }
 0x6d1   : > { %3470 = vrot.lane.b32.xlu2 %v12139_v40, %s5272_s12  ;;  %v12146_v40 = vld [vmem:[#allocation122_spill] sm:$0xff] }
 0x6d3   : > { %v9128_v3 = vpop.permute.xlu2 %3340  ;;  %3472 = vrot.lane.b32.xlu0 %v12141_v37, %s5272_s12 }
 0x6d4   : > { %12140 = vst [vmem:[#allocation111_spill] sm:$0xff] %v9128_v3  ;;  %3486 = vrot.lane.b32.xlu1 %v12142_v56, %s5272_s12  ;;  %v12147_v56 = vld [vmem:[#allocation35_spill] sm:$0xff] }
 0x6d5   : > { %v9134_v54 = vpop.permute.xlu0 %3324 }
 0x6d6   : > { %v9136_v60 = vpop.permute.xlu1 %3338 }
 0x6d9   : > { %3476 = vrot.lane.b32.xlu2 %v12143_v41, %s5272_s12  ;;  %v12150_v41 = vld [vmem:[#allocation132_spill] sm:$0xff] }
 0x6db   : > { %v9140_v0 = vpop.permute.xlu2 %3346  ;;  %3478 = vrot.lane.b32.xlu0 %v12145_v9, %s5272_s12 }
 0x6dc   : > { %12144 = vst [vmem:[#allocation93_spill] sm:$0xff] %v9140_v0  ;;  %3492 = vrot.lane.b32.xlu1 %v12146_v40, %s5272_s12  ;;  %v12151_v40 = vld [vmem:[#allocation112_spill] sm:$0xff] }
 0x6dd   : > { %v9146_v61 = vpop.permute.xlu0 %3330 }
 0x6de   : > { %v9148_v37 = vpop.permute.xlu1 %3344 }
 0x6e1   : > { %3482 = vrot.lane.b32.xlu2 %v12147_v56, %s5272_s12  ;;  %v12154_v56 = vld [vmem:[#allocation159_spill] sm:$0xff] }
 0x6e3   : > { %v9152_v27 = vpop.permute.xlu2 %3352  ;;  %3484 = vrot.lane.b32.xlu0 %v12149_v7, %s5272_s12 }
 0x6e4   : > { %12148 = vst [vmem:[#allocation23_spill] sm:$0xff] %v9152_v27  ;;  %3498 = vrot.lane.b32.xlu1 %v12150_v41, %s5272_s12  ;;  %v12156_v41 = vld [vmem:[#allocation118_spill] sm:$0xff] }
 0x6e5   : > { %v9158_v0 = vpop.permute.xlu0 %3336 }
 0x6e6   : > { %v9160_v9 = vpop.permute.xlu1 %3350 }
 0x6e9   : > { %3488 = vrot.lane.b32.xlu2 %v12151_v40, %s5272_s12  ;;  %v12159_v40 = vld [vmem:[#allocation139_spill] sm:$0xff] }
 0x6eb   : > { %v9164_v22 = vpop.permute.xlu2 %3422  ;;  %3490 = vrot.lane.b32.xlu0 %v12153_v20, %s5272_s12 }
 0x6ec   : > { %12152 = vst [vmem:[#allocation153_spill] sm:$0xff] %v9164_v22  ;;  %3504 = vrot.lane.b32.xlu1 %v12154_v56, %s5272_s12  ;;  %v12161_v56 = vld [vmem:[#allocation124_spill] sm:$0xff] }
 0x6ed   : > { %v9170_v27 = vpop.permute.xlu0 %3342 }
 0x6ee   : > { %v9172_v7 = vpop.permute.xlu1 %3420 }
 0x6ef   : > { %12155 = vst [vmem:[#allocation99_spill] sm:$0xff] %v9172_v7  ;;  %v12163_v7 = vld [vmem:[#allocation80_spill] sm:$0xff] }
 0x6f1   : > { %3494 = vrot.lane.b32.xlu2 %v12156_v41, %s5272_s12  ;;  %v12164_v41 = vld [vmem:[#allocation147_spill] sm:$0xff] }
 0x6f3   : > { %v9176_v3 = vpop.permute.xlu2 %3428  ;;  %3496 = vrot.lane.b32.xlu0 %v12158_v12, %s5272_s12 }
 0x6f4   : > { %12157 = vst [vmem:[#allocation109_spill] sm:$0xff] %v9176_v3  ;;  %3510 = vrot.lane.b32.xlu1 %v12159_v40, %s5272_s12  ;;  %v12167_v40 = vld [vmem:[#allocation134_spill] sm:$0xff] }
 0x6f5   : > { %v9182_v22 = vpop.permute.xlu0 %3348 }
 0x6f6   : > { %v9184_v20 = vpop.permute.xlu1 %3426 }
 0x6f7   : > { %12160 = vst [vmem:[#allocation73_spill] sm:$0xff] %v9184_v20  ;;  %v12169_v20 = vld [vmem:[#allocation145_spill] sm:$0xff] }
 0x6f9   : > { %3500 = vrot.lane.b32.xlu2 %v12161_v56, %s5272_s12  ;;  %v12170_v56 = vld [vmem:[#allocation165_spill] sm:$0xff] }
 0x6fb   : > { %v9188_v36 = vpop.permute.xlu2 %3434  ;;  %3502 = vrot.lane.b32.xlu0 %v12163_v7, %s5272_s12 }
 0x6fc   : > { %12162 = vst [vmem:[#allocation41_spill] sm:$0xff] %v9188_v36  ;;  %3516 = vrot.lane.b32.xlu1 %v12164_v41, %s5272_s12  ;;  %v12172_v41 = vld [vmem:[#allocation149_spill] sm:$0xff] }
 0x6fd   : > { %v9194_v3 = vpop.permute.xlu0 %3418 }
 0x6fe   : > { %12165 = vst [vmem:[#allocation75_spill] sm:$0xff] %v9194_v3  ;;  %v9196_v12 = vpop.permute.xlu1 %3432 }
 0x6ff   : > { %12166 = vst [vmem:[#allocation122_spill] sm:$0xff] %v9196_v12  ;;  %v12174_v12 = vld [vmem:[#allocation152_spill] sm:$0xff] }
 0x701   : > { %3506 = vrot.lane.b32.xlu2 %v12167_v40, %s5272_s12 }
 0x703   : > { %v9200_v38 = vpop.permute.xlu2 %3440  ;;  %3508 = vrot.lane.b32.xlu0 %v12169_v20, %s5272_s12 }
 0x704   : > { %12168 = vst [vmem:[#allocation35_spill] sm:$0xff] %v9200_v38  ;;  %3522 = vrot.lane.b32.xlu1 %v12170_v56, %s5272_s12  ;;  %v12176_v56 = vld [vmem:[#allocation141_spill] sm:$0xff] }
 0x705   : > { %v9206_v36 = vpop.permute.xlu0 %3424 }
 0x706   : > { %v9208_v7 = vpop.permute.xlu1 %3438 }
 0x707   : > { %12171 = vst [vmem:[#allocation54_spill] sm:$0xff] %v9208_v7  ;;  %v12178_v7 = vld [vmem:[#allocation59_spill] sm:$0xff] }
 0x709   : > { %3512 = vrot.lane.b32.xlu2 %v12172_v41, %s5272_s12 }
 0x70b   : > { %v9212_v3 = vpop.permute.xlu2 %3446  ;;  %3514 = vrot.lane.b32.xlu0 %v12174_v12, %s5272_s12 }
 0x70c   : > { %12173 = vst [vmem:[#allocation132_spill] sm:$0xff] %v9212_v3  ;;  %3528 = vrot.lane.b32.xlu1 %v11890_v1, %s5272_s12  ;;  %v2251_v1 = vrot.slane %v12075_v23, 1  ;;  %v2249_v3 = vrot.slane %v12085_v5, 1 }
 0x70d   : > { %v9218_v40 = vpop.permute.xlu0 %3430 }
 0x70e   : > { %v9220_v20 = vpop.permute.xlu1 %3444 }
 0x70f   : > { %12175 = vst [vmem:[#allocation112_spill] sm:$0xff] %v9220_v20  ;;  %v12181_v20 = vld [vmem:[#allocation155_spill] sm:$0xff] }
 0x711   : > { %3518 = vrot.lane.b32.xlu2 %v12176_v56, %s5272_s12 }
 0x713   : > { %v9224_v38 = vpop.permute.xlu2 %3452  ;;  %3520 = vrot.lane.b32.xlu0 %v12178_v7, %s5272_s12  ;;  %v2252_v7 = vsel %vm1930_vm3, %v2249_v3, %v2251_v1 }
 0x714   : > { %12177 = vst [vmem:[#allocation130_spill] sm:$0xff] %v9224_v38  ;;  %3534 = vrot.lane.b32.xlu1 %v8475_v2, %s5272_s12  ;;  %v12183_v38 = vld [vmem:[#allocation169_spill] sm:$0xff] }
 0x715   : > { %v9230_v41 = vpop.permute.xlu0 %3436 }
 0x716   : > { %12179 = vst [vmem:[#allocation159_spill] sm:$0xff] %v9230_v41  ;;  %v9232_v12 = vpop.permute.xlu1 %3450 }
 0x717   : > { %12180 = vst [vmem:[#allocation118_spill] sm:$0xff] %v9232_v12 }
 0x719   : > { %3524 = vrot.lane.b32.xlu2 %v12181_v20, %s5272_s12  ;;  %v12187_v20 = vld [vmem:[#allocation388_spill] sm:$0xff] }
 0x71b   : > { %v9238_v56 = vpop.permute.xlu2 %3458  ;;  %3526 = vrot.lane.b32.xlu0 %v12183_v38, %s5272_s12 }
 0x71c   : > { %12182 = vst [vmem:[#allocation158_spill] sm:$0xff] %v9238_v56  ;;  %3540 = vrot.lane.b32.xlu1 %v2252_v7, %s5272_s12  ;;  %v2248_v56 = vrot.slane %v9004_v58, 1 }
 0x71d   : > { %v9244_v2 = vpop.permute.xlu0 %3442 }
 0x71e   : > { %12184 = vst [vmem:[#allocation139_spill] sm:$0xff] %v9244_v2  ;;  %v9246_v41 = vpop.permute.xlu1 %3456  ;;  %v1848_v2 = vrot.slane %v8457_v16, 4 }
 0x71f   : > { %12185 = vst [vmem:[#allocation124_spill] sm:$0xff] %v9246_v41  ;;  %v12190_v41 = vld [vmem:[#allocation392_spill] sm:$0xff] }
 0x721   : > { %3530 = vrot.lane.b32.xlu2 %v8460_v57, %s5272_s12  ;;  %v2250_v57 = vsel %vm1930_vm3, %v2248_v56, %v2249_v3 }
 0x723   : > { %v9250_v12 = vpop.permute.xlu2 %3464  ;;  %3532 = vrot.lane.b32.xlu0 %v12187_v20, %s5272_s12  ;;  %v9269_v20 = vsel %vm681_vm2, 0.0, %v1848_v2  ;;  %v12196_v2 = vld [vmem:[#allocation196_spill] sm:$0xff] }
 0x724   : > { %12186 = vst [vmem:[#allocation80_spill] sm:$0xff] %v9250_v12  ;;  %3610 = vrot.lane.b32.xlu1 %v11906_v13, %s5271_s11  ;;  %v2253_v13 = vrot.slane %v12089_v25, 1 }
 0x725   : > { %v9256_v38 = vpop.permute.xlu0 %3448 }
 0x726   : > { %12188 = vst [vmem:[#allocation147_spill] sm:$0xff] %v9256_v38  ;;  %v9259_v7 = vpop.permute.xlu1 %3462  ;;  %v12192_v38 = vld [vmem:[#allocation190_spill] sm:$0xff]  ;;  %v2254_v3 = vsel %vm1930_vm3, %v2251_v1, %v2253_v13  ;;  %v12201_v1 = vld [vmem:[#allocation71_spill] sm:$0xff] }
 0x727   : > { %12189 = vst [vmem:[#allocation134_spill] sm:$0xff] %v9259_v7 }
 0x729   : > { %3536 = vrot.lane.b32.xlu2 %v12190_v41, %s5272_s12  ;;  %v2255_v41 = vrot.slane %v9269_v20, 1 }
 0x72b   : > { %v9265_v12 = vpop.permute.xlu2 %3470  ;;  %3538 = vrot.lane.b32.xlu0 %v2250_v57, %s5272_s12  ;;  %v2256_v56 = vsel %vm1930_vm3, %v2253_v13, %v2255_v41  ;;  %v12202_v13 = vld [vmem:[#allocation202_spill] sm:$0xff] }
 0x72c   : > { %12191 = vst [vmem:[#allocation145_spill] sm:$0xff] %v9265_v12  ;;  %3616 = vrot.lane.b32.xlu1 %v12192_v38, %s5271_s11 }
 0x72d   : > { %v9274_v7 = vpop.permute.xlu0 %3454 }
 0x72e   : > { %12193 = vst [vmem:[#allocation165_spill] sm:$0xff] %v9274_v7  ;;  %v9276_v16 = vpop.permute.xlu1 %3468 }
 0x72f   : > { %12194 = vst [vmem:[#allocation149_spill] sm:$0xff] %v9276_v16  ;;  %v12199_v16 = vld [vmem:[#allocation176_spill] sm:$0xff] }
 0x731   : > { %3542 = vrot.lane.b32.xlu2 %v2254_v3, %s5272_s12 }
 0x733   : > { %v9282_v57 = vpop.permute.xlu2 %3476  ;;  %3544 = vrot.lane.b32.xlu0 %v2256_v56, %s5272_s12  ;;  %v12205_v56 = vld [vmem:[#allocation182_spill] sm:$0xff] }
 0x734   : > { %12195 = vst [vmem:[#allocation152_spill] sm:$0xff] %v9282_v57  ;;  %3622 = vrot.lane.b32.xlu1 %v12196_v2, %s5271_s11  ;;  %v12207_v57 = vld [vmem:[#allocation195_spill] sm:$0xff] }
 0x735   : > { %v9287_v38 = vpop.permute.xlu0 %3460 }
 0x736   : > { %12197 = vst [vmem:[#allocation141_spill] sm:$0xff] %v9287_v38  ;;  %v9289_v12 = vpop.permute.xlu1 %3474  ;;  %v12237_v38 = vld [vmem:[#allocation212_spill] sm:$0xff] }
 0x737   : > { %12198 = vst [vmem:[#allocation59_spill] sm:$0xff] %v9289_v12 }
 0x739   : > { %3612 = vrot.lane.b32.xlu2 %v12199_v16, %s5271_s11  ;;  %v12208_v16 = vld [vmem:[#allocation208_spill] sm:$0xff] }
 0x73b   : > { %v9293_v7 = vpop.permute.xlu2 %3482  ;;  %3614 = vrot.lane.b32.xlu0 %v12201_v1, %s5271_s11 }
 0x73c   : > { %12200 = vst [vmem:[#allocation155_spill] sm:$0xff] %v9293_v7  ;;  %3628 = vrot.lane.b32.xlu1 %v12202_v13, %s5271_s11  ;;  %v12211_v13 = vld [vmem:[#allocation187_spill] sm:$0xff]  ;;  %v12236_v7 = vld [vmem:[#allocation356_spill] sm:$0xff] }
 0x73d   : > { %v9299_v41 = vpop.permute.xlu0 %3466 }
 0x73e   : > { %12203 = vst [vmem:[#allocation169_spill] sm:$0xff] %v9299_v41  ;;  %v9301_v3 = vpop.permute.xlu1 %3480 }
 0x73f   : > { %12204 = vst [vmem:[#allocation388_spill] sm:$0xff] %v9301_v3  ;;  %v12213_v3 = vld [vmem:[#allocation201_spill] sm:$0xff] }
 0x741   : > { %3618 = vrot.lane.b32.xlu2 %v12205_v56, %s5271_s11  ;;  %v12214_v56 = vld [vmem:[#allocation213_spill] sm:$0xff] }
 0x743   : > { %v9305_v2 = vpop.permute.xlu2 %3488  ;;  %3620 = vrot.lane.b32.xlu0 %v12207_v57, %s5271_s11 }
 0x744   : > { %12206 = vst [vmem:[#allocation392_spill] sm:$0xff] %v9305_v2  ;;  %3634 = vrot.lane.b32.xlu1 %v12208_v16, %s5271_s11  ;;  %v12217_v16 = vld [vmem:[#allocation192_spill] sm:$0xff] }
 0x745   : > { %v9311_v12 = vpop.permute.xlu0 %3472 }
 0x746   : > { %12209 = vst [vmem:[#allocation190_spill] sm:$0xff] %v9311_v12  ;;  %v9313_v1 = vpop.permute.xlu1 %3486 }
 0x747   : > { %12210 = vst [vmem:[#allocation196_spill] sm:$0xff] %v9313_v1  ;;  %v12219_v1 = vld [vmem:[#allocation207_spill] sm:$0xff] }
 0x749   : > { %3624 = vrot.lane.b32.xlu2 %v12211_v13, %s5271_s11  ;;  %v12220_v13 = vld [vmem:[#allocation219_spill] sm:$0xff] }
 0x74b   : > { %v9317_v41 = vpop.permute.xlu2 %3494  ;;  %3626 = vrot.lane.b32.xlu0 %v12213_v3, %s5271_s11 }
 0x74c   : > { %12212 = vst [vmem:[#allocation176_spill] sm:$0xff] %v9317_v41  ;;  %3640 = vrot.lane.b32.xlu1 %v12214_v56, %s5271_s11  ;;  %v12223_v56 = vld [vmem:[#allocation198_spill] sm:$0xff] }
 0x74d   : > { %v9323_v2 = vpop.permute.xlu0 %3478 }
 0x74e   : > { %12215 = vst [vmem:[#allocation71_spill] sm:$0xff] %v9323_v2  ;;  %v9325_v57 = vpop.permute.xlu1 %3492 }
 0x74f   : > { %12216 = vst [vmem:[#allocation202_spill] sm:$0xff] %v9325_v57  ;;  %v12225_v57 = vld [vmem:[#allocation97_spill] sm:$0xff] }
 0x751   : > { %3630 = vrot.lane.b32.xlu2 %v12217_v16, %s5271_s11  ;;  %v12226_v16 = vld [vmem:[#allocation224_spill] sm:$0xff] }
 0x753   : > { %v9329_v12 = vpop.permute.xlu2 %3500  ;;  %3632 = vrot.lane.b32.xlu0 %v12219_v1, %s5271_s11 }
 0x754   : > { %12218 = vst [vmem:[#allocation182_spill] sm:$0xff] %v9329_v12  ;;  %3646 = vrot.lane.b32.xlu1 %v12220_v13, %s5271_s11  ;;  %v12229_v13 = vld [vmem:[#allocation204_spill] sm:$0xff] }
 0x755   : > { %v9335_v41 = vpop.permute.xlu0 %3484 }
 0x756   : > { %12221 = vst [vmem:[#allocation195_spill] sm:$0xff] %v9335_v41  ;;  %v9337_v3 = vpop.permute.xlu1 %3498 }
 0x757   : > { %12222 = vst [vmem:[#allocation208_spill] sm:$0xff] %v9337_v3  ;;  %v12231_v3 = vld [vmem:[#allocation218_spill] sm:$0xff] }
 0x759   : > { %3636 = vrot.lane.b32.xlu2 %v12223_v56, %s5271_s11  ;;  %v12232_v56 = vld [vmem:[#allocation215_spill] sm:$0xff] }
 0x75b   : > { %v9341_v2 = vpop.permute.xlu2 %3506  ;;  %3638 = vrot.lane.b32.xlu0 %v12225_v57, %s5271_s11 }
 0x75c   : > { %12224 = vst [vmem:[#allocation187_spill] sm:$0xff] %v9341_v2  ;;  %3650 = vrot.lane.b32.xlu1 %v12226_v16, %s5271_s11  ;;  %v12234_v2 = vld [vmem:[#allocation203_spill] sm:$0xff] }
 0x75d   : > { %v9347_v12 = vpop.permute.xlu0 %3490  ;;  %v3853_v16 = vsel %vm3802_vm5, %v12054_v47, %v12234_v2  ;;  %v12239_v47 = vld [vmem:[#allocation306_spill] sm:$0xff] }
 0x75e   : > { %12227 = vst [vmem:[#allocation201_spill] sm:$0xff] %v9347_v12  ;;  %v9349_v1 = vpop.permute.xlu1 %3504  ;;  %v12235_v12 = vld [vmem:[#allocation316_spill] sm:$0xff] }
 0x75f   : > { %12228 = vst [vmem:[#allocation213_spill] sm:$0xff] %v9349_v1 }
 0x761   : > { %3642 = vrot.lane.b32.xlu2 %v12229_v13, %s5271_s11  ;;  %v3918_v13 = vsel %vm3867_vm6, %v3853_v16, %v12235_v12  ;;  %v12240_v16 = vld [vmem:[#allocation361_spill] sm:$0xff] }
 0x763   : > { %v9353_v41 = vpop.permute.xlu2 %3512  ;;  %3644 = vrot.lane.b32.xlu0 %v12231_v3, %s5271_s11  ;;  %v3983_v3 = vsel %vm3932_vm7, %v3918_v13, %v12236_v7  ;;  %v12242_v13 = vld [vmem:[#allocation413_spill] sm:$0xff] }
 0x764   : > { %12230 = vst [vmem:[#allocation192_spill] sm:$0xff] %v9353_v41  ;;  %3654 = vrot.lane.b32.xlu1 %v12232_v56, %s5271_s11  ;;  %v3852_v56 = vsel %vm3802_vm5, %v7051_v14, %v12237_v38  ;;  %v12238_v41 = vld [vmem:[#allocation411_spill] sm:$0xff] }
 0x765   : > { %v9359_v57 = vpop.permute.xlu0 %3496  ;;  %v3917_v2 = vsel %vm3867_vm6, %v3852_v56, %v12239_v47 }
 0x766   : > { %12233 = vst [vmem:[#allocation207_spill] sm:$0xff] %v9359_v57  ;;  %v9364_v1 = vpop.permute.xlu1 %3510  ;;  %v4047_v57 = vsel %vm273_vm0, %v3983_v3, %v12238_v41  ;;  %v3982_v7 = vsel %vm3932_vm7, %v3917_v2, %v12240_v16  ;;  %v12241_v41 = vld [vmem:[#allocation210_spill] sm:$0xff] }
 0x767   : > { %v4112_v12 = vsel %vm4061_vm8, %v4047_v57, %v8877_v8 }
 0x768   : > { %v4177_v14 = vsel %vm4126_vm9, %v4112_v12, %v9112_v32  ;;  %v12243_v32 = vld [vmem:[#allocation209_spill] sm:$0xff]  ;;  %v12244_v12 = vld [vmem:[#allocation319_spill] sm:$0xff] }
 0x769   : > { %3700 = vrot.lane.b32.xlu2 %v11989_v44, %s5271_s11  ;;  %v4046_v44 = vsel %vm273_vm0, %v3982_v7, %v12242_v13  ;;  %v3856_v56 = vsel %vm3802_vm5, %v12059_v30, %v12243_v32  ;;  %v12248_v13 = vld [vmem:[#allocation309_spill] sm:$0xff] }
 0x76a   : > { %v4111_v8 = vsel %vm4061_vm8, %v4046_v44, %v8835_v10  ;;  %v3921_v16 = vsel %vm3867_vm6, %v3856_v56, %v12244_v12  ;;  %v12246_v10 = vld [vmem:[#allocation217_spill] sm:$0xff] }
 0x76b   : > { %v3519_v38 = vpop.permute.xlu2 %3518  ;;  %3648 = vrot.lane.b32.xlu0 %v12241_v41, %s5271_s11  ;;  %v4176_v47 = vsel %vm4126_vm9, %v4111_v8, %v9134_v54  ;;  %v12247_v41 = vld [vmem:[#allocation414_spill] sm:$0xff] }
 0x76c   : > { %v9390_v3 = vsel %vm4191_vm10, %v4177_v14, %v3519_v38  ;;  %3706 = vrot.lane.b32.xlu1 %v7855_v11, %s5271_s11  ;;  %v12245_v11 = vld [vmem:[#allocation359_spill] sm:$0xff]  ;;  %v3855_v38 = vsel %vm3802_vm5, %v12047_v49, %v12246_v10  ;;  %v4325_v54 = vld [vmem:[%s10794_s3 + $0x20] sm:$0xf]  ;;  %v12249_v49 = vld [vmem:[#allocation364_spill] sm:$0xff] }
 0x76d   : > { %v9396_v57 = vpop.permute.xlu0 %3502  ;;  %v3986_v14 = vsel %vm3932_vm7, %v3921_v16, %v12245_v11  ;;  %v3920_v44 = vsel %vm3867_vm6, %v3855_v38, %v12248_v13  ;;  %5048 = vmatpush.msk.msra.mxu0 %vm4523_vm11, %v4325_v54  ;;  %5118 = vmatpush.msk.msra.mxu3 %vm4523_vm11, %v4325_v54 }
 0x76e   : > { %v3517_v2 = vpop.permute.xlu1 %3516  ;;  %v4050_v30 = vsel %vm273_vm0, %v3986_v14, %v12247_v41  ;;  %v3985_v32 = vsel %vm3932_vm7, %v3920_v44, %v12249_v49  ;;  %5116 = vmatpush.msk.msrb.mxu1 %vm4523_vm11, %v4325_v54  ;;  %v12252_v14 = vld [vmem:[#allocation214_spill] sm:$0xff]  ;;  %5117 = vmatpush.msk.msra.mxu2 %vm4523_vm11, %v4325_v54 }
 0x76f   : > { %v9406_v7 = vsel %vm4191_vm10, %v4176_v47, %v3517_v2  ;;  %v4115_v8 = vsel %vm4061_vm8, %v4050_v30, %v8889_v29  ;;  %v12250_v47 = vld [vmem:[#allocation225_spill] sm:$0xff]  ;;  %v12251_v29 = vld [vmem:[#allocation416_spill] sm:$0xff]  ;;  %v3859_v10 = vsel %vm3802_vm5, %v12064_v42, %v12252_v14  ;;  %v12253_v30 = vld [vmem:[#allocation322_spill] sm:$0xff] }
 0x770   : > { %v4324_v2 = vld [vmem:[%s10794_s3 + $0x18] sm:$0xff]  ;;  %v4049_v12 = vsel %vm273_vm0, %v3985_v32, %v12251_v29  ;;  %v3924_v13 = vsel %vm3867_vm6, %v3859_v10, %v12253_v30  ;;  %v12260_v14 = vld [vmem:[#allocation419_spill] sm:$0xff] }
 0x771   : > { %3702 = vrot.lane.b32.xlu2 %v11991_v45, %s5271_s11  ;;  %v4180_v45 = vsel %vm4126_vm9, %v4115_v8, %v9124_v50  ;;  %4539 = vmatpush.msra.mxu0 %v4324_v2  ;;  %v4114_v50 = vsel %vm4061_vm8, %v4049_v12, %v8847_v26  ;;  %v4322_v26 = vld [vmem:[%s10794_s3 + $0x8] sm:$0xff]  ;;  %v12255_v8 = vld [vmem:[#allocation228_spill] sm:$0xff]  ;;  %v12256_v32 = vld [vmem:[#allocation417_spill] sm:$0xff] }
 0x772   : > { %5121 = vmatpush.msra.mxu3 %v4324_v2  ;;  %5119 = vmatpush.msrb.mxu1 %v4324_v2  ;;  %v4179_v38 = vsel %vm4126_vm9, %v4114_v50, %v9146_v61  ;;  %v12254_v61 = vld [vmem:[#allocation362_spill] sm:$0xff]  ;;  %v3858_v49 = vsel %vm3802_vm5, %v12052_v24, %v12255_v8  ;;  %v12258_v24 = vld [vmem:[#allocation367_spill] sm:$0xff]  ;;  %v12259_v50 = vld [vmem:[#allocation229_spill] sm:$0xff] }
 0x773   : > { %v3525_v56 = vpop.permute.xlu2 %3524  ;;  %3652 = vrot.lane.b32.xlu0 %v12250_v47, %s5271_s11  ;;  %v3989_v42 = vsel %vm3932_vm7, %v3924_v13, %v12254_v61  ;;  %5120 = vmatpush.msra.mxu2 %v4324_v2 }
 0x774   : > { %v9439_v16 = vsel %vm4191_vm10, %v4180_v45, %v3525_v56  ;;  %3708 = vrot.lane.b32.xlu1 %v11995_v6, %s5271_s11  ;;  %v4323_v6 = vld [vmem:[%s10794_s3 + $0x10] sm:$0xff]  ;;  %v4053_v54 = vsel %vm273_vm0, %v3989_v42, %v12256_v32  ;;  %v4321_v45 = vld [vmem:[%s10794_s3] sm:$0xff]  ;;  %v12262_v42 = vld [vmem:[#allocation325_spill] sm:$0xff] }
 0x775   : > { %v9445_v11 = vpop.permute.xlu0 %3508  ;;  %4540 = vmatpush.msra.mxu0 %v4323_v6  ;;  %5124 = vmatpush.msra.mxu3 %v4323_v6  ;;  %v12257_v56 = vld [vmem:[#allocation312_spill] sm:$0xff]  ;;  %v4118_v2 = vsel %vm4061_vm8, %v4053_v54, %v8901_v28  ;;  %v12265_v54 = vld [vmem:[#allocation223_spill] sm:$0xff] }
 0x776   : > { %v3523_v41 = vpop.permute.xlu1 %3522  ;;  %5122 = vmatpush.msrb.mxu1 %v4323_v6  ;;  %v3923_v47 = vsel %vm3867_vm6, %v3858_v49, %v12257_v56  ;;  %v4183_v12 = vsel %vm4126_vm9, %v4118_v2, %v9136_v60  ;;  %5123 = vmatpush.msra.mxu2 %v4323_v6  ;;  %v12261_v60 = vld [vmem:[#allocation226_spill] sm:$0xff]  ;;  %v12264_v6 = vld [vmem:[#allocation365_spill] sm:$0xff] }
 0x777   : > { %v9462_v44 = vsel %vm4191_vm10, %v4179_v38, %v3523_v41  ;;  %4541 = vmatpush.msra.mxu0 %v4322_v26  ;;  %5127 = vmatpush.msra.mxu3 %v4322_v26  ;;  %v3988_v29 = vsel %vm3932_vm7, %v3923_v47, %v12258_v24  ;;  %v3862_v30 = vsel %vm3802_vm5, %v7183_v21, %v12261_v60  ;;  %v12267_v2 = vld [vmem:[#allocation230_spill] sm:$0xff] }
 0x778   : > { %5125 = vmatpush.msrb.mxu1 %v4322_v26  ;;  %v4052_v10 = vsel %vm273_vm0, %v3988_v29, %v12260_v14  ;;  %v3927_v8 = vsel %vm3867_vm6, %v3862_v30, %v12262_v42  ;;  %5126 = vmatpush.msra.mxu2 %v4322_v26  ;;  %v3861_v21 = vsel %vm3802_vm5, %v7196_v48, %v12265_v54  ;;  %v12268_v26 = vld [vmem:[#allocation315_spill] sm:$0xff]  ;;  %v12269_v24 = vld [vmem:[#allocation354_spill] sm:$0xff]  ;;  %v12277_v54 = vld [vmem:[#allocation368_spill] sm:$0xff] }
 0x779   : > { %3704 = vrot.lane.b32.xlu2 %v7849_v35, %s5271_s11  ;;  %4542 = vmatpush.msra.mxu0 %v4321_v45  ;;  %v4117_v28 = vsel %vm4061_vm8, %v4052_v10, %v8859_v46  ;;  %v12263_v46 = vld [vmem:[#allocation239_spill] sm:$0xff]  ;;  %v3992_v32 = vsel %vm3932_vm7, %v3927_v8, %v12264_v6  ;;  %v12270_v48 = vld [vmem:[#allocation370_spill] sm:$0xff]  ;;  %v12275_v6 = vld [vmem:[#allocation328_spill] sm:$0xff] }
 0x77a   : > { %5130 = vmatpush.msra.mxu3 %v4321_v45  ;;  %5128 = vmatpush.msrb.mxu1 %v4321_v45  ;;  %v4182_v13 = vsel %vm4126_vm9, %v4117_v28, %v9158_v0  ;;  %v3854_v49 = vsel %vm3802_vm5, %v12056_v33, %v12263_v46  ;;  %v12266_v0 = vld [vmem:[#allocation311_spill] sm:$0xff]  ;;  %v4056_v47 = vsel %vm273_vm0, %v3992_v32, %v8602_v4  ;;  %v12273_v28 = vld [vmem:[#allocation421_spill] sm:$0xff]  ;;  %v12276_v32 = vld [vmem:[#allocation222_spill] sm:$0xff] }
 0x77b   : > { %v3531_v35 = vpop.permute.xlu2 %3530  ;;  %3656 = vrot.lane.b32.xlu0 %v12259_v50, %s5271_s11  ;;  %v3919_v56 = vsel %vm3867_vm6, %v3854_v49, %v12266_v0  ;;  %5129 = vmatpush.msra.mxu2 %v4321_v45  ;;  %v3926_v33 = vsel %vm3867_vm6, %v3861_v21, %v12268_v26  ;;  %v12271_v50 = vld [vmem:[#allocation420_spill] sm:$0xff]  ;;  %v12272_v45 = vld [vmem:[#allocation221_spill] sm:$0xff]  ;;  %v12274_v42 = vld [vmem:[#allocation231_spill] sm:$0xff] }
 0x77c   : > { %v9489_v38 = vsel %vm4191_vm10, %v4183_v12, %v3531_v35  ;;  %3710 = vrot.lane.b32.xlu1 %v7873_v34, %s5271_s11  ;;  %v3984_v29 = vsel %vm3932_vm7, %v3919_v56, %v12269_v24  ;;  %v4121_v12 = vsel %vm4061_vm8, %v4056_v47, %v8913_v59  ;;  %v3991_v35 = vsel %vm3932_vm7, %v3926_v33, %v12270_v48  ;;  %v12278_v21 = vld [vmem:[#allocation234_spill] sm:$0xff] }
 0x77d   : > { %v9495_v41 = vpop.permute.xlu0 %3514  ;;  %v4048_v14 = vsel %vm273_vm0, %v3984_v29, %v12271_v50  ;;  %v4186_v4 = vsel %vm4126_vm9, %v4121_v12, %v9148_v37  ;;  %v4055_v60 = vsel %vm273_vm0, %v3991_v35, %v12273_v28  ;;  %v3865_v8 = vsel %vm3802_vm5, %v7274_v31, %v12274_v42  ;;  %v12279_v0 = vld [vmem:[#allocation314_spill] sm:$0xff]  ;;  %v12283_v12 = vld [vmem:[#allocation373_spill] sm:$0xff]  ;;  %v12288_v42 = vld [vmem:[#allocation27_spill] sm:$0xff] }
 0x77e   : > { %v3529_v61 = vpop.permute.xlu1 %3528  ;;  %v4113_v30 = vsel %vm4061_vm8, %v4048_v14, %v8855_v62  ;;  %v12281_v26 = vld [vmem:[#allocation318_spill] sm:$0xff]  ;;  %v12285_v14 = vld [vmem:[#allocation247_spill] sm:$0xff] }
 0x77f   : > { %v9505_v34 = vsel %vm4191_vm10, %v4182_v13, %v3529_v61  ;;  %v4120_v13 = vsel %vm4061_vm8, %v4055_v60, %v8871_v15  ;;  %v4178_v37 = vsel %vm4126_vm9, %v4113_v30, %v9104_v55  ;;  %v3857_v55 = vsel %vm3802_vm5, %v12061_v17, %v12276_v32  ;;  %v12282_v17 = vld [vmem:[#allocation357_spill] sm:$0xff]  ;;  %v12284_v48 = vld [vmem:[#allocation422_spill] sm:$0xff] }
 0x780   : > { %v4185_v62 = vsel %vm4126_vm9, %v4120_v13, %v9170_v27  ;;  %v3864_v27 = vsel %vm3802_vm5, %v7283_v52, %v12278_v21  ;;  %v3922_v56 = vsel %vm3867_vm6, %v3857_v55, %v12279_v0  ;;  %v12294_v32 = vld [vmem:[#allocation321_spill] sm:$0xff]  ;;  %v12296_v21 = vld [vmem:[#allocation376_spill] sm:$0xff] }
 0x781   : > { %3658 = vrot.lane.b32.xlu2 %v12267_v2, %s5271_s11  ;;  %v12280_v2 = vld [vmem:[#allocation235_spill] sm:$0xff]  ;;  %v3929_v33 = vsel %vm3867_vm6, %v3864_v27, %v12281_v26  ;;  %v3987_v24 = vsel %vm3932_vm7, %v3922_v56, %v12282_v17  ;;  %v12297_v0 = vld [vmem:[#allocation425_spill] sm:$0xff]  ;;  %v12299_v26 = vld [vmem:[#allocation426_spill] sm:$0xff] }
 0x782   : > { %v3994_v52 = vsel %vm3932_vm7, %v3929_v33, %v12283_v12  ;;  %v4051_v35 = vsel %vm273_vm0, %v3987_v24, %v12284_v48  ;;  %v12300_v17 = vld [vmem:[#allocation477_spill] sm:$0xff]  ;;  %v12302_v12 = vld [vmem:[#allocation479_spill] sm:$0xff] }
 0x783   : > { %v3537_v10 = vpop.permute.xlu2 %3536  ;;  %3660 = vrot.lane.b32.xlu0 %v12272_v45, %s5271_s11  ;;  %v4116_v45 = vsel %vm4061_vm8, %v4051_v35, %v8867_v43  ;;  %v12303_v48 = vld [vmem:[#allocation111_spill] sm:$0xff] }
 0x784   : > { %v9540_v59 = vsel %vm4191_vm10, %v4186_v4, %v3537_v10  ;;  %3712 = vrot.lane.b32.xlu1 %v7878_v18, %s5271_s11  ;;  %v3930_v18 = vsel %vm3867_vm6, %v3865_v8, %v12275_v6  ;;  %v12286_v4 = vld [vmem:[#allocation423_spill] sm:$0xff]  ;;  %v12289_v8 = vld [vmem:[#allocation28_spill] sm:$0xff]  ;;  %v12292_v6 = vld [vmem:[#allocation317_spill] sm:$0xff] }
 0x785   : > { %v3521_v61 = vpop.permute.xlu0 %3520  ;;  %v3995_v31 = vsel %vm3932_vm7, %v3930_v18, %v12277_v54  ;;  %v4058_v10 = vsel %vm273_vm0, %v3994_v52, %v12286_v4  ;;  %v12293_v18 = vld [vmem:[#allocation236_spill] sm:$0xff] }
 0x786   : > { %v9554_v46 = vsel %vm4191_vm10, %v4178_v37, %v3521_v61  ;;  %v3535_v49 = vpop.permute.xlu1 %3534  ;;  %v4059_v47 = vsel %vm273_vm0, %v3995_v31, %v8614_v51  ;;  %v4123_v28 = vsel %vm4061_vm8, %v4058_v10, %v8883_v63  ;;  %v12287_v61 = vld [vmem:[#allocation128_spill] sm:$0xff]  ;;  %v12290_v63 = vld [vmem:[#allocation143_spill] sm:$0xff] }
 0x787   : > { %v9559_v15 = vsel %vm4191_vm10, %v4185_v62, %v3535_v49  ;;  %v4124_v29 = vsel %vm4061_vm8, %v4059_v47, %v8925_v53  ;;  %v4188_v30 = vsel %vm4126_vm9, %v4123_v28, %v9182_v22  ;;  %v3860_v62 = vsel %vm3802_vm5, %v12290_v63, %v12289_v8  ;;  %v12295_v54 = vld [vmem:[#allocation360_spill] sm:$0xff]  ;;  %v12305_v28 = vld [vmem:[#allocation113_spill] sm:$0xff] }
 0x788   : > { %v4189_v51 = vsel %vm4126_vm9, %v4124_v29, %v9160_v9  ;;  %v4181_v9 = vsel %vm4126_vm9, %v4116_v45, %v9116_v19  ;;  %v12291_v19 = vld [vmem:[#allocation240_spill] sm:$0xff]  ;;  %v3925_v22 = vsel %vm3867_vm6, %v3860_v62, %v12292_v6  ;;  %v12301_v29 = vld [vmem:[#allocation241_spill] sm:$0xff]  ;;  %v12311_v62 = vld [vmem:[#allocation227_spill] sm:$0xff] }
 0x789   : > { %3662 = vrot.lane.b32.xlu2 %v12280_v2, %s5271_s11  ;;  %v3990_v31 = vsel %vm3932_vm7, %v3925_v22, %v12295_v54  ;;  %v12298_v2 = vld [vmem:[#allocation248_spill] sm:$0xff]  ;;  %v12313_v6 = vld [vmem:[#allocation363_spill] sm:$0xff] }
 0x78a   : > { %v4054_v56 = vsel %vm273_vm0, %v3990_v31, %v12297_v0  ;;  %v12310_v8 = vld [vmem:[#allocation320_spill] sm:$0xff] }
 0x78b   : > { %v3543_v50 = vpop.permute.xlu2 %3542  ;;  %3674 = vrot.lane.b32.xlu0 %v12285_v14, %s5271_s11  ;;  %v4119_v24 = vsel %vm4061_vm8, %v4054_v56, %v12300_v17  ;;  %v12318_v56 = vld [vmem:[#allocation478_spill] sm:$0xff] }
 0x78c   : > { %v9594_v53 = vsel %vm4191_vm10, %v4189_v51, %v3543_v50  ;;  %3714 = vrot.lane.b32.xlu1 %v7837_v39, %s5271_s11  ;;  %v3803_v39 = vsel %vm3802_vm5, %v12288_v42, %v12287_v61  ;;  %v4184_v35 = vsel %vm4126_vm9, %v4119_v24, %v12303_v48  ;;  %v12304_v50 = vld [vmem:[#allocation75_spill] sm:$0xff]  ;;  %v12309_v42 = vld [vmem:[#allocation237_spill] sm:$0xff] }
 0x78d   : > { %v3527_v60 = vpop.permute.xlu0 %3526  ;;  %v3868_v49 = vsel %vm3867_vm6, %v3803_v39, %v12291_v19  ;;  %v12312_v19 = vld [vmem:[#allocation331_spill] sm:$0xff]  ;;  %v12321_v24 = vld [vmem:[#allocation93_spill] sm:$0xff] }
 0x78e   : > { %v9605_v13 = vsel %vm4191_vm10, %v4181_v9, %v3527_v60  ;;  %v3541_v43 = vpop.permute.xlu1 %3540  ;;  %v3933_v55 = vsel %vm3932_vm7, %v3868_v49, %v12294_v32  ;;  %v12306_v9 = vld [vmem:[#allocation26_spill] sm:$0xff] }
 0x78f   : > { %v9608_v37 = vsel %vm4191_vm10, %v4188_v30, %v3541_v43  ;;  %v3997_v27 = vsel %vm273_vm0, %v3933_v55, %v12296_v21  ;;  %v3804_v60 = vsel %vm3802_vm5, %v12306_v9, %v12305_v28  ;;  %v12307_v30 = vld [vmem:[#allocation245_spill] sm:$0xff]  ;;  %v12315_v55 = vld [vmem:[#allocation428_spill] sm:$0xff]  ;;  %v12316_v21 = vld [vmem:[#allocation238_spill] sm:$0xff] }
 0x790   : > { %v4062_v33 = vsel %vm4061_vm8, %v3997_v27, %v12299_v26  ;;  %v12308_v43 = vld [vmem:[#allocation161_spill] sm:$0xff]  ;;  %v3869_v39 = vsel %vm3867_vm6, %v3804_v60, %v12309_v42  ;;  %v12317_v27 = vld [vmem:[#allocation424_spill] sm:$0xff]  ;;  %v12319_v26 = vld [vmem:[#allocation242_spill] sm:$0xff] }
 0x791   : > { %3664 = vrot.lane.b32.xlu2 %v12293_v18, %s5271_s11  ;;  %v4127_v52 = vsel %vm4126_vm9, %v4062_v33, %v12302_v12  ;;  %v3863_v61 = vsel %vm3802_vm5, %v12308_v43, %v12307_v30  ;;  %v3934_v49 = vsel %vm3932_vm7, %v3869_v39, %v12312_v19  ;;  %v12314_v18 = vld [vmem:[#allocation371_spill] sm:$0xff]  ;;  %v12326_v60 = vld [vmem:[#allocation253_spill] sm:$0xff]  ;;  %v12327_v30 = vld [vmem:[#allocation366_spill] sm:$0xff] }
 0x792   : > { %v4192_v14 = vsel %vm4191_vm10, %v4127_v52, %v12304_v50  ;;  %v3928_v63 = vsel %vm3867_vm6, %v3863_v61, %v12310_v8  ;;  %v3998_v32 = vsel %vm273_vm0, %v3934_v49, %v12314_v18  ;;  %v12320_v33 = vld [vmem:[#allocation131_spill] sm:$0xff]  ;;  %v12330_v8 = vld [vmem:[#allocation480_spill] sm:$0xff] }
 0x793   : > { %v3613_v47 = vpop.permute.xlu2 %3612  ;;  %3676 = vrot.lane.b32.xlu0 %v12298_v2, %s5271_s11  ;;  %v3993_v22 = vsel %vm3932_vm7, %v3928_v63, %v12313_v6  ;;  %v4063_v0 = vsel %vm4061_vm8, %v3998_v32, %v12317_v27  ;;  %v12322_v52 = vld [vmem:[#allocation99_spill] sm:$0xff]  ;;  %v12333_v32 = vld [vmem:[#allocation25_spill] sm:$0xff] }
 0x794   : > { %3668 = vrot.lane.b32.xlu1 %v12301_v29, %s5271_s11  ;;  %v4057_v54 = vsel %vm273_vm0, %v3993_v22, %v12315_v55  ;;  %v4128_v17 = vsel %vm4126_vm9, %v4063_v0, %v12320_v33  ;;  %v12325_v28 = vld [vmem:[#allocation323_spill] sm:$0xff]  ;;  %v12334_v55 = vld [vmem:[#allocation40_spill] sm:$0xff]  ;;  %v12336_v0 = vld [vmem:[#allocation326_spill] sm:$0xff] }
 0x795   : > { %v3533_v51 = vpop.permute.xlu0 %3532  ;;  %v4122_v2 = vsel %vm4061_vm8, %v4057_v54, %v12318_v56  ;;  %v4193_v48 = vsel %vm4191_vm10, %v4128_v17, %v12322_v52  ;;  %v12328_v61 = vld [vmem:[#allocation431_spill] sm:$0xff]  ;;  %v3805_v54 = vsel %vm3802_vm5, %v12334_v55, %v12333_v32  ;;  %v12339_v17 = vld [vmem:[#allocation434_spill] sm:$0xff]  ;;  %v12351_v55 = vld [vmem:[#allocation277_spill] sm:$0xff] }
 0x796   : > { %v9645_v4 = vsel %vm4191_vm10, %v4184_v35, %v3533_v51  ;;  %v3611_v10 = vpop.permute.xlu1 %3610  ;;  %v4187_v29 = vsel %vm4126_vm9, %v4122_v2, %v12321_v24  ;;  %v4258_v50 = vsel %vm4256_vm13, %v4193_v48, %v3613_v47  ;;  %v12329_v47 = vld [vmem:[#allocation283_spill] sm:$0xff]  ;;  %v12337_v2 = vld [vmem:[#allocation254_spill] sm:$0xff] }
 0x797   : > { %v4257_v45 = vsel %vm4256_vm13, %v4192_v14, %v3611_v10  ;;  %v12323_v14 = vld [vmem:[#allocation251_spill] sm:$0xff]  ;;  %v12324_v10 = vld [vmem:[#allocation164_spill] sm:$0xff]  ;;  %v12341_v52 = vld [vmem:[#allocation126_spill] sm:$0xff] }
 0x798   : > { %5049 = vmatmul.msk.f32.vlgmr.msra.gmra.mxu0 %vm4330_vm12, %v4257_v45  ;;  %v3866_v45 = vsel %vm3802_vm5, %v12324_v10, %v12323_v14  ;;  %v12332_v19 = vld [vmem:[#allocation23_spill] sm:$0xff]  ;;  %v12343_v14 = vld [vmem:[#allocation153_spill] sm:$0xff] }
 0x799   : > { %3666 = vrot.lane.b32.xlu2 %v12311_v62, %s5271_s11  ;;  %v3931_v9 = vsel %vm3867_vm6, %v3866_v45, %v12325_v28  ;;  %v12331_v62 = vld [vmem:[#allocation259_spill] sm:$0xff] }
 0x79a   : > { %v3996_v43 = vsel %vm3932_vm7, %v3931_v9, %v12327_v30  ;;  %v12345_v30 = vld [vmem:[#allocation58_spill] sm:$0xff] }
 0x79b   : > { %v9669_v31 = vpop.permute.xlu2 %3618  ;;  %3678 = vrot.lane.b32.xlu0 %v12316_v21, %s5271_s11  ;;  %v4060_v42 = vsel %vm273_vm0, %v3996_v43, %v12328_v61  ;;  %v12335_v21 = vld [vmem:[#allocation257_spill] sm:$0xff]  ;;  %v12346_v61 = vld [vmem:[#allocation246_spill] sm:$0xff] }
 0x79c   : > { %3670 = vrot.lane.b32.xlu1 %v12319_v26, %s5271_s11  ;;  %v4125_v63 = vsel %vm4061_vm8, %v4060_v42, %v12330_v8  ;;  %v3870_v27 = vsel %vm3867_vm6, %v3805_v54, %v12335_v21  ;;  %v12338_v26 = vld [vmem:[#allocation369_spill] sm:$0xff] }
 0x79d   : > { %v3539_v12 = vpop.permute.xlu0 %3538  ;;  %v4190_v49 = vsel %vm4126_vm9, %v4125_v63, %v12332_v19  ;;  %v3935_v56 = vsel %vm3932_vm7, %v3870_v27, %v12336_v0  ;;  %v12348_v63 = vld [vmem:[#allocation244_spill] sm:$0xff]  ;;  %v12352_v54 = vld [vmem:[#allocation481_spill] sm:$0xff]  ;;  %v12353_v27 = vld [vmem:[#allocation451_spill] sm:$0xff] }
 0x79e   : > { %v9686_v35 = vsel %vm4191_vm10, %v4187_v29, %v3539_v12  ;;  %v3617_v51 = vpop.permute.xlu1 %3616  ;;  %v3999_v33 = vsel %vm273_vm0, %v3935_v56, %v12338_v26  ;;  %v12340_v12 = vld [vmem:[#allocation284_spill] sm:$0xff] }
 0x79f   : > { %v4064_v24 = vsel %vm4061_vm8, %v3999_v33, %v12339_v17  ;;  %v12354_v33 = vld [vmem:[#allocation24_spill] sm:$0xff]  ;;  %v12355_v17 = vld [vmem:[#allocation43_spill] sm:$0xff] }
 0x7a0   : > { %5050 = vmatmul.msk.f32.gmra.mxu0 %vm4330_vm12, %v4258_v50  ;;  %v4129_v48 = vsel %vm4126_vm9, %v4064_v24, %v12341_v52  ;;  %v12342_v50 = vld [vmem:[#allocation260_spill] sm:$0xff]  ;;  %v3807_v24 = vsel %vm3802_vm5, %v12355_v17, %v12354_v33  ;;  %v12371_v17 = vld [vmem:[#allocation263_spill] sm:$0xff] }
 0x7a1   : > { %3680 = vrot.lane.b32.xlu2 %v12326_v60, %s5271_s11  ;;  %v4194_v10 = vsel %vm4191_vm10, %v4129_v48, %v12343_v14  ;;  %v12344_v60 = vld [vmem:[#allocation136_spill] sm:$0xff]  ;;  %v12357_v48 = vld [vmem:[#allocation334_spill] sm:$0xff] }
 0x7a2   : > { %v3806_v43 = vsel %vm3802_vm5, %v12345_v30, %v12344_v60  ;;  %v12358_v14 = vld [vmem:[#allocation268_spill] sm:$0xff]  ;;  %v12362_v30 = vld [vmem:[#allocation137_spill] sm:$0xff] }
 0x7a3   : > { %v9701_v39 = vpop.permute.xlu2 %3624  ;;  %3716 = vrot.lane.b32.xlu0 %v12329_v47, %s5271_s11  ;;  %v3871_v42 = vsel %vm3867_vm6, %v3806_v43, %v12346_v61  ;;  %v12347_v47 = vld [vmem:[#allocation324_spill] sm:$0xff] }
 0x7a4   : > { %3686 = vrot.lane.b32.xlu1 %v12331_v62, %s5271_s11  ;;  %v3936_v8 = vsel %vm3932_vm7, %v3871_v42, %v12347_v47  ;;  %v12349_v62 = vld [vmem:[#allocation379_spill] sm:$0xff]  ;;  %v12361_v60 = vld [vmem:[#allocation232_spill] sm:$0xff] }
 0x7a5   : > { %v3545_v6 = vpop.permute.xlu0 %3544  ;;  %v4000_v19 = vsel %vm273_vm0, %v3936_v8, %v12349_v62  ;;  %v12363_v61 = vld [vmem:[#allocation444_spill] sm:$0xff]  ;;  %v12364_v42 = vld [vmem:[#allocation211_spill] sm:$0xff] }
 0x7a6   : > { %v9712_v22 = vsel %vm4191_vm10, %v4190_v49, %v3545_v6  ;;  %v9714_v18 = vpop.permute.xlu1 %3622  ;;  %v12350_v49 = vld [vmem:[#allocation429_spill] sm:$0xff]  ;;  %v12365_v47 = vld [vmem:[#allocation119_spill] sm:$0xff] }
 0x7a7   : > { %v4065_v6 = vsel %vm4061_vm8, %v4000_v19, %v12350_v49  ;;  %v3848_v8 = vsel %vm3802_vm5, %v12365_v47, %v12364_v42  ;;  %v12367_v49 = vld [vmem:[#allocation305_spill] sm:$0xff]  ;;  %v12379_v47 = vld [vmem:[#allocation250_spill] sm:$0xff] }
 0x7a8   : > { %v4130_v21 = vsel %vm4126_vm9, %v4065_v6, %v12352_v54  ;;  %v3913_v6 = vsel %vm3867_vm6, %v3848_v8, %v12367_v49  ;;  %v12380_v8 = vld [vmem:[#allocation135_spill] sm:$0xff] }
 0x7a9   : > { %3682 = vrot.lane.b32.xlu2 %v12337_v2, %s5271_s11  ;;  %v4195_v0 = vsel %vm4191_vm10, %v4130_v21, %v9206_v36  ;;  %v12359_v36 = vld [vmem:[#allocation374_spill] sm:$0xff]  ;;  %v12368_v21 = vld [vmem:[#allocation117_spill] sm:$0xff]  ;;  %v12381_v49 = vld [vmem:[#allocation271_spill] sm:$0xff] }
 0x7aa   : > { %v4260_v2 = vsel %vm4256_vm13, %v4195_v0, %v3617_v51 }
 0x7ab   : > { %v9729_v29 = vpop.permute.xlu2 %3630  ;;  %3718 = vrot.lane.b32.xlu0 %v12340_v12, %s5271_s11  ;;  %v12356_v12 = vld [vmem:[#allocation243_spill] sm:$0xff] }
 0x7ac   : > { %3688 = vrot.lane.b32.xlu1 %v12342_v50, %s5271_s11  ;;  %v3872_v52 = vsel %vm3867_vm6, %v3807_v24, %v12356_v12  ;;  %v12372_v12 = vld [vmem:[#allocation415_spill] sm:$0xff] }
 0x7ad   : > { %v3615_v45 = vpop.permute.xlu0 %3614  ;;  %v3937_v50 = vsel %vm3932_vm7, %v3872_v52, %v12357_v48  ;;  %v12373_v48 = vld [vmem:[#allocation329_spill] sm:$0xff] }
 0x7ae   : > { %v4259_v28 = vsel %vm4256_vm13, %v4194_v10, %v3615_v45  ;;  %v9740_v9 = vpop.permute.xlu1 %3628  ;;  %v4001_v51 = vsel %vm273_vm0, %v3937_v50, %v12359_v36  ;;  %v12360_v10 = vld [vmem:[#allocation427_spill] sm:$0xff]  ;;  %v12374_v50 = vld [vmem:[#allocation472_spill] sm:$0xff]  ;;  %v12375_v36 = vld [vmem:[#allocation450_spill] sm:$0xff] }
 0x7af   : > { %5051 = vmatmul.msk.f32.gmra.mxu0 %vm4330_vm12, %v4259_v28  ;;  %v4066_v45 = vsel %vm4061_vm8, %v4001_v51, %v12360_v10  ;;  %v12376_v51 = vld [vmem:[#allocation372_spill] sm:$0xff] }
 0x7b0   : > { %v4131_v43 = vsel %vm4126_vm9, %v4066_v45, %v12362_v30  ;;  %v12377_v45 = vld [vmem:[#allocation74_spill] sm:$0xff]  ;;  %v12378_v30 = vld [vmem:[#allocation437_spill] sm:$0xff] }
 0x7b1   : > { %3684 = vrot.lane.b32.xlu2 %v12348_v63, %s5271_s11  ;;  %v12366_v63 = vld [vmem:[#allocation73_spill] sm:$0xff] }
 0x7b2   : > { %v4196_v62 = vsel %vm4191_vm10, %v4131_v43, %v12366_v63 }
 0x7b3   : > { %v9756_v32 = vpop.permute.xlu2 %3636  ;;  %3720 = vrot.lane.b32.xlu0 %v12351_v55, %s5271_s11  ;;  %v4261_v55 = vsel %vm4256_vm13, %v4196_v62, %v9669_v31 }
 0x7b4   : > { %3726 = vrot.lane.b32.xlu1 %v12353_v27, %s5271_s11  ;;  %v12369_v27 = vld [vmem:[#allocation42_spill] sm:$0xff] }
 0x7b5   : > { %v3621_v56 = vpop.permute.xlu0 %3620  ;;  %v3808_v0 = vsel %vm3802_vm5, %v12369_v27, %v12368_v21  ;;  %v12384_v27 = vld [vmem:[#allocation109_spill] sm:$0xff] }
 0x7b6   : > { %v9767_v26 = vpop.permute.xlu1 %3634  ;;  %v3873_v24 = vsel %vm3867_vm6, %v3808_v0, %v12371_v17 }
 0x7b7   : > { %5052 = vmatmul.msk.f32.gmra.mxu0 %vm4330_vm12, %v4260_v2  ;;  %v12370_v2 = vld [vmem:[#allocation348_spill] sm:$0xff]  ;;  %v3938_v31 = vsel %vm3932_vm7, %v3873_v24, %v12373_v48  ;;  %v12387_v24 = vld [vmem:[#allocation303_spill] sm:$0xff] }
 0x7b8   : > { %v3978_v33 = vsel %vm3932_vm7, %v3913_v6, %v12370_v2  ;;  %v4002_v10 = vsel %vm273_vm0, %v3938_v31, %v12376_v51  ;;  %v12382_v6 = vld [vmem:[#allocation206_spill] sm:$0xff]  ;;  %v12385_v2 = vld [vmem:[#allocation129_spill] sm:$0xff] }
 0x7b9   : > { %3722 = vrot.lane.b32.xlu2 %v12358_v14, %s5271_s11  ;;  %v4042_v52 = vsel %vm273_vm0, %v3978_v33, %v12372_v12  ;;  %v4067_v43 = vsel %vm4061_vm8, %v4002_v10, %v12378_v30  ;;  %v12386_v33 = vld [vmem:[#allocation37_spill] sm:$0xff]  ;;  %v12388_v31 = vld [vmem:[#allocation142_spill] sm:$0xff]  ;;  %v12392_v30 = vld [vmem:[#allocation252_spill] sm:$0xff] }
 0x7ba   : > { %v4107_v14 = vsel %vm4061_vm8, %v4042_v52, %v12374_v50  ;;  %v4132_v63 = vsel %vm4126_vm9, %v4067_v43, %v12380_v8  ;;  %v3813_v17 = vsel %vm3802_vm5, %v12386_v33, %v12385_v2  ;;  %v12389_v50 = vld [vmem:[#allocation39_spill] sm:$0xff]  ;;  %v12391_v10 = vld [vmem:[#allocation358_spill] sm:$0xff]  ;;  %v12400_v2 = vld [vmem:[#allocation433_spill] sm:$0xff] }
 0x7bb   : > { %v9783_v28 = vpop.permute.xlu2 %3642  ;;  %3672 = vrot.lane.b32.xlu0 %v12361_v60, %s5271_s11  ;;  %v4172_v60 = vsel %vm4126_vm9, %v4107_v14, %v12377_v45  ;;  %v4197_v0 = vsel %vm4191_vm10, %v4132_v63, %v12384_v27  ;;  %v3809_v14 = vsel %vm3802_vm5, %v12389_v50, %v12388_v31  ;;  %v12395_v8 = vld [vmem:[#allocation327_spill] sm:$0xff]  ;;  %v12399_v27 = vld [vmem:[#allocation382_spill] sm:$0xff]  ;;  %v12403_v31 = vld [vmem:[#allocation488_spill] sm:$0xff] }
 0x7bc   : > { %3728 = vrot.lane.b32.xlu1 %v12363_v61, %s5271_s11  ;;  %v4237_v61 = vsel %vm4191_vm10, %v4172_v60, %v9445_v11  ;;  %v4262_v52 = vsel %vm4256_vm13, %v4197_v0, %v3621_v56  ;;  %v2264_v60 = vrot.slane %v9269_v20, 2  ;;  %v3874_v43 = vsel %vm3867_vm6, %v3809_v14, %v12392_v30  ;;  %v12393_v56 = vld [vmem:[#allocation4_spill] sm:$0xff]  ;;  %v12406_v30 = vld [vmem:[#allocation54_spill] sm:$0xff] }
 0x7bd   : > { %v9796_v19 = vpop.permute.xlu0 %3626  ;;  %v3939_v63 = vsel %vm3932_vm7, %v3874_v43, %v12395_v8  ;;  %v2262_v20 = vrot.slane %v12089_v25, 2 }
 0x7be   : > { %v9802_v54 = vpop.permute.xlu1 %3640  ;;  %v4003_v0 = vsel %vm273_vm0, %v3939_v63, %v12399_v27  ;;  %v12409_v63 = vld [vmem:[#allocation313_spill] sm:$0xff] }
 0x7bf   : > { %5053 = vmatmul.msk.f32.gmra.mxu0 %vm4330_vm12, %v4261_v55  ;;  %v12383_v55 = vld [vmem:[#allocation116_spill] sm:$0xff] }
 0x7c0   : > { %v3849_v21 = vsel %vm3802_vm5, %v12383_v55, %v12382_v6  ;;  %v12397_v6 = vld [vmem:[#allocation470_spill] sm:$0xff] }
 0x7c1   : > { %3724 = vrot.lane.b32.xlu2 %v12375_v36, %s5271_s11  ;;  %v3914_v12 = vsel %vm3867_vm6, %v3849_v21, %v12387_v24  ;;  %v12390_v36 = vld [vmem:[#allocation255_spill] sm:$0xff]  ;;  %v12398_v21 = vld [vmem:[#allocation265_spill] sm:$0xff] }
 0x7c2   : > { %v3878_v51 = vsel %vm3867_vm6, %v3813_v17, %v12390_v36  ;;  %v3979_v45 = vsel %vm3932_vm7, %v3914_v12, %v12391_v10  ;;  %v12401_v17 = vld [vmem:[#allocation96_spill] sm:$0xff]  ;;  %v12404_v36 = vld [vmem:[#allocation266_spill] sm:$0xff] }
 0x7c3   : > { %v3701_v42 = vpop.permute.xlu2 %3700  ;;  %3690 = vrot.lane.b32.xlu0 %v12379_v47, %s5271_s11  ;;  %v12402_v12 = vld [vmem:[#allocation432_spill] sm:$0xff]  ;;  %v12405_v10 = vld [vmem:[#allocation482_spill] sm:$0xff] }
 0x7c4   : > { %v4302_v62 = vsel %vm4256_vm13, %v4237_v61, %v3701_v42  ;;  %3698 = vrot.lane.b32.xlu1 %v12381_v49, %s5271_s11  ;;  %v3943_v61 = vsel %vm3932_vm7, %v3878_v51, %v12393_v56  ;;  %v12394_v42 = vld [vmem:[#allocation410_spill] sm:$0xff]  ;;  %v2265_v51 = vsel %vm2075_vm4, %v2262_v20, %v2264_v60 }
 0x7c5   : > { %v9840_v11 = vpop.permute.xlu0 %3632  ;;  %5094 = vmatmul.msk.f32.vlgmr.msra.gmra.mxu3 %vm4330_vm12, %v4302_v62  ;;  %v4043_v47 = vsel %vm273_vm0, %v3979_v45, %v12394_v42  ;;  %v12396_v62 = vld [vmem:[#allocation380_spill] sm:$0xff]  ;;  %v12408_v42 = vld [vmem:[#allocation114_spill] sm:$0xff] }
 0x7c6   : > { %v9849_v48 = vpop.permute.xlu1 %3646  ;;  %v4007_v49 = vsel %vm273_vm0, %v3943_v61, %v12396_v62  ;;  %v4108_v55 = vsel %vm4061_vm8, %v4043_v47, %v12397_v6  ;;  %v12407_v61 = vld [vmem:[#allocation220_spill] sm:$0xff] }
 0x7c7   : > { %5054 = vmatmul.msk.f32.gmra.mxu0 %vm4330_vm12, %v4262_v52  ;;  %v4072_v33 = vsel %vm4061_vm8, %v4007_v49, %v12400_v2  ;;  %v4173_v24 = vsel %vm4126_vm9, %v4108_v55, %v12401_v17  ;;  %v4068_v52 = vsel %vm4061_vm8, %v4003_v0, %v12402_v12  ;;  %v2257_v49 = vrot.slane %v9004_v58, 2  ;;  %v12412_v0 = vld [vmem:[#allocation168_spill] sm:$0xff]  ;;  %v12413_v2 = vld [vmem:[#allocation62_spill] sm:$0xff]  ;;  %v12416_v12 = vld [vmem:[#allocation281_spill] sm:$0xff] }
 0x7c8   : > { %v4137_v50 = vsel %vm4126_vm9, %v4072_v33, %v12403_v31  ;;  %v4238_v25 = vsel %vm4191_vm10, %v4173_v24, %v9364_v1  ;;  %v4133_v45 = vsel %vm4126_vm9, %v4068_v52, %v12405_v10  ;;  %v3850_v1 = vsel %vm3802_vm5, %v12408_v42, %v12407_v61  ;;  %v12415_v24 = vld [vmem:[#allocation249_spill] sm:$0xff]  ;;  %v12417_v52 = vld [vmem:[#allocation408_spill] sm:$0xff] }
 0x7c9   : > { %3692 = vrot.lane.b32.xlu2 %v12398_v21, %s5271_s11  ;;  %v4202_v43 = vsel %vm4191_vm10, %v4137_v50, %v12406_v30  ;;  %v4198_v47 = vsel %vm4191_vm10, %v4133_v45, %v9218_v40  ;;  %v3915_v62 = vsel %vm3867_vm6, %v3850_v1, %v12409_v63  ;;  %v12410_v21 = vld [vmem:[#allocation148_spill] sm:$0xff]  ;;  %v12411_v40 = vld [vmem:[#allocation63_spill] sm:$0xff]  ;;  %v3810_v33 = vsel %vm3802_vm5, %v12413_v2, %v12412_v0  ;;  %v12424_v1 = vld [vmem:[#allocation46_spill] sm:$0xff] }
 0x7ca   : > { %v9906_v60 = vsel %vm4256_vm13, %v4202_v43, %v9729_v29  ;;  %v4263_v6 = vsel %vm4256_vm13, %v4198_v47, %v9714_v18  ;;  %v3820_v27 = vsel %vm3802_vm5, %v12411_v40, %v12410_v21  ;;  %v12414_v29 = vld [vmem:[#allocation353_spill] sm:$0xff]  ;;  %v3875_v58 = vsel %vm3867_vm6, %v3810_v33, %v12415_v24  ;;  %v12420_v10 = vld [vmem:[#allocation476_spill] sm:$0xff]  ;;  %v12430_v24 = vld [vmem:[#allocation122_spill] sm:$0xff] }
 0x7cb   : > { %v3703_v14 = vpop.permute.xlu2 %3702  ;;  %3694 = vrot.lane.b32.xlu0 %v12404_v36, %s5271_s11  ;;  %v3980_v17 = vsel %vm3932_vm7, %v3915_v62, %v12414_v29  ;;  %v3885_v18 = vsel %vm3867_vm6, %v3820_v27, %v12416_v12  ;;  %v2258_v50 = vrot.slane %v12085_v5, 2  ;;  %v12419_v36 = vld [vmem:[#allocation9_spill] sm:$0xff]  ;;  %v2260_v30 = vrot.slane %v12075_v23, 2  ;;  %v12421_v43 = vld [vmem:[#allocation256_spill] sm:$0xff]  ;;  %v12425_v62 = vld [vmem:[#allocation430_spill] sm:$0xff] }
 0x7cc   : > { %v4303_v56 = vsel %vm4256_vm13, %v4238_v25, %v3703_v14  ;;  %3736 = vrot.lane.b32.xlu1 %v2265_v51, %s5271_s11  ;;  %v4044_v31 = vsel %vm273_vm0, %v3980_v17, %v12417_v52  ;;  %v12418_v25 = vld [vmem:[#allocation337_spill] sm:$0xff]  ;;  %v3950_v51 = vsel %vm3932_vm7, %v3885_v18, %v12419_v36  ;;  %v12423_v42 = vld [vmem:[#allocation384_spill] sm:$0xff]  ;;  %v12431_v12 = vld [vmem:[#allocation130_spill] sm:$0xff] }
 0x7cd   : > { %v9901_v8 = vpop.permute.xlu0 %3638  ;;  %5095 = vmatmul.msk.f32.gmra.mxu3 %vm4330_vm12, %v4303_v56  ;;  %v3940_v14 = vsel %vm3932_vm7, %v3875_v58, %v12418_v25  ;;  %v4109_v45 = vsel %vm4061_vm8, %v4044_v31, %v12420_v10  ;;  %v12422_v56 = vld [vmem:[#allocation377_spill] sm:$0xff]  ;;  %v4014_v5 = vsel %vm273_vm0, %v3950_v51, %v12423_v42  ;;  %v2259_v63 = vsel %vm2075_vm4, %v2257_v49, %v2258_v50  ;;  %v12426_v21 = vld [vmem:[#allocation448_spill] sm:$0xff]  ;;  %v12434_v10 = vld [vmem:[#allocation138_spill] sm:$0xff] }
 0x7ce   : > { %v9913_v55 = vpop.permute.xlu1 %3650  ;;  %v4004_v61 = vsel %vm273_vm0, %v3940_v14, %v12422_v56  ;;  %v4174_v47 = vsel %vm4126_vm9, %v4109_v45, %v12424_v1  ;;  %v4079_v23 = vsel %vm4061_vm8, %v4014_v5, %v12426_v21  ;;  %v12427_v40 = vld [vmem:[#allocation192_spill] sm:$0xff]  ;;  %v12428_v2 = vld [vmem:[#allocation485_spill] sm:$0xff]  ;;  %v2261_v31 = vsel %vm2075_vm4, %v2258_v50, %v2260_v30  ;;  %v12432_v14 = vld [vmem:[#allocation123_spill] sm:$0xff] }
 0x7cf   : > { %5055 = vmatmul.msk.f32.gmra.mxu0 %vm4330_vm12, %v4263_v6  ;;  %v4069_v6 = vsel %vm4061_vm8, %v4004_v61, %v12425_v62  ;;  %v4239_v27 = vsel %vm4191_vm10, %v4174_v47, %v12427_v40  ;;  %v12429_v29 = vld [vmem:[#allocation489_spill] sm:$0xff]  ;;  %v2263_v25 = vsel %vm2075_vm4, %v2260_v30, %v2262_v20  ;;  %v12436_v5 = vld [vmem:[#allocation150_spill] sm:$0xff]  ;;  %v12438_v20 = vld [vmem:[#allocation156_spill] sm:$0xff] }
 0x7d0   : > { %v4134_v33 = vsel %vm4126_vm9, %v4069_v6, %v12428_v2  ;;  %v4144_v17 = vsel %vm4126_vm9, %v4079_v23, %v12429_v29  ;;  %v12433_v36 = vld [vmem:[#allocation13_spill] sm:$0xff]  ;;  %v12437_v1 = vld [vmem:[#allocation22_spill] sm:$0xff]  ;;  %v12442_v21 = vld [vmem:[#allocation216_spill] sm:$0xff] }
 0x7d1   : > { %3696 = vrot.lane.b32.xlu2 %v12421_v43, %s5271_s11  ;;  %v4199_v58 = vsel %vm4191_vm10, %v4134_v33, %v12430_v24  ;;  %v4209_v18 = vsel %vm4191_vm10, %v4144_v17, %v12431_v12  ;;  %v3811_v51 = vsel %vm3802_vm5, %v12433_v36, %v12432_v14  ;;  %v12435_v45 = vld [vmem:[#allocation21_spill] sm:$0xff]  ;;  %v3812_v50 = vsel %vm3802_vm5, %v12437_v1, %v12436_v5  ;;  %v12439_v30 = vld [vmem:[#allocation14_spill] sm:$0xff]  ;;  %v12444_v40 = vld [vmem:[#allocation264_spill] sm:$0xff] }
 0x7d2   : > { %v3816_v43 = vsel %vm3802_vm5, %v12435_v45, %v12434_v10  ;;  %v4264_v61 = vsel %vm4256_vm13, %v4199_v58, %v9701_v39  ;;  %v3815_v47 = vsel %vm3802_vm5, %v12439_v30, %v12438_v20  ;;  %v12441_v62 = vld [vmem:[#allocation17_spill] sm:$0xff]  ;;  %v12446_v33 = vld [vmem:[#allocation275_spill] sm:$0xff]  ;;  %v12447_v17 = vld [vmem:[#allocation308_spill] sm:$0xff] }
 0x7d3   : > { %v3705_v0 = vpop.permute.xlu2 %3704  ;;  %3730 = vrot.lane.b32.xlu0 %v2259_v63, %s5271_s11  ;;  %v12440_v63 = vld [vmem:[#allocation162_spill] sm:$0xff]  ;;  %v12443_v39 = vld [vmem:[#allocation125_spill] sm:$0xff]  ;;  %v12448_v24 = vld [vmem:[#allocation332_spill] sm:$0xff] }
 0x7d4   : > { %v4304_v49 = vsel %vm4256_vm13, %v4239_v27, %v3705_v0  ;;  %v3821_v6 = vsel %vm3802_vm5, %v12441_v62, %v12440_v63  ;;  %v3851_v23 = vsel %vm3802_vm5, %v12443_v39, %v12442_v21  ;;  %v3880_v27 = vsel %vm3867_vm6, %v3815_v47, %v12444_v40  ;;  %v12445_v0 = vld [vmem:[#allocation269_spill] sm:$0xff]  ;;  %v12451_v36 = vld [vmem:[#allocation351_spill] sm:$0xff]  ;;  %v12454_v5 = vld [vmem:[#allocation170_spill] sm:$0xff] }
 0x7d5   : > { %v3645_v52 = vpop.permute.xlu0 %3644  ;;  %5096 = vmatmul.msk.f32.gmra.mxu3 %vm4330_vm12, %v4304_v49  ;;  %v3876_v2 = vsel %vm3867_vm6, %v3811_v51, %v12445_v0  ;;  %v3886_v29 = vsel %vm3867_vm6, %v3821_v6, %v12446_v33  ;;  %v3916_v49 = vsel %vm3867_vm6, %v3851_v23, %v12447_v17  ;;  %v12449_v12 = vld [vmem:[#allocation333_spill] sm:$0xff]  ;;  %v12452_v10 = vld [vmem:[#allocation375_spill] sm:$0xff]  ;;  %v12455_v20 = vld [vmem:[#allocation418_spill] sm:$0xff] }
 0x7d6   : > { %v4274_v56 = vsel %vm4256_vm13, %v4209_v18, %v3645_v52  ;;  %v9975_v42 = vpop.permute.xlu1 %3654  ;;  %v3941_v58 = vsel %vm3932_vm7, %v3876_v2, %v12448_v24  ;;  %v3945_v18 = vsel %vm3932_vm7, %v3880_v27, %v12449_v12  ;;  %v12450_v52 = vld [vmem:[#allocation10_spill] sm:$0xff]  ;;  %v3981_v51 = vsel %vm3932_vm7, %v3916_v49, %v12451_v36  ;;  %v12460_v40 = vld [vmem:[#allocation483_spill] sm:$0xff]  ;;  %v12464_v24 = vld [vmem:[#allocation41_spill] sm:$0xff] }
 0x7d7   : > { %5056 = vmatmul.msk.f32.gmra.mxu0 %vm4330_vm12, %v4264_v61  ;;  %5066 = vmatmul.msk.f32.vlgmr.msrb.gmra.mxu1 %vm4330_vm12, %v4274_v56  ;;  %v3951_v14 = vsel %vm3932_vm7, %v3886_v29, %v12450_v52  ;;  %v4005_v45 = vsel %vm273_vm0, %v3941_v58, %v12452_v10  ;;  %v12453_v56 = vld [vmem:[#allocation389_spill] sm:$0xff]  ;;  %v4045_v30 = vsel %vm273_vm0, %v3981_v51, %v12455_v20  ;;  %v12456_v47 = vld [vmem:[#allocation438_spill] sm:$0xff]  ;;  %v12461_v0 = vld [vmem:[#allocation127_spill] sm:$0xff] }
 0x7d8   : > { %v4009_v61 = vsel %vm273_vm0, %v3945_v18, %v12453_v56  ;;  %v4015_v1 = vsel %vm273_vm0, %v3951_v14, %v12454_v5  ;;  %v12457_v62 = vld [vmem:[#allocation262_spill] sm:$0xff]  ;;  %v12462_v33 = vld [vmem:[#allocation487_spill] sm:$0xff]  ;;  %v12466_v18 = vld [vmem:[#allocation165_spill] sm:$0xff] }
 0x7d9   : > { %3732 = vrot.lane.b32.xlu2 %v2261_v31, %s5271_s11  ;;  %v4074_v63 = vsel %vm4061_vm8, %v4009_v61, %v12456_v47  ;;  %v4070_v31 = vsel %vm4061_vm8, %v4005_v45, %v12457_v62  ;;  %v12458_v6 = vld [vmem:[#allocation442_spill] sm:$0xff]  ;;  %v12465_v12 = vld [vmem:[#allocation139_spill] sm:$0xff]  ;;  %v12469_v20 = vld [vmem:[#allocation261_spill] sm:$0xff] }
 0x7da   : > { %v4080_v21 = vsel %vm4061_vm8, %v4015_v1, %v12458_v6  ;;  %v12459_v39 = vld [vmem:[#allocation474_spill] sm:$0xff]  ;;  %v4135_v27 = vsel %vm4126_vm9, %v4070_v31, %v12460_v40  ;;  %v4139_v2 = vsel %vm4126_vm9, %v4074_v63, %v12461_v0  ;;  %v12468_v5 = vld [vmem:[#allocation83_spill] sm:$0xff]  ;;  %v12471_v47 = vld [vmem:[#allocation273_spill] sm:$0xff] }
 0x7db   : > { %3734 = vrot.lane.b32.xlu0 %v2263_v25, %s5271_s11  ;;  %v4110_v23 = vsel %vm4061_vm8, %v4045_v30, %v12459_v39  ;;  %v4145_v29 = vsel %vm4126_vm9, %v4080_v21, %v12462_v33  ;;  %v12463_v17 = vld [vmem:[#allocation82_spill] sm:$0xff]  ;;  %v4200_v58 = vsel %vm4191_vm10, %v4135_v27, %v12464_v24  ;;  %v4204_v25 = vsel %vm4191_vm10, %v4139_v2, %v12465_v12  ;;  %v12472_v63 = vld [vmem:[#allocation107_spill] sm:$0xff]  ;;  %v12476_v40 = vld [vmem:[#allocation385_spill] sm:$0xff] }
 0x7dc   : > { %v4175_v49 = vsel %vm4126_vm9, %v4110_v23, %v12463_v17  ;;  %v4210_v52 = vsel %vm4191_vm10, %v4145_v29, %v12466_v18  ;;  %v4265_v51 = vsel %vm4256_vm13, %v4200_v58, %v9796_v19  ;;  %v10047_v56 = vsel %vm4256_vm13, %v4204_v25, %v9767_v26  ;;  %v12467_v61 = vld [vmem:[#allocation174_spill] sm:$0xff]  ;;  %v12475_v39 = vld [vmem:[#allocation383_spill] sm:$0xff]  ;;  %v12478_v2 = vld [vmem:[#allocation436_spill] sm:$0xff] }
 0x7dd   : > { %v3649_v14 = vpop.permute.xlu0 %3648  ;;  %v4240_v36 = vsel %vm4191_vm10, %v4175_v49, %v9495_v41  ;;  %v4275_v10 = vsel %vm4256_vm13, %v4210_v52, %v9849_v48  ;;  %v3822_v1 = vsel %vm3802_vm5, %v12468_v5, %v12467_v61  ;;  %v3881_v30 = vsel %vm3867_vm6, %v3816_v43, %v12469_v20  ;;  %v12470_v19 = vld [vmem:[#allocation258_spill] sm:$0xff]  ;;  %v12479_v29 = vld [vmem:[#allocation435_spill] sm:$0xff]  ;;  %v12480_v49 = vld [vmem:[#allocation440_spill] sm:$0xff] }
 0x7de   : > { %v3707_v45 = vpop.permute.xlu1 %3706  ;;  %v3877_v48 = vsel %vm3867_vm6, %v3812_v50, %v12470_v19  ;;  %v3887_v26 = vsel %vm3867_vm6, %v3822_v1, %v12471_v47  ;;  %v3946_v62 = vsel %vm3932_vm7, %v3881_v30, %v12472_v63  ;;  %v12473_v31 = vld [vmem:[#allocation330_spill] sm:$0xff]  ;;  %v12481_v58 = vld [vmem:[#allocation51_spill] sm:$0xff]  ;;  %v12482_v25 = vld [vmem:[#allocation120_spill] sm:$0xff] }
 0x7df   : > { %5057 = vmatmul.msk.f32.gmra.mxu0 %vm4330_vm12, %v4265_v51  ;;  %5067 = vmatmul.msk.f32.gmra.mxu1 %vm4330_vm12, %v4275_v10  ;;  %v4305_v41 = vsel %vm4256_vm13, %v4240_v36, %v3707_v45  ;;  %v3942_v43 = vsel %vm3932_vm7, %v3877_v48, %v12473_v31  ;;  %v12474_v6 = vld [vmem:[#allocation66_spill] sm:$0xff]  ;;  %v4010_v23 = vsel %vm273_vm0, %v3946_v62, %v12475_v39  ;;  %v12484_v51 = vld [vmem:[#allocation112_spill] sm:$0xff]  ;;  %v10088_v45 = vpop.permute.xlu2 %3658  ;;  %v12485_v61 = vld [vmem:[#allocation159_spill] sm:$0xff] }
 0x7e0   : > { %5097 = vmatmul.msk.f32.gmra.mxu3 %vm4330_vm12, %v4305_v41  ;;  %v3952_v21 = vsel %vm3932_vm7, %v3887_v26, %v12474_v6  ;;  %v4006_v50 = vsel %vm273_vm0, %v3942_v43, %v12476_v40  ;;  %v12477_v27 = vld [vmem:[#allocation390_spill] sm:$0xff]  ;;  %v4075_v33 = vsel %vm4061_vm8, %v4010_v23, %v12478_v2  ;;  %v12486_v1 = vld [vmem:[#allocation124_spill] sm:$0xff] }
 0x7e1   : > { %v4016_v0 = vsel %vm273_vm0, %v3952_v21, %v12477_v27  ;;  %v4071_v17 = vsel %vm4061_vm8, %v4006_v50, %v12479_v29  ;;  %v4140_v12 = vsel %vm4126_vm9, %v4075_v33, %v12481_v58  ;;  %v12483_v52 = vld [vmem:[#allocation34_spill] sm:$0xff]  ;;  %v12487_v19 = vld [vmem:[#allocation140_spill] sm:$0xff]  ;;  %v12494_v50 = vld [vmem:[#allocation5_spill] sm:$0xff] }
 0x7e2   : > { %v4081_v24 = vsel %vm4061_vm8, %v4016_v0, %v12480_v49  ;;  %v4136_v18 = vsel %vm4126_vm9, %v4071_v17, %v12482_v25  ;;  %v4205_v10 = vsel %vm4191_vm10, %v4140_v12, %v12484_v51  ;;  %v12488_v48 = vld [vmem:[#allocation38_spill] sm:$0xff]  ;;  %v12495_v0 = vld [vmem:[#allocation381_spill] sm:$0xff]  ;;  %v12496_v33 = vld [vmem:[#allocation387_spill] sm:$0xff] }
 0x7e3   : > { %v4146_v36 = vsel %vm4126_vm9, %v4081_v24, %v12483_v52  ;;  %v4201_v5 = vsel %vm4191_vm10, %v4136_v18, %v12485_v61  ;;  %v10096_v41 = vsel %vm4256_vm13, %v4205_v10, %v9756_v32  ;;  %v3817_v47 = vsel %vm3802_vm5, %v12488_v48, %v12487_v19  ;;  %v12489_v31 = vld [vmem:[#allocation154_spill] sm:$0xff]  ;;  %v12497_v17 = vld [vmem:[#allocation445_spill] sm:$0xff]  ;;  %v12500_v25 = vld [vmem:[#allocation491_spill] sm:$0xff] }
 0x7e4   : > { %v4211_v20 = vsel %vm4191_vm10, %v4146_v36, %v12486_v1  ;;  %v4266_v26 = vsel %vm4256_vm13, %v4201_v5, %v9740_v9  ;;  %v12490_v43 = vld [vmem:[#allocation78_spill] sm:$0xff]  ;;  %v12498_v49 = vld [vmem:[#allocation453_spill] sm:$0xff]  ;;  %v12501_v52 = vld [vmem:[#allocation132_spill] sm:$0xff] }
 0x7e5   : > { %v3653_v30 = vpop.permute.xlu0 %3652  ;;  %v4276_v63 = vsel %vm4256_vm13, %v4211_v20, %v3649_v14  ;;  %v3823_v6 = vsel %vm3802_vm5, %v12490_v43, %v12489_v31  ;;  %v12491_v21 = vld [vmem:[#allocation278_spill] sm:$0xff]  ;;  %v12503_v1 = vld [vmem:[#allocation133_spill] sm:$0xff]  ;;  %v12504_v20 = vld [vmem:[#allocation56_spill] sm:$0xff] }
 0x7e6   : > { %v3709_v62 = vpop.permute.xlu1 %3708  ;;  %v3882_v39 = vsel %vm3867_vm6, %v3817_v47, %v12491_v21  ;;  %v12492_v23 = vld [vmem:[#allocation286_spill] sm:$0xff]  ;;  %v3814_v19 = vsel %vm3802_vm5, %v12504_v20, %v12503_v1  ;;  %v12505_v48 = vld [vmem:[#allocation55_spill] sm:$0xff] }
 0x7e7   : > { %5058 = vmatmul.msk.f32.gmra.mxu0 %vm4330_vm12, %v4266_v26  ;;  %5068 = vmatmul.msk.f32.gmra.mxu1 %vm4330_vm12, %v4276_v63  ;;  %v4306_v32 = vsel %vm4256_vm13, %v9406_v7, %v3709_v62  ;;  %v3888_v9 = vsel %vm3867_vm6, %v3823_v6, %v12492_v23  ;;  %v12493_v40 = vld [vmem:[#allocation338_spill] sm:$0xff]  ;;  %v12506_v47 = vld [vmem:[#allocation79_spill] sm:$0xff]  ;;  %v10148_v63 = vpop.permute.xlu2 %3662  ;;  %v12508_v6 = vld [vmem:[#allocation16_spill] sm:$0xff] }
 0x7e8   : > { %v3947_v14 = vsel %vm3932_vm7, %v3882_v39, %v12493_v40  ;;  %5098 = vmatmul.msk.f32.gmra.mxu3 %vm4330_vm12, %v4306_v32  ;;  %v3953_v27 = vsel %vm3932_vm7, %v3888_v9, %v12494_v50  ;;  %v12499_v58 = vld [vmem:[#allocation486_spill] sm:$0xff]  ;;  %v3818_v26 = vsel %vm3802_vm5, %v12506_v47, %v12505_v48  ;;  %v12507_v43 = vld [vmem:[#allocation167_spill] sm:$0xff] }
 0x7e9   : > { %v4011_v2 = vsel %vm273_vm0, %v3947_v14, %v12495_v0  ;;  %v4017_v29 = vsel %vm273_vm0, %v3953_v27, %v12496_v33  ;;  %v12502_v51 = vld [vmem:[#allocation158_spill] sm:$0xff]  ;;  %v3824_v21 = vsel %vm3802_vm5, %v12508_v6, %v12507_v43  ;;  %v12512_v14 = vld [vmem:[#allocation336_spill] sm:$0xff]  ;;  %v12513_v27 = vld [vmem:[#allocation335_spill] sm:$0xff] }
 0x7ea   : > { %v4076_v7 = vsel %vm4061_vm8, %v4011_v2, %v12497_v17  ;;  %v4082_v24 = vsel %vm4061_vm8, %v4017_v29, %v12498_v49  ;;  %v12510_v23 = vld [vmem:[#allocation274_spill] sm:$0xff]  ;;  %v12515_v33 = vld [vmem:[#allocation179_spill] sm:$0xff] }
 0x7eb   : > { %v4141_v12 = vsel %vm4126_vm9, %v4076_v7, %v12499_v58  ;;  %v4147_v18 = vsel %vm4126_vm9, %v4082_v24, %v12500_v25  ;;  %v3879_v9 = vsel %vm3867_vm6, %v3814_v19, %v12510_v23  ;;  %v12516_v29 = vld [vmem:[#allocation378_spill] sm:$0xff]  ;;  %v12518_v24 = vld [vmem:[#allocation439_spill] sm:$0xff] }
 0x7ec   : > { %v4206_v36 = vsel %vm4191_vm10, %v4141_v12, %v12501_v52  ;;  %v4212_v10 = vsel %vm4191_vm10, %v4147_v18, %v12502_v51  ;;  %v3944_v0 = vsel %vm3932_vm7, %v3879_v9, %v12513_v27  ;;  %v12517_v7 = vld [vmem:[#allocation394_spill] sm:$0xff]  ;;  %v12519_v12 = vld [vmem:[#allocation441_spill] sm:$0xff]  ;;  %v12524_v48 = vld [vmem:[#allocation147_spill] sm:$0xff] }
 0x7ed   : > { %v10136_v61 = vpop.permute.xlu0 %3656  ;;  %v10140_v5 = vsel %vm4256_vm13, %v4206_v36, %v9901_v8  ;;  %v4277_v62 = vsel %vm4256_vm13, %v4212_v10, %v9913_v55  ;;  %v12509_v8 = vld [vmem:[#allocation270_spill] sm:$0xff]  ;;  %v12511_v55 = vld [vmem:[#allocation279_spill] sm:$0xff]  ;;  %v4008_v17 = vsel %vm273_vm0, %v3944_v0, %v12516_v29  ;;  %v12522_v10 = vld [vmem:[#allocation484_spill] sm:$0xff] }
 0x7ee   : > { %v3711_v31 = vpop.permute.xlu1 %3710  ;;  %v3883_v39 = vsel %vm3867_vm6, %v3818_v26, %v12509_v8  ;;  %v3889_v40 = vsel %vm3867_vm6, %v3824_v21, %v12511_v55  ;;  %v4073_v25 = vsel %vm4061_vm8, %v4008_v17, %v12519_v12  ;;  %v12520_v18 = vld [vmem:[#allocation446_spill] sm:$0xff]  ;;  %v12525_v26 = vld [vmem:[#allocation35_spill] sm:$0xff]  ;;  %v12527_v8 = vld [vmem:[#allocation144_spill] sm:$0xff] }
 0x7ef   : > { %5059 = vmatmul.msk.f32.gmra.mxu0 %vm4330_vm12, %v9906_v60  ;;  %5069 = vmatmul.msk.f32.gmra.mxu1 %vm4330_vm12, %v4277_v62  ;;  %v4307_v32 = vsel %vm4256_vm13, %v9390_v3, %v3711_v31  ;;  %v3948_v50 = vsel %vm3932_vm7, %v3883_v39, %v12512_v14  ;;  %v12514_v60 = vld [vmem:[#allocation8_spill] sm:$0xff]  ;;  %v12521_v36 = vld [vmem:[#allocation146_spill] sm:$0xff]  ;;  %v4138_v1 = vsel %vm4126_vm9, %v4073_v25, %v12522_v10  ;;  %v12526_v31 = vld [vmem:[#allocation141_spill] sm:$0xff] }
 0x7f0   : > { %5099 = vmatmul.msk.f32.gmra.mxu3 %vm4330_vm12, %v4307_v32  ;;  %v3954_v2 = vsel %vm3932_vm7, %v3889_v40, %v12514_v60  ;;  %v4012_v3 = vsel %vm273_vm0, %v3948_v50, %v12515_v33  ;;  %v12523_v20 = vld [vmem:[#allocation490_spill] sm:$0xff]  ;;  %v4203_v62 = vsel %vm4191_vm10, %v4138_v1, %v12525_v26  ;;  %v12528_v39 = vld [vmem:[#allocation65_spill] sm:$0xff]  ;;  %v12529_v23 = vld [vmem:[#allocation151_spill] sm:$0xff] }
 0x7f1   : > { %v4018_v49 = vsel %vm273_vm0, %v3954_v2, %v12517_v7  ;;  %v4077_v58 = vsel %vm4061_vm8, %v4012_v3, %v12518_v24  ;;  %v3819_v32 = vsel %vm3802_vm5, %v12528_v39, %v12527_v8  ;;  %v12530_v9 = vld [vmem:[#allocation70_spill] sm:$0xff]  ;;  %v4268_v40 = vsel %vm4256_vm13, %v4203_v62, %v9840_v11  ;;  %v12531_v27 = vld [vmem:[#allocation175_spill] sm:$0xff]  ;;  %v12534_v3 = vld [vmem:[#allocation276_spill] sm:$0xff] }
 0x7f2   : > { %v4083_v52 = vsel %vm4061_vm8, %v4018_v49, %v12520_v18  ;;  %v4142_v51 = vsel %vm4126_vm9, %v4077_v58, %v12521_v36  ;;  %v3825_v55 = vsel %vm3802_vm5, %v12530_v9, %v12529_v23  ;;  %v12532_v0 = vld [vmem:[#allocation103_spill] sm:$0xff]  ;;  %v12535_v29 = vld [vmem:[#allocation298_spill] sm:$0xff]  ;;  %v10227_v49 = vpop.permute.xlu2 %3664  ;;  %v12537_v24 = vld [vmem:[#allocation88_spill] sm:$0xff] }
 0x7f3   : > { %v4148_v19 = vsel %vm4126_vm9, %v4083_v52, %v12523_v20  ;;  %v4207_v47 = vsel %vm4191_vm10, %v4142_v51, %v12524_v48  ;;  %v3835_v60 = vsel %vm3802_vm5, %v12532_v0, %v12531_v27  ;;  %v3890_v11 = vsel %vm3867_vm6, %v3825_v55, %v12534_v3  ;;  %v12536_v17 = vld [vmem:[#allocation47_spill] sm:$0xff]  ;;  %v12538_v12 = vld [vmem:[#allocation52_spill] sm:$0xff]  ;;  %v12548_v23 = vld [vmem:[#allocation118_spill] sm:$0xff] }
 0x7f4   : > { %v4213_v43 = vsel %vm4191_vm10, %v4148_v19, %v12526_v31  ;;  %v10201_v21 = vsel %vm4256_vm13, %v4207_v47, %v9802_v54  ;;  %v12533_v54 = vld [vmem:[#allocation267_spill] sm:$0xff]  ;;  %v3955_v58 = vsel %vm3932_vm7, %v3890_v11, %v12537_v24  ;;  %v12541_v51 = vld [vmem:[#allocation180_spill] sm:$0xff]  ;;  %v12544_v47 = vld [vmem:[#allocation465_spill] sm:$0xff] }
 0x7f5   : > { %v10197_v6 = vpop.permute.xlu0 %3660  ;;  %v4278_v14 = vsel %vm4256_vm13, %v4213_v43, %v3653_v30  ;;  %v3884_v2 = vsel %vm3867_vm6, %v3819_v32, %v12533_v54  ;;  %v3900_v30 = vsel %vm3867_vm6, %v3835_v60, %v12535_v29  ;;  %v12540_v52 = vld [vmem:[#allocation391_spill] sm:$0xff]  ;;  %v12542_v1 = vld [vmem:[#allocation272_spill] sm:$0xff]  ;;  %v12549_v55 = vld [vmem:[#allocation134_spill] sm:$0xff] }
 0x7f6   : > { %v3713_v50 = vpop.permute.xlu1 %3712  ;;  %v3949_v7 = vsel %vm3932_vm7, %v3884_v2, %v12536_v17  ;;  %v3965_v25 = vsel %vm3932_vm7, %v3900_v30, %v12538_v12  ;;  %v4019_v36 = vsel %vm273_vm0, %v3955_v58, %v12540_v52  ;;  %v12543_v19 = vld [vmem:[#allocation443_spill] sm:$0xff]  ;;  %v12545_v62 = vld [vmem:[#allocation12_spill] sm:$0xff]  ;;  %v12552_v3 = vld [vmem:[#allocation69_spill] sm:$0xff] }
 0x7f7   : > { %5060 = vmatmul.msk.f32.gmra.mxu0 %vm4330_vm12, %v4268_v40  ;;  %5070 = vmatmul.msk.f32.gmra.mxu1 %vm4330_vm12, %v4278_v14  ;;  %v4308_v33 = vsel %vm4256_vm13, %v9554_v46, %v3713_v50  ;;  %v12539_v46 = vld [vmem:[#allocation386_spill] sm:$0xff]  ;;  %v4029_v10 = vsel %vm273_vm0, %v3965_v25, %v12541_v51  ;;  %v4084_v48 = vsel %vm4061_vm8, %v4019_v36, %v12543_v19  ;;  %v12546_v43 = vld [vmem:[#allocation72_spill] sm:$0xff]  ;;  %v12547_v39 = vld [vmem:[#allocation15_spill] sm:$0xff] }
 0x7f8   : > { %5100 = vmatmul.msk.f32.gmra.mxu3 %vm4330_vm12, %v4308_v33  ;;  %v4013_v18 = vsel %vm273_vm0, %v3949_v7, %v12539_v46  ;;  %v4094_v26 = vsel %vm4061_vm8, %v4029_v10, %v12544_v47  ;;  %v4149_v8 = vsel %vm4126_vm9, %v4084_v48, %v12546_v43  ;;  %v12550_v14 = vld [vmem:[#allocation155_spill] sm:$0xff]  ;;  %v12553_v29 = vld [vmem:[#allocation193_spill] sm:$0xff]  ;;  %v12557_v12 = vld [vmem:[#allocation2_spill] sm:$0xff] }
 0x7f9   : > { %v4078_v20 = vsel %vm4061_vm8, %v4013_v18, %v12542_v1  ;;  %v4159_v32 = vsel %vm4126_vm9, %v4094_v26, %v12547_v39  ;;  %v4214_v40 = vsel %vm4191_vm10, %v4149_v8, %v12549_v55  ;;  %v12551_v33 = vld [vmem:[#allocation171_spill] sm:$0xff]  ;;  %v12554_v30 = vld [vmem:[#allocation105_spill] sm:$0xff]  ;;  %v12558_v46 = vld [vmem:[#allocation44_spill] sm:$0xff] }
 0x7fa   : > { %v4143_v31 = vsel %vm4126_vm9, %v4078_v20, %v12545_v62  ;;  %v4224_v50 = vsel %vm4191_vm10, %v4159_v32, %v12550_v14  ;;  %v4279_v54 = vsel %vm4256_vm13, %v4214_v40, %v9975_v42  ;;  %v3826_v11 = vsel %vm3802_vm5, %v12552_v3, %v12551_v33  ;;  %v12555_v7 = vld [vmem:[#allocation289_spill] sm:$0xff]  ;;  %v12559_v18 = vld [vmem:[#allocation64_spill] sm:$0xff]  ;;  %v10290_v51 = vpop.permute.xlu2 %3666  ;;  %v12563_v48 = vld [vmem:[#allocation7_spill] sm:$0xff] }
 0x7fb   : > { %v4208_v9 = vsel %vm4191_vm10, %v4143_v31, %v12548_v23  ;;  %v3836_v17 = vsel %vm3802_vm5, %v12554_v30, %v12553_v29  ;;  %v3891_v42 = vsel %vm3867_vm6, %v3826_v11, %v12555_v7  ;;  %v12556_v24 = vld [vmem:[#allocation293_spill] sm:$0xff]  ;;  %v12561_v10 = vld [vmem:[#allocation456_spill] sm:$0xff]  ;;  %v12566_v8 = vld [vmem:[#allocation195_spill] sm:$0xff] }
 0x7fc   : > { %v10260_v0 = vsel %vm4256_vm13, %v4208_v9, %v9783_v28  ;;  %v3901_v58 = vsel %vm3867_vm6, %v3836_v17, %v12556_v24  ;;  %v3956_v25 = vsel %vm3932_vm7, %v3891_v42, %v12557_v12  ;;  %v12562_v20 = vld [vmem:[#allocation460_spill] sm:$0xff]  ;;  %v12564_v26 = vld [vmem:[#allocation57_spill] sm:$0xff]  ;;  %v12572_v33 = vld [vmem:[#allocation291_spill] sm:$0xff] }
 0x7fd   : > { %v3675_v27 = vpop.permute.xlu0 %3674  ;;  %v4020_v52 = vsel %vm273_vm0, %v3956_v25, %v12559_v18  ;;  %v12565_v31 = vld [vmem:[#allocation80_spill] sm:$0xff]  ;;  %v12567_v55 = vld [vmem:[#allocation173_spill] sm:$0xff]  ;;  %v12573_v3 = vld [vmem:[#allocation3_spill] sm:$0xff] }
 0x7fe   : > { %v4289_v60 = vsel %vm4256_vm13, %v4224_v50, %v3675_v27  ;;  %v3715_v2 = vpop.permute.xlu1 %3714  ;;  %v4085_v1 = vsel %vm4061_vm8, %v4020_v52, %v12561_v10  ;;  %v12568_v40 = vld [vmem:[#allocation84_spill] sm:$0xff]  ;;  %v12569_v50 = vld [vmem:[#allocation183_spill] sm:$0xff]  ;;  %v12574_v29 = vld [vmem:[#allocation346_spill] sm:$0xff] }
 0x7ff   : > { %5061 = vmatmul.msk.f32.gmra.mxu0 %vm4330_vm12, %v10047_v56  ;;  %5071 = vmatmul.msk.f32.gmra.mxu1 %vm4330_vm12, %v4279_v54  ;;  %v4309_v28 = vsel %vm4256_vm13, %v9462_v44, %v3715_v2  ;;  %v3966_v56 = vsel %vm3932_vm7, %v3901_v58, %v12558_v46  ;;  %v12560_v44 = vld [vmem:[#allocation403_spill] sm:$0xff]  ;;  %v4150_v47 = vsel %vm4126_vm9, %v4085_v1, %v12563_v48  ;;  %v12571_v54 = vld [vmem:[#allocation282_spill] sm:$0xff]  ;;  %v12575_v17 = vld [vmem:[#allocation172_spill] sm:$0xff] }
 0x800   : > { %5081 = vmatmul.msk.f32.vlgmr.msra.gmra.mxu2 %vm4330_vm12, %v4289_v60  ;;  %5101 = vmatmul.msk.f32.gmra.mxu3 %vm4330_vm12, %v4309_v28  ;;  %v4030_v36 = vsel %vm273_vm0, %v3966_v56, %v12560_v44  ;;  %v4215_v43 = vsel %vm4191_vm10, %v4150_v47, %v12565_v31  ;;  %v3827_v14 = vsel %vm3802_vm5, %v12568_v40, %v12567_v55  ;;  %v12570_v27 = vld [vmem:[#allocation95_spill] sm:$0xff]  ;;  %v12577_v42 = vld [vmem:[#allocation449_spill] sm:$0xff]  ;;  %v12578_v58 = vld [vmem:[#allocation458_spill] sm:$0xff] }
 0x801   : > { %v4095_v19 = vsel %vm4061_vm8, %v4030_v36, %v12562_v20  ;;  %v4280_v23 = vsel %vm4256_vm13, %v4215_v43, %v10136_v61  ;;  %v3837_v60 = vsel %vm3802_vm5, %v12570_v27, %v12569_v50  ;;  %v3892_v2 = vsel %vm3867_vm6, %v3827_v14, %v12571_v54  ;;  %v12579_v25 = vld [vmem:[#allocation492_spill] sm:$0xff]  ;;  %v12580_v56 = vld [vmem:[#allocation53_spill] sm:$0xff]  ;;  %v12586_v43 = vld [vmem:[#allocation94_spill] sm:$0xff] }
 0x802   : > { %v4160_v62 = vsel %vm4126_vm9, %v4095_v19, %v12564_v26  ;;  %v3902_v61 = vsel %vm3867_vm6, %v3837_v60, %v12572_v33  ;;  %v3957_v11 = vsel %vm3932_vm7, %v3892_v2, %v12573_v3  ;;  %v3681_v52 = vpop.permute.xlu2 %3680  ;;  %v12581_v44 = vld [vmem:[#allocation169_spill] sm:$0xff]  ;;  %v12582_v10 = vld [vmem:[#allocation196_spill] sm:$0xff]  ;;  %v10369_v60 = vld [vmem:[%s10795_s4] ss:$0 sm:$0xff] }
 0x803   : > { %v4225_v39 = vsel %vm4191_vm10, %v4160_v62, %v12566_v8  ;;  %v3967_v30 = vsel %vm3932_vm7, %v3902_v61, %v12574_v29  ;;  %v4021_v28 = vsel %vm273_vm0, %v3957_v11, %v12575_v17  ;;  %v12583_v47 = vld [vmem:[#allocation157_spill] sm:$0xff]  ;;  %v12584_v26 = vld [vmem:[#allocation76_spill] sm:$0xff]  ;;  %v12593_v33 = vld [vmem:[#allocation447_spill] sm:$0xff] }
 0x804   : > { %v4086_v24 = vsel %vm4061_vm8, %v4021_v28, %v12577_v42  ;;  %v3828_v62 = vsel %vm3802_vm5, %v12584_v26, %v12583_v47  ;;  %v12585_v31 = vld [vmem:[#allocation181_spill] sm:$0xff]  ;;  %v12591_v14 = vld [vmem:[#allocation184_spill] sm:$0xff]  ;;  %v12595_v29 = vld [vmem:[#allocation18_spill] sm:$0xff] }
 0x805   : > { %v3677_v32 = vpop.permute.xlu0 %3676  ;;  %v4151_v46 = vsel %vm4126_vm9, %v4086_v24, %v12579_v25  ;;  %v3838_v8 = vsel %vm3802_vm5, %v12586_v43, %v12585_v31  ;;  %v12590_v40 = vld [vmem:[#allocation341_spill] sm:$0xff]  ;;  %v12594_v3 = vld [vmem:[#allocation468_spill] sm:$0xff]  ;;  %v12596_v17 = vld [vmem:[#allocation87_spill] sm:$0xff] }
 0x806   : > { %v4290_v9 = vsel %vm4256_vm13, %v4225_v39, %v3677_v32  ;;  %v4216_v36 = vsel %vm4191_vm10, %v4151_v46, %v12581_v44  ;;  %v12587_v39 = vld [vmem:[#allocation280_spill] sm:$0xff]  ;;  %v10364_v27 = vpop.permute.xlu1 %3668  ;;  %v12592_v54 = vld [vmem:[#allocation185_spill] sm:$0xff]  ;;  %v12606_v43 = vld [vmem:[#allocation339_spill] sm:$0xff] }
 0x807   : > { %5062 = vmatmul.msk.f32.gmra.mxu0 %vm4330_vm12, %v10096_v41  ;;  %5072 = vmatmul.msk.f32.gmra.mxu1 %vm4330_vm12, %v4280_v23  ;;  %v12576_v41 = vld [vmem:[#allocation398_spill] sm:$0xff]  ;;  %v4281_v19 = vsel %vm4256_vm13, %v4216_v36, %v10088_v45  ;;  %v3893_v32 = vsel %vm3867_vm6, %v3828_v62, %v12587_v39  ;;  %v12588_v45 = vld [vmem:[#allocation301_spill] sm:$0xff]  ;;  %v12599_v44 = vld [vmem:[#allocation160_spill] sm:$0xff] }
 0x808   : > { %5082 = vmatmul.msk.f32.gmra.mxu2 %vm4330_vm12, %v4290_v9  ;;  %v4031_v7 = vsel %vm273_vm0, %v3967_v30, %v12576_v41  ;;  %v3903_v23 = vsel %vm3867_vm6, %v3838_v8, %v12588_v45  ;;  %v12589_v9 = vld [vmem:[#allocation67_spill] sm:$0xff]  ;;  %v12597_v41 = vld [vmem:[#allocation149_spill] sm:$0xff]  ;;  %v12600_v36 = vld [vmem:[#allocation6_spill] sm:$0xff] }
 0x809   : > { %v4096_v12 = vsel %vm4061_vm8, %v4031_v7, %v12578_v58  ;;  %v3958_v55 = vsel %vm3932_vm7, %v3893_v32, %v12589_v9  ;;  %v12598_v58 = vld [vmem:[#allocation392_spill] sm:$0xff]  ;;  %v12607_v8 = vld [vmem:[#allocation29_spill] sm:$0xff]  ;;  %v12608_v32 = vld [vmem:[#allocation406_spill] sm:$0xff] }
 0x80a   : > { %v4161_v18 = vsel %vm4126_vm9, %v4096_v12, %v12580_v56  ;;  %v4022_v50 = vsel %vm273_vm0, %v3958_v55, %v12591_v14  ;;  %v3683_v25 = vpop.permute.xlu2 %3682  ;;  %v12604_v26 = vld [vmem:[#allocation296_spill] sm:$0xff]  ;;  %v12610_v55 = vld [vmem:[#allocation463_spill] sm:$0xff] }
 0x80b   : > { %v4226_v1 = vsel %vm4191_vm10, %v4161_v18, %v12582_v10  ;;  %v4087_v61 = vsel %vm4061_vm8, %v4022_v50, %v12593_v33  ;;  %v3829_v10 = vsel %vm3802_vm5, %v12600_v36, %v12599_v44  ;;  %v12613_v33 = vld [vmem:[#allocation145_spill] sm:$0xff]  ;;  %v12620_v36 = vld [vmem:[#allocation294_spill] sm:$0xff] }
 0x80c   : > { %v4152_v30 = vsel %vm4126_vm9, %v4087_v61, %v12595_v29  ;;  %v12614_v29 = vld [vmem:[#allocation201_spill] sm:$0xff] }
 0x80d   : > { %v3679_v20 = vpop.permute.xlu0 %3678  ;;  %v4217_v7 = vsel %vm4191_vm10, %v4152_v30, %v12597_v41 }
 0x80e   : > { %v4291_v48 = vsel %vm4256_vm13, %v4226_v1, %v3679_v20  ;;  %v4282_v46 = vsel %vm4256_vm13, %v4217_v7, %v10197_v6  ;;  %v12601_v20 = vld [vmem:[#allocation199_spill] sm:$0xff]  ;;  %v10420_v50 = vpop.permute.xlu1 %3670  ;;  %v12615_v7 = vld [vmem:[#allocation188_spill] sm:$0xff] }
 0x80f   : > { %5063 = vmatmul.msk.f32.gmra.mxu0 %vm4330_vm12, %v10140_v5  ;;  %5073 = vmatmul.msk.f32.gmra.mxu1 %vm4330_vm12, %v4281_v19  ;;  %v3968_v5 = vsel %vm3932_vm7, %v3903_v23, %v12590_v40  ;;  %v12602_v19 = vld [vmem:[#allocation45_spill] sm:$0xff]  ;;  %v12609_v23 = vld [vmem:[#allocation459_spill] sm:$0xff] }
 0x810   : > { %5083 = vmatmul.msk.f32.gmra.mxu2 %vm4330_vm12, %v4291_v48  ;;  %v4032_v2 = vsel %vm273_vm0, %v3968_v5, %v12592_v54  ;;  %v3839_v6 = vsel %vm3802_vm5, %v12602_v19, %v12601_v20  ;;  %v12603_v48 = vld [vmem:[#allocation292_spill] sm:$0xff]  ;;  %v12611_v5 = vld [vmem:[#allocation81_spill] sm:$0xff] }
 0x811   : > { %v4097_v11 = vsel %vm4061_vm8, %v4032_v2, %v12594_v3  ;;  %v3904_v62 = vsel %vm3867_vm6, %v3839_v6, %v12604_v26  ;;  %v12612_v54 = vld [vmem:[#allocation61_spill] sm:$0xff] }
 0x812   : > { %v4162_v28 = vsel %vm4126_vm9, %v4097_v11, %v12596_v17  ;;  %v12623_v19 = vld [vmem:[#allocation397_spill] sm:$0xff] }
 0x813   : > { %v4227_v12 = vsel %vm4191_vm10, %v4162_v28, %v12598_v58 }
 0x814   : > { %v4292_v1 = vsel %vm4256_vm13, %v4227_v12, %v3681_v52  ;;  %v3969_v52 = vsel %vm3932_vm7, %v3904_v62, %v12606_v43  ;;  %v12617_v12 = vld [vmem:[#allocation189_spill] sm:$0xff] }
 0x815   : > { %v3717_v42 = vpop.permute.xlu0 %3716  ;;  %v4544_v24 = vpop.f32.mrf.mxu0  ;;  %v4033_v45 = vsel %vm273_vm0, %v3969_v52, %v12608_v32  ;;  %v12626_v62 = vld [vmem:[#allocation461_spill] sm:$0xff]  ;;  %v12628_v52 = vld [vmem:[#allocation102_spill] sm:$0xff] }
 0x816   : > { %v4310_v56 = vsel %vm4256_vm13, %v9439_v16, %v3717_v42  ;;  %v4545_v18 = vadd.f32 %v10369_v60, %v4544_v24  ;;  %v3894_v16 = vsel %vm3867_vm6, %v3829_v10, %v12603_v48  ;;  %v4098_v40 = vsel %vm4061_vm8, %v4033_v45, %v12610_v55  ;;  %v12616_v42 = vld [vmem:[#allocation32_spill] sm:$0xff]  ;;  %v12621_v10 = vld [vmem:[#allocation11_spill] sm:$0xff]  ;;  %v12624_v48 = vld [vmem:[#allocation401_spill] sm:$0xff]  ;;  %v3687_v55 = vpop.permute.xlu1 %3686 }
 0x817   : > { %5064 = vmatmul.msk.f32.gmra.mxu0 %vm4330_vm12, %v10201_v21  ;;  %5074 = vmatmul.msk.f32.gmra.mxu1 %vm4330_vm12, %v4282_v46  ;;  %v12605_v21 = vld [vmem:[#allocation33_spill] sm:$0xff]  ;;  %v4163_v2 = vsel %vm4126_vm9, %v4098_v40, %v12612_v54  ;;  %v3830_v24 = vsel %vm3802_vm5, %v12616_v42, %v12615_v7  ;;  %v12639_v42 = vld [vmem:[#allocation395_spill] sm:$0xff] }
 0x818   : > { %5084 = vmatmul.msk.f32.gmra.mxu2 %vm4330_vm12, %v4292_v1  ;;  %5102 = vmatmul.msk.f32.gmra.mxu3 %vm4330_vm12, %v4310_v56  ;;  %v4736_v47 = vmax.f32 %v4545_v18, 0.0  ;;  %v3959_v31 = vsel %vm3932_vm7, %v3894_v16, %v12605_v21  ;;  %v4228_v30 = vsel %vm4191_vm10, %v4163_v2, %v12614_v29  ;;  %v12618_v46 = vld [vmem:[#allocation101_spill] sm:$0xff]  ;;  %v12619_v56 = vld [vmem:[#allocation287_spill] sm:$0xff]  ;;  %v3685_v18 = vpop.permute.xlu2 %3684 }
 0x819   : > { %v4023_v39 = vsel %vm273_vm0, %v3959_v31, %v12607_v8  ;;  %v4293_v58 = vsel %vm4256_vm13, %v4228_v30, %v3683_v25  ;;  %v12622_v25 = vld [vmem:[#allocation349_spill] sm:$0xff] }
 0x81a   : > { %4800 = vxpose.xlu2.b32.start [1/16] (narrow) %v4736_v47, 8  ;;  %v4088_v9 = vsel %vm4061_vm8, %v4023_v39, %v12609_v23  ;;  %v12625_v47 = vld [vmem:[#allocation454_spill] sm:$0xff]  ;;  %v12627_v31 = vld [vmem:[#allocation49_spill] sm:$0xff] }
 0x81b   : > { %v4153_v14 = vsel %vm4126_vm9, %v4088_v9, %v12611_v5  ;;  %v12629_v39 = vld [vmem:[#allocation190_spill] sm:$0xff]  ;;  %v12632_v54 = vld [vmem:[#allocation77_spill] sm:$0xff] }
 0x81c   : > { %v4218_v61 = vsel %vm4191_vm10, %v4153_v14, %v12613_v33  ;;  %v12630_v23 = vld [vmem:[#allocation202_spill] sm:$0xff]  ;;  %v12631_v14 = vld [vmem:[#allocation163_spill] sm:$0xff]  ;;  %v12635_v29 = vld [vmem:[#allocation285_spill] sm:$0xff] }
 0x81d   : > { %v3719_v3 = vpop.permute.xlu0 %3718  ;;  %v4547_v11 = vpop.f32.mrf.mxu0  ;;  %v4283_v17 = vsel %vm4256_vm13, %v4218_v61, %v10148_v63  ;;  %v3840_v63 = vsel %vm3802_vm5, %v12618_v46, %v12617_v12  ;;  %v3831_v2 = vsel %vm3802_vm5, %v12632_v54, %v12631_v14  ;;  %v12633_v61 = vld [vmem:[#allocation186_spill] sm:$0xff]  ;;  %v12640_v12 = vld [vmem:[#allocation399_spill] sm:$0xff]  ;;  %v12655_v54 = vld [vmem:[#allocation393_spill] sm:$0xff] }
 0x81e   : > { %v4311_v28 = vsel %vm4256_vm13, %v9605_v13, %v3719_v3  ;;  %v4548_v41 = vadd.f32 %v10369_v60, %v4547_v11  ;;  %v3895_v13 = vsel %vm3867_vm6, %v3830_v24, %v12619_v56  ;;  %v12634_v3 = vld [vmem:[#allocation100_spill] sm:$0xff]  ;;  %v3896_v30 = vsel %vm3867_vm6, %v3831_v2, %v12635_v29  ;;  %v12658_v29 = vld [vmem:[#allocation466_spill] sm:$0xff] }
 0x81f   : > { %5065 = vmatmul.msk.f32.gmra.mxu0 %vm4330_vm12, %v10260_v0  ;;  %5075 = vmatmul.msk.f32.gmra.mxu1 %vm4330_vm12, %v4283_v17  ;;  %v3905_v0 = vsel %vm3867_vm6, %v3840_v63, %v12620_v36  ;;  %v3960_v1 = vsel %vm3932_vm7, %v3895_v13, %v12621_v10  ;;  %v3841_v11 = vsel %vm3802_vm5, %v12634_v3, %v12633_v61  ;;  %v12637_v17 = vld [vmem:[#allocation340_spill] sm:$0xff]  ;;  %v12642_v13 = vld [vmem:[#allocation471_spill] sm:$0xff]  ;;  %v12644_v10 = vld [vmem:[#allocation30_spill] sm:$0xff] }
 0x820   : > { %5085 = vmatmul.msk.f32.gmra.mxu2 %vm4330_vm12, %v4293_v58  ;;  %5103 = vmatmul.msk.f32.gmra.mxu3 %vm4330_vm12, %v4311_v28  ;;  %v4737_v44 = vmax.f32 %v4548_v41, 0.0  ;;  %v3970_v20 = vsel %vm3932_vm7, %v3905_v0, %v12622_v25  ;;  %v4024_v6 = vsel %vm273_vm0, %v3960_v1, %v12623_v19  ;;  %v3961_v28 = vsel %vm3932_vm7, %v3896_v30, %v12637_v17  ;;  %v12638_v41 = vld [vmem:[#allocation344_spill] sm:$0xff]  ;;  %v3723_v58 = vpop.permute.xlu2 %3722  ;;  %v12645_v25 = vld [vmem:[#allocation59_spill] sm:$0xff]  ;;  %v12657_v3 = vld [vmem:[#allocation462_spill] sm:$0xff] }
 0x821   : > { %v4034_v16 = vsel %vm273_vm0, %v3970_v20, %v12624_v48  ;;  %v4089_v26 = vsel %vm4061_vm8, %v4024_v6, %v12625_v47  ;;  %v4025_v24 = vsel %vm273_vm0, %v3961_v28, %v12639_v42  ;;  %v12641_v63 = vld [vmem:[#allocation452_spill] sm:$0xff] }
 0x822   : > { %4801 = vxpose.xlu2.b32.cont [2/16] (narrow) %v4737_v44, 8  ;;  %v4099_v21 = vsel %vm4061_vm8, %v4034_v16, %v12626_v62  ;;  %v4154_v43 = vsel %vm4126_vm9, %v4089_v26, %v12627_v31  ;;  %v4090_v56 = vsel %vm4061_vm8, %v4025_v24, %v12641_v63  ;;  %v12643_v44 = vld [vmem:[#allocation86_spill] sm:$0xff]  ;;  %v12646_v6 = vld [vmem:[#allocation176_spill] sm:$0xff]  ;;  %v12648_v62 = vld [vmem:[#allocation85_spill] sm:$0xff] }
 0x823   : > { %v4164_v8 = vsel %vm4126_vm9, %v4099_v21, %v12628_v52  ;;  %v4219_v32 = vsel %vm4191_vm10, %v4154_v43, %v12629_v39  ;;  %v4155_v36 = vsel %vm4126_vm9, %v4090_v56, %v12643_v44  ;;  %v12647_v26 = vld [vmem:[#allocation166_spill] sm:$0xff]  ;;  %v4313_v52 = vsel %vm4256_vm13, %v9489_v38, %v3723_v58  ;;  %v12661_v42 = vld [vmem:[#allocation152_spill] sm:$0xff]  ;;  %v12663_v56 = vld [vmem:[#allocation177_spill] sm:$0xff] }
 0x824   : > { %v4229_v9 = vsel %vm4191_vm10, %v4164_v8, %v12630_v23  ;;  %v4284_v40 = vsel %vm4256_vm13, %v4219_v32, %v10227_v49  ;;  %v4220_v20 = vsel %vm4191_vm10, %v4155_v36, %v12645_v25  ;;  %v3832_v21 = vsel %vm3802_vm5, %v12648_v62, %v12647_v26  ;;  %v12649_v8 = vld [vmem:[#allocation233_spill] sm:$0xff]  ;;  %v12650_v39 = vld [vmem:[#allocation110_spill] sm:$0xff] }
 0x825   : > { %v3721_v45 = vpop.permute.xlu0 %3720  ;;  %v4294_v33 = vsel %vm4256_vm13, %v4229_v9, %v3685_v18  ;;  %v4285_v47 = vsel %vm4256_vm13, %v4220_v20, %v10290_v51  ;;  %v3842_v32 = vsel %vm3802_vm5, %v12650_v39, %v12649_v8  ;;  %v3689_v51 = vpop.permute.xlu1 %3688  ;;  %v12652_v9 = vld [vmem:[#allocation299_spill] sm:$0xff]  ;;  %v12654_v38 = vld [vmem:[#allocation342_spill] sm:$0xff]  ;;  %v12673_v39 = vld [vmem:[#allocation457_spill] sm:$0xff] }
 0x826   : > { %v4312_v5 = vsel %vm4256_vm13, %v9505_v34, %v3721_v45  ;;  %v12636_v34 = vld [vmem:[#allocation304_spill] sm:$0xff]  ;;  %v12651_v45 = vld [vmem:[#allocation295_spill] sm:$0xff]  ;;  %v12667_v20 = vld [vmem:[#allocation290_spill] sm:$0xff] }
 0x827   : > { %5076 = vmatmul.msk.f32.gmra.mxu1 %vm4330_vm12, %v4284_v40  ;;  %v3906_v49 = vsel %vm3867_vm6, %v3841_v11, %v12636_v34  ;;  %v3897_v23 = vsel %vm3867_vm6, %v3832_v21, %v12651_v45  ;;  %v3907_v40 = vsel %vm3867_vm6, %v3842_v32, %v12652_v9  ;;  %v12659_v34 = vld [vmem:[#allocation98_spill] sm:$0xff]  ;;  %v12671_v21 = vld [vmem:[#allocation400_spill] sm:$0xff] }
 0x828   : > { %5086 = vmatmul.msk.f32.gmra.mxu2 %vm4330_vm12, %v4294_v33  ;;  %5104 = vmatmul.msk.f32.gmra.mxu3 %vm4330_vm12, %v4312_v5  ;;  %v3971_v7 = vsel %vm3932_vm7, %v3906_v49, %v12638_v41  ;;  %v12653_v5 = vld [vmem:[#allocation36_spill] sm:$0xff]  ;;  %v3972_v14 = vsel %vm3932_vm7, %v3907_v40, %v12654_v38  ;;  %v12656_v33 = vld [vmem:[#allocation409_spill] sm:$0xff]  ;;  %v3725_v17 = vpop.permute.xlu2 %3724  ;;  %v12677_v38 = vld [vmem:[#allocation71_spill] sm:$0xff] }
 0x829   : > { %v4035_v46 = vsel %vm273_vm0, %v3971_v7, %v12640_v12  ;;  %v4036_v61 = vsel %vm273_vm0, %v3972_v14, %v12656_v33  ;;  %v12660_v41 = vld [vmem:[#allocation68_spill] sm:$0xff]  ;;  %v12662_v12 = vld [vmem:[#allocation207_spill] sm:$0xff] }
 0x82a   : > { %v4100_v18 = vsel %vm4061_vm8, %v4035_v46, %v12642_v13  ;;  %v4101_v30 = vsel %vm4061_vm8, %v4036_v61, %v12658_v29  ;;  %v12664_v13 = vld [vmem:[#allocation89_spill] sm:$0xff]  ;;  %v12674_v45 = vld [vmem:[#allocation464_spill] sm:$0xff] }
 0x82b   : > { %v4165_v1 = vsel %vm4126_vm9, %v4100_v18, %v12644_v10  ;;  %v4166_v7 = vsel %vm4126_vm9, %v4101_v30, %v12660_v41  ;;  %v3833_v18 = vsel %vm3802_vm5, %v12664_v13, %v12663_v56  ;;  %v12665_v10 = vld [vmem:[#allocation194_spill] sm:$0xff]  ;;  %v12687_v56 = vld [vmem:[#allocation396_spill] sm:$0xff] }
 0x82c   : > { %v4550_v0 = vpop.f32.mrf.mxu0  ;;  %v4230_v48 = vsel %vm4191_vm10, %v4165_v1, %v12646_v6  ;;  %v4231_v46 = vsel %vm4191_vm10, %v4166_v7, %v12662_v12  ;;  %v12666_v1 = vld [vmem:[#allocation106_spill] sm:$0xff]  ;;  %v12668_v6 = vld [vmem:[#allocation297_spill] sm:$0xff]  ;;  %v12683_v7 = vld [vmem:[#allocation288_spill] sm:$0xff] }
 0x82d   : > { %v4551_v19 = vadd.f32 %v10369_v60, %v4550_v0  ;;  %v10508_v16 = vpop.permute.xlu0 %3672  ;;  %v4295_v43 = vsel %vm4256_vm13, %v4230_v48, %v3687_v55  ;;  %v3962_v55 = vsel %vm3932_vm7, %v3897_v23, %v12653_v5  ;;  %v4296_v36 = vsel %vm4256_vm13, %v4231_v46, %v3689_v51  ;;  %v12675_v51 = vld [vmem:[#allocation90_spill] sm:$0xff]  ;;  %v12676_v5 = vld [vmem:[#allocation91_spill] sm:$0xff] }
 0x82e   : > { %v4026_v2 = vsel %vm273_vm0, %v3962_v55, %v12655_v54  ;;  %v4314_v0 = vsel %vm4256_vm13, %v9645_v4, %v3725_v17  ;;  %v3843_v25 = vsel %vm3802_vm5, %v12666_v1, %v12665_v10  ;;  %v12670_v4 = vld [vmem:[#allocation352_spill] sm:$0xff]  ;;  %v12681_v17 = vld [vmem:[#allocation191_spill] sm:$0xff]  ;;  %v12690_v1 = vld [vmem:[#allocation473_spill] sm:$0xff] }
 0x82f   : > { %v4738_v31 = vmax.f32 %v4551_v19, 0.0  ;;  %5077 = vmatmul.msk.f32.gmra.mxu1 %vm4330_vm12, %v4285_v47  ;;  %v4091_v11 = vsel %vm4061_vm8, %v4026_v2, %v12657_v3  ;;  %v3898_v19 = vsel %vm3867_vm6, %v3833_v18, %v12667_v20  ;;  %v3908_v48 = vsel %vm3867_vm6, %v3843_v25, %v12668_v6  ;;  %v12669_v47 = vld [vmem:[#allocation31_spill] sm:$0xff]  ;;  %v12678_v2 = vld [vmem:[#allocation208_spill] sm:$0xff]  ;;  %v12679_v3 = vld [vmem:[#allocation178_spill] sm:$0xff] }
 0x830   : > { %5087 = vmatmul.msk.f32.gmra.mxu2 %vm4330_vm12, %v4295_v43  ;;  %5105 = vmatmul.msk.f32.gmra.mxu3 %vm4330_vm12, %v4313_v52  ;;  %v4156_v49 = vsel %vm4126_vm9, %v4091_v11, %v12659_v34  ;;  %v3963_v26 = vsel %vm3932_vm7, %v3898_v19, %v12669_v47  ;;  %v3973_v62 = vsel %vm3932_vm7, %v3908_v48, %v12670_v4  ;;  %v3727_v43 = vpop.permute.xlu1 %3726  ;;  %v12672_v52 = vld [vmem:[#allocation404_spill] sm:$0xff]  ;;  %v12685_v12 = vld [vmem:[#allocation343_spill] sm:$0xff]  ;;  %v12691_v20 = vld [vmem:[#allocation50_spill] sm:$0xff] }
 0x831   : > { %4802 = vxpose.xlu2.b32.cont [3/16] (narrow) %v4738_v31, 8  ;;  %v4221_v24 = vsel %vm4191_vm10, %v4156_v49, %v12661_v42  ;;  %v4027_v31 = vsel %vm273_vm0, %v3963_v26, %v12671_v21  ;;  %v4037_v8 = vsel %vm273_vm0, %v3973_v62, %v12672_v52  ;;  %v12680_v11 = vld [vmem:[#allocation48_spill] sm:$0xff]  ;;  %v4315_v49 = vsel %vm4256_vm13, %v9559_v15, %v3727_v43  ;;  %v12686_v15 = vld [vmem:[#allocation347_spill] sm:$0xff]  ;;  %v12694_v21 = vld [vmem:[#allocation182_spill] sm:$0xff] }
 0x832   : > { %v4286_v63 = vsel %vm4256_vm13, %v4221_v24, %v10364_v27  ;;  %v4092_v32 = vsel %vm4061_vm8, %v4027_v31, %v12673_v39  ;;  %v4102_v23 = vsel %vm4061_vm8, %v4037_v8, %v12674_v45  ;;  %v3834_v29 = vsel %vm3802_vm5, %v12680_v11, %v12679_v3  ;;  %v12684_v24 = vld [vmem:[#allocation307_spill] sm:$0xff]  ;;  %v12693_v26 = vld [vmem:[#allocation388_spill] sm:$0xff] }
 0x833   : > { %v4157_v9 = vsel %vm4126_vm9, %v4092_v32, %v12675_v51  ;;  %v4167_v55 = vsel %vm4126_vm9, %v4102_v23, %v12676_v5  ;;  %v3899_v42 = vsel %vm3867_vm6, %v3834_v29, %v12683_v7  ;;  %v12692_v48 = vld [vmem:[#allocation19_spill] sm:$0xff]  ;;  %v12695_v32 = vld [vmem:[#allocation205_spill] sm:$0xff]  ;;  %v12697_v51 = vld [vmem:[#allocation302_spill] sm:$0xff] }
 0x834   : > { %v4553_v28 = vpop.f32.mrf.mxu0  ;;  %v4222_v14 = vsel %vm4191_vm10, %v4157_v9, %v12677_v38  ;;  %v4232_v33 = vsel %vm4191_vm10, %v4167_v55, %v12678_v2  ;;  %v3964_v46 = vsel %vm3932_vm7, %v3899_v42, %v12685_v12  ;;  %v12696_v45 = vld [vmem:[#allocation115_spill] sm:$0xff]  ;;  %v12699_v55 = vld [vmem:[#allocation412_spill] sm:$0xff] }
 0x835   : > { %v4554_v58 = vadd.f32 %v10369_v60, %v4553_v28  ;;  %v3691_v27 = vpop.permute.xlu0 %3690  ;;  %v4287_v61 = vsel %vm4256_vm13, %v4222_v14, %v10420_v50  ;;  %v12682_v28 = vld [vmem:[#allocation104_spill] sm:$0xff]  ;;  %v3693_v50 = vpop.permute.xlu2 %3692  ;;  %v4028_v13 = vsel %vm273_vm0, %v3964_v46, %v12687_v56  ;;  %v3845_v23 = vsel %vm3802_vm5, %v12696_v45, %v12695_v32  ;;  %v12705_v42 = vld [vmem:[#allocation355_spill] sm:$0xff] }
 0x836   : > { %v4297_v34 = vsel %vm4256_vm13, %v4232_v33, %v3691_v27  ;;  %v3844_v41 = vsel %vm3802_vm5, %v12682_v28, %v12681_v17  ;;  %v3910_v9 = vsel %vm3867_vm6, %v3845_v23, %v12697_v51  ;;  %v12701_v33 = vld [vmem:[#allocation60_spill] sm:$0xff] }
 0x837   : > { %v4739_v44 = vmax.f32 %v4554_v58, 0.0  ;;  %5078 = vmatmul.msk.f32.gmra.mxu1 %vm4330_vm12, %v4286_v63  ;;  %v3909_v58 = vsel %vm3867_vm6, %v3844_v41, %v12684_v24  ;;  %v12703_v17 = vld [vmem:[#allocation108_spill] sm:$0xff] }
 0x838   : > { %5088 = vmatmul.msk.f32.gmra.mxu2 %vm4330_vm12, %v4296_v36  ;;  %5106 = vmatmul.msk.f32.gmra.mxu3 %vm4330_vm12, %v4314_v0  ;;  %v3974_v63 = vsel %vm3932_vm7, %v3909_v58, %v12686_v15  ;;  %v12689_v0 = vld [vmem:[#allocation455_spill] sm:$0xff]  ;;  %v3729_v27 = vpop.permute.xlu1 %3728  ;;  %v12704_v41 = vld [vmem:[#allocation300_spill] sm:$0xff] }
 0x839   : > { %4803 = vxpose.xlu2.b32.cont [4/16] (narrow) %v4739_v44, 8  ;;  %v12688_v44 = vld [vmem:[#allocation402_spill] sm:$0xff]  ;;  %v4093_v10 = vsel %vm4061_vm8, %v4028_v13, %v12689_v0  ;;  %v4316_v39 = vsel %vm4256_vm13, %v9540_v59, %v3729_v27  ;;  %v12700_v59 = vld [vmem:[#allocation469_spill] sm:$0xff]  ;;  %v12707_v58 = vld [vmem:[#allocation467_spill] sm:$0xff] }
 0x83a   : > { %v4038_v36 = vsel %vm273_vm0, %v3974_v63, %v12688_v44  ;;  %v4158_v19 = vsel %vm4126_vm9, %v4093_v10, %v12691_v20  ;;  %v12708_v15 = vld [vmem:[#allocation20_spill] sm:$0xff]  ;;  %v12709_v13 = vld [vmem:[#allocation213_spill] sm:$0xff]  ;;  %v12712_v20 = vld [vmem:[#allocation310_spill] sm:$0xff] }
 0x83b   : > { %v4103_v25 = vsel %vm4061_vm8, %v4038_v36, %v12690_v1  ;;  %v4223_v4 = vsel %vm4191_vm10, %v4158_v19, %v12693_v26  ;;  %v12710_v10 = vld [vmem:[#allocation197_spill] sm:$0xff]  ;;  %v12713_v27 = vld [vmem:[#allocation350_spill] sm:$0xff] }
 0x83c   : > { %v4556_v40 = vpop.f32.mrf.mxu0  ;;  %v4168_v47 = vsel %vm4126_vm9, %v4103_v25, %v12692_v48  ;;  %v4288_v43 = vsel %vm4256_vm13, %v4223_v4, %v10508_v16  ;;  %v12698_v16 = vld [vmem:[#allocation345_spill] sm:$0xff] }
 0x83d   : > { %v4557_v54 = vadd.f32 %v10369_v60, %v4556_v40  ;;  %v3695_v18 = vpop.permute.xlu0 %3694  ;;  %v4233_v31 = vsel %vm4191_vm10, %v4168_v47, %v12694_v21  ;;  %v3975_v40 = vsel %vm3932_vm7, %v3910_v9, %v12698_v16  ;;  %v3697_v5 = vpop.permute.xlu2 %3696  ;;  %v12711_v1 = vld [vmem:[#allocation121_spill] sm:$0xff] }
 0x83e   : > { %v4298_v8 = vsel %vm4256_vm13, %v4233_v31, %v3693_v50  ;;  %v4039_v38 = vsel %vm273_vm0, %v3975_v40, %v12699_v55  ;;  %v12706_v50 = vld [vmem:[#allocation407_spill] sm:$0xff]  ;;  %v3847_v25 = vsel %vm3802_vm5, %v12711_v1, %v12710_v10  ;;  %v12714_v47 = vld [vmem:[#allocation405_spill] sm:$0xff]  ;;  %v12716_v31 = vld [vmem:[#allocation92_spill] sm:$0xff] }
 0x83f   : > { %v4740_v30 = vmax.f32 %v4557_v54, 0.0  ;;  %5079 = vmatmul.msk.f32.gmra.mxu1 %vm4330_vm12, %v4287_v61  ;;  %v4104_v14 = vsel %vm4061_vm8, %v4039_v38, %v12700_v59  ;;  %v3912_v19 = vsel %vm3867_vm6, %v3847_v25, %v12712_v20 }
 0x840   : > { %5089 = vmatmul.msk.f32.gmra.mxu2 %vm4330_vm12, %v4297_v34  ;;  %5107 = vmatmul.msk.f32.gmra.mxu3 %vm4330_vm12, %v4315_v49  ;;  %v4169_v61 = vsel %vm4126_vm9, %v4104_v14, %v12701_v33  ;;  %v12702_v49 = vld [vmem:[#allocation200_spill] sm:$0xff]  ;;  %v3699_v48 = vpop.permute.xlu1 %3698 }
 0x841   : > { %4804 = vxpose.xlu2.b32.cont [5/16] (narrow) %v4740_v30, 8  ;;  %v4234_v11 = vsel %vm4191_vm10, %v4169_v61, %v9396_v57  ;;  %v3846_v28 = vsel %vm3802_vm5, %v12703_v17, %v12702_v49 }
 0x842   : > { %v4299_v30 = vsel %vm4256_vm13, %v4234_v11, %v3695_v18  ;;  %v3911_v7 = vsel %vm3867_vm6, %v3846_v28, %v12704_v41 }
 0x843   : > { %v3976_v57 = vsel %vm3932_vm7, %v3911_v7, %v12705_v42 }
 0x844   : > { %v4559_v6 = vpop.f32.mrf.mxu0  ;;  %v4040_v24 = vsel %vm273_vm0, %v3976_v57, %v12706_v50 }
 0x845   : > { %v4560_v62 = vadd.f32 %v10369_v60, %v4559_v6  ;;  %v3731_v54 = vpop.permute.xlu0 %3730  ;;  %v3733_v12 = vpop.permute.xlu2 %3732  ;;  %v3977_v6 = vsel %vm3932_vm7, %v3912_v19, %v12713_v27 }
 0x846   : > { %v4317_v34 = vsel %vm4256_vm13, %v9686_v35, %v3731_v54  ;;  %v4105_v35 = vsel %vm4061_vm8, %v4040_v24, %v12707_v58  ;;  %v4318_v0 = vsel %vm4256_vm13, %v9608_v37, %v3733_v12  ;;  %v4041_v26 = vsel %vm273_vm0, %v3977_v6, %v12714_v47  ;;  %v12715_v37 = vld [vmem:[#allocation475_spill] sm:$0xff] }
 0x847   : > { %v4741_v52 = vmax.f32 %v4560_v62, 0.0  ;;  %5080 = vmatmul.msk.f32.gmra.mxu1 %vm4330_vm12, %v4288_v43  ;;  %v4170_v63 = vsel %vm4126_vm9, %v4105_v35, %v12708_v15  ;;  %v4106_v4 = vsel %vm4061_vm8, %v4041_v26, %v12715_v37 }
 0x848   : > { %5090 = vmatmul.msk.f32.gmra.mxu2 %vm4330_vm12, %v4298_v8  ;;  %5108 = vmatmul.msk.f32.gmra.mxu3 %vm4330_vm12, %v4316_v39  ;;  %v4235_v18 = vsel %vm4191_vm10, %v4170_v63, %v12709_v13  ;;  %v4171_v43 = vsel %vm4126_vm9, %v4106_v4, %v12716_v31  ;;  %v12717_v8 = vld [vmem:[#allocation187_spill] sm:$0xff]  ;;  %v10696_v51 = vpop.f32.mrf.mxu3  ;;  %v3737_v9 = vpop.permute.xlu1 %3736 }
 0x849   : > { %4805 = vxpose.xlu2.b32.cont [6/16] (narrow) %v4741_v52, 8  ;;  %v4300_v36 = vsel %vm4256_vm13, %v4235_v18, %v3697_v5  ;;  %v4236_v39 = vsel %vm4191_vm10, %v4171_v43, %v12717_v8  ;;  %v4320_v55 = vsel %vm4256_vm13, %v9712_v22, %v3737_v9 }
 0x84a   : > { %v4301_v45 = vsel %vm4256_vm13, %v4236_v39, %v3699_v48 }
 0x84c   : > { %v4562_v2 = vpop.f32.mrf.mxu0 }
 0x84d   : > { %v4563_v3 = vadd.f32 %v10369_v60, %v4562_v2  ;;  %v3735_v62 = vpop.permute.xlu0 %3734 }
 0x84e   : > { %v4319_v23 = vsel %vm4256_vm13, %v9594_v53, %v3735_v62 }
 0x84f   : > { %v4742_v29 = vmax.f32 %v4563_v3, 0.0 }
 0x850   : > { %5091 = vmatmul.msk.f32.gmra.mxu2 %vm4330_vm12, %v4299_v30  ;;  %5109 = vmatmul.msk.f32.gmra.mxu3 %vm4330_vm12, %v4317_v34  ;;  %v10704_v38 = vpop.f32.mrf.mxu3 }
 0x851   : > { %4806 = vxpose.xlu2.b32.cont [7/16] (narrow) %v4742_v29, 8 }
 0x854   : > { %v4565_v46 = vpop.f32.mrf.mxu0  ;;  %v4595_v34 = vpop.f32.mrf.mxu1 }
 0x855   : > { %v4566_v56 = vadd.f32 %v10369_v60, %v4565_v46  ;;  %v4596_v37 = vadd.f32 %v10369_v60, %v4595_v34 }
 0x857   : > { %v4743_v44 = vmax.f32 %v4566_v56, 0.0 }
 0x858   : > { %5092 = vmatmul.msk.f32.gmra.mxu2 %vm4330_vm12, %v4300_v36  ;;  %5110 = vmatmul.msk.f32.gmra.mxu3 %vm4330_vm12, %v4318_v0  ;;  %v10707_v54 = vpop.f32.mrf.mxu3 }
 0x859   : > { %4807 = vxpose.xlu2.b32.cont [8/16] (narrow) %v4743_v44, 8 }
 0x85c   : > { %v4568_v21 = vpop.f32.mrf.mxu0  ;;  %v4598_v35 = vpop.f32.mrf.mxu1 }
 0x85d   : > { %v4569_v52 = vadd.f32 %v10369_v60, %v4568_v21  ;;  %v4599_v39 = vadd.f32 %v10369_v60, %v4598_v35 }
 0x85f   : > { %v4744_v32 = vmax.f32 %v4569_v52, 0.0  ;;  %v4753_v52 = vmax.f32 %v4596_v37, 0.0 }
 0x860   : > { %5093 = vmatmul.msk.f32.gmra.mxu2 %vm4330_vm12, %v4301_v45  ;;  %5111 = vmatmul.msk.f32.gmra.mxu3 %vm4330_vm12, %v4319_v23 }
 0x861   : > { %4808 = vxpose.xlu2.b32.cont [9/16] (narrow) %v4744_v32, 8 }
 0x863   : > { %v4688_v3 = vpop.f32.mrf.mxu3 }
 0x864   : > { %v4571_v16 = vpop.f32.mrf.mxu0  ;;  %v4601_v0 = vpop.f32.mrf.mxu1  ;;  %v4689_v1 = vadd.f32 %v10369_v60, %v4688_v3 }
 0x865   : > { %v4572_v40 = vadd.f32 %v10369_v60, %v4571_v16 }
 0x866   : > { %v4784_v48 = vmax.f32 %v4689_v1, 0.0 }
 0x867   : > { %v4745_v5 = vmax.f32 %v4572_v40, 0.0 }
 0x868   : > { %5112 = vmatmul.msk.f32.gmra.mxu3 %vm4330_vm12, %v4320_v55 }
 0x869   : > { %4809 = vxpose.xlu2.b32.cont [10/16] (narrow) %v4745_v5, 8  ;;  %v4754_v5 = vmax.f32 %v4599_v39, 0.0 }
 0x86b   : > { %v4691_v41 = vpop.f32.mrf.mxu3 }
 0x86c   : > { %v4574_v53 = vpop.f32.mrf.mxu0  ;;  %v4604_v26 = vpop.f32.mrf.mxu1  ;;  %v4692_v4 = vadd.f32 %v10369_v60, %v4691_v41 }
 0x86d   : > { %v4575_v59 = vadd.f32 %v10369_v60, %v4574_v53  ;;  %v4602_v53 = vadd.f32 %v10369_v60, %v4601_v0 }
 0x86e   : > { %v4785_v8 = vmax.f32 %v4692_v4, 0.0 }
 0x86f   : > { %v4746_v14 = vmax.f32 %v4575_v59, 0.0 }
 0x871   : > { %4810 = vxpose.xlu2.b32.cont [11/16] (narrow) %v4746_v14, 8 }
 0x873   : > { %v4694_v15 = vpop.f32.mrf.mxu3 }
 0x874   : > { %v4577_v2 = vpop.f32.mrf.mxu0  ;;  %v4695_v32 = vadd.f32 %v10369_v60, %v4694_v15  ;;  %v4607_v23 = vpop.f32.mrf.mxu1 }
 0x875   : > { %v4578_v33 = vadd.f32 %v10369_v60, %v4577_v2 }
 0x876   : > { %v4786_v55 = vmax.f32 %v4695_v32, 0.0 }
 0x877   : > { %v4747_v61 = vmax.f32 %v4578_v33, 0.0 }
 0x879   : > { %4811 = vxpose.xlu2.b32.cont [12/16] (narrow) %v4747_v61, 8 }
 0x87b   : > { %v4697_v10 = vpop.f32.mrf.mxu3 }
 0x87c   : > { %v4580_v11 = vpop.f32.mrf.mxu0  ;;  %v4698_v59 = vadd.f32 %v10369_v60, %v4697_v10  ;;  %v4610_v33 = vpop.f32.mrf.mxu1 }
 0x87d   : > { %v4581_v22 = vadd.f32 %v10369_v60, %v4580_v11  ;;  %v4755_v11 = vmax.f32 %v4602_v53, 0.0 }
 0x87f   : > { %v4748_v29 = vmax.f32 %v4581_v22, 0.0  ;;  %v4787_v22 = vmax.f32 %v4698_v59, 0.0  ;;  %v4680_v59 = vadd.f32 %v10369_v60, %v10696_v51 }
 0x881   : > { %4812 = vxpose.xlu2.b32.cont [13/16] (narrow) %v4748_v29, 8  ;;  %v4605_v29 = vadd.f32 %v10369_v60, %v4604_v26 }
 0x883   : > { %v4640_v30 = vpop.f32.mrf.mxu2  ;;  %v4700_v21 = vpop.f32.mrf.mxu3 }
 0x884   : > { %v4641_v49 = vadd.f32 %v10369_v60, %v4640_v30  ;;  %v4583_v17 = vpop.f32.mrf.mxu0  ;;  %v4701_v30 = vadd.f32 %v10369_v60, %v4700_v21 }
 0x885   : > { %v4584_v28 = vadd.f32 %v10369_v60, %v4583_v17 }
 0x886   : > { %v4768_v7 = vmax.f32 %v4641_v49, 0.0  ;;  %v4788_v41 = vmax.f32 %v4701_v30, 0.0 }
 0x887   : > { %v4749_v42 = vmax.f32 %v4584_v28, 0.0  ;;  %v4756_v28 = vmax.f32 %v4605_v29, 0.0 }
 0x888   : > { %4864 = vxpose.xlu1.b32.start [1/16] (narrow) %v4768_v7, 8  ;;  %v4613_v7 = vpop.f32.mrf.mxu1 }
 0x889   : > { %4813 = vxpose.xlu2.b32.cont [14/16] (narrow) %v4749_v42, 8  ;;  %v4614_v1 = vadd.f32 %v10369_v60, %v4613_v7 }
 0x88b   : > { %v4643_v57 = vpop.f32.mrf.mxu2 }
 0x88c   : > { %v4644_v50 = vadd.f32 %v10369_v60, %v4643_v57  ;;  %v4586_v24 = vpop.f32.mrf.mxu0  ;;  %v4608_v57 = vadd.f32 %v10369_v60, %v4607_v23 }
 0x88d   : > { %v4587_v58 = vadd.f32 %v10369_v60, %v4586_v24 }
 0x88e   : > { %v4769_v12 = vmax.f32 %v4644_v50, 0.0 }
 0x88f   : > { %v4750_v46 = vmax.f32 %v4587_v58, 0.0 }
 0x890   : > { %4865 = vxpose.xlu1.b32.cont [2/16] (narrow) %v4769_v12, 8  ;;  %v4757_v12 = vmax.f32 %v4608_v57, 0.0  ;;  %v4616_v15 = vpop.f32.mrf.mxu1 }
 0x891   : > { %4814 = vxpose.xlu2.b32.cont [15/16] (narrow) %v4750_v46, 8  ;;  %v4617_v37 = vadd.f32 %v10369_v60, %v4616_v15 }
 0x893   : > { %v4646_v63 = vpop.f32.mrf.mxu2 }
 0x894   : > { %v4647_v56 = vadd.f32 %v10369_v60, %v4646_v63  ;;  %v4589_v13 = vpop.f32.mrf.mxu0 }
 0x895   : > { %v4590_v18 = vadd.f32 %v10369_v60, %v4589_v13 }
 0x896   : > { %v4770_v44 = vmax.f32 %v4647_v56, 0.0  ;;  %v4611_v56 = vadd.f32 %v10369_v60, %v4610_v33  ;;  %v4781_v33 = vmax.f32 %v4680_v59, 0.0 }
 0x897   : > { %v4751_v36 = vmax.f32 %v4590_v18, 0.0 }
 0x898   : > { %4866 = vxpose.xlu1.b32.cont [3/16] (narrow) %v4770_v44, 8  ;;  %v4758_v0 = vmax.f32 %v4611_v56, 0.0 }
 0x899   : > { %4815 = vxpose.xlu2.b32.end [16/16] (narrow) %v4751_v36, 8 }
 0x89b   : > { %v4649_v25 = vpop.f32.mrf.mxu2  ;;  %v4703_v9 = vpop.f32.mrf.mxu3 }
 0x89c   : > { %v4650_v20 = vadd.f32 %v10369_v60, %v4649_v25  ;;  %v4592_v19 = vpop.f32.mrf.mxu0  ;;  %v4704_v50 = vadd.f32 %v10369_v60, %v4703_v9 }
 0x89d   : > { %v4593_v27 = vadd.f32 %v10369_v60, %v4592_v19  ;;  %v4619_v19 = vpop.f32.mrf.mxu1 }
 0x89e   : > { %v4771_v6 = vmax.f32 %v4650_v20, 0.0  ;;  %v4789_v46 = vmax.f32 %v4704_v50, 0.0  ;;  %v4620_v32 = vadd.f32 %v10369_v60, %v4619_v19 }
 0x89f   : > { %v4752_v47 = vmax.f32 %v4593_v27, 0.0 }
 0x8a0   : > { %4867 = vxpose.xlu1.b32.cont [4/16] (narrow) %v4771_v6, 8 }
 0x8a1   : > { %4832 = vxpose.xlu0.b32.start [1/16] (narrow) %v4752_v47, 8  ;;  %4896 = vxpose.xlu2.b32.start [1/16] (narrow) %v4784_v48, 8  ;;  %v4759_v47 = vmax.f32 %v4614_v1, 0.0 }
 0x8a3   : > { %v4652_v62 = vpop.f32.mrf.mxu2  ;;  %v4706_v61 = vpop.f32.mrf.mxu3 }
 0x8a4   : > { %v4653_v31 = vadd.f32 %v10369_v60, %v4652_v62  ;;  %v4707_v13 = vadd.f32 %v10369_v60, %v4706_v61 }
 0x8a6   : > { %v4772_v43 = vmax.f32 %v4653_v31, 0.0  ;;  %v4790_v10 = vmax.f32 %v4707_v13, 0.0  ;;  %v4622_v31 = vpop.f32.mrf.mxu1 }
 0x8a8   : > { %4868 = vxpose.xlu1.b32.cont [5/16] (narrow) %v4772_v43, 8 }
 0x8a9   : > { %4833 = vxpose.xlu0.b32.cont [2/16] (narrow) %v4753_v52, 8  ;;  %4897 = vxpose.xlu2.b32.cont [2/16] (narrow) %v4785_v8, 8  ;;  %v4760_v8 = vmax.f32 %v4617_v37, 0.0 }
 0x8ab   : > { %v4655_v45 = vpop.f32.mrf.mxu2  ;;  %v4709_v42 = vpop.f32.mrf.mxu3 }
 0x8ac   : > { %v4656_v16 = vadd.f32 %v10369_v60, %v4655_v45  ;;  %v4710_v25 = vadd.f32 %v10369_v60, %v4709_v42 }
 0x8ae   : > { %v4773_v40 = vmax.f32 %v4656_v16, 0.0  ;;  %v4791_v26 = vmax.f32 %v4710_v25, 0.0 }
 0x8b0   : > { %4869 = vxpose.xlu1.b32.cont [6/16] (narrow) %v4773_v40, 8  ;;  %v4761_v40 = vmax.f32 %v4620_v32, 0.0 }
 0x8b1   : > { %4834 = vxpose.xlu0.b32.cont [3/16] (narrow) %v4754_v5, 8  ;;  %4898 = vxpose.xlu2.b32.cont [3/16] (narrow) %v4786_v55, 8  ;;  %v4625_v55 = vpop.f32.mrf.mxu1 }
 0x8b2   : > { %v4626_v51 = vadd.f32 %v10369_v60, %v4625_v55 }
 0x8b3   : > { %v4658_v14 = vpop.f32.mrf.mxu2  ;;  %v4712_v63 = vpop.f32.mrf.mxu3 }
 0x8b4   : > { %v4659_v2 = vadd.f32 %v10369_v60, %v4658_v14  ;;  %v4713_v4 = vadd.f32 %v10369_v60, %v4712_v63  ;;  %v4623_v14 = vadd.f32 %v10369_v60, %v4622_v31 }
 0x8b6   : > { %v4774_v3 = vmax.f32 %v4659_v2, 0.0  ;;  %v4792_v39 = vmax.f32 %v4713_v4, 0.0  ;;  %v4762_v61 = vmax.f32 %v4623_v14, 0.0 }
 0x8b8   : > { %4870 = vxpose.xlu1.b32.cont [7/16] (narrow) %v4774_v3, 8 }
 0x8b9   : > { %4835 = vxpose.xlu0.b32.cont [4/16] (narrow) %v4755_v11, 8  ;;  %4899 = vxpose.xlu2.b32.cont [4/16] (narrow) %v4787_v22, 8  ;;  %v4683_v11 = vadd.f32 %v10369_v60, %v10704_v38  ;;  %v4628_v22 = vpop.f32.mrf.mxu1 }
 0x8ba   : > { %v4816_v38 = vpop.trf.xlu2 }
 0x8bb   : > { %v4661_v34 = vpop.f32.mrf.mxu2  ;;  %v4715_v27 = vpop.f32.mrf.mxu3  ;;  %4928 = vst [vmem:[%s10760_s17] sm:$0xff] %v4816_v38 }
 0x8bc   : > { %v4662_v49 = vadd.f32 %v10369_v60, %v4661_v34  ;;  %v4716_v45 = vadd.f32 %v10369_v60, %v4715_v27  ;;  %v4782_v34 = vmax.f32 %v4683_v11, 0.0 }
 0x8be   : > { %v4775_v17 = vmax.f32 %v4662_v49, 0.0  ;;  %v4793_v5 = vmax.f32 %v4716_v45, 0.0  ;;  %v4763_v49 = vmax.f32 %v4626_v51, 0.0 }
 0x8c0   : > { %4871 = vxpose.xlu1.b32.cont [8/16] (narrow) %v4775_v17, 8 }
 0x8c1   : > { %4836 = vxpose.xlu0.b32.cont [5/16] (narrow) %v4756_v28, 8  ;;  %4900 = vxpose.xlu2.b32.cont [5/16] (narrow) %v4788_v41, 8  ;;  %v4686_v28 = vadd.f32 %v10369_v60, %v10707_v54  ;;  %v4629_v41 = vadd.f32 %v10369_v60, %v4628_v22  ;;  %v4631_v42 = vpop.f32.mrf.mxu1 }
 0x8c3   : > { %v4664_v24 = vpop.f32.mrf.mxu2  ;;  %v4718_v43 = vpop.f32.mrf.mxu3  ;;  %v4783_v50 = vmax.f32 %v4686_v28, 0.0 }
 0x8c4   : > { %v4665_v58 = vadd.f32 %v10369_v60, %v4664_v24  ;;  %v4719_v2 = vadd.f32 %v10369_v60, %v4718_v43  ;;  %v4764_v24 = vmax.f32 %v4629_v41, 0.0 }
 0x8c6   : > { %v4776_v35 = vmax.f32 %v4665_v58, 0.0  ;;  %v4794_v3 = vmax.f32 %v4719_v2, 0.0 }
 0x8c8   : > { %4872 = vxpose.xlu1.b32.cont [9/16] (narrow) %v4776_v35, 8  ;;  %v4632_v35 = vadd.f32 %v10369_v60, %v4631_v42 }
 0x8c9   : > { %4837 = vxpose.xlu0.b32.cont [6/16] (narrow) %v4757_v12, 8  ;;  %4901 = vxpose.xlu2.b32.cont [6/16] (narrow) %v4789_v46, 8  ;;  %v4634_v46 = vpop.f32.mrf.mxu1 }
 0x8ca   : > { %v4765_v54 = vmax.f32 %v4632_v35, 0.0  ;;  %v4635_v56 = vadd.f32 %v10369_v60, %v4634_v46 }
 0x8cb   : > { %v4667_v18 = vpop.f32.mrf.mxu2  ;;  %v4721_v53 = vpop.f32.mrf.mxu3 }
 0x8cc   : > { %v4668_v44 = vadd.f32 %v10369_v60, %v4667_v18  ;;  %v4722_v30 = vadd.f32 %v10369_v60, %v4721_v53  ;;  %v4766_v18 = vmax.f32 %v4635_v56, 0.0 }
 0x8ce   : > { %v4777_v36 = vmax.f32 %v4668_v44, 0.0  ;;  %v4795_v17 = vmax.f32 %v4722_v30, 0.0 }
 0x8d0   : > { %4873 = vxpose.xlu1.b32.cont [10/16] (narrow) %v4777_v36, 8 }
 0x8d1   : > { %4838 = vxpose.xlu0.b32.cont [7/16] (narrow) %v4758_v0, 8  ;;  %4902 = vxpose.xlu2.b32.cont [7/16] (narrow) %v4790_v10, 8  ;;  %v4637_v36 = vpop.f32.mrf.mxu1 }
 0x8d2   : > { %v4638_v10 = vadd.f32 %v10369_v60, %v4637_v36 }
 0x8d3   : > { %v4670_v20 = vpop.f32.mrf.mxu2  ;;  %v4724_v29 = vpop.f32.mrf.mxu3 }
 0x8d4   : > { %v4671_v6 = vadd.f32 %v10369_v60, %v4670_v20  ;;  %v4725_v7 = vadd.f32 %v10369_v60, %v4724_v29  ;;  %v4767_v25 = vmax.f32 %v4638_v10, 0.0 }
 0x8d6   : > { %v4778_v48 = vmax.f32 %v4671_v6, 0.0  ;;  %v4796_v58 = vmax.f32 %v4725_v7, 0.0 }
 0x8d8   : > { %4874 = vxpose.xlu1.b32.cont [11/16] (narrow) %v4778_v48, 8 }
 0x8d9   : > { %4839 = vxpose.xlu0.b32.cont [8/16] (narrow) %v4759_v47, 8  ;;  %4903 = vxpose.xlu2.b32.cont [8/16] (narrow) %v4791_v26, 8 }
 0x8db   : > { %v4673_v62 = vpop.f32.mrf.mxu2  ;;  %v4727_v57 = vpop.f32.mrf.mxu3 }
 0x8dc   : > { %v4674_v21 = vadd.f32 %v10369_v60, %v4673_v62  ;;  %v4728_v12 = vadd.f32 %v10369_v60, %v4727_v57 }
 0x8de   : > { %v4779_v52 = vmax.f32 %v4674_v21, 0.0  ;;  %v4797_v63 = vmax.f32 %v4728_v12, 0.0 }
 0x8e0   : > { %4875 = vxpose.xlu1.b32.cont [12/16] (narrow) %v4779_v52, 8 }
 0x8e1   : > { %4840 = vxpose.xlu0.b32.cont [9/16] (narrow) %v4760_v8, 8  ;;  %4904 = vxpose.xlu2.b32.cont [9/16] (narrow) %v4792_v39, 8 }
 0x8e3   : > { %v4676_v23 = vpop.f32.mrf.mxu2  ;;  %v4730_v15 = vpop.f32.mrf.mxu3 }
 0x8e4   : > { %v4677_v9 = vadd.f32 %v10369_v60, %v4676_v23  ;;  %v4731_v13 = vadd.f32 %v10369_v60, %v4730_v15 }
 0x8e6   : > { %v4780_v16 = vmax.f32 %v4677_v9, 0.0  ;;  %v4798_v44 = vmax.f32 %v4731_v13, 0.0 }
 0x8e8   : > { %4876 = vxpose.xlu1.b32.cont [13/16] (narrow) %v4780_v16, 8 }
 0x8e9   : > { %4841 = vxpose.xlu0.b32.cont [10/16] (narrow) %v4761_v40, 8  ;;  %4905 = vxpose.xlu2.b32.cont [10/16] (narrow) %v4793_v5, 8 }
 0x8eb   : > { %v4733_v0 = vpop.f32.mrf.mxu3 }
 0x8ec   : > { %v4734_v1 = vadd.f32 %v10369_v60, %v4733_v0 }
 0x8ee   : > { %v4799_v20 = vmax.f32 %v4734_v1, 0.0 }
 0x8f0   : > { %4877 = vxpose.xlu1.b32.cont [14/16] (narrow) %v4781_v33, 8 }
 0x8f1   : > { %4842 = vxpose.xlu0.b32.cont [11/16] (narrow) %v4762_v61, 8  ;;  %4906 = vxpose.xlu2.b32.cont [11/16] (narrow) %v4794_v3, 8 }
 0x8f8   : > { %4878 = vxpose.xlu1.b32.cont [15/16] (narrow) %v4782_v34, 8 }
 0x8f9   : > { %4843 = vxpose.xlu0.b32.cont [12/16] (narrow) %v4763_v49, 8  ;;  %4907 = vxpose.xlu2.b32.cont [12/16] (narrow) %v4795_v17, 8 }
 0x900   : > { %4879 = vxpose.xlu1.b32.end [16/16] (narrow) %v4783_v50, 8 }
 0x901   : > { %4844 = vxpose.xlu0.b32.cont [13/16] (narrow) %v4764_v24, 8  ;;  %4908 = vxpose.xlu2.b32.cont [13/16] (narrow) %v4796_v58, 8 }
 0x909   : > { %4845 = vxpose.xlu0.b32.cont [14/16] (narrow) %v4765_v54, 8  ;;  %4909 = vxpose.xlu2.b32.cont [14/16] (narrow) %v4797_v63, 8 }
 0x911   : > { %4846 = vxpose.xlu0.b32.cont [15/16] (narrow) %v4766_v18, 8  ;;  %4910 = vxpose.xlu2.b32.cont [15/16] (narrow) %v4798_v44, 8 }
 0x919   : > { %4847 = vxpose.xlu0.b32.end [16/16] (narrow) %v4767_v25, 8  ;;  %4911 = vxpose.xlu2.b32.end [16/16] (narrow) %v4799_v20, 8 }
 0x92c   : > { %v4880_v19 = vpop.trf.xlu1 }
 0x92d   : > { %4930 = vst [vmem:[%s10760_s17 + $0x10] sm:$0xff] %v4880_v19 }
 0x93a   : > { %v4912_v27 = vpop.trf.xlu2 }
 0x93b   : > { %4931 = vst [vmem:[%s10760_s17 + $0x18] sm:$0xff] %v4912_v27 }
 0x945   : > { %v4848_v6 = vpop.trf.xlu0 }
 0x946   : > { %4929 = vst [vmem:[%s10760_s17 + $0x8] sm:$0xff] %v4848_v6 }
 0x947 PF: > { %s15_s22 = sadd.s32 1, %s5244_s22   ;;  %s12718_s18 = smov %s5236_s20 }
 0x948   : > { %p12_p8 = scmp.ge.s32.totalorder %s15_s22, 6   ;;  %s12719_s19 = smov %s5240_s21 }
 0x949   : > { %s12720_s20 = smov %s12723_s23  ;;  %s12721_s21 = smov %s12727_s24 }
 0x94a   :  { %14 = sbr.rel (!%p12_p8) target bundleno = 3 (0x3), region = 73 }

</bundles_post_ra>
